<compile_context>
chip_gen: v7x
topology: tpu7x:2x2x1
jax: 0.10.0
libtpu: 0.0.40
codegen_flags: <defaults>
</compile_context>

<pallas_src>
import jax
import jax.numpy as jnp
from jax.experimental import pallas as pl
from jax.experimental.pallas import tpu as pltpu


# --------------------------- fused forward kernel ---------------------------

def dnn3_kernel(x16_ref, w1_ref, b1_ref, w2_ref, b2_ref,
                wf1_ref, bf1_ref, wf2_ref, bf2_ref, o_ref, pad_ref):
    # x16_ref : (49*TB, 16) bf16  pool-phase encoded input; row=(h*7+w)*TB+b,
    #                             col=r*4+c holds xpad[b, 2h+r, 2w+c]
    # w1_ref  : (16, 64)    bf16  conv1 weights folded per 2x2 pool phase
    # b1_ref  : (1, 16)     f32
    # w2_ref  : (144, 32)   bf16  conv2 weights, rows = (kh*3+kw)*16 + cin
    # b2_ref  : (1, 32)     f32
    # wf1_ref : (1568, 128) bf16  fc1 weights, rows = (h*7+w)*32 + c
    # bf1_ref : (1, 128)    f32
    # wf2_ref : (128, 10)   bf16
    # bf2_ref : (1, 10)     f32
    # o_ref   : (TB, 10)    f32
    # pad_ref : (101*TB,16) bf16  VMEM scratch: zero halo-padded 9x9 pooled map
    TB = o_ref.shape[0]

    # ---- conv1 + bias + ReLU + 2x2/2 max-pool: one matmul + lane-group max --
    y1 = jnp.dot(x16_ref[...], w1_ref[...],
                 preferred_element_type=jnp.float32)                 # (49TB,64)
    m = jnp.maximum(jnp.maximum(y1[:, 0:16], y1[:, 16:32]),
                    jnp.maximum(y1[:, 32:48], y1[:, 48:64]))
    pooled = jnp.maximum(m + b1_ref[...], 0.0).astype(jnp.bfloat16)  # (49TB,16)

    # ---- scatter pooled into a zero halo-padded 9x9 layout (plus 10*TB
    #      guard row-blocks on each end) so every conv2 tap is an aligned
    #      static slice: no masks, no shifts, no concatenates. ----
    pad_ref[...] = jnp.zeros_like(pad_ref)
    for h in range(7):
        pad_ref[(9 * h + 20) * TB:(9 * h + 27) * TB, :] = \
            pooled[h * 7 * TB:(h + 1) * 7 * TB, :]

    # ---- conv2 (3x3, pad 1) + bias + ReLU: 9 accumulated matmuls over the
    #      padded 9x9 grid (halo output rows are garbage, never read). ----
    y2 = None
    for kh in range(3):
        for kw in range(3):
            tap = pad_ref[(9 * kh + kw) * TB:(9 * kh + kw + 81) * TB, :]
            w2k = w2_ref[(kh * 3 + kw) * 16:(kh * 3 + kw + 1) * 16, :]
            part = jnp.dot(tap, w2k, preferred_element_type=jnp.float32)
            y2 = part if y2 is None else y2 + part
    y2 = jnp.maximum(y2 + b2_ref[...], 0.0).astype(jnp.bfloat16)     # (81TB,32)

    # ---- flatten (NCHW order via wf1 row permutation) + fc1 + ReLU as 49
    #      accumulated (TB,32)@(32,128) matmuls -- no lane concatenates. ----
    acc = None
    for h in range(7):
        for w in range(7):
            blk = y2[((h + 1) * 9 + w + 1) * TB:((h + 1) * 9 + w + 2) * TB, :]
            wk = wf1_ref[(h * 7 + w) * 32:(h * 7 + w + 1) * 32, :]
            part = jnp.dot(blk, wk, preferred_element_type=jnp.float32)
            acc = part if acc is None else acc + part
    hid = jnp.maximum(acc + bf1_ref[...], 0.0).astype(jnp.bfloat16)  # (TB,128)

    # ---- fc2 ----
    out = jnp.dot(hid, wf2_ref[...], preferred_element_type=jnp.float32)
    o_ref[...] = out + bf2_ref[...]                                  # (TB,10)


# ------------------------------ forward wrapper ------------------------------

def _ceil_to(a, m):
    return -(-a // m) * m


def dnn3_forward(x, params, batch_tile=128):
    w1, b1, w2, b2, wf1, bf1, wf2, bf2 = params
    x = x.reshape(-1, 14, 14).astype(jnp.float32)
    B = x.shape[0]

    # -- batch tiling: TB in [8, batch_tile], keep >= 2 grid steps when the
    #    batch allows it (v7x has 2 TensorCores on the parallel grid axis). --
    Bp8 = _ceil_to(B, 8)
    T = max(1, -(-Bp8 // batch_tile))
    if T == 1 and Bp8 >= 16:
        T = 2
    TB = _ceil_to(-(-Bp8 // T), 8)
    T = -(-Bp8 // TB)
    Bp = T * TB
    if Bp != B:
        x = jnp.pad(x, ((0, Bp - B), (0, 0), (0, 0)))

    # -- input prep: pad to 16x16, encode the 4x4 neighbourhood of each 2x2
    #    pool window as 16 lanes (bf16 -> half the input DMA bytes); rows
    #    ordered (tile, h, w, sample-in-tile). --
    xp = jnp.pad(x, ((0, 0), (1, 1), (1, 1)))                        # (Bp,16,16)
    cols = [xp[:, r::2, c::2][:, :7, :7] for r in range(4) for c in range(4)]
    x16 = jnp.stack(cols, axis=-1)                                   # (Bp,7,7,16)
    x16 = x16.reshape(T, TB, 7, 7, 16).transpose(0, 2, 3, 1, 4)
    x16 = x16.reshape(T * 49 * TB, 16).astype(jnp.bfloat16)

    # -- conv1 weights folded with the pool-phase encoding: (16, 4*16) --
    w1f = w1.reshape(16, 9)                                          # (oc, kh*3+kw)
    wcat = jnp.zeros((4, 16, 16), jnp.float32)
    for g, (dh, dw) in enumerate(((0, 0), (0, 1), (1, 0), (1, 1))):
        for kh in range(3):
            for kw in range(3):
                wcat = wcat.at[g, (dh + kh) * 4 + (dw + kw), :].set(
                    w1f[:, kh * 3 + kw])
    w1r = jnp.concatenate([wcat[0], wcat[1], wcat[2], wcat[3]], axis=1)  # (16,64)

    # -- remaining weight-layout glue (weights only, host side) --
    w2r = jnp.transpose(w2, (2, 3, 1, 0)).reshape(144, 32)           # (kh,kw,cin)->oc
    wf1r = jnp.transpose(wf1.T.reshape(32, 49, 128), (1, 0, 2)).reshape(1568, 128)
    wf2r = wf2.T                                                     # (128, 10)

    N = 49 * TB
    out = pl.pallas_call(
        dnn3_kernel,
        out_shape=jax.ShapeDtypeStruct((Bp, 10), jnp.float32),
        grid=(T,),
        in_specs=[
            pl.BlockSpec((N, 16), lambda i: (i, 0)),        # x16 (batch tiled)
            pl.BlockSpec((16, 64), lambda i: (0, 0)),       # conv1 weights
            pl.BlockSpec((1, 16), lambda i: (0, 0)),        # b1
            pl.BlockSpec((144, 32), lambda i: (0, 0)),      # conv2 weights
            pl.BlockSpec((1, 32), lambda i: (0, 0)),        # b2
            pl.BlockSpec((1568, 128), lambda i: (0, 0)),    # fc1 weights
            pl.BlockSpec((1, 128), lambda i: (0, 0)),       # bf1
            pl.BlockSpec((128, 10), lambda i: (0, 0)),      # fc2 weights
            pl.BlockSpec((1, 10), lambda i: (0, 0)),        # bf2
        ],
        out_specs=pl.BlockSpec((TB, 10), lambda i: (i, 0)),
        scratch_shapes=[pltpu.VMEM((101 * TB, 16), jnp.bfloat16)],
        compiler_params=pltpu.CompilerParams(
            dimension_semantics=("parallel",),
            vmem_limit_bytes=48 * 1024 * 1024),
    )(x16, w1r.astype(jnp.bfloat16), b1.reshape(1, 16),
      w2r.astype(jnp.bfloat16), b2.reshape(1, 32),
      wf1r.astype(jnp.bfloat16), bf1.reshape(1, 128),
      wf2r.astype(jnp.bfloat16), bf2.reshape(1, 10))
    return out[:B]


# ----------------------------- reference (JAX) -----------------------------

def dnn3_reference(x, params):
    w1, b1, w2, b2, wf1, bf1, wf2, bf2 = params
    x = x.reshape(-1, 1, 14, 14).astype(jnp.float32)
    B = x.shape[0]
    y = jax.lax.conv_general_dilated(x, w1, (1, 1), ((1, 1), (1, 1)),
                                     dimension_numbers=("NCHW", "OIHW", "NCHW"))
    y = jnp.maximum(y + b1[None, :, None, None], 0.0)
    y = y.reshape(B, 16, 7, 2, 7, 2).max(axis=(3, 5))          # maxpool 2x2/2
    y = jax.lax.conv_general_dilated(y, w2, (1, 1), ((1, 1), (1, 1)),
                                     dimension_numbers=("NCHW", "OIHW", "NCHW"))
    y = jnp.maximum(y + b2[None, :, None, None], 0.0)
    y = y.reshape(B, 1568)
    y = jnp.maximum(y @ wf1.T + bf1, 0.0)
    return y @ wf2.T + bf2


# ------------------------------- parameters --------------------------------

def init_params(key):
    ks = jax.random.split(key, 8)
    w1 = jax.random.normal(ks[0], (16, 1, 3, 3), jnp.float32) * 0.20
    b1 = jax.random.normal(ks[1], (16,), jnp.float32) * 0.05
    w2 = jax.random.normal(ks[2], (32, 16, 3, 3), jnp.float32) * 0.05
    b2 = jax.random.normal(ks[3], (32,), jnp.float32) * 0.05
    wf1 = jax.random.normal(ks[4], (128, 1568), jnp.float32) * 0.02
    bf1 = jax.random.normal(ks[5], (128,), jnp.float32) * 0.05
    wf2 = jax.random.normal(ks[6], (10, 128), jnp.float32) * 0.05
    bf2 = jax.random.normal(ks[7], (10,), jnp.float32) * 0.05
    return (w1, b1, w2, b2, wf1, bf1, wf2, bf2)


if __name__ == "__main__":
    key = jax.random.PRNGKey(0)
    kx, kp = jax.random.split(key)
    x = jax.random.normal(kx, (2, 1, 14, 14), jnp.float32)
    params = init_params(kp)

    out = jax.jit(dnn3_forward)(x, params)
    out = jax.block_until_ready(out)

    ref = dnn3_reference(x, params)
    assert out.shape == (2, 10), out.shape
    assert jnp.allclose(out, ref, rtol=3e-2, atol=3e-2), (out, ref)
    print("KERNEL_OK")
</pallas_src>

<mosaic_0001>
module attributes {stable_mosaic.version = 11 : i64} {
  func.func @dnn3_kernel(%arg0: i32, %arg1: memref<392x16xbf16, #tpu.memory_space<vmem>>, %arg2: memref<16x64xbf16, #tpu.memory_space<vmem>>, %arg3: memref<1x16xf32, #tpu.memory_space<vmem>>, %arg4: memref<144x32xbf16, #tpu.memory_space<vmem>>, %arg5: memref<1x32xf32, #tpu.memory_space<vmem>>, %arg6: memref<1568x128xbf16, #tpu.memory_space<vmem>>, %arg7: memref<1x128xf32, #tpu.memory_space<vmem>>, %arg8: memref<128x10xbf16, #tpu.memory_space<vmem>>, %arg9: memref<1x10xf32, #tpu.memory_space<vmem>>, %arg10: memref<8x10xf32, #tpu.memory_space<vmem>>, %arg11: memref<808x16xbf16, #tpu.memory_space<vmem>>) attributes {dimension_semantics = [#tpu.dimension_semantics<parallel>], iteration_bounds = array<i64: 1>, scalar_prefetch = 0 : i64, scratch_operands = 1 : i64, tpu.core_type = #tpu.core_type<tc>, window_params = [{transform_indices = @transform_0, window_bounds = array<i64: 392, 16>}, {pipeline_mode = #tpu.pipeline_mode<synchronous>, transform_indices = @transform_1, window_bounds = array<i64: 16, 64>}, {pipeline_mode = #tpu.pipeline_mode<synchronous>, transform_indices = @transform_2, window_bounds = array<i64: 1, 16>}, {pipeline_mode = #tpu.pipeline_mode<synchronous>, transform_indices = @transform_3, window_bounds = array<i64: 144, 32>}, {pipeline_mode = #tpu.pipeline_mode<synchronous>, transform_indices = @transform_4, window_bounds = array<i64: 1, 32>}, {pipeline_mode = #tpu.pipeline_mode<synchronous>, transform_indices = @transform_5, window_bounds = array<i64: 1568, 128>}, {pipeline_mode = #tpu.pipeline_mode<synchronous>, transform_indices = @transform_6, window_bounds = array<i64: 1, 128>}, {pipeline_mode = #tpu.pipeline_mode<synchronous>, transform_indices = @transform_7, window_bounds = array<i64: 128, 10>}, {pipeline_mode = #tpu.pipeline_mode<synchronous>, transform_indices = @transform_8, window_bounds = array<i64: 1, 10>}, {transform_indices = @transform_9, window_bounds = array<i64: 8, 10>}]} {
    %c0 = arith.constant 0 : index
    %c0_0 = arith.constant 0 : index
    %0 = vector.load %arg1[%c0, %c0_0] : memref<392x16xbf16, #tpu.memory_space<vmem>>, vector<392x16xbf16>
    %c0_1 = arith.constant 0 : index
    %c0_2 = arith.constant 0 : index
    %1 = vector.load %arg2[%c0_1, %c0_2] : memref<16x64xbf16, #tpu.memory_space<vmem>>, vector<16x64xbf16>
    %cst = arith.constant dense<0.000000e+00> : vector<392x64xf32>
    %2 = tpu.matmul %0, %1, %cst {dimension_numbers = #tpu.dot_dimension_numbers<[1], [0], [0], [1], [0, 0, 1, 1], [], []>} : vector<392x16xbf16>, vector<16x64xbf16>, vector<392x64xf32> -> vector<392x64xf32>
    %3 = vector.extract_strided_slice %2 {offsets = [0, 0], sizes = [392, 16], strides = [1, 1]} : vector<392x64xf32> to vector<392x16xf32>
    %4 = vector.extract_strided_slice %2 {offsets = [0, 16], sizes = [392, 16], strides = [1, 1]} : vector<392x64xf32> to vector<392x16xf32>
    %5 = arith.maximumf %3, %4 : vector<392x16xf32>
    %6 = vector.extract_strided_slice %2 {offsets = [0, 32], sizes = [392, 16], strides = [1, 1]} : vector<392x64xf32> to vector<392x16xf32>
    %7 = vector.extract_strided_slice %2 {offsets = [0, 48], sizes = [392, 16], strides = [1, 1]} : vector<392x64xf32> to vector<392x16xf32>
    %8 = arith.maximumf %6, %7 : vector<392x16xf32>
    %9 = arith.maximumf %5, %8 : vector<392x16xf32>
    %c0_3 = arith.constant 0 : index
    %c0_4 = arith.constant 0 : index
    %10 = vector.load %arg3[%c0_3, %c0_4] : memref<1x16xf32, #tpu.memory_space<vmem>>, vector<1x16xf32>
    %11 = vector.broadcast %10 : vector<1x16xf32> to vector<392x16xf32>
    %12 = arith.addf %9, %11 : vector<392x16xf32>
    %cst_5 = arith.constant 0.000000e+00 : f32
    %13 = vector.broadcast %cst_5 : f32 to vector<392x16xf32>
    %14 = arith.maximumf %12, %13 : vector<392x16xf32>
    %15 = arith.truncf %14 : vector<392x16xf32> to vector<392x16xbf16>
    %cst_6 = arith.constant 0.000000e+00 : bf16
    %16 = vector.broadcast %cst_6 : bf16 to vector<808x16xbf16>
    %c0_7 = arith.constant 0 : index
    %c0_8 = arith.constant 0 : index
    %17 = vector.load %arg11[%c0_7, %c0_8] : memref<808x16xbf16, #tpu.memory_space<vmem>>, vector<808x16xbf16>
    tpu.vector_store %arg11[%c0_7, %c0_8], %16 {strides = array<i32>} : memref<808x16xbf16, #tpu.memory_space<vmem>>, vector<808x16xbf16>,
    %18 = vector.extract_strided_slice %15 {offsets = [0, 0], sizes = [56, 16], strides = [1, 1]} : vector<392x16xbf16> to vector<56x16xbf16>
    %c160 = arith.constant 160 : index
    %c0_9 = arith.constant 0 : index
    %19 = vector.load %arg11[%c160, %c0_9] : memref<808x16xbf16, #tpu.memory_space<vmem>>, vector<56x16xbf16>
    tpu.vector_store %arg11[%c160, %c0_9], %18 {strides = array<i32>} : memref<808x16xbf16, #tpu.memory_space<vmem>>, vector<56x16xbf16>,
    %20 = vector.extract_strided_slice %15 {offsets = [56, 0], sizes = [56, 16], strides = [1, 1]} : vector<392x16xbf16> to vector<56x16xbf16>
    %c232 = arith.constant 232 : index
    %c0_10 = arith.constant 0 : index
    %21 = vector.load %arg11[%c232, %c0_10] : memref<808x16xbf16, #tpu.memory_space<vmem>>, vector<56x16xbf16>
    tpu.vector_store %arg11[%c232, %c0_10], %20 {strides = array<i32>} : memref<808x16xbf16, #tpu.memory_space<vmem>>, vector<56x16xbf16>,
    %22 = vector.extract_strided_slice %15 {offsets = [112, 0], sizes = [56, 16], strides = [1, 1]} : vector<392x16xbf16> to vector<56x16xbf16>
    %c304 = arith.constant 304 : index
    %c0_11 = arith.constant 0 : index
    %23 = vector.load %arg11[%c304, %c0_11] : memref<808x16xbf16, #tpu.memory_space<vmem>>, vector<56x16xbf16>
    tpu.vector_store %arg11[%c304, %c0_11], %22 {strides = array<i32>} : memref<808x16xbf16, #tpu.memory_space<vmem>>, vector<56x16xbf16>,
    %24 = vector.extract_strided_slice %15 {offsets = [168, 0], sizes = [56, 16], strides = [1, 1]} : vector<392x16xbf16> to vector<56x16xbf16>
    %c376 = arith.constant 376 : index
    %c0_12 = arith.constant 0 : index
    %25 = vector.load %arg11[%c376, %c0_12] : memref<808x16xbf16, #tpu.memory_space<vmem>>, vector<56x16xbf16>
    tpu.vector_store %arg11[%c376, %c0_12], %24 {strides = array<i32>} : memref<808x16xbf16, #tpu.memory_space<vmem>>, vector<56x16xbf16>,
    %26 = vector.extract_strided_slice %15 {offsets = [224, 0], sizes = [56, 16], strides = [1, 1]} : vector<392x16xbf16> to vector<56x16xbf16>
    %c448 = arith.constant 448 : index
    %c0_13 = arith.constant 0 : index
    %27 = vector.load %arg11[%c448, %c0_13] : memref<808x16xbf16, #tpu.memory_space<vmem>>, vector<56x16xbf16>
    tpu.vector_store %arg11[%c448, %c0_13], %26 {strides = array<i32>} : memref<808x16xbf16, #tpu.memory_space<vmem>>, vector<56x16xbf16>,
    %28 = vector.extract_strided_slice %15 {offsets = [280, 0], sizes = [56, 16], strides = [1, 1]} : vector<392x16xbf16> to vector<56x16xbf16>
    %c520 = arith.constant 520 : index
    %c0_14 = arith.constant 0 : index
    %29 = vector.load %arg11[%c520, %c0_14] : memref<808x16xbf16, #tpu.memory_space<vmem>>, vector<56x16xbf16>
    tpu.vector_store %arg11[%c520, %c0_14], %28 {strides = array<i32>} : memref<808x16xbf16, #tpu.memory_space<vmem>>, vector<56x16xbf16>,
    %30 = vector.extract_strided_slice %15 {offsets = [336, 0], sizes = [56, 16], strides = [1, 1]} : vector<392x16xbf16> to vector<56x16xbf16>
    %c592 = arith.constant 592 : index
    %c0_15 = arith.constant 0 : index
    %31 = vector.load %arg11[%c592, %c0_15] : memref<808x16xbf16, #tpu.memory_space<vmem>>, vector<56x16xbf16>
    tpu.vector_store %arg11[%c592, %c0_15], %30 {strides = array<i32>} : memref<808x16xbf16, #tpu.memory_space<vmem>>, vector<56x16xbf16>,
    %c0_16 = arith.constant 0 : index
    %c0_17 = arith.constant 0 : index
    %32 = vector.load %arg11[%c0_16, %c0_17] : memref<808x16xbf16, #tpu.memory_space<vmem>>, vector<648x16xbf16>
    %c0_18 = arith.constant 0 : index
    %c0_19 = arith.constant 0 : index
    %33 = vector.load %arg4[%c0_18, %c0_19] : memref<144x32xbf16, #tpu.memory_space<vmem>>, vector<16x32xbf16>
    %cst_20 = arith.constant dense<0.000000e+00> : vector<648x32xf32>
    %34 = tpu.matmul %32, %33, %cst_20 {dimension_numbers = #tpu.dot_dimension_numbers<[1], [0], [0], [1], [0, 0, 1, 1], [], []>} : vector<648x16xbf16>, vector<16x32xbf16>, vector<648x32xf32> -> vector<648x32xf32>
    %c8 = arith.constant 8 : index
    %c0_21 = arith.constant 0 : index
    %35 = vector.load %arg11[%c8, %c0_21] : memref<808x16xbf16, #tpu.memory_space<vmem>>, vector<648x16xbf16>
    %c16 = arith.constant 16 : index
    %c0_22 = arith.constant 0 : index
    %36 = vector.load %arg4[%c16, %c0_22] : memref<144x32xbf16, #tpu.memory_space<vmem>>, vector<16x32xbf16>
    %cst_23 = arith.constant dense<0.000000e+00> : vector<648x32xf32>
    %37 = tpu.matmul %35, %36, %cst_23 {dimension_numbers = #tpu.dot_dimension_numbers<[1], [0], [0], [1], [0, 0, 1, 1], [], []>} : vector<648x16xbf16>, vector<16x32xbf16>, vector<648x32xf32> -> vector<648x32xf32>
    %38 = arith.addf %34, %37 : vector<648x32xf32>
    %c16_24 = arith.constant 16 : index
    %c0_25 = arith.constant 0 : index
    %39 = vector.load %arg11[%c16_24, %c0_25] : memref<808x16xbf16, #tpu.memory_space<vmem>>, vector<648x16xbf16>
    %c32 = arith.constant 32 : index
    %c0_26 = arith.constant 0 : index
    %40 = vector.load %arg4[%c32, %c0_26] : memref<144x32xbf16, #tpu.memory_space<vmem>>, vector<16x32xbf16>
    %cst_27 = arith.constant dense<0.000000e+00> : vector<648x32xf32>
    %41 = tpu.matmul %39, %40, %cst_27 {dimension_numbers = #tpu.dot_dimension_numbers<[1], [0], [0], [1], [0, 0, 1, 1], [], []>} : vector<648x16xbf16>, vector<16x32xbf16>, vector<648x32xf32> -> vector<648x32xf32>
    %42 = arith.addf %38, %41 : vector<648x32xf32>
    %c72 = arith.constant 72 : index
    %c0_28 = arith.constant 0 : index
    %43 = vector.load %arg11[%c72, %c0_28] : memref<808x16xbf16, #tpu.memory_space<vmem>>, vector<648x16xbf16>
    %c48 = arith.constant 48 : index
    %c0_29 = arith.constant 0 : index
    %44 = vector.load %arg4[%c48, %c0_29] : memref<144x32xbf16, #tpu.memory_space<vmem>>, vector<16x32xbf16>
    %cst_30 = arith.constant dense<0.000000e+00> : vector<648x32xf32>
    %45 = tpu.matmul %43, %44, %cst_30 {dimension_numbers = #tpu.dot_dimension_numbers<[1], [0], [0], [1], [0, 0, 1, 1], [], []>} : vector<648x16xbf16>, vector<16x32xbf16>, vector<648x32xf32> -> vector<648x32xf32>
    %46 = arith.addf %42, %45 : vector<648x32xf32>
    %c80 = arith.constant 80 : index
    %c0_31 = arith.constant 0 : index
    %47 = vector.load %arg11[%c80, %c0_31] : memref<808x16xbf16, #tpu.memory_space<vmem>>, vector<648x16xbf16>
    %c64 = arith.constant 64 : index
    %c0_32 = arith.constant 0 : index
    %48 = vector.load %arg4[%c64, %c0_32] : memref<144x32xbf16, #tpu.memory_space<vmem>>, vector<16x32xbf16>
    %cst_33 = arith.constant dense<0.000000e+00> : vector<648x32xf32>
    %49 = tpu.matmul %47, %48, %cst_33 {dimension_numbers = #tpu.dot_dimension_numbers<[1], [0], [0], [1], [0, 0, 1, 1], [], []>} : vector<648x16xbf16>, vector<16x32xbf16>, vector<648x32xf32> -> vector<648x32xf32>
    %50 = arith.addf %46, %49 : vector<648x32xf32>
    %c88 = arith.constant 88 : index
    %c0_34 = arith.constant 0 : index
    %51 = vector.load %arg11[%c88, %c0_34] : memref<808x16xbf16, #tpu.memory_space<vmem>>, vector<648x16xbf16>
    %c80_35 = arith.constant 80 : index
    %c0_36 = arith.constant 0 : index
    %52 = vector.load %arg4[%c80_35, %c0_36] : memref<144x32xbf16, #tpu.memory_space<vmem>>, vector<16x32xbf16>
    %cst_37 = arith.constant dense<0.000000e+00> : vector<648x32xf32>
    %53 = tpu.matmul %51, %52, %cst_37 {dimension_numbers = #tpu.dot_dimension_numbers<[1], [0], [0], [1], [0, 0, 1, 1], [], []>} : vector<648x16xbf16>, vector<16x32xbf16>, vector<648x32xf32> -> vector<648x32xf32>
    %54 = arith.addf %50, %53 : vector<648x32xf32>
    %c144 = arith.constant 144 : index
    %c0_38 = arith.constant 0 : index
    %55 = vector.load %arg11[%c144, %c0_38] : memref<808x16xbf16, #tpu.memory_space<vmem>>, vector<648x16xbf16>
    %c96 = arith.constant 96 : index
    %c0_39 = arith.constant 0 : index
    %56 = vector.load %arg4[%c96, %c0_39] : memref<144x32xbf16, #tpu.memory_space<vmem>>, vector<16x32xbf16>
    %cst_40 = arith.constant dense<0.000000e+00> : vector<648x32xf32>
    %57 = tpu.matmul %55, %56, %cst_40 {dimension_numbers = #tpu.dot_dimension_numbers<[1], [0], [0], [1], [0, 0, 1, 1], [], []>} : vector<648x16xbf16>, vector<16x32xbf16>, vector<648x32xf32> -> vector<648x32xf32>
    %58 = arith.addf %54, %57 : vector<648x32xf32>
    %c152 = arith.constant 152 : index
    %c0_41 = arith.constant 0 : index
    %59 = vector.load %arg11[%c152, %c0_41] : memref<808x16xbf16, #tpu.memory_space<vmem>>, vector<648x16xbf16>
    %c112 = arith.constant 112 : index
    %c0_42 = arith.constant 0 : index
    %60 = vector.load %arg4[%c112, %c0_42] : memref<144x32xbf16, #tpu.memory_space<vmem>>, vector<16x32xbf16>
    %cst_43 = arith.constant dense<0.000000e+00> : vector<648x32xf32>
    %61 = tpu.matmul %59, %60, %cst_43 {dimension_numbers = #tpu.dot_dimension_numbers<[1], [0], [0], [1], [0, 0, 1, 1], [], []>} : vector<648x16xbf16>, vector<16x32xbf16>, vector<648x32xf32> -> vector<648x32xf32>
    %62 = arith.addf %58, %61 : vector<648x32xf32>
    %c160_44 = arith.constant 160 : index
    %c0_45 = arith.constant 0 : index
    %63 = vector.load %arg11[%c160_44, %c0_45] : memref<808x16xbf16, #tpu.memory_space<vmem>>, vector<648x16xbf16>
    %c128 = arith.constant 128 : index
    %c0_46 = arith.constant 0 : index
    %64 = vector.load %arg4[%c128, %c0_46] : memref<144x32xbf16, #tpu.memory_space<vmem>>, vector<16x32xbf16>
    %cst_47 = arith.constant dense<0.000000e+00> : vector<648x32xf32>
    %65 = tpu.matmul %63, %64, %cst_47 {dimension_numbers = #tpu.dot_dimension_numbers<[1], [0], [0], [1], [0, 0, 1, 1], [], []>} : vector<648x16xbf16>, vector<16x32xbf16>, vector<648x32xf32> -> vector<648x32xf32>
    %66 = arith.addf %62, %65 : vector<648x32xf32>
    %c0_48 = arith.constant 0 : index
    %c0_49 = arith.constant 0 : index
    %67 = vector.load %arg5[%c0_48, %c0_49] : memref<1x32xf32, #tpu.memory_space<vmem>>, vector<1x32xf32>
    %68 = vector.broadcast %67 : vector<1x32xf32> to vector<648x32xf32>
    %69 = arith.addf %66, %68 : vector<648x32xf32>
    %cst_50 = arith.constant 0.000000e+00 : f32
    %70 = vector.broadcast %cst_50 : f32 to vector<648x32xf32>
    %71 = arith.maximumf %69, %70 : vector<648x32xf32>
    %72 = arith.truncf %71 : vector<648x32xf32> to vector<648x32xbf16>
    %73 = vector.extract_strided_slice %72 {offsets = [80, 0], sizes = [8, 32], strides = [1, 1]} : vector<648x32xbf16> to vector<8x32xbf16>
    %c0_51 = arith.constant 0 : index
    %c0_52 = arith.constant 0 : index
    %74 = vector.load %arg6[%c0_51, %c0_52] : memref<1568x128xbf16, #tpu.memory_space<vmem>>, vector<32x128xbf16>
    %cst_53 = arith.constant dense<0.000000e+00> : vector<8x128xf32>
    %75 = tpu.matmul %73, %74, %cst_53 {dimension_numbers = #tpu.dot_dimension_numbers<[1], [0], [0], [1], [0, 0, 1, 1], [], []>} : vector<8x32xbf16>, vector<32x128xbf16>, vector<8x128xf32> -> vector<8x128xf32>
    %76 = vector.extract_strided_slice %72 {offsets = [88, 0], sizes = [8, 32], strides = [1, 1]} : vector<648x32xbf16> to vector<8x32xbf16>
    %c32_54 = arith.constant 32 : index
    %c0_55 = arith.constant 0 : index
    %77 = vector.load %arg6[%c32_54, %c0_55] : memref<1568x128xbf16, #tpu.memory_space<vmem>>, vector<32x128xbf16>
    %cst_56 = arith.constant dense<0.000000e+00> : vector<8x128xf32>
    %78 = tpu.matmul %76, %77, %cst_56 {dimension_numbers = #tpu.dot_dimension_numbers<[1], [0], [0], [1], [0, 0, 1, 1], [], []>} : vector<8x32xbf16>, vector<32x128xbf16>, vector<8x128xf32> -> vector<8x128xf32>
    %79 = arith.addf %75, %78 : vector<8x128xf32>
    %80 = vector.extract_strided_slice %72 {offsets = [96, 0], sizes = [8, 32], strides = [1, 1]} : vector<648x32xbf16> to vector<8x32xbf16>
    %c64_57 = arith.constant 64 : index
    %c0_58 = arith.constant 0 : index
    %81 = vector.load %arg6[%c64_57, %c0_58] : memref<1568x128xbf16, #tpu.memory_space<vmem>>, vector<32x128xbf16>
    %cst_59 = arith.constant dense<0.000000e+00> : vector<8x128xf32>
    %82 = tpu.matmul %80, %81, %cst_59 {dimension_numbers = #tpu.dot_dimension_numbers<[1], [0], [0], [1], [0, 0, 1, 1], [], []>} : vector<8x32xbf16>, vector<32x128xbf16>, vector<8x128xf32> -> vector<8x128xf32>
    %83 = arith.addf %79, %82 : vector<8x128xf32>
    %84 = vector.extract_strided_slice %72 {offsets = [104, 0], sizes = [8, 32], strides = [1, 1]} : vector<648x32xbf16> to vector<8x32xbf16>
    %c96_60 = arith.constant 96 : index
    %c0_61 = arith.constant 0 : index
    %85 = vector.load %arg6[%c96_60, %c0_61] : memref<1568x128xbf16, #tpu.memory_space<vmem>>, vector<32x128xbf16>
    %cst_62 = arith.constant dense<0.000000e+00> : vector<8x128xf32>
    %86 = tpu.matmul %84, %85, %cst_62 {dimension_numbers = #tpu.dot_dimension_numbers<[1], [0], [0], [1], [0, 0, 1, 1], [], []>} : vector<8x32xbf16>, vector<32x128xbf16>, vector<8x128xf32> -> vector<8x128xf32>
    %87 = arith.addf %83, %86 : vector<8x128xf32>
    %88 = vector.extract_strided_slice %72 {offsets = [112, 0], sizes = [8, 32], strides = [1, 1]} : vector<648x32xbf16> to vector<8x32xbf16>
    %c128_63 = arith.constant 128 : index
    %c0_64 = arith.constant 0 : index
    %89 = vector.load %arg6[%c128_63, %c0_64] : memref<1568x128xbf16, #tpu.memory_space<vmem>>, vector<32x128xbf16>
    %cst_65 = arith.constant dense<0.000000e+00> : vector<8x128xf32>
    %90 = tpu.matmul %88, %89, %cst_65 {dimension_numbers = #tpu.dot_dimension_numbers<[1], [0], [0], [1], [0, 0, 1, 1], [], []>} : vector<8x32xbf16>, vector<32x128xbf16>, vector<8x128xf32> -> vector<8x128xf32>
    %91 = arith.addf %87, %90 : vector<8x128xf32>
    %92 = vector.extract_strided_slice %72 {offsets = [120, 0], sizes = [8, 32], strides = [1, 1]} : vector<648x32xbf16> to vector<8x32xbf16>
    %c160_66 = arith.constant 160 : index
    %c0_67 = arith.constant 0 : index
    %93 = vector.load %arg6[%c160_66, %c0_67] : memref<1568x128xbf16, #tpu.memory_space<vmem>>, vector<32x128xbf16>
    %cst_68 = arith.constant dense<0.000000e+00> : vector<8x128xf32>
    %94 = tpu.matmul %92, %93, %cst_68 {dimension_numbers = #tpu.dot_dimension_numbers<[1], [0], [0], [1], [0, 0, 1, 1], [], []>} : vector<8x32xbf16>, vector<32x128xbf16>, vector<8x128xf32> -> vector<8x128xf32>
    %95 = arith.addf %91, %94 : vector<8x128xf32>
    %96 = vector.extract_strided_slice %72 {offsets = [128, 0], sizes = [8, 32], strides = [1, 1]} : vector<648x32xbf16> to vector<8x32xbf16>
    %c192 = arith.constant 192 : index
    %c0_69 = arith.constant 0 : index
    %97 = vector.load %arg6[%c192, %c0_69] : memref<1568x128xbf16, #tpu.memory_space<vmem>>, vector<32x128xbf16>
    %cst_70 = arith.constant dense<0.000000e+00> : vector<8x128xf32>
    %98 = tpu.matmul %96, %97, %cst_70 {dimension_numbers = #tpu.dot_dimension_numbers<[1], [0], [0], [1], [0, 0, 1, 1], [], []>} : vector<8x32xbf16>, vector<32x128xbf16>, vector<8x128xf32> -> vector<8x128xf32>
    %99 = arith.addf %95, %98 : vector<8x128xf32>
    %100 = vector.extract_strided_slice %72 {offsets = [152, 0], sizes = [8, 32], strides = [1, 1]} : vector<648x32xbf16> to vector<8x32xbf16>
    %c224 = arith.constant 224 : index
    %c0_71 = arith.constant 0 : index
    %101 = vector.load %arg6[%c224, %c0_71] : memref<1568x128xbf16, #tpu.memory_space<vmem>>, vector<32x128xbf16>
    %cst_72 = arith.constant dense<0.000000e+00> : vector<8x128xf32>
    %102 = tpu.matmul %100, %101, %cst_72 {dimension_numbers = #tpu.dot_dimension_numbers<[1], [0], [0], [1], [0, 0, 1, 1], [], []>} : vector<8x32xbf16>, vector<32x128xbf16>, vector<8x128xf32> -> vector<8x128xf32>
    %103 = arith.addf %99, %102 : vector<8x128xf32>
    %104 = vector.extract_strided_slice %72 {offsets = [160, 0], sizes = [8, 32], strides = [1, 1]} : vector<648x32xbf16> to vector<8x32xbf16>
    %c256 = arith.constant 256 : index
    %c0_73 = arith.constant 0 : index
    %105 = vector.load %arg6[%c256, %c0_73] : memref<1568x128xbf16, #tpu.memory_space<vmem>>, vector<32x128xbf16>
    %cst_74 = arith.constant dense<0.000000e+00> : vector<8x128xf32>
    %106 = tpu.matmul %104, %105, %cst_74 {dimension_numbers = #tpu.dot_dimension_numbers<[1], [0], [0], [1], [0, 0, 1, 1], [], []>} : vector<8x32xbf16>, vector<32x128xbf16>, vector<8x128xf32> -> vector<8x128xf32>
    %107 = arith.addf %103, %106 : vector<8x128xf32>
    %108 = vector.extract_strided_slice %72 {offsets = [168, 0], sizes = [8, 32], strides = [1, 1]} : vector<648x32xbf16> to vector<8x32xbf16>
    %c288 = arith.constant 288 : index
    %c0_75 = arith.constant 0 : index
    %109 = vector.load %arg6[%c288, %c0_75] : memref<1568x128xbf16, #tpu.memory_space<vmem>>, vector<32x128xbf16>
    %cst_76 = arith.constant dense<0.000000e+00> : vector<8x128xf32>
    %110 = tpu.matmul %108, %109, %cst_76 {dimension_numbers = #tpu.dot_dimension_numbers<[1], [0], [0], [1], [0, 0, 1, 1], [], []>} : vector<8x32xbf16>, vector<32x128xbf16>, vector<8x128xf32> -> vector<8x128xf32>
    %111 = arith.addf %107, %110 : vector<8x128xf32>
    %112 = vector.extract_strided_slice %72 {offsets = [176, 0], sizes = [8, 32], strides = [1, 1]} : vector<648x32xbf16> to vector<8x32xbf16>
    %c320 = arith.constant 320 : index
    %c0_77 = arith.constant 0 : index
    %113 = vector.load %arg6[%c320, %c0_77] : memref<1568x128xbf16, #tpu.memory_space<vmem>>, vector<32x128xbf16>
    %cst_78 = arith.constant dense<0.000000e+00> : vector<8x128xf32>
    %114 = tpu.matmul %112, %113, %cst_78 {dimension_numbers = #tpu.dot_dimension_numbers<[1], [0], [0], [1], [0, 0, 1, 1], [], []>} : vector<8x32xbf16>, vector<32x128xbf16>, vector<8x128xf32> -> vector<8x128xf32>
    %115 = arith.addf %111, %114 : vector<8x128xf32>
    %116 = vector.extract_strided_slice %72 {offsets = [184, 0], sizes = [8, 32], strides = [1, 1]} : vector<648x32xbf16> to vector<8x32xbf16>
    %c352 = arith.constant 352 : index
    %c0_79 = arith.constant 0 : index
    %117 = vector.load %arg6[%c352, %c0_79] : memref<1568x128xbf16, #tpu.memory_space<vmem>>, vector<32x128xbf16>
    %cst_80 = arith.constant dense<0.000000e+00> : vector<8x128xf32>
    %118 = tpu.matmul %116, %117, %cst_80 {dimension_numbers = #tpu.dot_dimension_numbers<[1], [0], [0], [1], [0, 0, 1, 1], [], []>} : vector<8x32xbf16>, vector<32x128xbf16>, vector<8x128xf32> -> vector<8x128xf32>
    %119 = arith.addf %115, %118 : vector<8x128xf32>
    %120 = vector.extract_strided_slice %72 {offsets = [192, 0], sizes = [8, 32], strides = [1, 1]} : vector<648x32xbf16> to vector<8x32xbf16>
    %c384 = arith.constant 384 : index
    %c0_81 = arith.constant 0 : index
    %121 = vector.load %arg6[%c384, %c0_81] : memref<1568x128xbf16, #tpu.memory_space<vmem>>, vector<32x128xbf16>
    %cst_82 = arith.constant dense<0.000000e+00> : vector<8x128xf32>
    %122 = tpu.matmul %120, %121, %cst_82 {dimension_numbers = #tpu.dot_dimension_numbers<[1], [0], [0], [1], [0, 0, 1, 1], [], []>} : vector<8x32xbf16>, vector<32x128xbf16>, vector<8x128xf32> -> vector<8x128xf32>
    %123 = arith.addf %119, %122 : vector<8x128xf32>
    %124 = vector.extract_strided_slice %72 {offsets = [200, 0], sizes = [8, 32], strides = [1, 1]} : vector<648x32xbf16> to vector<8x32xbf16>
    %c416 = arith.constant 416 : index
    %c0_83 = arith.constant 0 : index
    %125 = vector.load %arg6[%c416, %c0_83] : memref<1568x128xbf16, #tpu.memory_space<vmem>>, vector<32x128xbf16>
    %cst_84 = arith.constant dense<0.000000e+00> : vector<8x128xf32>
    %126 = tpu.matmul %124, %125, %cst_84 {dimension_numbers = #tpu.dot_dimension_numbers<[1], [0], [0], [1], [0, 0, 1, 1], [], []>} : vector<8x32xbf16>, vector<32x128xbf16>, vector<8x128xf32> -> vector<8x128xf32>
    %127 = arith.addf %123, %126 : vector<8x128xf32>
    %128 = vector.extract_strided_slice %72 {offsets = [224, 0], sizes = [8, 32], strides = [1, 1]} : vector<648x32xbf16> to vector<8x32xbf16>
    %c448_85 = arith.constant 448 : index
    %c0_86 = arith.constant 0 : index
    %129 = vector.load %arg6[%c448_85, %c0_86] : memref<1568x128xbf16, #tpu.memory_space<vmem>>, vector<32x128xbf16>
    %cst_87 = arith.constant dense<0.000000e+00> : vector<8x128xf32>
    %130 = tpu.matmul %128, %129, %cst_87 {dimension_numbers = #tpu.dot_dimension_numbers<[1], [0], [0], [1], [0, 0, 1, 1], [], []>} : vector<8x32xbf16>, vector<32x128xbf16>, vector<8x128xf32> -> vector<8x128xf32>
    %131 = arith.addf %127, %130 : vector<8x128xf32>
    %132 = vector.extract_strided_slice %72 {offsets = [232, 0], sizes = [8, 32], strides = [1, 1]} : vector<648x32xbf16> to vector<8x32xbf16>
    %c480 = arith.constant 480 : index
    %c0_88 = arith.constant 0 : index
    %133 = vector.load %arg6[%c480, %c0_88] : memref<1568x128xbf16, #tpu.memory_space<vmem>>, vector<32x128xbf16>
    %cst_89 = arith.constant dense<0.000000e+00> : vector<8x128xf32>
    %134 = tpu.matmul %132, %133, %cst_89 {dimension_numbers = #tpu.dot_dimension_numbers<[1], [0], [0], [1], [0, 0, 1, 1], [], []>} : vector<8x32xbf16>, vector<32x128xbf16>, vector<8x128xf32> -> vector<8x128xf32>
    %135 = arith.addf %131, %134 : vector<8x128xf32>
    %136 = vector.extract_strided_slice %72 {offsets = [240, 0], sizes = [8, 32], strides = [1, 1]} : vector<648x32xbf16> to vector<8x32xbf16>
    %c512 = arith.constant 512 : index
    %c0_90 = arith.constant 0 : index
    %137 = vector.load %arg6[%c512, %c0_90] : memref<1568x128xbf16, #tpu.memory_space<vmem>>, vector<32x128xbf16>
    %cst_91 = arith.constant dense<0.000000e+00> : vector<8x128xf32>
    %138 = tpu.matmul %136, %137, %cst_91 {dimension_numbers = #tpu.dot_dimension_numbers<[1], [0], [0], [1], [0, 0, 1, 1], [], []>} : vector<8x32xbf16>, vector<32x128xbf16>, vector<8x128xf32> -> vector<8x128xf32>
    %139 = arith.addf %135, %138 : vector<8x128xf32>
    %140 = vector.extract_strided_slice %72 {offsets = [248, 0], sizes = [8, 32], strides = [1, 1]} : vector<648x32xbf16> to vector<8x32xbf16>
    %c544 = arith.constant 544 : index
    %c0_92 = arith.constant 0 : index
    %141 = vector.load %arg6[%c544, %c0_92] : memref<1568x128xbf16, #tpu.memory_space<vmem>>, vector<32x128xbf16>
    %cst_93 = arith.constant dense<0.000000e+00> : vector<8x128xf32>
    %142 = tpu.matmul %140, %141, %cst_93 {dimension_numbers = #tpu.dot_dimension_numbers<[1], [0], [0], [1], [0, 0, 1, 1], [], []>} : vector<8x32xbf16>, vector<32x128xbf16>, vector<8x128xf32> -> vector<8x128xf32>
    %143 = arith.addf %139, %142 : vector<8x128xf32>
    %144 = vector.extract_strided_slice %72 {offsets = [256, 0], sizes = [8, 32], strides = [1, 1]} : vector<648x32xbf16> to vector<8x32xbf16>
    %c576 = arith.constant 576 : index
    %c0_94 = arith.constant 0 : index
    %145 = vector.load %arg6[%c576, %c0_94] : memref<1568x128xbf16, #tpu.memory_space<vmem>>, vector<32x128xbf16>
    %cst_95 = arith.constant dense<0.000000e+00> : vector<8x128xf32>
    %146 = tpu.matmul %144, %145, %cst_95 {dimension_numbers = #tpu.dot_dimension_numbers<[1], [0], [0], [1], [0, 0, 1, 1], [], []>} : vector<8x32xbf16>, vector<32x128xbf16>, vector<8x128xf32> -> vector<8x128xf32>
    %147 = arith.addf %143, %146 : vector<8x128xf32>
    %148 = vector.extract_strided_slice %72 {offsets = [264, 0], sizes = [8, 32], strides = [1, 1]} : vector<648x32xbf16> to vector<8x32xbf16>
    %c608 = arith.constant 608 : index
    %c0_96 = arith.constant 0 : index
    %149 = vector.load %arg6[%c608, %c0_96] : memref<1568x128xbf16, #tpu.memory_space<vmem>>, vector<32x128xbf16>
    %cst_97 = arith.constant dense<0.000000e+00> : vector<8x128xf32>
    %150 = tpu.matmul %148, %149, %cst_97 {dimension_numbers = #tpu.dot_dimension_numbers<[1], [0], [0], [1], [0, 0, 1, 1], [], []>} : vector<8x32xbf16>, vector<32x128xbf16>, vector<8x128xf32> -> vector<8x128xf32>
    %151 = arith.addf %147, %150 : vector<8x128xf32>
    %152 = vector.extract_strided_slice %72 {offsets = [272, 0], sizes = [8, 32], strides = [1, 1]} : vector<648x32xbf16> to vector<8x32xbf16>
    %c640 = arith.constant 640 : index
    %c0_98 = arith.constant 0 : index
    %153 = vector.load %arg6[%c640, %c0_98] : memref<1568x128xbf16, #tpu.memory_space<vmem>>, vector<32x128xbf16>
    %cst_99 = arith.constant dense<0.000000e+00> : vector<8x128xf32>
    %154 = tpu.matmul %152, %153, %cst_99 {dimension_numbers = #tpu.dot_dimension_numbers<[1], [0], [0], [1], [0, 0, 1, 1], [], []>} : vector<8x32xbf16>, vector<32x128xbf16>, vector<8x128xf32> -> vector<8x128xf32>
    %155 = arith.addf %151, %154 : vector<8x128xf32>
    %156 = vector.extract_strided_slice %72 {offsets = [296, 0], sizes = [8, 32], strides = [1, 1]} : vector<648x32xbf16> to vector<8x32xbf16>
    %c672 = arith.constant 672 : index
    %c0_100 = arith.constant 0 : index
    %157 = vector.load %arg6[%c672, %c0_100] : memref<1568x128xbf16, #tpu.memory_space<vmem>>, vector<32x128xbf16>
    %cst_101 = arith.constant dense<0.000000e+00> : vector<8x128xf32>
    %158 = tpu.matmul %156, %157, %cst_101 {dimension_numbers = #tpu.dot_dimension_numbers<[1], [0], [0], [1], [0, 0, 1, 1], [], []>} : vector<8x32xbf16>, vector<32x128xbf16>, vector<8x128xf32> -> vector<8x128xf32>
    %159 = arith.addf %155, %158 : vector<8x128xf32>
    %160 = vector.extract_strided_slice %72 {offsets = [304, 0], sizes = [8, 32], strides = [1, 1]} : vector<648x32xbf16> to vector<8x32xbf16>
    %c704 = arith.constant 704 : index
    %c0_102 = arith.constant 0 : index
    %161 = vector.load %arg6[%c704, %c0_102] : memref<1568x128xbf16, #tpu.memory_space<vmem>>, vector<32x128xbf16>
    %cst_103 = arith.constant dense<0.000000e+00> : vector<8x128xf32>
    %162 = tpu.matmul %160, %161, %cst_103 {dimension_numbers = #tpu.dot_dimension_numbers<[1], [0], [0], [1], [0, 0, 1, 1], [], []>} : vector<8x32xbf16>, vector<32x128xbf16>, vector<8x128xf32> -> vector<8x128xf32>
    %163 = arith.addf %159, %162 : vector<8x128xf32>
    %164 = vector.extract_strided_slice %72 {offsets = [312, 0], sizes = [8, 32], strides = [1, 1]} : vector<648x32xbf16> to vector<8x32xbf16>
    %c736 = arith.constant 736 : index
    %c0_104 = arith.constant 0 : index
    %165 = vector.load %arg6[%c736, %c0_104] : memref<1568x128xbf16, #tpu.memory_space<vmem>>, vector<32x128xbf16>
    %cst_105 = arith.constant dense<0.000000e+00> : vector<8x128xf32>
    %166 = tpu.matmul %164, %165, %cst_105 {dimension_numbers = #tpu.dot_dimension_numbers<[1], [0], [0], [1], [0, 0, 1, 1], [], []>} : vector<8x32xbf16>, vector<32x128xbf16>, vector<8x128xf32> -> vector<8x128xf32>
    %167 = arith.addf %163, %166 : vector<8x128xf32>
    %168 = vector.extract_strided_slice %72 {offsets = [320, 0], sizes = [8, 32], strides = [1, 1]} : vector<648x32xbf16> to vector<8x32xbf16>
    %c768 = arith.constant 768 : index
    %c0_106 = arith.constant 0 : index
    %169 = vector.load %arg6[%c768, %c0_106] : memref<1568x128xbf16, #tpu.memory_space<vmem>>, vector<32x128xbf16>
    %cst_107 = arith.constant dense<0.000000e+00> : vector<8x128xf32>
    %170 = tpu.matmul %168, %169, %cst_107 {dimension_numbers = #tpu.dot_dimension_numbers<[1], [0], [0], [1], [0, 0, 1, 1], [], []>} : vector<8x32xbf16>, vector<32x128xbf16>, vector<8x128xf32> -> vector<8x128xf32>
    %171 = arith.addf %167, %170 : vector<8x128xf32>
    %172 = vector.extract_strided_slice %72 {offsets = [328, 0], sizes = [8, 32], strides = [1, 1]} : vector<648x32xbf16> to vector<8x32xbf16>
    %c800 = arith.constant 800 : index
    %c0_108 = arith.constant 0 : index
    %173 = vector.load %arg6[%c800, %c0_108] : memref<1568x128xbf16, #tpu.memory_space<vmem>>, vector<32x128xbf16>
    %cst_109 = arith.constant dense<0.000000e+00> : vector<8x128xf32>
    %174 = tpu.matmul %172, %173, %cst_109 {dimension_numbers = #tpu.dot_dimension_numbers<[1], [0], [0], [1], [0, 0, 1, 1], [], []>} : vector<8x32xbf16>, vector<32x128xbf16>, vector<8x128xf32> -> vector<8x128xf32>
    %175 = arith.addf %171, %174 : vector<8x128xf32>
    %176 = vector.extract_strided_slice %72 {offsets = [336, 0], sizes = [8, 32], strides = [1, 1]} : vector<648x32xbf16> to vector<8x32xbf16>
    %c832 = arith.constant 832 : index
    %c0_110 = arith.constant 0 : index
    %177 = vector.load %arg6[%c832, %c0_110] : memref<1568x128xbf16, #tpu.memory_space<vmem>>, vector<32x128xbf16>
    %cst_111 = arith.constant dense<0.000000e+00> : vector<8x128xf32>
    %178 = tpu.matmul %176, %177, %cst_111 {dimension_numbers = #tpu.dot_dimension_numbers<[1], [0], [0], [1], [0, 0, 1, 1], [], []>} : vector<8x32xbf16>, vector<32x128xbf16>, vector<8x128xf32> -> vector<8x128xf32>
    %179 = arith.addf %175, %178 : vector<8x128xf32>
    %180 = vector.extract_strided_slice %72 {offsets = [344, 0], sizes = [8, 32], strides = [1, 1]} : vector<648x32xbf16> to vector<8x32xbf16>
    %c864 = arith.constant 864 : index
    %c0_112 = arith.constant 0 : index
    %181 = vector.load %arg6[%c864, %c0_112] : memref<1568x128xbf16, #tpu.memory_space<vmem>>, vector<32x128xbf16>
    %cst_113 = arith.constant dense<0.000000e+00> : vector<8x128xf32>
    %182 = tpu.matmul %180, %181, %cst_113 {dimension_numbers = #tpu.dot_dimension_numbers<[1], [0], [0], [1], [0, 0, 1, 1], [], []>} : vector<8x32xbf16>, vector<32x128xbf16>, vector<8x128xf32> -> vector<8x128xf32>
    %183 = arith.addf %179, %182 : vector<8x128xf32>
    %184 = vector.extract_strided_slice %72 {offsets = [368, 0], sizes = [8, 32], strides = [1, 1]} : vector<648x32xbf16> to vector<8x32xbf16>
    %c896 = arith.constant 896 : index
    %c0_114 = arith.constant 0 : index
    %185 = vector.load %arg6[%c896, %c0_114] : memref<1568x128xbf16, #tpu.memory_space<vmem>>, vector<32x128xbf16>
    %cst_115 = arith.constant dense<0.000000e+00> : vector<8x128xf32>
    %186 = tpu.matmul %184, %185, %cst_115 {dimension_numbers = #tpu.dot_dimension_numbers<[1], [0], [0], [1], [0, 0, 1, 1], [], []>} : vector<8x32xbf16>, vector<32x128xbf16>, vector<8x128xf32> -> vector<8x128xf32>
    %187 = arith.addf %183, %186 : vector<8x128xf32>
    %188 = vector.extract_strided_slice %72 {offsets = [376, 0], sizes = [8, 32], strides = [1, 1]} : vector<648x32xbf16> to vector<8x32xbf16>
    %c928 = arith.constant 928 : index
    %c0_116 = arith.constant 0 : index
    %189 = vector.load %arg6[%c928, %c0_116] : memref<1568x128xbf16, #tpu.memory_space<vmem>>, vector<32x128xbf16>
    %cst_117 = arith.constant dense<0.000000e+00> : vector<8x128xf32>
    %190 = tpu.matmul %188, %189, %cst_117 {dimension_numbers = #tpu.dot_dimension_numbers<[1], [0], [0], [1], [0, 0, 1, 1], [], []>} : vector<8x32xbf16>, vector<32x128xbf16>, vector<8x128xf32> -> vector<8x128xf32>
    %191 = arith.addf %187, %190 : vector<8x128xf32>
    %192 = vector.extract_strided_slice %72 {offsets = [384, 0], sizes = [8, 32], strides = [1, 1]} : vector<648x32xbf16> to vector<8x32xbf16>
    %c960 = arith.constant 960 : index
    %c0_118 = arith.constant 0 : index
    %193 = vector.load %arg6[%c960, %c0_118] : memref<1568x128xbf16, #tpu.memory_space<vmem>>, vector<32x128xbf16>
    %cst_119 = arith.constant dense<0.000000e+00> : vector<8x128xf32>
    %194 = tpu.matmul %192, %193, %cst_119 {dimension_numbers = #tpu.dot_dimension_numbers<[1], [0], [0], [1], [0, 0, 1, 1], [], []>} : vector<8x32xbf16>, vector<32x128xbf16>, vector<8x128xf32> -> vector<8x128xf32>
    %195 = arith.addf %191, %194 : vector<8x128xf32>
    %196 = vector.extract_strided_slice %72 {offsets = [392, 0], sizes = [8, 32], strides = [1, 1]} : vector<648x32xbf16> to vector<8x32xbf16>
    %c992 = arith.constant 992 : index
    %c0_120 = arith.constant 0 : index
    %197 = vector.load %arg6[%c992, %c0_120] : memref<1568x128xbf16, #tpu.memory_space<vmem>>, vector<32x128xbf16>
    %cst_121 = arith.constant dense<0.000000e+00> : vector<8x128xf32>
    %198 = tpu.matmul %196, %197, %cst_121 {dimension_numbers = #tpu.dot_dimension_numbers<[1], [0], [0], [1], [0, 0, 1, 1], [], []>} : vector<8x32xbf16>, vector<32x128xbf16>, vector<8x128xf32> -> vector<8x128xf32>
    %199 = arith.addf %195, %198 : vector<8x128xf32>
    %200 = vector.extract_strided_slice %72 {offsets = [400, 0], sizes = [8, 32], strides = [1, 1]} : vector<648x32xbf16> to vector<8x32xbf16>
    %c1024 = arith.constant 1024 : index
    %c0_122 = arith.constant 0 : index
    %201 = vector.load %arg6[%c1024, %c0_122] : memref<1568x128xbf16, #tpu.memory_space<vmem>>, vector<32x128xbf16>
    %cst_123 = arith.constant dense<0.000000e+00> : vector<8x128xf32>
    %202 = tpu.matmul %200, %201, %cst_123 {dimension_numbers = #tpu.dot_dimension_numbers<[1], [0], [0], [1], [0, 0, 1, 1], [], []>} : vector<8x32xbf16>, vector<32x128xbf16>, vector<8x128xf32> -> vector<8x128xf32>
    %203 = arith.addf %199, %202 : vector<8x128xf32>
    %204 = vector.extract_strided_slice %72 {offsets = [408, 0], sizes = [8, 32], strides = [1, 1]} : vector<648x32xbf16> to vector<8x32xbf16>
    %c1056 = arith.constant 1056 : index
    %c0_124 = arith.constant 0 : index
    %205 = vector.load %arg6[%c1056, %c0_124] : memref<1568x128xbf16, #tpu.memory_space<vmem>>, vector<32x128xbf16>
    %cst_125 = arith.constant dense<0.000000e+00> : vector<8x128xf32>
    %206 = tpu.matmul %204, %205, %cst_125 {dimension_numbers = #tpu.dot_dimension_numbers<[1], [0], [0], [1], [0, 0, 1, 1], [], []>} : vector<8x32xbf16>, vector<32x128xbf16>, vector<8x128xf32> -> vector<8x128xf32>
    %207 = arith.addf %203, %206 : vector<8x128xf32>
    %208 = vector.extract_strided_slice %72 {offsets = [416, 0], sizes = [8, 32], strides = [1, 1]} : vector<648x32xbf16> to vector<8x32xbf16>
    %c1088 = arith.constant 1088 : index
    %c0_126 = arith.constant 0 : index
    %209 = vector.load %arg6[%c1088, %c0_126] : memref<1568x128xbf16, #tpu.memory_space<vmem>>, vector<32x128xbf16>
    %cst_127 = arith.constant dense<0.000000e+00> : vector<8x128xf32>
    %210 = tpu.matmul %208, %209, %cst_127 {dimension_numbers = #tpu.dot_dimension_numbers<[1], [0], [0], [1], [0, 0, 1, 1], [], []>} : vector<8x32xbf16>, vector<32x128xbf16>, vector<8x128xf32> -> vector<8x128xf32>
    %211 = arith.addf %207, %210 : vector<8x128xf32>
    %212 = vector.extract_strided_slice %72 {offsets = [440, 0], sizes = [8, 32], strides = [1, 1]} : vector<648x32xbf16> to vector<8x32xbf16>
    %c1120 = arith.constant 1120 : index
    %c0_128 = arith.constant 0 : index
    %213 = vector.load %arg6[%c1120, %c0_128] : memref<1568x128xbf16, #tpu.memory_space<vmem>>, vector<32x128xbf16>
    %cst_129 = arith.constant dense<0.000000e+00> : vector<8x128xf32>
    %214 = tpu.matmul %212, %213, %cst_129 {dimension_numbers = #tpu.dot_dimension_numbers<[1], [0], [0], [1], [0, 0, 1, 1], [], []>} : vector<8x32xbf16>, vector<32x128xbf16>, vector<8x128xf32> -> vector<8x128xf32>
    %215 = arith.addf %211, %214 : vector<8x128xf32>
    %216 = vector.extract_strided_slice %72 {offsets = [448, 0], sizes = [8, 32], strides = [1, 1]} : vector<648x32xbf16> to vector<8x32xbf16>
    %c1152 = arith.constant 1152 : index
    %c0_130 = arith.constant 0 : index
    %217 = vector.load %arg6[%c1152, %c0_130] : memref<1568x128xbf16, #tpu.memory_space<vmem>>, vector<32x128xbf16>
    %cst_131 = arith.constant dense<0.000000e+00> : vector<8x128xf32>
    %218 = tpu.matmul %216, %217, %cst_131 {dimension_numbers = #tpu.dot_dimension_numbers<[1], [0], [0], [1], [0, 0, 1, 1], [], []>} : vector<8x32xbf16>, vector<32x128xbf16>, vector<8x128xf32> -> vector<8x128xf32>
    %219 = arith.addf %215, %218 : vector<8x128xf32>
    %220 = vector.extract_strided_slice %72 {offsets = [456, 0], sizes = [8, 32], strides = [1, 1]} : vector<648x32xbf16> to vector<8x32xbf16>
    %c1184 = arith.constant 1184 : index
    %c0_132 = arith.constant 0 : index
    %221 = vector.load %arg6[%c1184, %c0_132] : memref<1568x128xbf16, #tpu.memory_space<vmem>>, vector<32x128xbf16>
    %cst_133 = arith.constant dense<0.000000e+00> : vector<8x128xf32>
    %222 = tpu.matmul %220, %221, %cst_133 {dimension_numbers = #tpu.dot_dimension_numbers<[1], [0], [0], [1], [0, 0, 1, 1], [], []>} : vector<8x32xbf16>, vector<32x128xbf16>, vector<8x128xf32> -> vector<8x128xf32>
    %223 = arith.addf %219, %222 : vector<8x128xf32>
    %224 = vector.extract_strided_slice %72 {offsets = [464, 0], sizes = [8, 32], strides = [1, 1]} : vector<648x32xbf16> to vector<8x32xbf16>
    %c1216 = arith.constant 1216 : index
    %c0_134 = arith.constant 0 : index
    %225 = vector.load %arg6[%c1216, %c0_134] : memref<1568x128xbf16, #tpu.memory_space<vmem>>, vector<32x128xbf16>
    %cst_135 = arith.constant dense<0.000000e+00> : vector<8x128xf32>
    %226 = tpu.matmul %224, %225, %cst_135 {dimension_numbers = #tpu.dot_dimension_numbers<[1], [0], [0], [1], [0, 0, 1, 1], [], []>} : vector<8x32xbf16>, vector<32x128xbf16>, vector<8x128xf32> -> vector<8x128xf32>
    %227 = arith.addf %223, %226 : vector<8x128xf32>
    %228 = vector.extract_strided_slice %72 {offsets = [472, 0], sizes = [8, 32], strides = [1, 1]} : vector<648x32xbf16> to vector<8x32xbf16>
    %c1248 = arith.constant 1248 : index
    %c0_136 = arith.constant 0 : index
    %229 = vector.load %arg6[%c1248, %c0_136] : memref<1568x128xbf16, #tpu.memory_space<vmem>>, vector<32x128xbf16>
    %cst_137 = arith.constant dense<0.000000e+00> : vector<8x128xf32>
    %230 = tpu.matmul %228, %229, %cst_137 {dimension_numbers = #tpu.dot_dimension_numbers<[1], [0], [0], [1], [0, 0, 1, 1], [], []>} : vector<8x32xbf16>, vector<32x128xbf16>, vector<8x128xf32> -> vector<8x128xf32>
    %231 = arith.addf %227, %230 : vector<8x128xf32>
    %232 = vector.extract_strided_slice %72 {offsets = [480, 0], sizes = [8, 32], strides = [1, 1]} : vector<648x32xbf16> to vector<8x32xbf16>
    %c1280 = arith.constant 1280 : index
    %c0_138 = arith.constant 0 : index
    %233 = vector.load %arg6[%c1280, %c0_138] : memref<1568x128xbf16, #tpu.memory_space<vmem>>, vector<32x128xbf16>
    %cst_139 = arith.constant dense<0.000000e+00> : vector<8x128xf32>
    %234 = tpu.matmul %232, %233, %cst_139 {dimension_numbers = #tpu.dot_dimension_numbers<[1], [0], [0], [1], [0, 0, 1, 1], [], []>} : vector<8x32xbf16>, vector<32x128xbf16>, vector<8x128xf32> -> vector<8x128xf32>
    %235 = arith.addf %231, %234 : vector<8x128xf32>
    %236 = vector.extract_strided_slice %72 {offsets = [488, 0], sizes = [8, 32], strides = [1, 1]} : vector<648x32xbf16> to vector<8x32xbf16>
    %c1312 = arith.constant 1312 : index
    %c0_140 = arith.constant 0 : index
    %237 = vector.load %arg6[%c1312, %c0_140] : memref<1568x128xbf16, #tpu.memory_space<vmem>>, vector<32x128xbf16>
    %cst_141 = arith.constant dense<0.000000e+00> : vector<8x128xf32>
    %238 = tpu.matmul %236, %237, %cst_141 {dimension_numbers = #tpu.dot_dimension_numbers<[1], [0], [0], [1], [0, 0, 1, 1], [], []>} : vector<8x32xbf16>, vector<32x128xbf16>, vector<8x128xf32> -> vector<8x128xf32>
    %239 = arith.addf %235, %238 : vector<8x128xf32>
    %240 = vector.extract_strided_slice %72 {offsets = [512, 0], sizes = [8, 32], strides = [1, 1]} : vector<648x32xbf16> to vector<8x32xbf16>
    %c1344 = arith.constant 1344 : index
    %c0_142 = arith.constant 0 : index
    %241 = vector.load %arg6[%c1344, %c0_142] : memref<1568x128xbf16, #tpu.memory_space<vmem>>, vector<32x128xbf16>
    %cst_143 = arith.constant dense<0.000000e+00> : vector<8x128xf32>
    %242 = tpu.matmul %240, %241, %cst_143 {dimension_numbers = #tpu.dot_dimension_numbers<[1], [0], [0], [1], [0, 0, 1, 1], [], []>} : vector<8x32xbf16>, vector<32x128xbf16>, vector<8x128xf32> -> vector<8x128xf32>
    %243 = arith.addf %239, %242 : vector<8x128xf32>
    %244 = vector.extract_strided_slice %72 {offsets = [520, 0], sizes = [8, 32], strides = [1, 1]} : vector<648x32xbf16> to vector<8x32xbf16>
    %c1376 = arith.constant 1376 : index
    %c0_144 = arith.constant 0 : index
    %245 = vector.load %arg6[%c1376, %c0_144] : memref<1568x128xbf16, #tpu.memory_space<vmem>>, vector<32x128xbf16>
    %cst_145 = arith.constant dense<0.000000e+00> : vector<8x128xf32>
    %246 = tpu.matmul %244, %245, %cst_145 {dimension_numbers = #tpu.dot_dimension_numbers<[1], [0], [0], [1], [0, 0, 1, 1], [], []>} : vector<8x32xbf16>, vector<32x128xbf16>, vector<8x128xf32> -> vector<8x128xf32>
    %247 = arith.addf %243, %246 : vector<8x128xf32>
    %248 = vector.extract_strided_slice %72 {offsets = [528, 0], sizes = [8, 32], strides = [1, 1]} : vector<648x32xbf16> to vector<8x32xbf16>
    %c1408 = arith.constant 1408 : index
    %c0_146 = arith.constant 0 : index
    %249 = vector.load %arg6[%c1408, %c0_146] : memref<1568x128xbf16, #tpu.memory_space<vmem>>, vector<32x128xbf16>
    %cst_147 = arith.constant dense<0.000000e+00> : vector<8x128xf32>
    %250 = tpu.matmul %248, %249, %cst_147 {dimension_numbers = #tpu.dot_dimension_numbers<[1], [0], [0], [1], [0, 0, 1, 1], [], []>} : vector<8x32xbf16>, vector<32x128xbf16>, vector<8x128xf32> -> vector<8x128xf32>
    %251 = arith.addf %247, %250 : vector<8x128xf32>
    %252 = vector.extract_strided_slice %72 {offsets = [536, 0], sizes = [8, 32], strides = [1, 1]} : vector<648x32xbf16> to vector<8x32xbf16>
    %c1440 = arith.constant 1440 : index
    %c0_148 = arith.constant 0 : index
    %253 = vector.load %arg6[%c1440, %c0_148] : memref<1568x128xbf16, #tpu.memory_space<vmem>>, vector<32x128xbf16>
    %cst_149 = arith.constant dense<0.000000e+00> : vector<8x128xf32>
    %254 = tpu.matmul %252, %253, %cst_149 {dimension_numbers = #tpu.dot_dimension_numbers<[1], [0], [0], [1], [0, 0, 1, 1], [], []>} : vector<8x32xbf16>, vector<32x128xbf16>, vector<8x128xf32> -> vector<8x128xf32>
    %255 = arith.addf %251, %254 : vector<8x128xf32>
    %256 = vector.extract_strided_slice %72 {offsets = [544, 0], sizes = [8, 32], strides = [1, 1]} : vector<648x32xbf16> to vector<8x32xbf16>
    %c1472 = arith.constant 1472 : index
    %c0_150 = arith.constant 0 : index
    %257 = vector.load %arg6[%c1472, %c0_150] : memref<1568x128xbf16, #tpu.memory_space<vmem>>, vector<32x128xbf16>
    %cst_151 = arith.constant dense<0.000000e+00> : vector<8x128xf32>
    %258 = tpu.matmul %256, %257, %cst_151 {dimension_numbers = #tpu.dot_dimension_numbers<[1], [0], [0], [1], [0, 0, 1, 1], [], []>} : vector<8x32xbf16>, vector<32x128xbf16>, vector<8x128xf32> -> vector<8x128xf32>
    %259 = arith.addf %255, %258 : vector<8x128xf32>
    %260 = vector.extract_strided_slice %72 {offsets = [552, 0], sizes = [8, 32], strides = [1, 1]} : vector<648x32xbf16> to vector<8x32xbf16>
    %c1504 = arith.constant 1504 : index
    %c0_152 = arith.constant 0 : index
    %261 = vector.load %arg6[%c1504, %c0_152] : memref<1568x128xbf16, #tpu.memory_space<vmem>>, vector<32x128xbf16>
    %cst_153 = arith.constant dense<0.000000e+00> : vector<8x128xf32>
    %262 = tpu.matmul %260, %261, %cst_153 {dimension_numbers = #tpu.dot_dimension_numbers<[1], [0], [0], [1], [0, 0, 1, 1], [], []>} : vector<8x32xbf16>, vector<32x128xbf16>, vector<8x128xf32> -> vector<8x128xf32>
    %263 = arith.addf %259, %262 : vector<8x128xf32>
    %264 = vector.extract_strided_slice %72 {offsets = [560, 0], sizes = [8, 32], strides = [1, 1]} : vector<648x32xbf16> to vector<8x32xbf16>
    %c1536 = arith.constant 1536 : index
    %c0_154 = arith.constant 0 : index
    %265 = vector.load %arg6[%c1536, %c0_154] : memref<1568x128xbf16, #tpu.memory_space<vmem>>, vector<32x128xbf16>
    %cst_155 = arith.constant dense<0.000000e+00> : vector<8x128xf32>
    %266 = tpu.matmul %264, %265, %cst_155 {dimension_numbers = #tpu.dot_dimension_numbers<[1], [0], [0], [1], [0, 0, 1, 1], [], []>} : vector<8x32xbf16>, vector<32x128xbf16>, vector<8x128xf32> -> vector<8x128xf32>
    %267 = arith.addf %263, %266 : vector<8x128xf32>
    %c0_156 = arith.constant 0 : index
    %c0_157 = arith.constant 0 : index
    %268 = vector.load %arg7[%c0_156, %c0_157] : memref<1x128xf32, #tpu.memory_space<vmem>>, vector<1x128xf32>
    %269 = vector.broadcast %268 : vector<1x128xf32> to vector<8x128xf32>
    %270 = arith.addf %267, %269 : vector<8x128xf32>
    %cst_158 = arith.constant 0.000000e+00 : f32
    %271 = vector.broadcast %cst_158 : f32 to vector<8x128xf32>
    %272 = arith.maximumf %270, %271 : vector<8x128xf32>
    %273 = arith.truncf %272 : vector<8x128xf32> to vector<8x128xbf16>
    %c0_159 = arith.constant 0 : index
    %c0_160 = arith.constant 0 : index
    %274 = vector.load %arg8[%c0_159, %c0_160] : memref<128x10xbf16, #tpu.memory_space<vmem>>, vector<128x10xbf16>
    %cst_161 = arith.constant dense<0.000000e+00> : vector<8x10xf32>
    %275 = tpu.matmul %273, %274, %cst_161 {dimension_numbers = #tpu.dot_dimension_numbers<[1], [0], [0], [1], [0, 0, 1, 1], [], []>} : vector<8x128xbf16>, vector<128x10xbf16>, vector<8x10xf32> -> vector<8x10xf32>
    %c0_162 = arith.constant 0 : index
    %c0_163 = arith.constant 0 : index
    %276 = vector.load %arg9[%c0_162, %c0_163] : memref<1x10xf32, #tpu.memory_space<vmem>>, vector<1x10xf32>
    %277 = vector.broadcast %276 : vector<1x10xf32> to vector<8x10xf32>
    %278 = arith.addf %275, %277 : vector<8x10xf32>
    %c0_164 = arith.constant 0 : index
    %c0_165 = arith.constant 0 : index
    %279 = vector.load %arg10[%c0_164, %c0_165] : memref<8x10xf32, #tpu.memory_space<vmem>>, vector<8x10xf32>
    tpu.vector_store %arg10[%c0_164, %c0_165], %278 {strides = array<i32>} : memref<8x10xf32, #tpu.memory_space<vmem>>, vector<8x10xf32>,
    return
  }
  func.func @transform_0(%arg0: i32) -> (i32, i32) {
    %c0_i32 = arith.constant 0 : i32
    %c0_i32_0 = arith.constant 0 : i32
    return %arg0, %c0_i32 : i32, i32
  }
  func.func @transform_1(%arg0: i32) -> (i32, i32) {
    %c0_i32 = arith.constant 0 : i32
    %c0_i32_0 = arith.constant 0 : i32
    %c0_i32_1 = arith.constant 0 : i32
    return %c0_i32, %c0_i32_0 : i32, i32
  }
  func.func @transform_2(%arg0: i32) -> (i32, i32) {
    %c0_i32 = arith.constant 0 : i32
    %c0_i32_0 = arith.constant 0 : i32
    %c0_i32_1 = arith.constant 0 : i32
    return %c0_i32, %c0_i32_0 : i32, i32
  }
  func.func @transform_3(%arg0: i32) -> (i32, i32) {
    %c0_i32 = arith.constant 0 : i32
    %c0_i32_0 = arith.constant 0 : i32
    %c0_i32_1 = arith.constant 0 : i32
    return %c0_i32, %c0_i32_0 : i32, i32
  }
  func.func @transform_4(%arg0: i32) -> (i32, i32) {
    %c0_i32 = arith.constant 0 : i32
    %c0_i32_0 = arith.constant 0 : i32
    %c0_i32_1 = arith.constant 0 : i32
    return %c0_i32, %c0_i32_0 : i32, i32
  }
  func.func @transform_5(%arg0: i32) -> (i32, i32) {
    %c0_i32 = arith.constant 0 : i32
    %c0_i32_0 = arith.constant 0 : i32
    %c0_i32_1 = arith.constant 0 : i32
    return %c0_i32, %c0_i32_0 : i32, i32
  }
  func.func @transform_6(%arg0: i32) -> (i32, i32) {
    %c0_i32 = arith.constant 0 : i32
    %c0_i32_0 = arith.constant 0 : i32
    %c0_i32_1 = arith.constant 0 : i32
    return %c0_i32, %c0_i32_0 : i32, i32
  }
  func.func @transform_7(%arg0: i32) -> (i32, i32) {
    %c0_i32 = arith.constant 0 : i32
    %c0_i32_0 = arith.constant 0 : i32
    %c0_i32_1 = arith.constant 0 : i32
    return %c0_i32, %c0_i32_0 : i32, i32
  }
  func.func @transform_8(%arg0: i32) -> (i32, i32) {
    %c0_i32 = arith.constant 0 : i32
    %c0_i32_0 = arith.constant 0 : i32
    %c0_i32_1 = arith.constant 0 : i32
    return %c0_i32, %c0_i32_0 : i32, i32
  }
  func.func @transform_9(%arg0: i32) -> (i32, i32) {
    %c0_i32 = arith.constant 0 : i32
    %c0_i32_0 = arith.constant 0 : i32
    return %arg0, %c0_i32 : i32, i32
  }
}

</mosaic_0001>

<bundles_post_ra>
// kernel: dnn3_forward.1
= control target key start
LH: loop header
LB: loop body
LE: loop exit
PB: predicated region body
PF: predicated region fallthrough
CT: control target
= control target key end

     0   :  { %v15734_v0 = vmov 0.0   ;;  %vm15735_vm0 = vmmov 0   ;;  %vm213_vm1 = vcmask 130048   ;;  %s15736_s30 = smov 112   ;;  %vm1141_vm2 = vcmask 125952   ;;  %s15738_s20 = smov 96   ;;  %s19342_s1 = inlined_call_operand.vmem [shape: bf16[16,64], index: 1, kind: input, shape index: {}]   ;;  %s19343_s0 = inlined_call_operand.vmem [shape: bf16[392,16], index: 0, kind: input, shape index: {}]   ;;  %s19344_s3 = inlined_call_operand.vmem [shape: bf16[144,32], index: 3, kind: input, shape index: {}]   ;;  %s19345_s2 = inlined_call_operand.vmem [shape: f32[1,16], index: 2, kind: input, shape index: {}]   ;;  %s19346_s5 = inlined_call_operand.vmem [shape: bf16[1568,128], index: 5, kind: input, shape index: {}]   ;;  %s19347_s4 = inlined_call_operand.vmem [shape: f32[1,32], index: 4, kind: input, shape index: {}]   ;;  %s19348_s7 = inlined_call_operand.vmem [shape: bf16[128,10], index: 7, kind: input, shape index: {}]   ;;  %s19349_s6 = inlined_call_operand.vmem [shape: f32[1,128], index: 6, kind: input, shape index: {}]   ;;  %s19350_s8 = inlined_call_operand.vmem [shape: f32[1,10], index: 8, kind: input, shape index: {}]   ;;  %s19351_s9 = inlined_call_operand.vmem [shape: f32[8,10], index: 9, kind: output, shape index: {}]  }
   0x1   :  { %13242 = vmatprep.subr.bf16.mxu0 %v15734_v0  ;;  %v15257_v1 = vld [vmem:[%s19342_s1] sm:$0xff]   ;;  %13244 = vmatprep.mubr.msk.bf16.mxu0 %vm15735_vm0, %v15734_v0  ;;  %v15259_v3 = vld [vmem:[%s19343_s0 + $0x8] sm:$0xff]   ;;  %v15260_v4 = vld [vmem:[%s19343_s0 + $0x10] sm:$0xff]   ;;  %v15737_v43 = vmov 0   ;;  %vm8535_vm3 = vcmask 261120   ;;  %vm11621_vm4 = vcmask 80896  }
   0x2   :  { %v15258_v2 = vld [vmem:[%s19343_s0] sm:$0xff]   ;;  %15250 = vmatprep.subr.bf16.mxu1 %v15734_v0  ;;  %13350 = vmatprep.mubr.msk.bf16.mxu1 %vm15735_vm0, %v15734_v0  ;;  %v15261_v5 = vld [vmem:[%s19343_s0 + $0x18] sm:$0xff]   ;;  %v15263_v7 = vld [vmem:[%s19343_s0 + $0x28] sm:$0xff]   ;;  %1143 = vst.msk [vmem:[#allocation2 + $0x4] sm:$0xf] %vm1141_vm2, %v15737_v43 }
   0x3   :  { %13243 = vmatpush3.bf16.msra.mxu0 %v15257_v1  ;;  %v15262_v6 = vld [vmem:[%s19343_s0 + $0x20] sm:$0xff]   ;;  %v15264_v8 = vld [vmem:[%s19343_s0 + $0x30] sm:$0xff]   ;;  %v15265_v9 = vld [vmem:[%s19343_s0 + $0x38] sm:$0xff]   ;;  %1144 = vst.msk [vmem:[#allocation2 + $0x8] sm:$0xf] %vm1141_vm2, %v15737_v43 }
   0x4   :  { %13344 = vmatprep.subr.bf16.mxu0 %v15734_v0  ;;  %v15266_v10 = vld [vmem:[%s19343_s0 + $0x40] sm:$0xff]   ;;  %v15267_v11 = vld [vmem:[%s19343_s0 + $0x48] sm:$0xff]   ;;  %v15268_v12 = vld [vmem:[%s19343_s0 + $0x50] sm:$0xff]   ;;  %1142 = vst.msk [vmem:[#allocation2] sm:$0xf] %vm1141_vm2, %v15737_v43 }
   0x5   :  { %v15269_v13 = vld [vmem:[%s19343_s0 + $0x58] sm:$0xff]   ;;  %v15270_v14 = vld [vmem:[%s19343_s0 + $0x60] sm:$0xff]   ;;  %v15271_v15 = vld [vmem:[%s19343_s0 + $0x68] sm:$0xff]   ;;  %1145 = vst.msk [vmem:[#allocation2 + $0xc] sm:$0xf] %vm1141_vm2, %v15737_v43 }
   0x6   :  { %13245 = vmatmul.mubr.msk.bf16.vlgmr.msra.gmra.mrb[0].mxu0 %vm213_vm1, %v15258_v2  ;;  %v15272_v16 = vld [vmem:[%s19343_s0 + $0x70] sm:$0xff]   ;;  %v15273_v17 = vld [vmem:[%s19343_s0 + $0x78] sm:$0xff]   ;;  %v15274_v18 = vld [vmem:[%s19343_s0 + $0x80] sm:$0xff]   ;;  %1146 = vst.msk [vmem:[#allocation2 + $0x10] sm:$0xf] %vm1141_vm2, %v15737_v43 }
   0x7   :  { %13248 = vmatprep.mubr.msk.bf16.mxu0 %vm15735_vm0, %v15734_v0  ;;  %v15275_v19 = vld [vmem:[%s19343_s0 + $0x88] sm:$0xff]   ;;  %v15276_v20 = vld [vmem:[%s19343_s0 + $0x90] sm:$0xff]   ;;  %v15277_v21 = vld [vmem:[%s19343_s0 + $0x98] sm:$0xff]   ;;  %1147 = vst.msk [vmem:[#allocation2 + $0x14] sm:$0xf] %vm1141_vm2, %v15737_v43 }
   0x8   :  { %v15278_v22 = vld [vmem:[%s19343_s0 + $0xa0] sm:$0xff]   ;;  %v15279_v27 = vld [vmem:[%s19343_s0 + $0xa8] sm:$0xff]   ;;  %v15280_v32 = vld [vmem:[%s19343_s0 + $0xb0] sm:$0xff]   ;;  %1148 = vst.msk [vmem:[#allocation2 + $0x18] sm:$0xf] %vm1141_vm2, %v15737_v43 }
   0x9   :  { %v15281_v37 = vld [vmem:[%s19343_s0 + $0xb8] sm:$0xff]   ;;  %v15978_v42 = vld [vmem:[%s19343_s0 + $0xc0] ss:$0 sps:$4 sm:$0xff]   ;;  %1149 = vst.msk [vmem:[#allocation2 + $0x1c] sm:$0xf] %vm1141_vm2, %v15737_v43  ;;  %v15283_v47 = vld [vmem:[%s19344_s3 + $0x8] sm:$0xff]  }
   0xa   :  { %1150 = vst.msk [vmem:[#allocation2 + $0x20] sm:$0xf] %vm1141_vm2, %v15737_v43  ;;  %1151 = vst.msk [vmem:[#allocation2 + $0x24] sm:$0xf] %vm1141_vm2, %v15737_v43  ;;  %13345 = vmatpush3.bf16.msra.mxu0 %v15283_v47  ;;  %v1465_v49 = vld [vmem:[#allocation2 + $0x4] sm:$0xf]  ;;  %15251 = vmatpush3.bf16.msra.mxu1 %v15283_v47 }
   0xb   :  { %1152 = vst.msk [vmem:[#allocation2 + $0x28] sm:$0xf] %vm1141_vm2, %v15737_v43  ;;  %1153 = vst.msk [vmem:[#allocation2 + $0x2c] sm:$0xf] %vm1141_vm2, %v15737_v43  ;;  %v1466_v50 = vld [vmem:[#allocation2 + $0x8] sm:$0xf]  ;;  %13510 = vmatprep.subr.bf16.mxu0 %v15734_v0  ;;  %13676 = vmatprep.subr.bf16.mxu1 %v15734_v0 }
   0xc   :  { %1154 = vst.msk [vmem:[#allocation2 + $0x30] sm:$0xf] %vm1141_vm2, %v15737_v43  ;;  %1155 = vst.msk [vmem:[#allocation2 + $0x34] sm:$0xf] %vm1141_vm2, %v15737_v43  ;;  %v11728_v51 = vcombine.low %v1465_v49, %v1466_v50  ;;  %v15285_v55 = vld [vmem:[%s19344_s3] sm:$0xff]  }
   0xd   :  { %1156 = vst.msk [vmem:[#allocation2 + $0x38] sm:$0xf] %vm1141_vm2, %v15737_v43  ;;  %1157 = vst.msk [vmem:[#allocation2 + $0x3c] sm:$0xf] %vm1141_vm2, %v15737_v43  ;;  %v1464_v57 = vld [vmem:[#allocation2] sm:$0xf] }
   0xe   :  { %13249 = vmatmul.mubr.msk.bf16.gmra.mrb[4].mxu0 %vm213_vm1, %v15259_v3  ;;  %1158 = vst.msk [vmem:[#allocation2 + $0x40] sm:$0xf] %vm1141_vm2, %v15737_v43  ;;  %1159 = vst.msk [vmem:[#allocation2 + $0x44] sm:$0xf] %vm1141_vm2, %v15737_v43  ;;  %v11811_v58 = vcombine.low %v1464_v57, %v1465_v49  ;;  %v1467_v62 = vld [vmem:[#allocation2 + $0xc] sm:$0xf] }
   0xf   :  { %13252 = vmatprep.mubr.msk.bf16.mxu0 %vm15735_vm0, %v15734_v0  ;;  %1160 = vst.msk [vmem:[#allocation2 + $0x48] sm:$0xf] %vm1141_vm2, %v15737_v43  ;;  %1161 = vst.msk [vmem:[#allocation2 + $0x4c] sm:$0xf] %vm1141_vm2, %v15737_v43  ;;  %v1468_v63 = vld [vmem:[#allocation2 + $0x10] sm:$0xf]  ;;  %v11812_v2 = vcombine.low %v1466_v50, %v1467_v62 }
  0x10   :  { %1162 = vst.msk [vmem:[#allocation2 + $0x50] sm:$0xf] %vm1141_vm2, %v15737_v43  ;;  %1163 = vst.msk [vmem:[#allocation2 + $0x54] sm:$0xf] %vm1141_vm2, %v15737_v43  ;;  %v11729_v3 = vcombine.low %v1467_v62, %v1468_v63 }
  0x11   :  { %1164 = vst.msk [vmem:[#allocation2 + $0x58] sm:$0xf] %vm1141_vm2, %v15737_v43  ;;  %1165 = vst.msk [vmem:[#allocation2 + $0x5c] sm:$0xf] %vm1141_vm2, %v15737_v43 }
  0x12   :  { %1166 = vst.msk [vmem:[#allocation2 + $0x60] sm:$0xf] %vm1141_vm2, %v15737_v43  ;;  %1167 = vst.msk [vmem:[#allocation2 + $0x64] sm:$0xf] %vm1141_vm2, %v15737_v43  ;;  %13351 = vmatmul.mubr.msk.bf16.vlgmr.msra.gmra.mrb[0].mxu1 %vm213_vm1, %v11729_v3 }
  0x13   :  { %1168 = vst.msk [vmem:[#allocation2 + $0x68] sm:$0xf] %vm1141_vm2, %v15737_v43  ;;  %1169 = vst.msk [vmem:[#allocation2 + $0x6c] sm:$0xf] %vm1141_vm2, %v15737_v43  ;;  %13354 = vmatprep.mubr.msk.bf16.mxu1 %vm15735_vm0, %v15734_v0  ;;  %v1477_v47 = vld [vmem:[#allocation2 + $0x34] sm:$0xf] }
  0x14   :  { %1170 = vst.msk [vmem:[#allocation2 + $0x70] sm:$0xf] %vm1141_vm2, %v15737_v43  ;;  %1171 = vst.msk [vmem:[#allocation2 + $0x74] sm:$0xf] %vm1141_vm2, %v15737_v43 }
  0x15   :  { %1172 = vst.msk [vmem:[#allocation2 + $0x78] sm:$0xf] %vm1141_vm2, %v15737_v43  ;;  %1173 = vst.msk [vmem:[#allocation2 + $0x7c] sm:$0xf] %vm1141_vm2, %v15737_v43 }
  0x16   :  { %13253 = vmatmul.mubr.msk.bf16.gmra.mrb[8].mxu0 %vm213_vm1, %v15260_v4  ;;  %1174 = vst.msk [vmem:[#allocation2 + $0x80] sm:$0xf] %vm1141_vm2, %v15737_v43  ;;  %1175 = vst.msk [vmem:[#allocation2 + $0x84] sm:$0xf] %vm1141_vm2, %v15737_v43  ;;  %v1470_v4 = vld [vmem:[#allocation2 + $0x18] sm:$0xf] }
  0x17   :  { %13256 = vmatprep.mubr.msk.bf16.mxu0 %vm15735_vm0, %v15734_v0  ;;  %1176 = vst.msk [vmem:[#allocation2 + $0x88] sm:$0xf] %vm1141_vm2, %v15737_v43  ;;  %1177 = vst.msk [vmem:[#allocation2 + $0x8c] sm:$0xf] %vm1141_vm2, %v15737_v43 }
  0x18   :  { %1178 = vst.msk [vmem:[#allocation2 + $0x90] sm:$0xf] %vm1141_vm2, %v15737_v43  ;;  %1179 = vst.msk [vmem:[#allocation2 + $0x94] sm:$0xf] %vm1141_vm2, %v15737_v43 }
  0x19   :  { %1180 = vst.msk [vmem:[#allocation2 + $0x98] sm:$0xf] %vm1141_vm2, %v15737_v43  ;;  %1181 = vst.msk [vmem:[#allocation2 + $0x9c] sm:$0xf] %vm1141_vm2, %v15737_v43 }
  0x1a   :  { %1182 = vst.msk [vmem:[#allocation2 + $0xa0] sm:$0xf] %vm1141_vm2, %v15737_v43  ;;  %1183 = vst.msk [vmem:[#allocation2 + $0xa4] sm:$0xf] %vm1141_vm2, %v15737_v43 }
  0x1b   :  { %1184 = vst.msk [vmem:[#allocation2 + $0xa8] sm:$0xf] %vm1141_vm2, %v15737_v43  ;;  %1185 = vst.msk [vmem:[#allocation2 + $0xac] sm:$0xf] %vm1141_vm2, %v15737_v43 }
  0x1c   :  { %1186 = vst.msk [vmem:[#allocation2 + $0xb0] sm:$0xf] %vm1141_vm2, %v15737_v43  ;;  %1187 = vst.msk [vmem:[#allocation2 + $0xb4] sm:$0xf] %vm1141_vm2, %v15737_v43 }
  0x1d   :  { %1188 = vst.msk [vmem:[#allocation2 + $0xb8] sm:$0xf] %vm1141_vm2, %v15737_v43  ;;  %1189 = vst.msk [vmem:[#allocation2 + $0xbc] sm:$0xf] %vm1141_vm2, %v15737_v43 }
  0x1e   :  { %13257 = vmatmul.mubr.msk.bf16.gmra.mrb[12].mxu0 %vm213_vm1, %v15261_v5  ;;  %1190 = vst.msk [vmem:[#allocation2 + $0xc0] sm:$0xf] %vm1141_vm2, %v15737_v43  ;;  %1191 = vst.msk [vmem:[#allocation2 + $0xc4] sm:$0xf] %vm1141_vm2, %v15737_v43  ;;  %v1469_v5 = vld [vmem:[#allocation2 + $0x14] sm:$0xf] }
  0x1f   :  { %13260 = vmatprep.mubr.msk.bf16.mxu0 %vm15735_vm0, %v15734_v0  ;;  %1192 = vst.msk [vmem:[#allocation2 + $0xc8] sm:$0xf] %vm1141_vm2, %v15737_v43  ;;  %1193 = vst.msk [vmem:[#allocation2 + $0xcc] sm:$0xf] %vm1141_vm2, %v15737_v43 }
  0x20   :  { %1194 = vst.msk [vmem:[#allocation2 + $0xd0] sm:$0xf] %vm1141_vm2, %v15737_v43  ;;  %1195 = vst.msk [vmem:[#allocation2 + $0xd4] sm:$0xf] %vm1141_vm2, %v15737_v43 }
  0x21   :  { %1196 = vst.msk [vmem:[#allocation2 + $0xd8] sm:$0xf] %vm1141_vm2, %v15737_v43  ;;  %1197 = vst.msk [vmem:[#allocation2 + $0xdc] sm:$0xf] %vm1141_vm2, %v15737_v43 }
  0x22   :  { %1198 = vst.msk [vmem:[#allocation2 + $0xe0] sm:$0xf] %vm1141_vm2, %v15737_v43  ;;  %1199 = vst.msk [vmem:[#allocation2 + $0xe4] sm:$0xf] %vm1141_vm2, %v15737_v43 }
  0x23   :  { %1200 = vst.msk [vmem:[#allocation2 + $0xe8] sm:$0xf] %vm1141_vm2, %v15737_v43  ;;  %1201 = vst.msk [vmem:[#allocation2 + $0xec] sm:$0xf] %vm1141_vm2, %v15737_v43 }
  0x24   :  { %1202 = vst.msk [vmem:[#allocation2 + $0xf0] sm:$0xf] %vm1141_vm2, %v15737_v43  ;;  %1203 = vst.msk [vmem:[#allocation2 + $0xf4] sm:$0xf] %vm1141_vm2, %v15737_v43 }
  0x25   :  { %1204 = vst.msk [vmem:[#allocation2 + $0xf8] sm:$0xf] %vm1141_vm2, %v15737_v43  ;;  %1205 = vst.msk [vmem:[#allocation2 + $0xfc] sm:$0xf] %vm1141_vm2, %v15737_v43 }
  0x26   :  { %13261 = vmatmul.mubr.msk.bf16.gmra.mrb[16].mxu0 %vm213_vm1, %v15262_v6  ;;  %1206 = vst.msk [vmem:[#allocation2 + $0x100] sm:$0xf] %vm1141_vm2, %v15737_v43  ;;  %1207 = vst.msk [vmem:[#allocation2 + $0x104] sm:$0xf] %vm1141_vm2, %v15737_v43 }
  0x27   :  { %13264 = vmatprep.mubr.msk.bf16.mxu0 %vm15735_vm0, %v15734_v0  ;;  %1208 = vst.msk [vmem:[#allocation2 + $0x108] sm:$0xf] %vm1141_vm2, %v15737_v43  ;;  %1209 = vst.msk [vmem:[#allocation2 + $0x10c] sm:$0xf] %vm1141_vm2, %v15737_v43 }
  0x28   :  { %1210 = vst.msk [vmem:[#allocation2 + $0x110] sm:$0xf] %vm1141_vm2, %v15737_v43  ;;  %1211 = vst.msk [vmem:[#allocation2 + $0x114] sm:$0xf] %vm1141_vm2, %v15737_v43 }
  0x29   :  { %1212 = vst.msk [vmem:[#allocation2 + $0x118] sm:$0xf] %vm1141_vm2, %v15737_v43  ;;  %1213 = vst.msk [vmem:[#allocation2 + $0x11c] sm:$0xf] %vm1141_vm2, %v15737_v43 }
  0x2a   :  { %1214 = vst.msk [vmem:[#allocation2 + $0x120] sm:$0xf] %vm1141_vm2, %v15737_v43  ;;  %1215 = vst.msk [vmem:[#allocation2 + $0x124] sm:$0xf] %vm1141_vm2, %v15737_v43 }
  0x2b   :  { %1216 = vst.msk [vmem:[#allocation2 + $0x128] sm:$0xf] %vm1141_vm2, %v15737_v43  ;;  %1217 = vst.msk [vmem:[#allocation2 + $0x12c] sm:$0xf] %vm1141_vm2, %v15737_v43 }
  0x2c   :  { %1218 = vst.msk [vmem:[#allocation2 + $0x130] sm:$0xf] %vm1141_vm2, %v15737_v43  ;;  %1219 = vst.msk [vmem:[#allocation2 + $0x134] sm:$0xf] %vm1141_vm2, %v15737_v43 }
  0x2d   :  { %1220 = vst.msk [vmem:[#allocation2 + $0x138] sm:$0xf] %vm1141_vm2, %v15737_v43  ;;  %1221 = vst.msk [vmem:[#allocation2 + $0x13c] sm:$0xf] %vm1141_vm2, %v15737_v43 }
  0x2e   :  { %13265 = vmatmul.mubr.msk.bf16.gmra.mrb[20].mxu0 %vm213_vm1, %v15263_v7  ;;  %1222 = vst.msk [vmem:[#allocation2 + $0x140] sm:$0xf] %vm1141_vm2, %v15737_v43  ;;  %1223 = vst.msk [vmem:[#allocation2 + $0x144] sm:$0xf] %vm1141_vm2, %v15737_v43 }
  0x2f   :  { %13268 = vmatprep.mubr.msk.bf16.mxu0 %vm15735_vm0, %v15734_v0  ;;  %1224 = vst.msk [vmem:[#allocation2 + $0x148] sm:$0xf] %vm1141_vm2, %v15737_v43  ;;  %1225 = vst.msk [vmem:[#allocation2 + $0x14c] sm:$0xf] %vm1141_vm2, %v15737_v43 }
  0x30   :  { %1226 = vst.msk [vmem:[#allocation2 + $0x150] sm:$0xf] %vm1141_vm2, %v15737_v43  ;;  %1227 = vst.msk [vmem:[#allocation2 + $0x154] sm:$0xf] %vm1141_vm2, %v15737_v43 }
  0x31   :  { %1228 = vst.msk [vmem:[#allocation2 + $0x158] sm:$0xf] %vm1141_vm2, %v15737_v43  ;;  %1229 = vst.msk [vmem:[#allocation2 + $0x15c] sm:$0xf] %vm1141_vm2, %v15737_v43 }
  0x32   :  { %1230 = vst.msk [vmem:[#allocation2 + $0x160] sm:$0xf] %vm1141_vm2, %v15737_v43  ;;  %1231 = vst.msk [vmem:[#allocation2 + $0x164] sm:$0xf] %vm1141_vm2, %v15737_v43 }
  0x33   :  { %1232 = vst.msk [vmem:[#allocation2 + $0x168] sm:$0xf] %vm1141_vm2, %v15737_v43  ;;  %1233 = vst.msk [vmem:[#allocation2 + $0x16c] sm:$0xf] %vm1141_vm2, %v15737_v43 }
  0x34   :  { %1234 = vst.msk [vmem:[#allocation2 + $0x170] sm:$0xf] %vm1141_vm2, %v15737_v43  ;;  %1235 = vst.msk [vmem:[#allocation2 + $0x174] sm:$0xf] %vm1141_vm2, %v15737_v43 }
  0x35   :  { %1236 = vst.msk [vmem:[#allocation2 + $0x178] sm:$0xf] %vm1141_vm2, %v15737_v43  ;;  %1237 = vst.msk [vmem:[#allocation2 + $0x17c] sm:$0xf] %vm1141_vm2, %v15737_v43 }
  0x36   :  { %13269 = vmatmul.mubr.msk.bf16.gmra.mrb[24].mxu0 %vm213_vm1, %v15264_v8  ;;  %1238 = vst.msk [vmem:[#allocation2 + $0x180] sm:$0xf] %vm1141_vm2, %v15737_v43  ;;  %1239 = vst.msk [vmem:[#allocation2 + $0x184] sm:$0xf] %vm1141_vm2, %v15737_v43  ;;  %v11730_v8 = vcombine.low %v1469_v5, %v1470_v4 }
  0x37   :  { %13272 = vmatprep.mubr.msk.bf16.mxu0 %vm15735_vm0, %v15734_v0  ;;  %1240 = vst.msk [vmem:[#allocation2 + $0x188] sm:$0xf] %vm1141_vm2, %v15737_v43  ;;  %1241 = vst.msk [vmem:[#allocation2 + $0x18c] sm:$0xf] %vm1141_vm2, %v15737_v43 }
  0x38   :  { %1242 = vst.msk [vmem:[#allocation2 + $0x190] sm:$0xf] %vm1141_vm2, %v15737_v43  ;;  %13355 = vmatmul.mubr.msk.bf16.gmra.mrb[4].mxu1 %vm213_vm1, %v11730_v8  ;;  %v1481_v8 = vld [vmem:[#allocation2 + $0x44] sm:$0xf] }
  0x39   :  { %13358 = vmatprep.mubr.msk.bf16.mxu1 %vm15735_vm0, %v15734_v0 }
  0x3e   :  { %13273 = vmatmul.mubr.msk.bf16.gmra.mrb[28].mxu0 %vm213_vm1, %v15265_v9 }
  0x3f   :  { %13276 = vmatprep.mubr.msk.bf16.mxu0 %vm15735_vm0, %v15734_v0 }
  0x46   :  { %13277 = vmatmul.mubr.msk.bf16.gmra.mrb[32].mxu0 %vm213_vm1, %v15266_v10 }
  0x47   :  { %13280 = vmatprep.mubr.msk.bf16.mxu0 %vm15735_vm0, %v15734_v0 }
  0x4e   :  { %13281 = vmatmul.mubr.msk.bf16.gmra.mrb[36].mxu0 %vm213_vm1, %v15267_v11  ;;  %v11813_v11 = vcombine.low %v1468_v63, %v1469_v5 }
  0x4f   :  { %13284 = vmatprep.mubr.msk.bf16.mxu0 %vm15735_vm0, %v15734_v0 }
  0x56   :  { %13285 = vmatmul.mubr.msk.bf16.gmra.mrb[40].mxu0 %vm213_vm1, %v15268_v12  ;;  %v1472_v12 = vld [vmem:[#allocation2 + $0x20] sm:$0xf] }
  0x57   :  { %13288 = vmatprep.mubr.msk.bf16.mxu0 %vm15735_vm0, %v15734_v0 }
  0x5e   :  { %13289 = vmatmul.mubr.msk.bf16.gmra.mrb[44].mxu0 %vm213_vm1, %v15269_v13  ;;  %v1471_v13 = vld [vmem:[#allocation2 + $0x1c] sm:$0xf] }
  0x5f   :  { %13292 = vmatprep.mubr.msk.bf16.mxu0 %vm15735_vm0, %v15734_v0 }
  0x66   :  { %13293 = vmatmul.mubr.msk.bf16.gmra.mrb[48].mxu0 %vm213_vm1, %v15270_v14 }
  0x67   :  { %13296 = vmatprep.mubr.msk.bf16.mxu0 %vm15735_vm0, %v15734_v0 }
  0x6e   :  { %13297 = vmatmul.mubr.msk.bf16.gmra.mrb[52].mxu0 %vm213_vm1, %v15271_v15 }
  0x6f   :  { %13300 = vmatprep.mubr.msk.bf16.mxu0 %vm15735_vm0, %v15734_v0 }
  0x76   :  { %13301 = vmatmul.mubr.msk.bf16.gmra.mrb[56].mxu0 %vm213_vm1, %v15272_v16  ;;  %v11731_v16 = vcombine.low %v1471_v13, %v1472_v12 }
  0x77   :  { %13304 = vmatprep.mubr.msk.bf16.mxu0 %vm15735_vm0, %v15734_v0 }
  0x78   :  { %13359 = vmatmul.mubr.msk.bf16.gmra.mrb[8].mxu1 %vm213_vm1, %v11731_v16  ;;  %v16302_v16 = vld [vmem:[#allocation2 + $0x4c] sm:$0xf] }
  0x79   :  { %13362 = vmatprep.mubr.msk.bf16.mxu1 %vm15735_vm0, %v15734_v0 }
  0x7e   :  { %13305 = vmatmul.mubr.msk.bf16.gmra.mrb[60].mxu0 %vm213_vm1, %v15273_v17 }
  0x7f   :  { %13308 = vmatprep.mubr.msk.bf16.mxu0 %vm15735_vm0, %v15734_v0 }
  0x86   :  { %13309 = vmatmul.mubr.msk.bf16.gmra.mrb[64].mxu0 %vm213_vm1, %v15274_v18 }
  0x87   :  { %13312 = vmatprep.mubr.msk.bf16.mxu0 %vm15735_vm0, %v15734_v0 }
  0x8e   :  { %13313 = vmatmul.mubr.msk.bf16.gmra.mrb[68].mxu0 %vm213_vm1, %v15275_v19  ;;  %v11814_v19 = vcombine.low %v1470_v4, %v1471_v13 }
  0x8f   :  { %13316 = vmatprep.mubr.msk.bf16.mxu0 %vm15735_vm0, %v15734_v0 }
  0x96   :  { %13317 = vmatmul.mubr.msk.bf16.gmra.mrb[72].mxu0 %vm213_vm1, %v15276_v20  ;;  %v1474_v20 = vld [vmem:[#allocation2 + $0x28] sm:$0xf] }
  0x97   :  { %13320 = vmatprep.mubr.msk.bf16.mxu0 %vm15735_vm0, %v15734_v0 }
  0x9e   :  { %13321 = vmatmul.mubr.msk.bf16.gmra.mrb[76].mxu0 %vm213_vm1, %v15277_v21  ;;  %v1473_v21 = vld [vmem:[#allocation2 + $0x24] sm:$0xf] }
  0x9f   :  { %13324 = vmatprep.mubr.msk.bf16.mxu0 %vm15735_vm0, %v15734_v0 }
  0xa6   :  { %13325 = vmatmul.mubr.msk.bf16.gmra.mrb[80].mxu0 %vm213_vm1, %v15278_v22 }
  0xa7   :  { %13328 = vmatprep.mubr.msk.bf16.mxu0 %vm15735_vm0, %v15734_v0 }
  0xae   :  { %13329 = vmatmul.mubr.msk.bf16.gmra.mrb[84].mxu0 %vm213_vm1, %v15279_v27 }
  0xaf   :  { %13332 = vmatprep.mubr.msk.bf16.mxu0 %vm15735_vm0, %v15734_v0 }
  0xb6   :  { %13333 = vmatmul.mubr.msk.bf16.gmra.mrb[88].mxu0 %vm213_vm1, %v15280_v32  ;;  %v1476_v32 = vld [vmem:[#allocation2 + $0x30] sm:$0xf] }
  0xb7   :  { %13336 = vmatprep.mubr.msk.bf16.mxu0 %vm15735_vm0, %v15734_v0 }
  0xbe   :  { %13337 = vmatmul.mubr.msk.bf16.gmra.mrb[92].mxu0 %vm213_vm1, %v15281_v37 }
  0xbf   :  { %13340 = vmatprep.mubr.msk.bf16.mxu0 %vm15735_vm0, %v15734_v0 }
  0xc6   :  { %13341 = vmatmul.mubr.msk.bf16.gmra.mrb[96].mxu0 %vm213_vm1, %v15978_v42 }
  0xc7   :  { %13346 = vmatprep.mubr.msk.bf16.mxu0 %vm15735_vm0, %v15734_v0 }
  0xce   :  { %13347 = vmatmul.mubr.msk.bf16.vlgmr.msra.gmra.mrb[100].mxu0 %vm213_vm1, %v11728_v51 }
  0xcf   :  { %13512 = vmatprep.mubr.msk.bf16.mxu0 %vm15735_vm0, %v15734_v0  ;;  %13511 = vmatpush3.bf16.msra.mxu0 %v15285_v55  ;;  %v11817_v55 = vcombine.low %v1476_v32, %v1477_v47 }
  0xd0   :  { %13842 = vmatprep.subr.bf16.mxu0 %v15734_v0 }
  0xd6   :  { %13513 = vmatmul.mubr.msk.bf16.vlgmr.msra.gmra.mrb[104].mxu0 %vm213_vm1, %v11811_v58 }
  0xd7   :  { %13516 = vmatprep.mubr.msk.bf16.mxu0 %vm15735_vm0, %v15734_v0 }
  0xd9   :  { %v15925_v23 = vpop.f32.mrb[0].mxu0 }
  0xda   :  { %570 = vrot.lane.b32.xlu0 %v15925_v23, %s15736_s30  ;;  %v13246_v24 = vpop.f32.mrb[1].mxu0 }
  0xdb   :  { %v15929_v25 = vpop.f32.mrb[2].mxu0 }
  0xdc   :  { %v13247_v26 = vpop.f32.mrb[3].mxu0 }
  0xdd   :  { %v11732_v26 = vcombine.low %v1473_v21, %v1474_v20 }
  0xde   :  { %572 = vrot.lane.b32.xlu0 %v15929_v25, %s15736_s30  ;;  %13517 = vmatmul.mubr.msk.bf16.gmra.mrb[108].mxu0 %vm213_vm1, %v11812_v2  ;;  %v1480_v2 = vld [vmem:[#allocation2 + $0x40] sm:$0xf] }
  0xdf   :  { %13520 = vmatprep.mubr.msk.bf16.mxu0 %vm15735_vm0, %v15734_v0  ;;  %13363 = vmatmul.mubr.msk.bf16.gmra.mrb[12].mxu1 %vm213_vm1, %v11732_v26 }
  0xe0   :  { %13366 = vmatprep.mubr.msk.bf16.mxu1 %vm15735_vm0, %v15734_v0 }
  0xe1   :  { %v15937_v28 = vpop.f32.mrb[4].mxu0 }
  0xe2   :  { %574 = vrot.lane.b32.xlu1 %v15937_v28, %s15736_s30  ;;  %v13250_v29 = vpop.f32.mrb[5].mxu0 }
  0xe3   :  { %v15943_v30 = vpop.f32.mrb[6].mxu0 }
  0xe4   :  { %v13251_v31 = vpop.f32.mrb[7].mxu0 }
  0xe5   :  { %v11815_v31 = vcombine.low %v1472_v12, %v1473_v21 }
  0xe6   :  { %576 = vrot.lane.b32.xlu1 %v15943_v30, %s15736_s30  ;;  %13521 = vmatmul.mubr.msk.bf16.gmra.mrb[112].mxu0 %vm213_vm1, %v11813_v11  ;;  %v1482_v11 = vld [vmem:[#allocation2 + $0x48] sm:$0xf] }
  0xe7   :  { %13524 = vmatprep.mubr.msk.bf16.mxu0 %vm15735_vm0, %v15734_v0  ;;  %v11736_v12 = vcombine.low %v1481_v8, %v1482_v11 }
  0xe9   :  { %v15951_v33 = vpop.f32.mrb[8].mxu0 }
  0xea   :  { %578 = vrot.lane.b32.xlu0 %v15951_v33, %s15736_s30  ;;  %v13254_v34 = vpop.f32.mrb[9].mxu0 }
  0xeb   :  { %v15957_v35 = vpop.f32.mrb[10].mxu0  ;;  %v1475_v34 = vld [vmem:[#allocation2 + $0x2c] sm:$0xf] }
  0xec   :  { %580 = vrot.lane.b32.xlu1 %v15957_v35, %s15736_s30  ;;  %v13255_v36 = vpop.f32.mrb[11].mxu0  ;;  %v11816_v43 = vcombine.low %v1474_v20, %v1475_v34 }
  0xee   :  { %13525 = vmatmul.mubr.msk.bf16.gmra.mrb[116].mxu0 %vm213_vm1, %v11814_v19 }
  0xef   :  { %13528 = vmatprep.mubr.msk.bf16.mxu0 %vm15735_vm0, %v15734_v0 }
  0xf1   :  { %v15965_v38 = vpop.f32.mrb[12].mxu0 }
  0xf2   :  { %582 = vrot.lane.b32.xlu0 %v15965_v38, %s15736_s30  ;;  %v13258_v39 = vpop.f32.mrb[13].mxu0 }
  0xf3   :  { %v15971_v40 = vpop.f32.mrb[14].mxu0  ;;  %v11733_v39 = vcombine.low %v1475_v34, %v1476_v32 }
  0xf4   :  { %584 = vrot.lane.b32.xlu1 %v15971_v40, %s15736_s30  ;;  %v13259_v41 = vpop.f32.mrb[15].mxu0 }
  0xf5   :  { %13367 = vmatmul.mubr.msk.bf16.gmra.mrb[16].mxu1 %vm213_vm1, %v11733_v39 }
  0xf6   :  { %13529 = vmatmul.mubr.msk.bf16.gmra.mrb[120].mxu0 %vm213_vm1, %v11815_v31  ;;  %13370 = vmatprep.mubr.msk.bf16.mxu1 %vm15735_vm0, %v15734_v0 }
  0xf7   :  { %13532 = vmatprep.mubr.msk.bf16.mxu0 %vm15735_vm0, %v15734_v0 }
  0xf9   :  { %v16184_v44 = vpop.f32.mrb[16].mxu0 }
  0xfa   :  { %586 = vrot.lane.b32.xlu0 %v16184_v44, %s15736_s30  ;;  %v13262_v45 = vpop.f32.mrb[17].mxu0 }
  0xfb   :  { %v16190_v46 = vpop.f32.mrb[18].mxu0  ;;  %v1478_v45 = vld [vmem:[#allocation2 + $0x38] sm:$0xf] }
  0xfc   :  { %588 = vrot.lane.b32.xlu1 %v16190_v46, %s15736_s30  ;;  %v13263_v48 = vpop.f32.mrb[19].mxu0  ;;  %v11734_v50 = vcombine.low %v1477_v47, %v1478_v45 }
  0xfe   :  { %13533 = vmatmul.mubr.msk.bf16.gmra.mrb[124].mxu0 %vm213_vm1, %v11816_v43  ;;  %13371 = vmatmul.mubr.msk.bf16.gmra.mrb[20].mxu1 %vm213_vm1, %v11734_v50 }
  0xff   :  { %13536 = vmatprep.mubr.msk.bf16.mxu0 %vm15735_vm0, %v15734_v0  ;;  %13374 = vmatprep.mubr.msk.bf16.mxu1 %vm15735_vm0, %v15734_v0 }
 0x101   :  { %v16200_v52 = vpop.f32.mrb[20].mxu0 }
 0x102   :  { %590 = vrot.lane.b32.xlu0 %v16200_v52, %s15736_s30  ;;  %v13266_v53 = vpop.f32.mrb[21].mxu0 }
 0x103   :  { %v16206_v54 = vpop.f32.mrb[22].mxu0 }
 0x104   :  { %592 = vrot.lane.b32.xlu1 %v16206_v54, %s15736_s30  ;;  %v13267_v56 = vpop.f32.mrb[23].mxu0 }
 0x105   :  { %v1479_v56 = vld [vmem:[#allocation2 + $0x3c] sm:$0xf] }
 0x106   :  { %13537 = vmatmul.mubr.msk.bf16.gmra.mrb[128].mxu0 %vm213_vm1, %v11817_v55  ;;  %v11818_v63 = vcombine.low %v1478_v45, %v1479_v56  ;;  %v11735_v4 = vcombine.low %v1479_v56, %v1480_v2 }
 0x107   :  { %13540 = vmatprep.mubr.msk.bf16.mxu0 %vm15735_vm0, %v15734_v0 }
 0x108   :  { %13375 = vmatmul.mubr.msk.bf16.gmra.mrb[24].mxu1 %vm213_vm1, %v11735_v4 }
 0x109   :  { %v16215_v59 = vpop.f32.mrb[24].mxu0  ;;  %13378 = vmatprep.mubr.msk.bf16.mxu1 %vm15735_vm0, %v15734_v0 }
 0x10a   :  { %594 = vrot.lane.b32.xlu0 %v16215_v59, %s15736_s30  ;;  %v13270_v60 = vpop.f32.mrb[25].mxu0 }
 0x10b   :  { %v16221_v61 = vpop.f32.mrb[26].mxu0 }
 0x10c   :  { %v13271_v1 = vpop.f32.mrb[27].mxu0 }
 0x10e   :  { %596 = vrot.lane.b32.xlu0 %v16221_v61, %s15736_s30  ;;  %13541 = vmatmul.mubr.msk.bf16.gmra.mrb[132].mxu0 %vm213_vm1, %v11818_v63 }
 0x10f   :  { %13544 = vmatprep.mubr.msk.bf16.mxu0 %vm15735_vm0, %v15734_v0 }
 0x110   :  { %13379 = vmatmul.mubr.msk.bf16.gmra.mrb[28].mxu1 %vm213_vm1, %v11736_v12 }
 0x111   :  { %v16229_v6 = vpop.f32.mrb[28].mxu0  ;;  %13382 = vmatprep.mubr.msk.bf16.mxu1 %vm15735_vm0, %v15734_v0 }
 0x112   :  { %v13274_v7 = vpop.f32.mrb[29].mxu0 }
 0x113   :  { %v16233_v9 = vpop.f32.mrb[30].mxu0 }
 0x114   :  { %v13275_v10 = vpop.f32.mrb[31].mxu0 }
 0x115   :  { %v11819_v10 = vcombine.low %v1480_v2, %v1481_v8 }
 0x117   :  { %13545 = vmatmul.mubr.msk.bf16.gmra.mrb[136].mxu0 %vm213_vm1, %v11819_v10 }
 0x118   :  { %13548 = vmatprep.mubr.msk.bf16.mxu0 %vm15735_vm0, %v15734_v0 }
 0x119   :  { %v16239_v14 = vpop.f32.mrb[32].mxu0 }
 0x11a   :  { %v13278_v15 = vpop.f32.mrb[33].mxu0 }
 0x11b   :  { %v16243_v17 = vpop.f32.mrb[34].mxu0 }
 0x11c   :  { %v13279_v18 = vpop.f32.mrb[35].mxu0 }
 0x11d   :  { %v11820_v18 = vcombine.low %v1482_v11, %v16302_v16 }
 0x11f   :  { %13549 = vmatmul.mubr.msk.bf16.gmra.mrb[140].mxu0 %vm213_vm1, %v11820_v18 }
 0x120   :  { %13552 = vmatprep.mubr.msk.bf16.mxu0 %vm15735_vm0, %v15734_v0 }
 0x121   :  { %v16249_v22 = vpop.f32.mrb[36].mxu0 }
 0x122   :  { %v13282_v24 = vpop.f32.mrb[37].mxu0 }
 0x123   :  { %v16253_v27 = vpop.f32.mrb[38].mxu0 }
 0x124   :  { %v13283_v29 = vpop.f32.mrb[39].mxu0 }
 0x129   :  { %v16259_v36 = vpop.f32.mrb[40].mxu0 }
 0x12a   :  { %v13286_v37 = vpop.f32.mrb[41].mxu0 }
 0x12b   :  { %v16263_v41 = vpop.f32.mrb[42].mxu0 }
 0x12c   :  { %v13287_v42 = vpop.f32.mrb[43].mxu0 }
 0x131   :  { %v16269_v48 = vpop.f32.mrb[44].mxu0 }
 0x132   :  { %v13290_v49 = vpop.f32.mrb[45].mxu0 }
 0x133   :  { %v16273_v51 = vpop.f32.mrb[46].mxu0 }
 0x134   :  { %v13291_v53 = vpop.f32.mrb[47].mxu0 }
 0x139   :  { %v16279_v57 = vpop.f32.mrb[48].mxu0 }
 0x13a   :  { %v13294_v58 = vpop.f32.mrb[49].mxu0 }
 0x13b   :  { %v16283_v60 = vpop.f32.mrb[50].mxu0 }
 0x13c   :  { %v13295_v62 = vpop.f32.mrb[51].mxu0 }
 0x141   :  { %v16286_v1 = vpop.f32.mrb[52].mxu0 }
 0x142   :  { %v13298_v3 = vpop.f32.mrb[53].mxu0 }
 0x143   :  { %v16290_v5 = vpop.f32.mrb[54].mxu0 }
 0x144   :  { %v13299_v7 = vpop.f32.mrb[55].mxu0 }
 0x149   :  { %v16324_v24 = vpop.f32.mrb[56].mxu0 }
 0x14a   :  { %v13302_v26 = vpop.f32.mrb[57].mxu0 }
 0x14b   :  { %v16331_v31 = vpop.f32.mrb[58].mxu0 }
 0x14c   :  { %v571_v13 = vpop.permute.xlu0 %570  ;;  %v13303_v32 = vpop.f32.mrb[59].mxu0 }
 0x14d   :  { %v16300_v15 = vmax.f32 %v15925_v23, %v571_v13 }
 0x14f   :  { %815 = vrot.lane.b32.xlu1 %v16300_v15, %s15738_s20 }
 0x150   :  { %v573_v19 = vpop.permute.xlu0 %572 }
 0x151   :  { %v16311_v20 = vmax.f32 %v15929_v25, %v573_v19  ;;  %v16343_v39 = vpop.f32.mrb[60].mxu0 }
 0x152   :  { %v13306_v42 = vpop.f32.mrb[61].mxu0 }
 0x153   :  { %817 = vrot.lane.b32.xlu1 %v16311_v20, %s15738_s20  ;;  %v16436_v42 = vld [vmem:[%s19345_s2] ss:$0 sm:$0xff] }
 0x154   :  { %v575_v23 = vpop.permute.xlu1 %574 }
 0x155   :  { %v16318_v21 = vmax.f32 %v15937_v28, %v575_v23 }
 0x157   :  { %819 = vrot.lane.b32.xlu0 %v16318_v21, %s15738_s20  ;;  %598 = vrot.lane.b32.xlu1 %v16229_v6, %s15736_s30 }
 0x158   :  { %v577_v25 = vpop.permute.xlu1 %576 }
 0x159   :  { %v16327_v29 = vmax.f32 %v15943_v30, %v577_v25 }
 0x15b   :  { %821 = vrot.lane.b32.xlu0 %v16327_v29, %s15738_s20 }
 0x15c   :  { %v579_v28 = vpop.permute.xlu0 %578 }
 0x15d   :  { %v16334_v34 = vmax.f32 %v15951_v33, %v579_v28  ;;  %v16349_v33 = vpop.f32.mrb[62].mxu0 }
 0x15e   :  { %v581_v37 = vpop.permute.xlu1 %580  ;;  %v13307_v45 = vpop.f32.mrb[63].mxu0 }
 0x15f   :  { %823 = vrot.lane.b32.xlu1 %v16334_v34, %s15738_s20  ;;  %600 = vrot.lane.b32.xlu0 %v16233_v9, %s15736_s30  ;;  %v16341_v30 = vmax.f32 %v15957_v35, %v581_v37  ;;  %v16358_v35 = vpop.f32.mrb[64].mxu0 }
 0x160   :  { %v13310_v50 = vpop.f32.mrb[65].mxu0 }
 0x161   :  { %v16364_v53 = vpop.f32.mrb[66].mxu0 }
 0x163   :  { %825 = vrot.lane.b32.xlu0 %v16341_v30, %s15738_s20  ;;  %602 = vrot.lane.b32.xlu1 %v16239_v14, %s15736_s30 }
 0x164   :  { %v583_v43 = vpop.permute.xlu0 %582 }
 0x165   :  { %v16352_v47 = vmax.f32 %v15965_v38, %v583_v43  ;;  %v13311_v38 = vpop.f32.mrb[67].mxu0 }
 0x166   :  { %v585_v49 = vpop.permute.xlu1 %584  ;;  %v16373_v62 = vpop.f32.mrb[68].mxu0 }
 0x167   :  { %827 = vrot.lane.b32.xlu1 %v16352_v47, %s15738_s20  ;;  %604 = vrot.lane.b32.xlu0 %v16243_v17, %s15736_s30  ;;  %v16367_v55 = vmax.f32 %v15971_v40, %v585_v49  ;;  %v13314_v3 = vpop.f32.mrb[69].mxu0 }
 0x168   :  { %v16385_v40 = vpop.f32.mrb[70].mxu0 }
 0x169   :  { %v13315_v7 = vpop.f32.mrb[71].mxu0 }
 0x16a   :  { %v16401_v11 = vpop.f32.mrb[72].mxu0 }
 0x16b   :  { %606 = vrot.lane.b32.xlu1 %v16249_v22, %s15736_s30  ;;  %608 = vrot.lane.b32.xlu0 %v16253_v27, %s15736_s30  ;;  %v13318_v12 = vpop.f32.mrb[73].mxu0 }
 0x16c   :  { %v587_v56 = vpop.permute.xlu0 %586  ;;  %v16406_v13 = vpop.f32.mrb[74].mxu0 }
 0x16d   :  { %v16376_v63 = vmax.f32 %v16184_v44, %v587_v56 }
 0x16e   :  { %v589_v58 = vpop.permute.xlu1 %588 }
 0x16f   :  { %829 = vrot.lane.b32.xlu0 %v16367_v55, %s15738_s20  ;;  %610 = vrot.lane.b32.xlu1 %v16259_v36, %s15736_s30  ;;  %v16379_v2 = vmax.f32 %v16190_v46, %v589_v58  ;;  %v15306_v58 = vld [vmem:[%s19344_s3 + $0x10] sm:$0xff]  }
 0x170   :  { %13677 = vmatpush3.bf16.msra.mxu1 %v15306_v58 }
 0x171   :  { %14008 = vmatprep.subr.bf16.mxu1 %v15734_v0 }
 0x173   :  { %833 = vrot.lane.b32.xlu0 %v16379_v2, %s15738_s20  ;;  %831 = vrot.lane.b32.xlu1 %v16376_v63, %s15738_s20 }
 0x174   :  { %v591_v4 = vpop.permute.xlu0 %590 }
 0x175   :  { %v16388_v8 = vmax.f32 %v16200_v52, %v591_v4 }
 0x176   :  { %v593_v10 = vpop.permute.xlu1 %592 }
 0x177   :  { %835 = vrot.lane.b32.xlu1 %v16388_v8, %s15738_s20  ;;  %612 = vrot.lane.b32.xlu0 %v16263_v41, %s15736_s30  ;;  %v16395_v44 = vmax.f32 %v16206_v54, %v593_v10  ;;  %v13319_v54 = vpop.f32.mrb[75].mxu0 }
 0x178   :  { %v16415_v23 = vpop.f32.mrb[76].mxu0 }
 0x179   :  { %v13322_v25 = vpop.f32.mrb[77].mxu0 }
 0x17b   :  { %837 = vrot.lane.b32.xlu0 %v16395_v44, %s15738_s20  ;;  %614 = vrot.lane.b32.xlu1 %v16269_v48, %s15736_s30 }
 0x17c   :  { %v595_v46 = vpop.permute.xlu0 %594 }
 0x17d   :  { %v16404_v52 = vmax.f32 %v16215_v59, %v595_v46  ;;  %v16421_v59 = vpop.f32.mrb[78].mxu0 }
 0x17e   :  { %v13323_v26 = vpop.f32.mrb[79].mxu0 }
 0x17f   :  { %839 = vrot.lane.b32.xlu1 %v16404_v52, %s15738_s20  ;;  %616 = vrot.lane.b32.xlu0 %v16273_v51, %s15736_s30 }
 0x180   :  { %v597_v18 = vpop.permute.xlu0 %596 }
 0x181   :  { %v16413_v19 = vmax.f32 %v16221_v61, %v597_v18  ;;  %v16427_v61 = vpop.f32.mrb[80].mxu0 }
 0x182   :  { %v13326_v28 = vpop.f32.mrb[81].mxu0 }
 0x183   :  { %841 = vrot.lane.b32.xlu0 %v16413_v19, %s15738_s20  ;;  %618 = vrot.lane.b32.xlu1 %v16279_v57, %s15736_s30  ;;  %v16429_v32 = vpop.f32.mrb[82].mxu0 }
 0x184   :  { %v13327_v37 = vpop.f32.mrb[83].mxu0 }
 0x187   :  { %620 = vrot.lane.b32.xlu1 %v16283_v60, %s15736_s30  ;;  %622 = vrot.lane.b32.xlu0 %v16286_v1, %s15736_s30 }
 0x18b   :  { %624 = vrot.lane.b32.xlu0 %v16290_v5, %s15736_s30 }
 0x1c1   :  { %v816_v43 = vpop.permute.xlu1 %815 }
 0x1c2   :  { %v962_v45 = vmax.f32 %v16300_v15, %v816_v43 }
 0x1c4   :  { %v1018_v49 = vadd.f32 %v16436_v42, %v962_v45 }
 0x1c5   :  { %v818_v50 = vpop.permute.xlu1 %817 }
 0x1c6   :  { %v1067_v38 = vmax.f32 %v1018_v49, 0.0  ;;  %v963_v56 = vmax.f32 %v16311_v20, %v818_v50 }
 0x1c8   :  { %v12633_v3 = vpack.c.bf16 %v1067_v38, %v1067_v38  ;;  %v1019_v4 = vadd.f32 %v16436_v42, %v963_v56 }
 0x1c9   :  { %v820_v7 = vpop.permute.xlu0 %819  ;;  %v599_v10 = vpop.permute.xlu1 %598 }
 0x1ca   :  { %1268 = vst.msk [vmem:[#allocation2 + $0x50] sm:$0xf] %vm1141_vm2, %v12633_v3  ;;  %v1068_v46 = vmax.f32 %v1019_v4, 0.0  ;;  %v964_v15 = vmax.f32 %v16318_v21, %v820_v7  ;;  %v16448_v12 = vmax.f32 %v16229_v6, %v599_v10 }
 0x1cc   :  { %v12634_v20 = vpack.c.bf16 %v1068_v46, %v1068_v46  ;;  %v1020_v54 = vadd.f32 %v16436_v42, %v964_v15  ;;  %843 = vrot.lane.b32.xlu1 %v16448_v12, %s15738_s20 }
 0x1cd   :  { %v822_v18 = vpop.permute.xlu0 %821 }
 0x1ce   :  { %1269 = vst.msk [vmem:[#allocation2 + $0x54] sm:$0xf] %vm1141_vm2, %v12634_v20  ;;  %v1069_v25 = vmax.f32 %v1020_v54, 0.0  ;;  %v965_v26 = vmax.f32 %v16327_v29, %v822_v18 }
 0x1d0   :  { %v12635_v28 = vpack.c.bf16 %v1069_v25, %v1069_v25  ;;  %v1021_v21 = vadd.f32 %v16436_v42, %v965_v26  ;;  %v16487_v26 = vpop.f32.mrb[84].mxu0 }
 0x1d1   :  { %v824_v37 = vpop.permute.xlu1 %823  ;;  %v601_v6 = vpop.permute.xlu0 %600  ;;  %v1484_v43 = vld [vmem:[#allocation2 + $0x50] sm:$0xf] }
 0x1d2   :  { %1270 = vst.msk [vmem:[#allocation2 + $0x58] sm:$0xf] %vm1141_vm2, %v12635_v28  ;;  %v1070_v45 = vmax.f32 %v1021_v21, 0.0  ;;  %v966_v49 = vmax.f32 %v16334_v34, %v824_v37  ;;  %v16460_v50 = vmax.f32 %v16233_v9, %v601_v6  ;;  %v11737_v38 = vcombine.low %v16302_v16, %v1484_v43  ;;  %v13330_v28 = vpop.f32.mrb[85].mxu0 }
 0x1d3   :  { %v16493_v6 = vpop.f32.mrb[86].mxu0 }
 0x1d4   :  { %v12636_v56 = vpack.c.bf16 %v1070_v45, %v1070_v45  ;;  %v1022_v58 = vadd.f32 %v16436_v42, %v966_v49  ;;  %13383 = vmatmul.mubr.msk.bf16.gmra.mrb[32].mxu1 %vm213_vm1, %v11737_v38  ;;  %845 = vrot.lane.b32.xlu1 %v16460_v50, %s15738_s20 }
 0x1d5   :  { %v826_v29 = vpop.permute.xlu0 %825  ;;  %v603_v3 = vpop.permute.xlu1 %602  ;;  %v1485_v4 = vld [vmem:[#allocation2 + $0x54] sm:$0xf]  ;;  %13386 = vmatprep.mubr.msk.bf16.mxu1 %vm15735_vm0, %v15734_v0 }
 0x1d6   :  { %1271 = vst.msk [vmem:[#allocation2 + $0x5c] sm:$0xf] %vm1141_vm2, %v12636_v56  ;;  %v1071_v9 = vmax.f32 %v1022_v58, 0.0  ;;  %v967_v34 = vmax.f32 %v16341_v30, %v826_v29  ;;  %v16472_v16 = vmax.f32 %v16239_v14, %v603_v3  ;;  %v11821_v7 = vcombine.low %v1484_v43, %v1485_v4  ;;  %v13331_v56 = vpop.f32.mrb[87].mxu0 }
 0x1d8   :  { %v12637_v10 = vpack.c.bf16 %v1071_v9, %v1071_v9  ;;  %v1023_v46 = vadd.f32 %v16436_v42, %v967_v34  ;;  %847 = vrot.lane.b32.xlu0 %v16472_v16, %s15738_s20  ;;  %626 = vrot.lane.b32.xlu1 %v16324_v24, %s15736_s30 }
 0x1d9   :  { %13553 = vmatmul.mubr.msk.bf16.gmra.mrb[144].mxu0 %vm213_vm1, %v11821_v7  ;;  %v828_v15 = vpop.permute.xlu1 %827  ;;  %v605_v20 = vpop.permute.xlu0 %604  ;;  %v1486_v54 = vld [vmem:[#allocation2 + $0x58] sm:$0xf] }
 0x1da   :  { %1272 = vst.msk [vmem:[#allocation2 + $0x60] sm:$0xf] %vm1141_vm2, %v12637_v10  ;;  %v1072_v30 = vmax.f32 %v1023_v46, 0.0  ;;  %v968_v14 = vmax.f32 %v16352_v47, %v828_v15  ;;  %v16483_v18 = vmax.f32 %v16243_v17, %v605_v20  ;;  %v11738_v25 = vcombine.low %v1485_v4, %v1486_v54  ;;  %13556 = vmatprep.mubr.msk.bf16.mxu0 %vm15735_vm0, %v15734_v0  ;;  %v16513_v7 = vpop.f32.mrb[88].mxu0  ;;  %v1922_v10 = vpop.f32.mrb[0].mxu1 }
 0x1db   :  { %v13334_v46 = vpop.f32.mrb[89].mxu0  ;;  %v13352_v15 = vpop.f32.mrb[1].mxu1 }
 0x1dc   :  { %v12638_v21 = vpack.c.bf16 %v1072_v30, %v1072_v30  ;;  %v1024_v37 = vadd.f32 %v16436_v42, %v968_v14  ;;  %13387 = vmatmul.mubr.msk.bf16.gmra.mrb[36].mxu1 %vm213_vm1, %v11738_v25  ;;  %849 = vrot.lane.b32.xlu0 %v16483_v18, %s15738_s20 }
 0x1dd   :  { %v607_v47 = vpop.permute.xlu1 %606  ;;  %v609_v17 = vpop.permute.xlu0 %608  ;;  %v1487_v43 = vld [vmem:[#allocation2 + $0x5c] sm:$0xf]  ;;  %13390 = vmatprep.mubr.msk.bf16.mxu1 %vm15735_vm0, %v15734_v0 }
 0x1de   :  { %1273 = vst.msk [vmem:[#allocation2 + $0x64] sm:$0xf] %vm1141_vm2, %v12638_v21  ;;  %v1073_v45 = vmax.f32 %v1024_v37, 0.0  ;;  %v16499_v49 = vmax.f32 %v16249_v22, %v607_v47  ;;  %v11822_v38 = vcombine.low %v1486_v54, %v1487_v43  ;;  %v16508_v9 = vmax.f32 %v16253_v27, %v609_v17  ;;  %v16519_v27 = vpop.f32.mrb[90].mxu0  ;;  %v1924_v54 = vpop.f32.mrb[2].mxu1 }
 0x1df   :  { %v13335_v47 = vpop.f32.mrb[91].mxu0  ;;  %v13353_v17 = vpop.f32.mrb[3].mxu1 }
 0x1e0   :  { %v12639_v58 = vpack.c.bf16 %v1073_v45, %v1073_v45  ;;  %851 = vrot.lane.b32.xlu1 %v16499_v49, %s15738_s20  ;;  %628 = vrot.lane.b32.xlu0 %v16331_v31, %s15736_s30 }
 0x1e1   :  { %13557 = vmatmul.mubr.msk.bf16.gmra.mrb[148].mxu0 %vm213_vm1, %v11822_v38  ;;  %v830_v29 = vpop.permute.xlu0 %829  ;;  %v611_v3 = vpop.permute.xlu1 %610  ;;  %v1488_v4 = vld [vmem:[#allocation2 + $0x60] sm:$0xf] }
 0x1e2   :  { %1274 = vst.msk [vmem:[#allocation2 + $0x68] sm:$0xf] %vm1141_vm2, %v12639_v58  ;;  %v969_v22 = vmax.f32 %v16367_v55, %v830_v29  ;;  %v11739_v34 = vcombine.low %v1487_v43, %v1488_v4  ;;  %13560 = vmatprep.mubr.msk.bf16.mxu0 %vm15735_vm0, %v15734_v0  ;;  %v16528_v43 = vmax.f32 %v16259_v36, %v611_v3 }
 0x1e4   :  { %v1025_v20 = vadd.f32 %v16436_v42, %v969_v22  ;;  %13391 = vmatmul.mubr.msk.bf16.gmra.mrb[40].mxu1 %vm213_vm1, %v11739_v34  ;;  %853 = vrot.lane.b32.xlu0 %v16508_v9, %s15738_s20  ;;  %v1928_v22 = vpop.f32.mrb[4].mxu1 }
 0x1e5   :  { %630 = vrot.lane.b32.xlu1 %v16343_v39, %s15736_s30  ;;  %v834_v55 = vpop.permute.xlu0 %833  ;;  %v832_v30 = vpop.permute.xlu1 %831  ;;  %v1489_v14 = vld [vmem:[#allocation2 + $0x64] sm:$0xf]  ;;  %13394 = vmatprep.mubr.msk.bf16.mxu1 %vm15735_vm0, %v15734_v0 }
 0x1e6   :  { %v1074_v25 = vmax.f32 %v1025_v20, 0.0  ;;  %v971_v28 = vmax.f32 %v16379_v2, %v834_v55  ;;  %v970_v21 = vmax.f32 %v16376_v63, %v832_v30  ;;  %v11823_v37 = vcombine.low %v1488_v4, %v1489_v14  ;;  %v16541_v4 = vpop.f32.mrb[92].mxu0  ;;  %v13356_v46 = vpop.f32.mrb[5].mxu1  ;;  %v1491_v55 = vld [vmem:[#allocation2 + $0x6c] sm:$0xf] }
 0x1e7   :  { %v13338_v10 = vpop.f32.mrb[93].mxu0 }
 0x1e8   :  { %v12640_v45 = vpack.c.bf16 %v1074_v25, %v1074_v25  ;;  %v1027_v38 = vadd.f32 %v16436_v42, %v971_v28  ;;  %v1026_v56 = vadd.f32 %v16436_v42, %v970_v21  ;;  %632 = vrot.lane.b32.xlu0 %v16349_v33, %s15736_s30  ;;  %v16546_v30 = vpop.f32.mrb[94].mxu0  ;;  %v1492_v28 = vld [vmem:[#allocation2 + $0x70] sm:$0xf] }
 0x1e9   :  { %13561 = vmatmul.mubr.msk.bf16.gmra.mrb[152].mxu0 %vm213_vm1, %v11823_v37  ;;  %855 = vrot.lane.b32.xlu1 %v16528_v43, %s15738_s20  ;;  %v836_v63 = vpop.permute.xlu1 %835  ;;  %v613_v2 = vpop.permute.xlu0 %612  ;;  %v1490_v58 = vld [vmem:[#allocation2 + $0x68] sm:$0xf] }
 0x1ea   :  { %1299 = vst.msk [vmem:[#allocation2 + $0x74] sm:$0xf] %vm1141_vm2, %v12640_v45  ;;  %v1076_v36 = vmax.f32 %v1027_v38, 0.0  ;;  %v1075_v29 = vmax.f32 %v1026_v56, 0.0  ;;  %v972_v3 = vmax.f32 %v16388_v8, %v836_v63  ;;  %13564 = vmatprep.mubr.msk.bf16.mxu0 %vm15735_vm0, %v15734_v0  ;;  %v11740_v34 = vcombine.low %v1489_v14, %v1490_v58  ;;  %v1930_v8 = vpop.f32.mrb[6].mxu1  ;;  %v13339_v17 = vpop.f32.mrb[95].mxu0 }
 0x1eb   :  { %v16554_v37 = vmax.f32 %v16263_v41, %v613_v2  ;;  %v13357_v45 = vpop.f32.mrb[7].mxu1  ;;  %v11824_v38 = vcombine.low %v1490_v58, %v1491_v55 }
 0x1ec   :  { %v12642_v15 = vpack.c.bf16 %v1076_v36, %v1076_v36  ;;  %v12641_v20 = vpack.c.bf16 %v1075_v29, %v1075_v29  ;;  %v1028_v54 = vadd.f32 %v16436_v42, %v972_v3  ;;  %636 = vrot.lane.b32.xlu0 %v16364_v53, %s15736_s30  ;;  %13395 = vmatmul.mubr.msk.bf16.gmra.mrb[44].mxu1 %vm213_vm1, %v11740_v34  ;;  %v16572_v3 = vpop.f32.mrb[96].mxu0  ;;  %v1934_v22 = vpop.f32.mrb[8].mxu1 }
 0x1ed   :  { %634 = vrot.lane.b32.xlu1 %v16358_v35, %s15736_s30  ;;  %v838_v25 = vpop.permute.xlu0 %837  ;;  %v615_v14 = vpop.permute.xlu1 %614  ;;  %13398 = vmatprep.mubr.msk.bf16.mxu1 %vm15735_vm0, %v15734_v0 }
 0x1ee   :  { %1301 = vst.msk [vmem:[#allocation2 + $0x7c] sm:$0xf] %vm1141_vm2, %v12642_v15  ;;  %1300 = vst.msk [vmem:[#allocation2 + $0x78] sm:$0xf] %vm1141_vm2, %v12641_v20  ;;  %v1077_v21 = vmax.f32 %v1028_v54, 0.0  ;;  %v973_v47 = vmax.f32 %v16395_v44, %v838_v25  ;;  %v11741_v44 = vcombine.low %v1491_v55, %v1492_v28  ;;  %v16575_v34 = vmax.f32 %v16269_v48, %v615_v14  ;;  %v13342_v10 = vpop.f32.mrb[97].mxu0 }
 0x1ef   :  { %v13360_v46 = vpop.f32.mrb[9].mxu1 }
 0x1f0   :  { %v12643_v56 = vpack.c.bf16 %v1077_v21, %v1077_v21  ;;  %v1029_v63 = vadd.f32 %v16436_v42, %v973_v47  ;;  %857 = vrot.lane.b32.xlu0 %v16554_v37, %s15738_s20  ;;  %v1936_v54 = vpop.f32.mrb[10].mxu1 }
 0x1f1   :  { %13565 = vmatmul.mubr.msk.bf16.gmra.mrb[156].mxu0 %vm213_vm1, %v11824_v38  ;;  %638 = vrot.lane.b32.xlu1 %v16373_v62, %s15736_s30  ;;  %v840_v41 = vpop.permute.xlu1 %839  ;;  %v617_v2 = vpop.permute.xlu0 %616 }
 0x1f2   :  { %1302 = vst.msk [vmem:[#allocation2 + $0x80] sm:$0xf] %vm1141_vm2, %v12643_v56  ;;  %v1078_v36 = vmax.f32 %v1029_v63, 0.0  ;;  %v974_v29 = vmax.f32 %v16404_v52, %v840_v41  ;;  %v16568_v58 = vmax.f32 %v16273_v51, %v617_v2  ;;  %13568 = vmatprep.mubr.msk.bf16.mxu0 %vm15735_vm0, %v15734_v0  ;;  %v1493_v52 = vld [vmem:[#allocation2 + $0x74] sm:$0xf]  ;;  %v518_v51 = vpop.f32.mrb[98].mxu0 }
 0x1f3   :  { %v13343_v47 = vpop.f32.mrb[99].mxu0  ;;  %v13361_v17 = vpop.f32.mrb[11].mxu1  ;;  %v11825_v45 = vcombine.low %v1492_v28, %v1493_v52 }
 0x1f4   :  { %v12644_v15 = vpack.c.bf16 %v1078_v36, %v1078_v36  ;;  %v1030_v20 = vadd.f32 %v16436_v42, %v974_v29  ;;  %861 = vrot.lane.b32.xlu0 %v16568_v58, %s15738_s20  ;;  %13399 = vmatmul.mubr.msk.bf16.gmra.mrb[48].mxu1 %vm213_vm1, %v11741_v44  ;;  %v1916_v38 = vpop.f32.mrb[100].mxu0  ;;  %v1940_v36 = vpop.f32.mrb[12].mxu1 }
 0x1f5   :  { %859 = vrot.lane.b32.xlu1 %v16575_v34, %s15738_s20  ;;  %v842_v55 = vpop.permute.xlu0 %841  ;;  %v619_v8 = vpop.permute.xlu1 %618  ;;  %13402 = vmatprep.mubr.msk.bf16.mxu1 %vm15735_vm0, %v15734_v0  ;;  %v1494_v21 = vld [vmem:[#allocation2 + $0x78] sm:$0xf] }
 0x1f6   :  { %1303 = vst.msk [vmem:[#allocation2 + $0x84] sm:$0xf] %vm1141_vm2, %v12644_v15  ;;  %v1079_v48 = vmax.f32 %v1030_v20, 0.0  ;;  %v975_v25 = vmax.f32 %v16413_v19, %v842_v55  ;;  %v16586_v14 = vmax.f32 %v16279_v57, %v619_v8  ;;  %v13348_v41 = vpop.f32.mrb[101].mxu0  ;;  %v11742_v29 = vcombine.low %v1493_v52, %v1494_v21  ;;  %v13364_v10 = vpop.f32.mrb[13].mxu1 }
 0x1f7   :  { %v1918_v44 = vpop.f32.mrb[102].mxu0  ;;  %v1495_v15 = vld [vmem:[#allocation2 + $0x7c] sm:$0xf]  ;;  %v1942_v51 = vpop.f32.mrb[14].mxu1 }
 0x1f8   :  { %v12645_v56 = vpack.c.bf16 %v1079_v48, %v1079_v48  ;;  %v1031_v63 = vadd.f32 %v16436_v42, %v975_v25  ;;  %640 = vrot.lane.b32.xlu0 %v16385_v40, %s15736_s30  ;;  %v13349_v22 = vpop.f32.mrb[103].mxu0  ;;  %v13365_v55 = vpop.f32.mrb[15].mxu1  ;;  %v11826_v25 = vcombine.low %v1494_v21, %v1495_v15 }
 0x1f9   :  { %13569 = vmatmul.mubr.msk.bf16.gmra.mrb[160].mxu0 %vm213_vm1, %v11825_v45  ;;  %863 = vrot.lane.b32.xlu1 %v16586_v14, %s15738_s20  ;;  %v621_v57 = vpop.permute.xlu1 %620  ;;  %v623_v19 = vpop.permute.xlu0 %622  ;;  %v1496_v52 = vld [vmem:[#allocation2 + $0x80] sm:$0xf]  ;;  %v1500_v55 = vld [vmem:[#allocation2 + $0x90] sm:$0xf] }
 0x1fa   :  { %1304 = vst.msk [vmem:[#allocation2 + $0x88] sm:$0xf] %vm1141_vm2, %v12645_v56  ;;  %v1080_v2 = vmax.f32 %v1031_v63, 0.0  ;;  %v16598_v28 = vmax.f32 %v16283_v60, %v621_v57  ;;  %13572 = vmatprep.mubr.msk.bf16.mxu0 %vm15735_vm0, %v15734_v0  ;;  %v2423_v20 = vpop.f32.mrb[104].mxu0  ;;  %v16611_v8 = vmax.f32 %v16286_v1, %v623_v19  ;;  %v11743_v21 = vcombine.low %v1495_v15, %v1496_v52 }
 0x1fb   :  { %v13514_v60 = vpop.f32.mrb[105].mxu0 }
 0x1fc   :  { %v12646_v46 = vpack.c.bf16 %v1080_v2, %v1080_v2  ;;  %865 = vrot.lane.b32.xlu0 %v16598_v28, %s15738_s20  ;;  %13403 = vmatmul.mubr.msk.bf16.gmra.mrb[52].mxu1 %vm213_vm1, %v11742_v29  ;;  %v2425_v54 = vpop.f32.mrb[106].mxu0 }
 0x1fd   :  { %642 = vrot.lane.b32.xlu1 %v16401_v11, %s15736_s30  ;;  %13406 = vmatprep.mubr.msk.bf16.mxu1 %vm15735_vm0, %v15734_v0  ;;  %v625_v48 = vpop.permute.xlu0 %624  ;;  %v13515_v47 = vpop.f32.mrb[107].mxu0  ;;  %v1497_v1 = vld [vmem:[#allocation2 + $0x84] sm:$0xf] }
 0x1fe   :  { %1305 = vst.msk [vmem:[#allocation2 + $0x8c] sm:$0xf] %vm1141_vm2, %v12646_v46  ;;  %v2429_v17 = vpop.f32.mrb[108].mxu0  ;;  %v16619_v38 = vmax.f32 %v16290_v5, %v625_v48  ;;  %v11827_v19 = vcombine.low %v1496_v52, %v1497_v1  ;;  %v16645_v48 = vld [vmem:[#allocation2 + $0x94] sm:$0xf] }
 0x1ff   :  { %v13518_v45 = vpop.f32.mrb[109].mxu0  ;;  %v11829_v47 = vcombine.low %v1500_v55, %v16645_v48  ;;  %v1946_v17 = vpop.f32.mrb[16].mxu1 }
 0x200   :  { %644 = vrot.lane.b32.xlu0 %v16406_v13, %s15736_s30  ;;  %v2431_v56 = vpop.f32.mrb[110].mxu0 }
 0x201   :  { %13573 = vmatmul.mubr.msk.bf16.gmra.mrb[164].mxu0 %vm213_vm1, %v11826_v25  ;;  %867 = vrot.lane.b32.xlu1 %v16611_v8, %s15738_s20  ;;  %v13519_v63 = vpop.f32.mrb[111].mxu0  ;;  %v1498_v44 = vld [vmem:[#allocation2 + $0x88] sm:$0xf]  ;;  %v13368_v56 = vpop.f32.mrb[17].mxu1 }
 0x202   :  { %13576 = vmatprep.mubr.msk.bf16.mxu0 %vm15735_vm0, %v15734_v0  ;;  %v2435_v41 = vpop.f32.mrb[112].mxu0  ;;  %v11744_v46 = vcombine.low %v1497_v1, %v1498_v44  ;;  %v1949_v63 = vpop.f32.mrb[18].mxu1 }
 0x203   :  { %v13522_v57 = vpop.f32.mrb[113].mxu0 }
 0x204   :  { %869 = vrot.lane.b32.xlu0 %v16619_v38, %s15738_s20  ;;  %13407 = vmatmul.mubr.msk.bf16.gmra.mrb[56].mxu1 %vm213_vm1, %v11743_v21  ;;  %v2437_v5 = vpop.f32.mrb[114].mxu0 }
 0x205   :  { %646 = vrot.lane.b32.xlu1 %v16415_v23, %s15736_s30  ;;  %13410 = vmatprep.mubr.msk.bf16.mxu1 %vm15735_vm0, %v15734_v0  ;;  %v13523_v2 = vpop.f32.mrb[115].mxu0  ;;  %v1499_v22 = vld [vmem:[#allocation2 + $0x8c] sm:$0xf]  ;;  %v13369_v5 = vpop.f32.mrb[19].mxu1 }
 0x206   :  { %v2441_v36 = vpop.f32.mrb[116].mxu0  ;;  %v11828_v52 = vcombine.low %v1498_v44, %v1499_v22  ;;  %v11745_v25 = vcombine.low %v1499_v22, %v1500_v55  ;;  %v1954_v2 = vpop.f32.mrb[20].mxu1 }
 0x207   :  { %v13526_v29 = vpop.f32.mrb[117].mxu0 }
 0x208   :  { %650 = vrot.lane.b32.xlu0 %v16427_v61, %s15736_s30  ;;  %v2443_v10 = vpop.f32.mrb[118].mxu0  ;;  %v13372_v29 = vpop.f32.mrb[21].mxu1 }
 0x209   :  { %13577 = vmatmul.mubr.msk.bf16.gmra.mrb[168].mxu0 %vm213_vm1, %v11827_v19  ;;  %648 = vrot.lane.b32.xlu1 %v16421_v59, %s15736_s30  ;;  %v13527_v15 = vpop.f32.mrb[119].mxu0  ;;  %v1957_v10 = vpop.f32.mrb[22].mxu1 }
 0x20a   :  { %13580 = vmatprep.mubr.msk.bf16.mxu0 %vm15735_vm0, %v15734_v0  ;;  %v2447_v20 = vpop.f32.mrb[120].mxu0 }
 0x20b   :  { %v13530_v51 = vpop.f32.mrb[121].mxu0  ;;  %v13373_v20 = vpop.f32.mrb[23].mxu1 }
 0x20c   :  { %652 = vrot.lane.b32.xlu0 %v16429_v32, %s15736_s30  ;;  %13411 = vmatmul.mubr.msk.bf16.gmra.mrb[60].mxu1 %vm213_vm1, %v11744_v46  ;;  %v2449_v60 = vpop.f32.mrb[122].mxu0 }
 0x20d   :  { %13414 = vmatprep.mubr.msk.bf16.mxu1 %vm15735_vm0, %v15734_v0  ;;  %v13531_v54 = vpop.f32.mrb[123].mxu0  ;;  %v1962_v60 = vpop.f32.mrb[24].mxu1 }
 0x20e   :  { %v2453_v45 = vpop.f32.mrb[124].mxu0  ;;  %v13376_v55 = vpop.f32.mrb[25].mxu1 }
 0x20f   :  { %v16651_v1 = vadd.f32 %v2453_v45, %v1946_v17  ;;  %v13534_v21 = vpop.f32.mrb[125].mxu0 }
 0x210   :  { %v2456_v41 = vpop.f32.mrb[126].mxu0 }
 0x211   :  { %13581 = vmatmul.mubr.msk.bf16.gmra.mrb[172].mxu0 %vm213_vm1, %v11828_v52  ;;  %v16654_v57 = vadd.f32 %v2456_v41, %v1949_v63  ;;  %v13535_v19 = vpop.f32.mrb[127].mxu0 }
 0x212   :  { %13584 = vmatprep.mubr.msk.bf16.mxu0 %vm15735_vm0, %v15734_v0  ;;  %v2461_v44 = vpop.f32.mrb[128].mxu0 }
 0x213   :  { %v16658_v36 = vadd.f32 %v2461_v44, %v1954_v2  ;;  %v13538_v22 = vpop.f32.mrb[129].mxu0 }
 0x214   :  { %13415 = vmatmul.mubr.msk.bf16.gmra.mrb[64].mxu1 %vm213_vm1, %v11745_v25  ;;  %v2464_v46 = vpop.f32.mrb[130].mxu0 }
 0x215   :  { %13418 = vmatprep.mubr.msk.bf16.mxu1 %vm15735_vm0, %v15734_v0  ;;  %v16660_v15 = vadd.f32 %v2464_v46, %v1957_v10  ;;  %v13539_v51 = vpop.f32.mrb[131].mxu0 }
 0x216   :  { %v2469_v52 = vpop.f32.mrb[132].mxu0 }
 0x217   :  { %v16662_v54 = vadd.f32 %v2469_v52, %v1962_v60  ;;  %v13542_v25 = vpop.f32.mrb[133].mxu0 }
 0x218   :  { %v2472_v17 = vpop.f32.mrb[134].mxu0 }
 0x219   :  { %13585 = vmatmul.mubr.msk.bf16.gmra.mrb[176].mxu0 %vm213_vm1, %v11829_v47  ;;  %v1965_v47 = vpop.f32.mrb[26].mxu1  ;;  %v13543_v21 = vpop.f32.mrb[135].mxu0 }
 0x21a   :  { %13588 = vmatprep.mubr.msk.bf16.mxu0 %vm15735_vm0, %v15734_v0  ;;  %v16664_v45 = vadd.f32 %v2472_v17, %v1965_v47  ;;  %v13377_v56 = vpop.f32.mrb[27].mxu1  ;;  %v2477_v41 = vpop.f32.mrb[136].mxu0 }
 0x21b   :  { %v1970_v63 = vpop.f32.mrb[28].mxu1  ;;  %v13546_v2 = vpop.f32.mrb[137].mxu0 }
 0x21c   :  { %v16666_v5 = vadd.f32 %v2477_v41, %v1970_v63  ;;  %v13380_v19 = vpop.f32.mrb[29].mxu1  ;;  %v2480_v29 = vpop.f32.mrb[138].mxu0 }
 0x21d   :  { %v1973_v44 = vpop.f32.mrb[30].mxu1  ;;  %v13547_v46 = vpop.f32.mrb[139].mxu0 }
 0x21e   :  { %v16668_v22 = vadd.f32 %v2480_v29, %v1973_v44  ;;  %v13381_v10 = vpop.f32.mrb[31].mxu1  ;;  %v16670_v20 = vpop.f32.mrb[140].mxu0 }
 0x21f   :  { %v13550_v51 = vpop.f32.mrb[141].mxu0 }
 0x220   :  { %v16672_v60 = vpop.f32.mrb[142].mxu0 }
 0x221   :  { %v13551_v52 = vpop.f32.mrb[143].mxu0 }
 0x23e   :  { %v844_v55 = vpop.permute.xlu1 %843 }
 0x23f   :  { %v976_v25 = vmax.f32 %v16448_v12, %v844_v55 }
 0x241   :  { %v1032_v47 = vadd.f32 %v16436_v42, %v976_v25 }
 0x243   :  { %v1081_v17 = vmax.f32 %v1032_v47, 0.0 }
 0x245   :  { %v12647_v56 = vpack.c.bf16 %v1081_v17, %v1081_v17 }
 0x246   :  { %v846_v21 = vpop.permute.xlu1 %845 }
 0x247   :  { %1331 = vst.msk [vmem:[#allocation2 + $0x98] sm:$0xf] %vm1141_vm2, %v12647_v56  ;;  %v977_v63 = vmax.f32 %v16460_v50, %v846_v21 }
 0x249   :  { %v1033_v41 = vadd.f32 %v16436_v42, %v977_v63 }
 0x24a   :  { %v848_v19 = vpop.permute.xlu0 %847  ;;  %v627_v2 = vpop.permute.xlu1 %626 }
 0x24b   :  { %v1082_v44 = vmax.f32 %v1033_v41, 0.0  ;;  %v978_v29 = vmax.f32 %v16472_v16, %v848_v19  ;;  %v16681_v10 = vmax.f32 %v16324_v24, %v627_v2 }
 0x24d   :  { %v12648_v12 = vpack.c.bf16 %v1082_v44, %v1082_v44  ;;  %v1034_v46 = vadd.f32 %v16436_v42, %v978_v29  ;;  %871 = vrot.lane.b32.xlu1 %v16681_v10, %s15738_s20 }
 0x24e   :  { %v850_v51 = vpop.permute.xlu0 %849  ;;  %v1502_v52 = vld [vmem:[#allocation2 + $0x98] sm:$0xf] }
 0x24f   :  { %1332 = vst.msk [vmem:[#allocation2 + $0x9c] sm:$0xf] %vm1141_vm2, %v12648_v12  ;;  %v1083_v50 = vmax.f32 %v1034_v46, 0.0  ;;  %v979_v55 = vmax.f32 %v16483_v18, %v850_v51  ;;  %v11746_v25 = vcombine.low %v16645_v48, %v1502_v52 }
 0x251   :  { %v12649_v47 = vpack.c.bf16 %v1083_v50, %v1083_v50  ;;  %v1035_v16 = vadd.f32 %v16436_v42, %v979_v55  ;;  %13419 = vmatmul.mubr.msk.bf16.gmra.mrb[68].mxu1 %vm213_vm1, %v11746_v25 }
 0x252   :  { %v852_v24 = vpop.permute.xlu1 %851  ;;  %v629_v17 = vpop.permute.xlu0 %628  ;;  %13422 = vmatprep.mubr.msk.bf16.mxu1 %vm15735_vm0, %v15734_v0 }
 0x253   :  { %1333 = vst.msk [vmem:[#allocation2 + $0xa0] sm:$0xf] %vm1141_vm2, %v12649_v47  ;;  %v1084_v56 = vmax.f32 %v1035_v16, 0.0  ;;  %v980_v21 = vmax.f32 %v16499_v49, %v852_v24  ;;  %v16696_v63 = vmax.f32 %v16331_v31, %v629_v17 }
 0x255   :  { %v12650_v18 = vpack.c.bf16 %v1084_v56, %v1084_v56  ;;  %v1036_v48 = vadd.f32 %v16436_v42, %v980_v21  ;;  %873 = vrot.lane.b32.xlu1 %v16696_v63, %s15738_s20 }
 0x256   :  { %v854_v41 = vpop.permute.xlu0 %853  ;;  %v1503_v19 = vld [vmem:[#allocation2 + $0x9c] sm:$0xf] }
 0x257   :  { %1334 = vst.msk [vmem:[#allocation2 + $0xa4] sm:$0xf] %vm1141_vm2, %v12650_v18  ;;  %v1085_v2 = vmax.f32 %v1036_v48, 0.0  ;;  %v981_v44 = vmax.f32 %v16508_v9, %v854_v41  ;;  %v631_v29 = vpop.permute.xlu1 %630  ;;  %v11830_v12 = vcombine.low %v1502_v52, %v1503_v19 }
 0x258   :  { %v16704_v49 = vmax.f32 %v16343_v39, %v631_v29 }
 0x259   :  { %v12651_v31 = vpack.c.bf16 %v1085_v2, %v1085_v2  ;;  %v1037_v46 = vadd.f32 %v16436_v42, %v981_v44  ;;  %13589 = vmatmul.mubr.msk.bf16.gmra.mrb[180].mxu0 %vm213_vm1, %v11830_v12  ;;  %654 = vrot.lane.b32.xlu1 %v16487_v26, %s15736_s30  ;;  %v16744_v44 = vld [vmem:[%s19345_s2] ss:$0 sm:$0xff] }
 0x25a   :  { %875 = vrot.lane.b32.xlu0 %v16704_v49, %s15738_s20  ;;  %v633_v51 = vpop.permute.xlu0 %632  ;;  %v1504_v50 = vld [vmem:[#allocation2 + $0xa0] sm:$0xf]  ;;  %13592 = vmatprep.mubr.msk.bf16.mxu0 %vm15735_vm0, %v15734_v0 }
 0x25b   :  { %1335 = vst.msk [vmem:[#allocation2 + $0xa8] sm:$0xf] %vm1141_vm2, %v12651_v31  ;;  %v1086_v39 = vmax.f32 %v1037_v46, 0.0  ;;  %v856_v9 = vpop.permute.xlu1 %855  ;;  %v16716_v52 = vmax.f32 %v16349_v33, %v633_v51  ;;  %v11747_v55 = vcombine.low %v1503_v19, %v1504_v50 }
 0x25c   :  { %v982_v25 = vmax.f32 %v16528_v43, %v856_v9 }
 0x25d   :  { %v12652_v47 = vpack.c.bf16 %v1086_v39, %v1086_v39  ;;  %13423 = vmatmul.mubr.msk.bf16.gmra.mrb[72].mxu1 %vm213_vm1, %v11747_v55 }
 0x25e   :  { %v1038_v16 = vadd.f32 %v16436_v42, %v982_v25  ;;  %877 = vrot.lane.b32.xlu0 %v16716_v52, %s15738_s20  ;;  %v637_v24 = vpop.permute.xlu0 %636  ;;  %v1505_v17 = vld [vmem:[#allocation2 + $0xa4] sm:$0xf]  ;;  %13426 = vmatprep.mubr.msk.bf16.mxu1 %vm15735_vm0, %v15734_v0 }
 0x25f   :  { %1336 = vst.msk [vmem:[#allocation2 + $0xac] sm:$0xf] %vm1141_vm2, %v12652_v47  ;;  %v635_v33 = vpop.permute.xlu1 %634  ;;  %v11831_v56 = vcombine.low %v1504_v50, %v1505_v17  ;;  %v1509_v47 = vld [vmem:[#allocation2 + $0xb4] sm:$0xf] }
 0x260   :  { %v1087_v21 = vmax.f32 %v1038_v16, 0.0  ;;  %v16727_v43 = vmax.f32 %v16358_v35, %v635_v33  ;;  %v16739_v35 = vmax.f32 %v16364_v53, %v637_v24 }
 0x261   :  { %13593 = vmatmul.mubr.msk.bf16.gmra.mrb[184].mxu0 %vm213_vm1, %v11831_v56 }
 0x262   :  { %v12653_v18 = vpack.c.bf16 %v1087_v21, %v1087_v21  ;;  %879 = vrot.lane.b32.xlu1 %v16727_v43, %s15738_s20  ;;  %656 = vrot.lane.b32.xlu0 %v16493_v6, %s15736_s30  ;;  %v858_v42 = vpop.permute.xlu0 %857  ;;  %v1506_v48 = vld [vmem:[#allocation2 + $0xa8] sm:$0xf] }
 0x263   :  { %v983_v41 = vmax.f32 %v16554_v37, %v858_v42  ;;  %v639_v19 = vpop.permute.xlu1 %638  ;;  %v11748_v2 = vcombine.low %v1505_v17, %v1506_v48  ;;  %13596 = vmatprep.mubr.msk.bf16.mxu0 %vm15735_vm0, %v15734_v0 }
 0x264   :  { %1337 = vst.msk [vmem:[#allocation2 + $0xb0] sm:$0xf] %vm1141_vm2, %v12653_v18  ;;  %v16756_v50 = vmax.f32 %v16373_v62, %v639_v19  ;;  %v1510_v19 = vld [vmem:[#allocation2 + $0xb8] sm:$0xf] }
 0x265   :  { %v1039_v29 = vadd.f32 %v16744_v44, %v983_v41  ;;  %13427 = vmatmul.mubr.msk.bf16.gmra.mrb[76].mxu1 %vm213_vm1, %v11748_v2 }
 0x266   :  { %881 = vrot.lane.b32.xlu0 %v16739_v35, %s15738_s20  ;;  %658 = vrot.lane.b32.xlu1 %v16513_v7, %s15736_s30  ;;  %v862_v37 = vpop.permute.xlu0 %861  ;;  %v1507_v12 = vld [vmem:[#allocation2 + $0xac] sm:$0xf] }
 0x267   :  { %v1088_v31 = vmax.f32 %v1039_v29, 0.0  ;;  %v985_v53 = vmax.f32 %v16568_v58, %v862_v37  ;;  %v860_v46 = vpop.permute.xlu1 %859  ;;  %v11832_v51 = vcombine.low %v1506_v48, %v1507_v12  ;;  %13430 = vmatprep.mubr.msk.bf16.mxu1 %vm15735_vm0, %v15734_v0 }
 0x268   :  { %v984_v39 = vmax.f32 %v16575_v34, %v860_v46 }
 0x269   :  { %v12654_v9 = vpack.c.bf16 %v1088_v31, %v1088_v31  ;;  %v1041_v55 = vadd.f32 %v16744_v44, %v985_v53  ;;  %13597 = vmatmul.mubr.msk.bf16.gmra.mrb[188].mxu0 %vm213_vm1, %v11832_v51  ;;  %v11750_v31 = vcombine.low %v1509_v47, %v1510_v19 }
 0x26a   :  { %v1040_v25 = vadd.f32 %v16744_v44, %v984_v39  ;;  %883 = vrot.lane.b32.xlu1 %v16756_v50, %s15738_s20  ;;  %660 = vrot.lane.b32.xlu0 %v16519_v27, %s15736_s30  ;;  %v641_v58 = vpop.permute.xlu0 %640 }
 0x26b   :  { %1362 = vst.msk [vmem:[#allocation2 + $0xbc] sm:$0xf] %vm1141_vm2, %v12654_v9  ;;  %v1090_v62 = vmax.f32 %v1041_v55, 0.0  ;;  %v864_v16 = vpop.permute.xlu1 %863  ;;  %v1508_v34 = vld [vmem:[#allocation2 + $0xb0] sm:$0xf]  ;;  %13600 = vmatprep.mubr.msk.bf16.mxu0 %vm15735_vm0, %v15734_v0  ;;  %v16782_v29 = vmax.f32 %v16385_v40, %v641_v58 }
 0x26c   :  { %v1089_v24 = vmax.f32 %v1040_v25, 0.0  ;;  %v986_v17 = vmax.f32 %v16586_v14, %v864_v16  ;;  %v11749_v33 = vcombine.low %v1507_v12, %v1508_v34  ;;  %v11833_v14 = vcombine.low %v1508_v34, %v1509_v47 }
 0x26d   :  { %v12656_v56 = vpack.c.bf16 %v1090_v62, %v1090_v62 }
 0x26e   :  { %v12655_v21 = vpack.c.bf16 %v1089_v24, %v1089_v24  ;;  %v1042_v18 = vadd.f32 %v16744_v44, %v986_v17  ;;  %13431 = vmatmul.mubr.msk.bf16.gmra.mrb[80].mxu1 %vm213_vm1, %v11749_v33  ;;  %662 = vrot.lane.b32.xlu1 %v16541_v4, %s15736_s30  ;;  %v866_v42 = vpop.permute.xlu0 %865 }
 0x26f   :  { %1364 = vst.msk [vmem:[#allocation2 + $0xc4] sm:$0xf] %vm1141_vm2, %v12656_v56  ;;  %664 = vrot.lane.b32.xlu0 %v16546_v30, %s15736_s30  ;;  %v987_v48 = vmax.f32 %v16598_v28, %v866_v42  ;;  %v643_v41 = vpop.permute.xlu1 %642  ;;  %13434 = vmatprep.mubr.msk.bf16.mxu1 %vm15735_vm0, %v15734_v0 }
 0x270   :  { %1363 = vst.msk [vmem:[#allocation2 + $0xc0] sm:$0xf] %vm1141_vm2, %v12655_v21  ;;  %v1091_v2 = vmax.f32 %v1042_v18, 0.0  ;;  %v16797_v51 = vmax.f32 %v16401_v11, %v643_v41 }
 0x271   :  { %v1043_v37 = vadd.f32 %v16744_v44, %v987_v48  ;;  %13601 = vmatmul.mubr.msk.bf16.gmra.mrb[192].mxu0 %vm213_vm1, %v11833_v14 }
 0x272   :  { %v12657_v12 = vpack.c.bf16 %v1091_v2, %v1091_v2  ;;  %666 = vrot.lane.b32.xlu1 %v16572_v3, %s15736_s30  ;;  %v645_v28 = vpop.permute.xlu0 %644  ;;  %13604 = vmatprep.mubr.msk.bf16.mxu0 %vm15735_vm0, %v15734_v0  ;;  %v1511_v9 = vld [vmem:[#allocation2 + $0xbc] sm:$0xf] }
 0x273   :  { %v1092_v53 = vmax.f32 %v1043_v37, 0.0  ;;  %885 = vrot.lane.b32.xlu0 %v16782_v29, %s15738_s20  ;;  %v868_v46 = vpop.permute.xlu1 %867  ;;  %v16793_v40 = vmax.f32 %v16406_v13, %v645_v28  ;;  %v11834_v47 = vcombine.low %v1510_v19, %v1511_v9 }
 0x274   :  { %1365 = vst.msk [vmem:[#allocation2 + $0xc8] sm:$0xf] %vm1141_vm2, %v12657_v12  ;;  %v988_v39 = vmax.f32 %v16611_v8, %v868_v46 }
 0x275   :  { %v12658_v55 = vpack.c.bf16 %v1092_v53, %v1092_v53  ;;  %v16854_v53 = vld [vmem:[#allocation2 + $0xdc] sm:$0xf] }
 0x276   :  { %v1044_v25 = vadd.f32 %v16744_v44, %v988_v39  ;;  %13435 = vmatmul.mubr.msk.bf16.gmra.mrb[84].mxu1 %vm213_vm1, %v11750_v31  ;;  %887 = vrot.lane.b32.xlu1 %v16797_v51, %s15738_s20  ;;  %v870_v58 = vpop.permute.xlu0 %869  ;;  %v1513_v18 = vld [vmem:[#allocation2 + $0xc4] sm:$0xf]  ;;  %v1518_v31 = vld [vmem:[#allocation2 + $0xd8] sm:$0xf] }
 0x277   :  { %1366 = vst.msk [vmem:[#allocation2 + $0xcc] sm:$0xf] %vm1141_vm2, %v12658_v55  ;;  %889 = vrot.lane.b32.xlu0 %v16793_v40, %s15738_s20  ;;  %v989_v11 = vmax.f32 %v16619_v38, %v870_v58  ;;  %v647_v13 = vpop.permute.xlu1 %646  ;;  %13438 = vmatprep.mubr.msk.bf16.mxu1 %vm15735_vm0, %v15734_v0  ;;  %v1512_v34 = vld [vmem:[#allocation2 + $0xc0] sm:$0xf]  ;;  %v11838_v39 = vcombine.low %v1518_v31, %v16854_v53 }
 0x278   :  { %v1093_v8 = vmax.f32 %v1044_v25, 0.0  ;;  %v16811_v62 = vmax.f32 %v16415_v23, %v647_v13  ;;  %v11751_v21 = vcombine.low %v1511_v9, %v1512_v34  ;;  %v11835_v41 = vcombine.low %v1512_v34, %v1513_v18 }
 0x279   :  { %v1045_v16 = vadd.f32 %v16744_v44, %v989_v11  ;;  %13605 = vmatmul.mubr.msk.bf16.gmra.mrb[196].mxu0 %vm213_vm1, %v11834_v47 }
 0x27a   :  { %v12659_v24 = vpack.c.bf16 %v1093_v8, %v1093_v8  ;;  %891 = vrot.lane.b32.xlu1 %v16811_v62, %s15738_s20  ;;  %v651_v17 = vpop.permute.xlu0 %650  ;;  %13608 = vmatprep.mubr.msk.bf16.mxu0 %vm15735_vm0, %v15734_v0 }
 0x27b   :  { %v1094_v38 = vmax.f32 %v1045_v16, 0.0  ;;  %v649_v33 = vpop.permute.xlu1 %648  ;;  %v16820_v56 = vmax.f32 %v16427_v61, %v651_v17 }
 0x27c   :  { %1367 = vst.msk [vmem:[#allocation2 + $0xd0] sm:$0xf] %vm1141_vm2, %v12659_v24  ;;  %v16824_v23 = vmax.f32 %v16421_v59, %v649_v33  ;;  %v1514_v59 = vld [vmem:[#allocation2 + $0xc8] sm:$0xf] }
 0x27d   :  { %v12660_v42 = vpack.c.bf16 %v1094_v38, %v1094_v38  ;;  %v11752_v14 = vcombine.low %v1513_v18, %v1514_v59 }
 0x27e   :  { %13439 = vmatmul.mubr.msk.bf16.gmra.mrb[88].mxu1 %vm213_vm1, %v11751_v21  ;;  %893 = vrot.lane.b32.xlu0 %v16824_v23, %s15738_s20  ;;  %v653_v48 = vpop.permute.xlu0 %652  ;;  %v1515_v19 = vld [vmem:[#allocation2 + $0xcc] sm:$0xf] }
 0x27f   :  { %1368 = vst.msk [vmem:[#allocation2 + $0xd4] sm:$0xf] %vm1141_vm2, %v12660_v42  ;;  %895 = vrot.lane.b32.xlu1 %v16820_v56, %s15738_s20  ;;  %v16833_v61 = vmax.f32 %v16429_v32, %v653_v48  ;;  %13442 = vmatprep.mubr.msk.bf16.mxu1 %vm15735_vm0, %v15734_v0  ;;  %v11836_v2 = vcombine.low %v1514_v59, %v1515_v19 }
 0x281   :  { %13609 = vmatmul.mubr.msk.bf16.gmra.mrb[200].mxu0 %vm213_vm1, %v11835_v41 }
 0x282   :  { %897 = vrot.lane.b32.xlu0 %v16833_v61, %s15738_s20  ;;  %13612 = vmatprep.mubr.msk.bf16.mxu0 %vm15735_vm0, %v15734_v0 }
 0x283   :  { %v1516_v32 = vld [vmem:[#allocation2 + $0xd0] sm:$0xf] }
 0x284   :  { %v11753_v37 = vcombine.low %v1515_v19, %v1516_v32 }
 0x286   :  { %13443 = vmatmul.mubr.msk.bf16.gmra.mrb[92].mxu1 %vm213_vm1, %v11752_v14  ;;  %v1517_v12 = vld [vmem:[#allocation2 + $0xd4] sm:$0xf] }
 0x287   :  { %13446 = vmatprep.mubr.msk.bf16.mxu1 %vm15735_vm0, %v15734_v0  ;;  %v11837_v28 = vcombine.low %v1516_v32, %v1517_v12  ;;  %v11754_v46 = vcombine.low %v1517_v12, %v1518_v31 }
 0x289   :  { %13613 = vmatmul.mubr.msk.bf16.gmra.mrb[204].mxu0 %vm213_vm1, %v11836_v2 }
 0x28a   :  { %13616 = vmatprep.mubr.msk.bf16.mxu0 %vm15735_vm0, %v15734_v0 }
 0x28e   :  { %13447 = vmatmul.mubr.msk.bf16.gmra.mrb[96].mxu1 %vm213_vm1, %v11753_v37 }
 0x28f   :  { %13450 = vmatprep.mubr.msk.bf16.mxu1 %vm15735_vm0, %v15734_v0 }
 0x291   :  { %13617 = vmatmul.mubr.msk.bf16.gmra.mrb[208].mxu0 %vm213_vm1, %v11837_v28 }
 0x292   :  { %13620 = vmatprep.mubr.msk.bf16.mxu0 %vm15735_vm0, %v15734_v0 }
 0x296   :  { %13451 = vmatmul.mubr.msk.bf16.gmra.mrb[100].mxu1 %vm213_vm1, %v11754_v46 }
 0x297   :  { %13454 = vmatprep.mubr.msk.bf16.mxu1 %vm15735_vm0, %v15734_v0 }
 0x299   :  { %13621 = vmatmul.mubr.msk.bf16.gmra.mrb[212].mxu0 %vm213_vm1, %v11838_v39  ;;  %v15326_v39 = vld [vmem:[%s19344_s3 + $0x18] sm:$0xff]  }
 0x29a   :  { %13624 = vmatprep.mubr.msk.bf16.mxu0 %vm15735_vm0, %v15734_v0  ;;  %13843 = vmatpush3.bf16.msra.mxu0 %v15326_v39 }
 0x29b   :  { %14174 = vmatprep.subr.bf16.mxu0 %v15734_v0 }
 0x2a7   :  { %v1978_v9 = vpop.f32.mrb[32].mxu1 }
 0x2a8   :  { %v16864_v55 = vadd.f32 %v16670_v20, %v1978_v9  ;;  %v13384_v25 = vpop.f32.mrb[33].mxu1 }
 0x2a9   :  { %v1981_v58 = vpop.f32.mrb[34].mxu1 }
 0x2aa   :  { %v16867_v11 = vadd.f32 %v16672_v60, %v1981_v58  ;;  %v13385_v13 = vpop.f32.mrb[35].mxu1 }
 0x2ac   :  { %v2493_v47 = vpop.f32.mrb[144].mxu0 }
 0x2ad   :  { %v13554_v8 = vpop.f32.mrb[145].mxu0 }
 0x2ae   :  { %v2496_v16 = vpop.f32.mrb[146].mxu0 }
 0x2af   :  { %v13555_v34 = vpop.f32.mrb[147].mxu0  ;;  %v1986_v24 = vpop.f32.mrb[36].mxu1 }
 0x2b0   :  { %v16869_v17 = vadd.f32 %v2493_v47, %v1986_v24  ;;  %v13388_v38 = vpop.f32.mrb[37].mxu1 }
 0x2b1   :  { %v1989_v33 = vpop.f32.mrb[38].mxu1 }
 0x2b2   :  { %v16871_v21 = vadd.f32 %v2496_v16, %v1989_v33  ;;  %v13389_v18 = vpop.f32.mrb[39].mxu1 }
 0x2b4   :  { %v2501_v20 = vpop.f32.mrb[148].mxu0 }
 0x2b5   :  { %v13558_v42 = vpop.f32.mrb[149].mxu0 }
 0x2b6   :  { %v2504_v48 = vpop.f32.mrb[150].mxu0 }
 0x2b7   :  { %v13559_v41 = vpop.f32.mrb[151].mxu0  ;;  %v1994_v59 = vpop.f32.mrb[40].mxu1 }
 0x2b8   :  { %v16873_v60 = vadd.f32 %v2501_v20, %v1994_v59  ;;  %v13392_v14 = vpop.f32.mrb[41].mxu1 }
 0x2b9   :  { %v1997_v19 = vpop.f32.mrb[42].mxu1 }
 0x2ba   :  { %v16875_v2 = vadd.f32 %v2504_v48, %v1997_v19  ;;  %v13393_v32 = vpop.f32.mrb[43].mxu1 }
 0x2bc   :  { %v2509_v37 = vpop.f32.mrb[152].mxu0 }
 0x2bd   :  { %v13562_v12 = vpop.f32.mrb[153].mxu0 }
 0x2be   :  { %v2512_v28 = vpop.f32.mrb[154].mxu0 }
 0x2bf   :  { %v13563_v31 = vpop.f32.mrb[155].mxu0  ;;  %v872_v46 = vpop.permute.xlu1 %871 }
 0x2c0   :  { %v2002_v9 = vpop.f32.mrb[44].mxu1  ;;  %v990_v25 = vmax.f32 %v16681_v10, %v872_v46 }
 0x2c1   :  { %v16881_v58 = vadd.f32 %v2509_v37, %v2002_v9  ;;  %v13396_v13 = vpop.f32.mrb[45].mxu1 }
 0x2c2   :  { %v1046_v47 = vadd.f32 %v16744_v44, %v990_v25  ;;  %v2005_v8 = vpop.f32.mrb[46].mxu1 }
 0x2c3   :  { %v16885_v16 = vadd.f32 %v2512_v28, %v2005_v8  ;;  %v13397_v34 = vpop.f32.mrb[47].mxu1 }
 0x2c4   :  { %v1095_v24 = vmax.f32 %v1046_v47, 0.0  ;;  %v2517_v38 = vpop.f32.mrb[156].mxu0 }
 0x2c5   :  { %v13566_v33 = vpop.f32.mrb[157].mxu0 }
 0x2c6   :  { %v12661_v18 = vpack.c.bf16 %v1095_v24, %v1095_v24  ;;  %v2519_v20 = vpop.f32.mrb[158].mxu0 }
 0x2c7   :  { %v13567_v42 = vpop.f32.mrb[159].mxu0  ;;  %v874_v48 = vpop.permute.xlu1 %873 }
 0x2c8   :  { %1394 = vst.msk [vmem:[#allocation2 + $0xe0] sm:$0xf] %vm1141_vm2, %v12661_v18  ;;  %v991_v10 = vmax.f32 %v16696_v63, %v874_v48  ;;  %v2010_v41 = vpop.f32.mrb[48].mxu1 }
 0x2c9   :  { %v13400_v59 = vpop.f32.mrb[49].mxu1 }
 0x2ca   :  { %v1047_v14 = vadd.f32 %v16744_v44, %v991_v10  ;;  %v2012_v19 = vpop.f32.mrb[50].mxu1 }
 0x2cb   :  { %v655_v32 = vpop.permute.xlu1 %654  ;;  %v13401_v37 = vpop.f32.mrb[51].mxu1 }
 0x2cc   :  { %v1096_v12 = vmax.f32 %v1047_v14, 0.0  ;;  %v876_v28 = vpop.permute.xlu0 %875  ;;  %v16891_v31 = vmax.f32 %v16487_v26, %v655_v32  ;;  %v2523_v46 = vpop.f32.mrb[160].mxu0 }
 0x2cd   :  { %v992_v39 = vmax.f32 %v16704_v49, %v876_v28  ;;  %v13570_v9 = vpop.f32.mrb[161].mxu0 }
 0x2ce   :  { %v12662_v25 = vpack.c.bf16 %v1096_v12, %v1096_v12  ;;  %v2526_v13 = vpop.f32.mrb[162].mxu0  ;;  %899 = vrot.lane.b32.xlu1 %v16891_v31, %s15738_s20 }
 0x2cf   :  { %v1048_v63 = vadd.f32 %v16744_v44, %v992_v39  ;;  %v13571_v47 = vpop.f32.mrb[163].mxu0  ;;  %v1520_v8 = vld [vmem:[#allocation2 + $0xe0] sm:$0xf]  ;;  %v2016_v34 = vpop.f32.mrb[52].mxu1 }
 0x2d0   :  { %1395 = vst.msk [vmem:[#allocation2 + $0xe4] sm:$0xf] %vm1141_vm2, %v12662_v25  ;;  %v878_v24 = vpop.permute.xlu0 %877  ;;  %v11755_v26 = vcombine.low %v16854_v53, %v1520_v8  ;;  %v16899_v33 = vadd.f32 %v2523_v46, %v2016_v34  ;;  %v13404_v18 = vpop.f32.mrb[53].mxu1 }
 0x2d1   :  { %v1097_v38 = vmax.f32 %v1048_v63, 0.0  ;;  %v993_v49 = vmax.f32 %v16716_v52, %v878_v24  ;;  %v2019_v20 = vpop.f32.mrb[54].mxu1 }
 0x2d2   :  { %13455 = vmatmul.mubr.msk.bf16.gmra.mrb[104].mxu1 %vm213_vm1, %v11755_v26  ;;  %v16904_v10 = vadd.f32 %v2526_v13, %v2019_v20  ;;  %v13405_v41 = vpop.f32.mrb[55].mxu1 }
 0x2d3   :  { %v12663_v42 = vpack.c.bf16 %v1097_v38, %v1097_v38  ;;  %v1049_v48 = vadd.f32 %v16744_v44, %v993_v49  ;;  %13458 = vmatprep.mubr.msk.bf16.mxu1 %vm15735_vm0, %v15734_v0 }
 0x2d4   :  { %v880_v59 = vpop.permute.xlu1 %879  ;;  %v657_v53 = vpop.permute.xlu0 %656 }
 0x2d5   :  { %1396 = vst.msk [vmem:[#allocation2 + $0xe8] sm:$0xf] %vm1141_vm2, %v12663_v42  ;;  %v1098_v14 = vmax.f32 %v1049_v48, 0.0  ;;  %v994_v52 = vmax.f32 %v16727_v43, %v880_v59  ;;  %v16911_v19 = vmax.f32 %v16493_v6, %v657_v53  ;;  %v2531_v32 = vpop.f32.mrb[164].mxu0 }
 0x2d6   :  { %v13574_v37 = vpop.f32.mrb[165].mxu0 }
 0x2d7   :  { %v12664_v12 = vpack.c.bf16 %v1098_v14, %v1098_v14  ;;  %v1050_v28 = vadd.f32 %v16744_v44, %v994_v52  ;;  %v2534_v46 = vpop.f32.mrb[166].mxu0  ;;  %901 = vrot.lane.b32.xlu0 %v16911_v19, %s15738_s20  ;;  %v1521_v39 = vld [vmem:[#allocation2 + $0xe4] sm:$0xf]  ;;  %v2024_v25 = vpop.f32.mrb[56].mxu1 }
 0x2d8   :  { %v13575_v9 = vpop.f32.mrb[167].mxu0  ;;  %v11839_v13 = vcombine.low %v1520_v8, %v1521_v39  ;;  %v16917_v43 = vadd.f32 %v2531_v32, %v2024_v25  ;;  %v882_v6 = vpop.permute.xlu0 %881 }
 0x2d9   :  { %1397 = vst.msk [vmem:[#allocation2 + $0xec] sm:$0xf] %vm1141_vm2, %v12664_v12  ;;  %v1099_v63 = vmax.f32 %v1050_v28, 0.0  ;;  %v659_v47 = vpop.permute.xlu1 %658  ;;  %v995_v34 = vmax.f32 %v16739_v35, %v882_v6  ;;  %v13408_v26 = vpop.f32.mrb[57].mxu1 }
 0x2da   :  { %v16921_v24 = vmax.f32 %v16513_v7, %v659_v47  ;;  %13625 = vmatmul.mubr.msk.bf16.gmra.mrb[216].mxu0 %vm213_vm1, %v11839_v13  ;;  %v2027_v49 = vpop.f32.mrb[58].mxu1 }
 0x2db   :  { %v12665_v38 = vpack.c.bf16 %v1099_v63, %v1099_v63  ;;  %13628 = vmatprep.mubr.msk.bf16.mxu0 %vm15735_vm0, %v15734_v0  ;;  %v1051_v8 = vadd.f32 %v16744_v44, %v995_v34  ;;  %v16927_v18 = vadd.f32 %v2534_v46, %v2027_v49  ;;  %v13409_v20 = vpop.f32.mrb[59].mxu1 }
 0x2dc   :  { %903 = vrot.lane.b32.xlu1 %v16921_v24, %s15738_s20  ;;  %v2539_v35 = vpop.f32.mrb[168].mxu0  ;;  %v1522_v42 = vld [vmem:[#allocation2 + $0xe8] sm:$0xf]  ;;  %v661_v48 = vpop.permute.xlu0 %660 }
 0x2dd   :  { %1398 = vst.msk [vmem:[#allocation2 + $0xf0] sm:$0xf] %vm1141_vm2, %v12665_v38  ;;  %v884_v7 = vpop.permute.xlu1 %883  ;;  %v11756_v41 = vcombine.low %v1521_v39, %v1522_v42  ;;  %v1100_v59 = vmax.f32 %v1051_v8, 0.0  ;;  %v16934_v14 = vmax.f32 %v16519_v27, %v661_v48  ;;  %v13578_v52 = vpop.f32.mrb[169].mxu0 }
 0x2de   :  { %v996_v53 = vmax.f32 %v16756_v50, %v884_v7  ;;  %v2542_v32 = vpop.f32.mrb[170].mxu0 }
 0x2df   :  { %13459 = vmatmul.mubr.msk.bf16.gmra.mrb[108].mxu1 %vm213_vm1, %v11756_v41  ;;  %v12666_v37 = vpack.c.bf16 %v1100_v59, %v1100_v59  ;;  %905 = vrot.lane.b32.xlu0 %v16934_v14, %s15738_s20  ;;  %v13579_v28 = vpop.f32.mrb[171].mxu0  ;;  %v2032_v46 = vpop.f32.mrb[60].mxu1 }
 0x2e0   :  { %v1052_v12 = vadd.f32 %v16744_v44, %v996_v53  ;;  %v1523_v9 = vld [vmem:[#allocation2 + $0xec] sm:$0xf]  ;;  %13462 = vmatprep.mubr.msk.bf16.mxu1 %vm15735_vm0, %v15734_v0  ;;  %v16942_v50 = vadd.f32 %v2539_v35, %v2032_v46  ;;  %v13412_v47 = vpop.f32.mrb[61].mxu1 }
 0x2e1   :  { %v663_v27 = vpop.permute.xlu1 %662  ;;  %v665_v39 = vpop.permute.xlu0 %664  ;;  %v11840_v25 = vcombine.low %v1522_v42, %v1523_v9  ;;  %1399 = vst.msk [vmem:[#allocation2 + $0xf4] sm:$0xf] %vm1141_vm2, %v12666_v37 }
 0x2e2   :  { %v1101_v13 = vmax.f32 %v1052_v12, 0.0  ;;  %v16946_v63 = vmax.f32 %v16541_v4, %v663_v27  ;;  %v16949_v6 = vmax.f32 %v16546_v30, %v665_v39  ;;  %v2035_v34 = vpop.f32.mrb[62].mxu1 }
 0x2e3   :  { %13629 = vmatmul.mubr.msk.bf16.gmra.mrb[220].mxu0 %vm213_vm1, %v11840_v25  ;;  %v16952_v38 = vadd.f32 %v2542_v32, %v2035_v34  ;;  %v13413_v49 = vpop.f32.mrb[63].mxu1 }
 0x2e4   :  { %v12667_v26 = vpack.c.bf16 %v1101_v13, %v1101_v13  ;;  %909 = vrot.lane.b32.xlu0 %v16949_v6, %s15738_s20  ;;  %907 = vrot.lane.b32.xlu1 %v16946_v63, %s15738_s20  ;;  %v2547_v8 = vpop.f32.mrb[172].mxu0  ;;  %v1524_v4 = vld [vmem:[#allocation2 + $0xf0] sm:$0xf] }
 0x2e5   :  { %v886_v20 = vpop.permute.xlu0 %885  ;;  %v667_v35 = vpop.permute.xlu1 %666  ;;  %v11757_v30 = vcombine.low %v1523_v9, %v1524_v4  ;;  %13632 = vmatprep.mubr.msk.bf16.mxu0 %vm15735_vm0, %v15734_v0 }
 0x2e6   :  { %1400 = vst.msk [vmem:[#allocation2 + $0xf8] sm:$0xf] %vm1141_vm2, %v12667_v26  ;;  %v997_v42 = vmax.f32 %v16782_v29, %v886_v20  ;;  %v16963_v7 = vmax.f32 %v16572_v3, %v667_v35  ;;  %v13582_v48 = vpop.f32.mrb[173].mxu0 }
 0x2e7   :  { %v2550_v41 = vpop.f32.mrb[174].mxu0  ;;  %13463 = vmatmul.mubr.msk.bf16.gmra.mrb[112].mxu1 %vm213_vm1, %v11757_v30  ;;  %v2040_v52 = vpop.f32.mrb[64].mxu1 }
 0x2e8   :  { %v1053_v59 = vadd.f32 %v16744_v44, %v997_v42  ;;  %911 = vrot.lane.b32.xlu1 %v16963_v7, %s15738_s20  ;;  %v13583_v53 = vpop.f32.mrb[175].mxu0  ;;  %13466 = vmatprep.mubr.msk.bf16.mxu1 %vm15735_vm0, %v15734_v0  ;;  %v16971_v32 = vadd.f32 %v2547_v8, %v2040_v52  ;;  %v1525_v3 = vld [vmem:[#allocation2 + $0xf4] sm:$0xf]  ;;  %v13416_v9 = vpop.f32.mrb[65].mxu1 }
 0x2e9   :  { %v890_v29 = vpop.permute.xlu0 %889  ;;  %v888_v37 = vpop.permute.xlu1 %887  ;;  %v11841_v27 = vcombine.low %v1524_v4, %v1525_v3 }
 0x2ea   :  { %v1102_v12 = vmax.f32 %v1053_v59, 0.0  ;;  %v999_v28 = vmax.f32 %v16793_v40, %v890_v29  ;;  %v998_v46 = vmax.f32 %v16797_v51, %v888_v37  ;;  %v2043_v39 = vpop.f32.mrb[66].mxu1  ;;  %v1527_v40 = vld [vmem:[#allocation2 + $0xfc] sm:$0xf] }
 0x2eb   :  { %v16977_v34 = vadd.f32 %v2550_v41, %v2043_v39  ;;  %v13417_v26 = vpop.f32.mrb[67].mxu1  ;;  %13633 = vmatmul.mubr.msk.bf16.gmra.mrb[224].mxu0 %vm213_vm1, %v11841_v27 }
 0x2ec   :  { %v12668_v25 = vpack.c.bf16 %v1102_v12, %v1102_v12  ;;  %v1055_v13 = vadd.f32 %v16744_v44, %v999_v28  ;;  %v1054_v47 = vadd.f32 %v16744_v44, %v998_v46  ;;  %v16980_v49 = vpop.f32.mrb[176].mxu0  ;;  %13636 = vmatprep.mubr.msk.bf16.mxu0 %vm15735_vm0, %v15734_v0  ;;  %v1528_v28 = vld [vmem:[#allocation2 + $0x100] sm:$0xf] }
 0x2ed   :  { %v892_v8 = vpop.permute.xlu1 %891  ;;  %v1526_v20 = vld [vmem:[#allocation2 + $0xf8] sm:$0xf]  ;;  %v13586_v51 = vpop.f32.mrb[177].mxu0 }
 0x2ee   :  { %1425 = vst.msk [vmem:[#allocation2 + $0x104] sm:$0xf] %vm1141_vm2, %v12668_v25  ;;  %v1104_v4 = vmax.f32 %v1055_v13, 0.0  ;;  %v1103_v35 = vmax.f32 %v1054_v47, 0.0  ;;  %v1000_v30 = vmax.f32 %v16811_v62, %v892_v8  ;;  %v11758_v42 = vcombine.low %v1525_v3, %v1526_v20  ;;  %v16986_v48 = vpop.f32.mrb[178].mxu0 }
 0x2ef   :  { %v13587_v41 = vpop.f32.mrb[179].mxu0  ;;  %v11842_v46 = vcombine.low %v1526_v20, %v1527_v40  ;;  %v11759_v25 = vcombine.low %v1527_v40, %v1528_v28 }
 0x2f0   :  { %v12670_v59 = vpack.c.bf16 %v1104_v4, %v1104_v4  ;;  %v12669_v53 = vpack.c.bf16 %v1103_v35, %v1103_v35  ;;  %v1056_v52 = vadd.f32 %v16744_v44, %v1000_v30  ;;  %13467 = vmatmul.mubr.msk.bf16.gmra.mrb[116].mxu1 %vm213_vm1, %v11758_v42  ;;  %v894_v29 = vpop.permute.xlu0 %893 }
 0x2f1   :  { %v1001_v37 = vmax.f32 %v16824_v23, %v894_v29  ;;  %v896_v12 = vpop.permute.xlu1 %895  ;;  %13470 = vmatprep.mubr.msk.bf16.mxu1 %vm15735_vm0, %v15734_v0 }
 0x2f2   :  { %1427 = vst.msk [vmem:[#allocation2 + $0x10c] sm:$0xf] %vm1141_vm2, %v12670_v59  ;;  %1426 = vst.msk [vmem:[#allocation2 + $0x108] sm:$0xf] %vm1141_vm2, %v12669_v53  ;;  %v1105_v62 = vmax.f32 %v1056_v52, 0.0  ;;  %v1002_v3 = vmax.f32 %v16820_v56, %v896_v12 }
 0x2f3   :  { %v1057_v9 = vadd.f32 %v16744_v44, %v1001_v37  ;;  %13637 = vmatmul.mubr.msk.bf16.gmra.mrb[228].mxu0 %vm213_vm1, %v11842_v46 }
 0x2f4   :  { %v12671_v27 = vpack.c.bf16 %v1105_v62, %v1105_v62  ;;  %v1058_v39 = vadd.f32 %v16744_v44, %v1002_v3  ;;  %v898_v23 = vpop.permute.xlu0 %897  ;;  %13640 = vmatprep.mubr.msk.bf16.mxu0 %vm15735_vm0, %v15734_v0  ;;  %v1536_v62 = vld [vmem:[#allocation2 + $0x120] sm:$0xf]  ;;  %v17031_v3 = vld [vmem:[#allocation2 + $0x124] sm:$0xf] }
 0x2f5   :  { %v1106_v13 = vmax.f32 %v1057_v9, 0.0  ;;  %v1003_v47 = vmax.f32 %v16833_v61, %v898_v23  ;;  %v1529_v26 = vld [vmem:[#allocation2 + $0x104] sm:$0xf]  ;;  %v11847_v9 = vcombine.low %v1536_v62, %v17031_v3 }
 0x2f6   :  { %1428 = vst.msk [vmem:[#allocation2 + $0x110] sm:$0xf] %vm1141_vm2, %v12671_v27  ;;  %v1107_v56 = vmax.f32 %v1058_v39, 0.0  ;;  %v11843_v61 = vcombine.low %v1528_v28, %v1529_v26 }
 0x2f7   :  { %v12672_v8 = vpack.c.bf16 %v1106_v13, %v1106_v13  ;;  %v1059_v20 = vadd.f32 %v16744_v44, %v1003_v47 }
 0x2f8   :  { %v12673_v51 = vpack.c.bf16 %v1107_v56, %v1107_v56  ;;  %13471 = vmatmul.mubr.msk.bf16.gmra.mrb[120].mxu1 %vm213_vm1, %v11759_v25 }
 0x2f9   :  { %1429 = vst.msk [vmem:[#allocation2 + $0x114] sm:$0xf] %vm1141_vm2, %v12672_v8  ;;  %v1108_v4 = vmax.f32 %v1059_v20, 0.0  ;;  %13474 = vmatprep.mubr.msk.bf16.mxu1 %vm15735_vm0, %v15734_v0  ;;  %v1530_v35 = vld [vmem:[#allocation2 + $0x108] sm:$0xf] }
 0x2fa   :  { %1430 = vst.msk [vmem:[#allocation2 + $0x118] sm:$0xf] %vm1141_vm2, %v12673_v51  ;;  %v11760_v44 = vcombine.low %v1529_v26, %v1530_v35  ;;  %v1531_v30 = vld [vmem:[#allocation2 + $0x10c] sm:$0xf] }
 0x2fb   :  { %v12674_v40 = vpack.c.bf16 %v1108_v4, %v1108_v4  ;;  %13641 = vmatmul.mubr.msk.bf16.gmra.mrb[232].mxu0 %vm213_vm1, %v11843_v61  ;;  %v11844_v42 = vcombine.low %v1530_v35, %v1531_v30 }
 0x2fc   :  { %13644 = vmatprep.mubr.msk.bf16.mxu0 %vm15735_vm0, %v15734_v0 }
 0x2fd   :  { %1431 = vst.msk [vmem:[#allocation2 + $0x11c] sm:$0xf] %vm1141_vm2, %v12674_v40  ;;  %v1532_v41 = vld [vmem:[#allocation2 + $0x110] sm:$0xf] }
 0x2fe   :  { %v11761_v59 = vcombine.low %v1531_v30, %v1532_v41 }
 0x300   :  { %13475 = vmatmul.mubr.msk.bf16.gmra.mrb[124].mxu1 %vm213_vm1, %v11760_v44  ;;  %v1533_v53 = vld [vmem:[#allocation2 + $0x114] sm:$0xf] }
 0x301   :  { %13478 = vmatprep.mubr.msk.bf16.mxu1 %vm15735_vm0, %v15734_v0  ;;  %v11845_v52 = vcombine.low %v1532_v41, %v1533_v53  ;;  %v1534_v29 = vld [vmem:[#allocation2 + $0x118] sm:$0xf] }
 0x302   :  { %v11762_v37 = vcombine.low %v1533_v53, %v1534_v29 }
 0x303   :  { %13645 = vmatmul.mubr.msk.bf16.gmra.mrb[236].mxu0 %vm213_vm1, %v11844_v42 }
 0x304   :  { %13648 = vmatprep.mubr.msk.bf16.mxu0 %vm15735_vm0, %v15734_v0  ;;  %v1535_v12 = vld [vmem:[#allocation2 + $0x11c] sm:$0xf] }
 0x305   :  { %v11846_v28 = vcombine.low %v1534_v29, %v1535_v12  ;;  %v11763_v46 = vcombine.low %v1535_v12, %v1536_v62 }
 0x308   :  { %13479 = vmatmul.mubr.msk.bf16.gmra.mrb[128].mxu1 %vm213_vm1, %v11761_v59 }
 0x309   :  { %13482 = vmatprep.mubr.msk.bf16.mxu1 %vm15735_vm0, %v15734_v0 }
 0x30b   :  { %13649 = vmatmul.mubr.msk.bf16.gmra.mrb[240].mxu0 %vm213_vm1, %v11845_v52 }
 0x30c   :  { %13652 = vmatprep.mubr.msk.bf16.mxu0 %vm15735_vm0, %v15734_v0 }
 0x310   :  { %13483 = vmatmul.mubr.msk.bf16.gmra.mrb[132].mxu1 %vm213_vm1, %v11762_v37 }
 0x311   :  { %13486 = vmatprep.mubr.msk.bf16.mxu1 %vm15735_vm0, %v15734_v0 }
 0x313   :  { %13653 = vmatmul.mubr.msk.bf16.gmra.mrb[244].mxu0 %vm213_vm1, %v11846_v28 }
 0x314   :  { %13656 = vmatprep.mubr.msk.bf16.mxu0 %vm15735_vm0, %v15734_v0 }
 0x318   :  { %13487 = vmatmul.mubr.msk.bf16.gmra.mrb[136].mxu1 %vm213_vm1, %v11763_v46 }
 0x319   :  { %13490 = vmatprep.mubr.msk.bf16.mxu1 %vm15735_vm0, %v15734_v0 }
 0x31b   :  { %13657 = vmatmul.mubr.msk.bf16.gmra.mrb[248].mxu0 %vm213_vm1, %v11847_v9 }
 0x31c   :  { %13660 = vmatprep.mubr.msk.bf16.mxu0 %vm15735_vm0, %v15734_v0 }
 0x324   :  { %v2048_v27 = vpop.f32.mrb[68].mxu1 }
 0x325   :  { %v17041_v39 = vadd.f32 %v16980_v49, %v2048_v27  ;;  %v13420_v23 = vpop.f32.mrb[69].mxu1 }
 0x326   :  { %v2051_v25 = vpop.f32.mrb[70].mxu1 }
 0x327   :  { %v17044_v13 = vadd.f32 %v16986_v48, %v2051_v25  ;;  %v13421_v47 = vpop.f32.mrb[71].mxu1 }
 0x32c   :  { %v2563_v26 = vpop.f32.mrb[180].mxu0 }
 0x32d   :  { %v13590_v56 = vpop.f32.mrb[181].mxu0 }
 0x32e   :  { %v2566_v8 = vpop.f32.mrb[182].mxu0 }
 0x32f   :  { %v13591_v20 = vpop.f32.mrb[183].mxu0 }
 0x330   :  { %v2056_v51 = vpop.f32.mrb[72].mxu1 }
 0x331   :  { %v17046_v4 = vadd.f32 %v2563_v26, %v2056_v51  ;;  %v13424_v61 = vpop.f32.mrb[73].mxu1  ;;  %v17060_v26 = vld [vmem:[%s19345_s2] ss:$0 sm:$0xff] }
 0x332   :  { %v2059_v40 = vpop.f32.mrb[74].mxu1 }
 0x333   :  { %v17048_v35 = vadd.f32 %v2566_v8, %v2059_v40  ;;  %v13425_v44 = vpop.f32.mrb[75].mxu1 }
 0x334   :  { %v2571_v49 = vpop.f32.mrb[184].mxu0 }
 0x335   :  { %v13594_v30 = vpop.f32.mrb[185].mxu0 }
 0x336   :  { %v2574_v42 = vpop.f32.mrb[186].mxu0 }
 0x337   :  { %v13595_v41 = vpop.f32.mrb[187].mxu0 }
 0x338   :  { %v2064_v59 = vpop.f32.mrb[76].mxu1 }
 0x339   :  { %v17050_v48 = vadd.f32 %v2571_v49, %v2064_v59  ;;  %v13428_v53 = vpop.f32.mrb[77].mxu1 }
 0x33a   :  { %v2067_v52 = vpop.f32.mrb[78].mxu1 }
 0x33b   :  { %v17052_v29 = vadd.f32 %v2574_v42, %v2067_v52  ;;  %v13429_v37 = vpop.f32.mrb[79].mxu1 }
 0x33c   :  { %v2579_v12 = vpop.f32.mrb[188].mxu0 }
 0x33d   :  { %v13598_v28 = vpop.f32.mrb[189].mxu0 }
 0x33e   :  { %v2582_v62 = vpop.f32.mrb[190].mxu0 }
 0x33f   :  { %v13599_v46 = vpop.f32.mrb[191].mxu0 }
 0x340   :  { %v900_v9 = vpop.permute.xlu1 %899 }
 0x341   :  { %v2072_v27 = vpop.f32.mrb[80].mxu1  ;;  %v1004_v23 = vmax.f32 %v16891_v31, %v900_v9 }
 0x342   :  { %v17055_v25 = vadd.f32 %v2579_v12, %v2072_v27  ;;  %v13432_v47 = vpop.f32.mrb[81].mxu1 }
 0x343   :  { %v1060_v56 = vadd.f32 %v17060_v26, %v1004_v23  ;;  %v2075_v8 = vpop.f32.mrb[82].mxu1 }
 0x344   :  { %v17063_v20 = vadd.f32 %v2582_v62, %v2075_v8  ;;  %v13433_v51 = vpop.f32.mrb[83].mxu1  ;;  %v2587_v61 = vpop.f32.mrb[192].mxu0 }
 0x345   :  { %v1109_v40 = vmax.f32 %v1060_v56, 0.0  ;;  %v13602_v44 = vpop.f32.mrb[193].mxu0 }
 0x346   :  { %v2589_v49 = vpop.f32.mrb[194].mxu0 }
 0x347   :  { %v12675_v30 = vpack.c.bf16 %v1109_v40, %v1109_v40  ;;  %v13603_v31 = vpop.f32.mrb[195].mxu0 }
 0x349   :  { %1457 = vst.msk [vmem:[#allocation2 + $0x128] sm:$0xf] %vm1141_vm2, %v12675_v30  ;;  %v902_v42 = vpop.permute.xlu0 %901  ;;  %v2080_v41 = vpop.f32.mrb[84].mxu1 }
 0x34a   :  { %v1005_v59 = vmax.f32 %v16911_v19, %v902_v42  ;;  %v13436_v53 = vpop.f32.mrb[85].mxu1 }
 0x34b   :  { %v2082_v52 = vpop.f32.mrb[86].mxu1 }
 0x34c   :  { %v1061_v37 = vadd.f32 %v17060_v26, %v1005_v59  ;;  %v2593_v12 = vpop.f32.mrb[196].mxu0  ;;  %v13437_v28 = vpop.f32.mrb[87].mxu1 }
 0x34d   :  { %v13606_v62 = vpop.f32.mrb[197].mxu0 }
 0x34e   :  { %v1110_v46 = vmax.f32 %v1061_v37, 0.0  ;;  %v904_v9 = vpop.permute.xlu1 %903  ;;  %v2596_v27 = vpop.f32.mrb[198].mxu0 }
 0x34f   :  { %v1006_v23 = vmax.f32 %v16921_v24, %v904_v9  ;;  %v13607_v47 = vpop.f32.mrb[199].mxu0 }
 0x350   :  { %v12676_v56 = vpack.c.bf16 %v1110_v46, %v1110_v46  ;;  %v1538_v8 = vld [vmem:[#allocation2 + $0x128] sm:$0xf] }
 0x351   :  { %v1062_v51 = vadd.f32 %v17060_v26, %v1006_v23  ;;  %v2086_v61 = vpop.f32.mrb[88].mxu1  ;;  %v11764_v19 = vcombine.low %v17031_v3, %v1538_v8  ;;  %v906_v44 = vpop.permute.xlu0 %905 }
 0x352   :  { %1458 = vst.msk [vmem:[#allocation2 + $0x12c] sm:$0xf] %vm1141_vm2, %v12676_v56  ;;  %v17072_v40 = vadd.f32 %v2593_v12, %v2086_v61  ;;  %v13440_v49 = vpop.f32.mrb[89].mxu1  ;;  %v1007_v31 = vmax.f32 %v16934_v14, %v906_v44 }
 0x353   :  { %v1111_v30 = vmax.f32 %v1062_v51, 0.0  ;;  %v2089_v42 = vpop.f32.mrb[90].mxu1  ;;  %13491 = vmatmul.mubr.msk.bf16.gmra.mrb[140].mxu1 %vm213_vm1, %v11764_v19 }
 0x354   :  { %v17076_v24 = vadd.f32 %v2596_v27, %v2089_v42  ;;  %v13441_v41 = vpop.f32.mrb[91].mxu1  ;;  %v2601_v59 = vpop.f32.mrb[200].mxu0  ;;  %13494 = vmatprep.mubr.msk.bf16.mxu1 %vm15735_vm0, %v15734_v0  ;;  %v1063_v53 = vadd.f32 %v17060_v26, %v1007_v31 }
 0x355   :  { %v12677_v3 = vpack.c.bf16 %v1111_v30, %v1111_v30  ;;  %v13610_v52 = vpop.f32.mrb[201].mxu0 }
 0x356   :  { %v910_v37 = vpop.permute.xlu0 %909  ;;  %v908_v12 = vpop.permute.xlu1 %907  ;;  %v1112_v28 = vmax.f32 %v1063_v53, 0.0 }
 0x357   :  { %1459 = vst.msk [vmem:[#allocation2 + $0x130] sm:$0xf] %vm1141_vm2, %v12677_v3  ;;  %v1009_v14 = vmax.f32 %v16949_v6, %v910_v37  ;;  %v1008_v62 = vmax.f32 %v16946_v63, %v908_v12  ;;  %v2604_v46 = vpop.f32.mrb[202].mxu0 }
 0x358   :  { %v13611_v9 = vpop.f32.mrb[203].mxu0  ;;  %v12678_v27 = vpack.c.bf16 %v1112_v28, %v1112_v28 }
 0x359   :  { %v1065_v23 = vadd.f32 %v17060_v26, %v1009_v14  ;;  %v1064_v47 = vadd.f32 %v17060_v26, %v1008_v62  ;;  %v2094_v56 = vpop.f32.mrb[92].mxu1  ;;  %v1539_v51 = vld [vmem:[#allocation2 + $0x12c] sm:$0xf] }
 0x35a   :  { %v17086_v61 = vadd.f32 %v2601_v59, %v2094_v56  ;;  %v912_v19 = vpop.permute.xlu1 %911  ;;  %v13444_v44 = vpop.f32.mrb[93].mxu1  ;;  %v11848_v49 = vcombine.low %v1538_v8, %v1539_v51  ;;  %1460 = vst.msk [vmem:[#allocation2 + $0x134] sm:$0xf] %vm1141_vm2, %v12678_v27 }
 0x35b   :  { %v1114_v30 = vmax.f32 %v1065_v23, 0.0  ;;  %v1113_v6 = vmax.f32 %v1064_v47, 0.0  ;;  %v1010_v63 = vmax.f32 %v16963_v7, %v912_v19  ;;  %v2097_v31 = vpop.f32.mrb[94].mxu1 }
 0x35c   :  { %v17090_v42 = vadd.f32 %v2604_v46, %v2097_v31  ;;  %v13445_v41 = vpop.f32.mrb[95].mxu1  ;;  %13661 = vmatmul.mubr.msk.bf16.gmra.mrb[252].mxu0 %vm213_vm1, %v11848_v49  ;;  %v2609_v3 = vpop.f32.mrb[204].mxu0 }
 0x35d   :  { %v12680_v53 = vpack.c.bf16 %v1114_v30, %v1114_v30  ;;  %v12679_v52 = vpack.c.bf16 %v1113_v6, %v1113_v6  ;;  %v1066_v59 = vadd.f32 %v17060_v26, %v1010_v63  ;;  %v13614_v37 = vpop.f32.mrb[205].mxu0  ;;  %13664 = vmatprep.mubr.msk.bf16.mxu0 %vm15735_vm0, %v15734_v0 }
 0x35e   :  { %v2612_v8 = vpop.f32.mrb[206].mxu0  ;;  %v1540_v12 = vld [vmem:[#allocation2 + $0x130] sm:$0xf] }
 0x35f   :  { %1462 = vst.msk [vmem:[#allocation2 + $0x13c] sm:$0xf] %vm1141_vm2, %v12680_v53  ;;  %1461 = vst.msk [vmem:[#allocation2 + $0x138] sm:$0xf] %vm1141_vm2, %v12679_v52  ;;  %v1115_v7 = vmax.f32 %v1066_v59, 0.0  ;;  %v11765_v28 = vcombine.low %v1539_v51, %v1540_v12  ;;  %v13615_v14 = vpop.f32.mrb[207].mxu0 }
 0x361   :  { %v12681_v62 = vpack.c.bf16 %v1115_v7, %v1115_v7  ;;  %13495 = vmatmul.mubr.msk.bf16.gmra.mrb[144].mxu1 %vm213_vm1, %v11765_v28  ;;  %v2102_v46 = vpop.f32.mrb[96].mxu1  ;;  %v1541_v9 = vld [vmem:[#allocation2 + $0x134] sm:$0xf] }
 0x362   :  { %v17099_v27 = vadd.f32 %v2609_v3, %v2102_v46  ;;  %v13448_v26 = vpop.f32.mrb[97].mxu1  ;;  %13498 = vmatprep.mubr.msk.bf16.mxu1 %vm15735_vm0, %v15734_v0  ;;  %v11849_v23 = vcombine.low %v1540_v12, %v1541_v9 }
 0x363   :  { %1463 = vst.msk [vmem:[#allocation2 + $0x140] sm:$0xf] %vm1141_vm2, %v12681_v62  ;;  %v2105_v47 = vpop.f32.mrb[98].mxu1  ;;  %v15334_v26 = vld [vmem:[#allocation2 + $0x144] ss:$0 sps:$4 sm:$0xff]  }
 0x364   :  { %v17104_v56 = vadd.f32 %v2612_v8, %v2105_v47  ;;  %v13449_v19 = vpop.f32.mrb[99].mxu1  ;;  %v2617_v51 = vpop.f32.mrb[208].mxu0  ;;  %13665 = vmatmul.mubr.msk.bf16.gmra.mrb[0].mxu0 %vm213_vm1, %v11849_v23  ;;  %v15335_v23 = vld [vmem:[#allocation2 + $0x24] sm:$0xff]  }
 0x365   :  { %v13618_v44 = vpop.f32.mrb[209].mxu0  ;;  %13668 = vmatprep.mubr.msk.bf16.mxu0 %vm15735_vm0, %v15734_v0  ;;  %v15336_v47 = vld [vmem:[#allocation2 + $0x8] sm:$0xff]   ;;  %v15337_v19 = vld [vmem:[%s19344_s3 + $0x20] sm:$0xff]  }
 0x366   :  { %v2620_v49 = vpop.f32.mrb[210].mxu0  ;;  %v1542_v30 = vld [vmem:[#allocation2 + $0x138] sm:$0xf]  ;;  %v1543_v6 = vld [vmem:[#allocation2 + $0x13c] sm:$0xf]  ;;  %v15339_v44 = vld [vmem:[#allocation2 + $0x10] sm:$0xff]  }
 0x367   :  { %v11766_v63 = vcombine.low %v1541_v9, %v1542_v30  ;;  %v13619_v31 = vpop.f32.mrb[211].mxu0  ;;  %v11850_v52 = vcombine.low %v1542_v30, %v1543_v6  ;;  %v15341_v30 = vld [vmem:[#allocation2 + $0x18] sm:$0xff]  }
 0x368   :  { %v15344_v31 = vld [vmem:[#allocation2 + $0x44] sm:$0xff]  }
 0x369   :  { %13499 = vmatmul.mubr.msk.bf16.gmra.mrb[148].mxu1 %vm213_vm1, %v11766_v63  ;;  %v2110_v41 = vpop.f32.mrb[100].mxu1  ;;  %v15343_v63 = vld [vmem:[#allocation2 + $0x20] sm:$0xff]  }
 0x36a   :  { %v17110_v3 = vadd.f32 %v2617_v51, %v2110_v41  ;;  %v13452_v53 = vpop.f32.mrb[101].mxu1  ;;  %13502 = vmatprep.mubr.msk.bf16.mxu1 %vm15735_vm0, %v15734_v0  ;;  %v1544_v12 = vld [vmem:[#allocation2 + $0x140] sm:$0xf]  ;;  %v15338_v51 = vld [vmem:[#allocation2 + $0x2c] sm:$0xff]  }
 0x36b   :  { %v2113_v59 = vpop.f32.mrb[102].mxu1  ;;  %v11767_v62 = vcombine.low %v1543_v6, %v1544_v12  ;;  %v11851_v9 = vcombine.low %v1544_v12, %v1544_v12  ;;  %v15342_v6 = vld [vmem:[#allocation2 + $0x3c] sm:$0xff]   ;;  %v15345_v41 = vld [vmem:[#allocation2 + $0x28] sm:$0xff]  }
 0x36c   :  { %v17114_v37 = vadd.f32 %v2620_v49, %v2113_v59  ;;  %v13453_v8 = vpop.f32.mrb[103].mxu1  ;;  %v2625_v7 = vpop.f32.mrb[212].mxu0  ;;  %13669 = vmatmul.mubr.msk.bf16.gmra.mrb[4].mxu0 %vm213_vm1, %v11850_v52  ;;  %v15340_v49 = vld [vmem:[#allocation2 + $0x34] sm:$0xff]   ;;  %v15346_v53 = vld [vmem:[#allocation2 + $0x4c] sm:$0xff]  }
 0x36d   :  { %v13622_v28 = vpop.f32.mrb[213].mxu0  ;;  %13672 = vmatprep.mubr.msk.bf16.mxu0 %vm15735_vm0, %v15734_v0  ;;  %v15347_v59 = vld [vmem:[#allocation2 + $0x30] sm:$0xff]  }
 0x36e   :  { %v2628_v14 = vpop.f32.mrb[214].mxu0 }
 0x36f   :  { %v13623_v46 = vpop.f32.mrb[215].mxu0 }
 0x371   :  { %13503 = vmatmul.mubr.msk.bf16.gmra.mrb[152].mxu1 %vm213_vm1, %v11767_v62 }
 0x372   :  { %13506 = vmatprep.mubr.msk.bf16.mxu1 %vm15735_vm0, %v15734_v0 }
 0x374   :  { %13673 = vmatmul.mubr.msk.bf16.gmra.mrb[8].mxu0 %vm213_vm1, %v11851_v9  ;;  %v15348_v9 = vld [vmem:[#allocation2 + $0x54] sm:$0xff]  }
 0x375   :  { %13844 = vmatprep.mubr.msk.bf16.mxu0 %vm15735_vm0, %v15734_v0 }
 0x379   :  { %13507 = vmatmul.mubr.msk.bf16.gmra.mrb[156].mxu1 %vm213_vm1, %v15334_v26 }
 0x37a   :  { %13678 = vmatprep.mubr.msk.bf16.mxu1 %vm15735_vm0, %v15734_v0 }
 0x37c   :  { %13845 = vmatmul.mubr.msk.bf16.vlgmr.msra.gmra.mrb[12].mxu0 %vm213_vm1, %v15335_v23  ;;  %v15349_v23 = vld [vmem:[#allocation2 + $0x38] sm:$0xff]  }
 0x37d   :  { %13848 = vmatprep.mubr.msk.bf16.mxu0 %vm15735_vm0, %v15734_v0 }
 0x381   :  { %13679 = vmatmul.mubr.msk.bf16.vlgmr.msra.gmra.mrb[160].mxu1 %vm213_vm1, %v15336_v47 }
 0x382   :  { %14009 = vmatpush3.bf16.msra.mxu1 %v15337_v19  ;;  %13682 = vmatprep.mubr.msk.bf16.mxu1 %vm15735_vm0, %v15734_v0 }
 0x383   :  { %14340 = vmatprep.subr.bf16.mxu1 %v15734_v0 }
 0x384   :  { %13849 = vmatmul.mubr.msk.bf16.gmra.mrb[16].mxu0 %vm213_vm1, %v15338_v51 }
 0x385   :  { %13852 = vmatprep.mubr.msk.bf16.mxu0 %vm15735_vm0, %v15734_v0 }
 0x389   :  { %13683 = vmatmul.mubr.msk.bf16.gmra.mrb[164].mxu1 %vm213_vm1, %v15339_v44 }
 0x38a   :  { %13686 = vmatprep.mubr.msk.bf16.mxu1 %vm15735_vm0, %v15734_v0 }
 0x38c   :  { %13853 = vmatmul.mubr.msk.bf16.gmra.mrb[20].mxu0 %vm213_vm1, %v15340_v49  ;;  %v15350_v49 = vld [vmem:[#allocation2 + $0x5c] sm:$0xff]  }
 0x38d   :  { %13856 = vmatprep.mubr.msk.bf16.mxu0 %vm15735_vm0, %v15734_v0 }
 0x391   :  { %13687 = vmatmul.mubr.msk.bf16.gmra.mrb[168].mxu1 %vm213_vm1, %v15341_v30 }
 0x392   :  { %13690 = vmatprep.mubr.msk.bf16.mxu1 %vm15735_vm0, %v15734_v0 }
 0x394   :  { %13857 = vmatmul.mubr.msk.bf16.gmra.mrb[24].mxu0 %vm213_vm1, %v15342_v6 }
 0x395   :  { %13860 = vmatprep.mubr.msk.bf16.mxu0 %vm15735_vm0, %v15734_v0 }
 0x399   :  { %13691 = vmatmul.mubr.msk.bf16.gmra.mrb[172].mxu1 %vm213_vm1, %v15343_v63 }
 0x39a   :  { %13694 = vmatprep.mubr.msk.bf16.mxu1 %vm15735_vm0, %v15734_v0 }
 0x39c   :  { %13861 = vmatmul.mubr.msk.bf16.gmra.mrb[28].mxu0 %vm213_vm1, %v15344_v31  ;;  %v15351_v31 = vld [vmem:[#allocation2 + $0x40] sm:$0xff]  }
 0x39d   :  { %13864 = vmatprep.mubr.msk.bf16.mxu0 %vm15735_vm0, %v15734_v0 }
 0x3a1   :  { %13695 = vmatmul.mubr.msk.bf16.gmra.mrb[176].mxu1 %vm213_vm1, %v15345_v41 }
 0x3a2   :  { %13698 = vmatprep.mubr.msk.bf16.mxu1 %vm15735_vm0, %v15734_v0 }
 0x3a4   :  { %13865 = vmatmul.mubr.msk.bf16.gmra.mrb[32].mxu0 %vm213_vm1, %v15346_v53 }
 0x3a5   :  { %v2118_v52 = vpop.f32.mrb[104].mxu1  ;;  %13868 = vmatprep.mubr.msk.bf16.mxu0 %vm15735_vm0, %v15734_v0 }
 0x3a6   :  { %v17163_v8 = vadd.f32 %v2625_v7, %v2118_v52  ;;  %v13456_v12 = vpop.f32.mrb[105].mxu1 }
 0x3a7   :  { %v2121_v28 = vpop.f32.mrb[106].mxu1 }
 0x3a8   :  { %v17167_v62 = vadd.f32 %v2628_v14, %v2121_v28  ;;  %v13457_v46 = vpop.f32.mrb[107].mxu1 }
 0x3a9   :  { %13699 = vmatmul.mubr.msk.bf16.gmra.mrb[180].mxu1 %vm213_vm1, %v15347_v59 }
 0x3aa   :  { %13702 = vmatprep.mubr.msk.bf16.mxu1 %vm15735_vm0, %v15734_v0 }
 0x3ac   :  { %13869 = vmatmul.mubr.msk.bf16.gmra.mrb[36].mxu0 %vm213_vm1, %v15348_v9  ;;  %v15352_v9 = vld [vmem:[#allocation2 + $0x64] sm:$0xff]  }
 0x3ad   :  { %v2633_v26 = vpop.f32.mrb[216].mxu0  ;;  %13872 = vmatprep.mubr.msk.bf16.mxu0 %vm15735_vm0, %v15734_v0 }
 0x3ae   :  { %v13626_v7 = vpop.f32.mrb[217].mxu0 }
 0x3af   :  { %v2636_v47 = vpop.f32.mrb[218].mxu0 }
 0x3b0   :  { %v13627_v19 = vpop.f32.mrb[219].mxu0 }
 0x3b1   :  { %13703 = vmatmul.mubr.msk.bf16.gmra.mrb[184].mxu1 %vm213_vm1, %v15349_v23 }
 0x3b2   :  { %v2126_v14 = vpop.f32.mrb[108].mxu1  ;;  %13706 = vmatprep.mubr.msk.bf16.mxu1 %vm15735_vm0, %v15734_v0 }
 0x3b3   :  { %v17178_v51 = vadd.f32 %v2633_v26, %v2126_v14  ;;  %v13460_v44 = vpop.f32.mrb[109].mxu1 }
 0x3b4   :  { %v2129_v30 = vpop.f32.mrb[110].mxu1  ;;  %13873 = vmatmul.mubr.msk.bf16.gmra.mrb[40].mxu0 %vm213_vm1, %v15350_v49  ;;  %v15354_v49 = vld [vmem:[#allocation2 + $0x6c] sm:$0xff]  }
 0x3b5   :  { %v17180_v6 = vadd.f32 %v2636_v47, %v2129_v30  ;;  %v13461_v63 = vpop.f32.mrb[111].mxu1  ;;  %13876 = vmatprep.mubr.msk.bf16.mxu0 %vm15735_vm0, %v15734_v0  ;;  %v15353_v47 = vld [vmem:[#allocation2 + $0x48] sm:$0xff]  }
 0x3b6   :  { %v2641_v41 = vpop.f32.mrb[220].mxu0 }
 0x3b7   :  { %v13630_v53 = vpop.f32.mrb[221].mxu0 }
 0x3b8   :  { %v2644_v52 = vpop.f32.mrb[222].mxu0 }
 0x3b9   :  { %13707 = vmatmul.mubr.msk.bf16.gmra.mrb[188].mxu1 %vm213_vm1, %v15351_v31  ;;  %v13631_v59 = vpop.f32.mrb[223].mxu0 }
 0x3ba   :  { %v2134_v12 = vpop.f32.mrb[112].mxu1  ;;  %13710 = vmatprep.mubr.msk.bf16.mxu1 %vm15735_vm0, %v15734_v0 }
 0x3bb   :  { %v17188_v28 = vadd.f32 %v2641_v41, %v2134_v12  ;;  %v13464_v46 = vpop.f32.mrb[113].mxu1 }
 0x3bc   :  { %v2137_v26 = vpop.f32.mrb[114].mxu1  ;;  %13877 = vmatmul.mubr.msk.bf16.gmra.mrb[44].mxu0 %vm213_vm1, %v15352_v9  ;;  %v15355_v46 = vld [vmem:[#allocation2 + $0x50] sm:$0xff]  }
 0x3bd   :  { %v17190_v23 = vadd.f32 %v2644_v52, %v2137_v26  ;;  %v13465_v7 = vpop.f32.mrb[115].mxu1  ;;  %13880 = vmatprep.mubr.msk.bf16.mxu0 %vm15735_vm0, %v15734_v0 }
 0x3be   :  { %v2649_v19 = vpop.f32.mrb[224].mxu0 }
 0x3bf   :  { %v13634_v14 = vpop.f32.mrb[225].mxu0 }
 0x3c0   :  { %v2652_v44 = vpop.f32.mrb[226].mxu0 }
 0x3c1   :  { %13711 = vmatmul.mubr.msk.bf16.gmra.mrb[192].mxu1 %vm213_vm1, %v15353_v47  ;;  %v13635_v30 = vpop.f32.mrb[227].mxu0  ;;  %v15356_v47 = vld [vmem:[#allocation2 + $0x74] sm:$0xff]  }
 0x3c2   :  { %13714 = vmatprep.mubr.msk.bf16.mxu1 %vm15735_vm0, %v15734_v0 }
 0x3c3   :  { %v2142_v63 = vpop.f32.mrb[116].mxu1 }
 0x3c4   :  { %v17198_v31 = vadd.f32 %v2649_v19, %v2142_v63  ;;  %v13468_v41 = vpop.f32.mrb[117].mxu1  ;;  %13881 = vmatmul.mubr.msk.bf16.gmra.mrb[48].mxu0 %vm213_vm1, %v15354_v49  ;;  %v15357_v63 = vld [vmem:[#allocation2 + $0x58] sm:$0xff]  }
 0x3c5   :  { %v2145_v53 = vpop.f32.mrb[118].mxu1  ;;  %13884 = vmatprep.mubr.msk.bf16.mxu0 %vm15735_vm0, %v15734_v0 }
 0x3c6   :  { %v17201_v52 = vadd.f32 %v2652_v44, %v2145_v53  ;;  %v13469_v59 = vpop.f32.mrb[119].mxu1  ;;  %v2657_v12 = vpop.f32.mrb[228].mxu0 }
 0x3c7   :  { %v13638_v9 = vpop.f32.mrb[229].mxu0 }
 0x3c8   :  { %v2659_v26 = vpop.f32.mrb[230].mxu0 }
 0x3c9   :  { %13715 = vmatmul.mubr.msk.bf16.gmra.mrb[196].mxu1 %vm213_vm1, %v15355_v46  ;;  %v13639_v7 = vpop.f32.mrb[231].mxu0  ;;  %v15358_v46 = vld [vmem:[#allocation2 + $0x7c] sm:$0xff]  }
 0x3ca   :  { %13718 = vmatprep.mubr.msk.bf16.mxu1 %vm15735_vm0, %v15734_v0 }
 0x3cb   :  { %v2150_v19 = vpop.f32.mrb[120].mxu1 }
 0x3cc   :  { %v13472_v14 = vpop.f32.mrb[121].mxu1  ;;  %13885 = vmatmul.mubr.msk.bf16.gmra.mrb[52].mxu0 %vm213_vm1, %v15356_v47 }
 0x3cd   :  { %v2152_v44 = vpop.f32.mrb[122].mxu1  ;;  %13888 = vmatprep.mubr.msk.bf16.mxu0 %vm15735_vm0, %v15734_v0 }
 0x3ce   :  { %v13473_v49 = vpop.f32.mrb[123].mxu1  ;;  %v2663_v30 = vpop.f32.mrb[232].mxu0  ;;  %v15359_v44 = vld [vmem:[#allocation2 + $0x60] sm:$0xff]  }
 0x3cf   :  { %v13642_v41 = vpop.f32.mrb[233].mxu0 }
 0x3d0   :  { %v2666_v53 = vpop.f32.mrb[234].mxu0 }
 0x3d1   :  { %13719 = vmatmul.mubr.msk.bf16.gmra.mrb[200].mxu1 %vm213_vm1, %v15357_v63  ;;  %v13643_v59 = vpop.f32.mrb[235].mxu0 }
 0x3d2   :  { %13722 = vmatprep.mubr.msk.bf16.mxu1 %vm15735_vm0, %v15734_v0  ;;  %v15360_v59 = vld [vmem:[#allocation2 + $0x84] sm:$0xff]  }
 0x3d3   :  { %v2156_v12 = vpop.f32.mrb[124].mxu1 }
 0x3d4   :  { %v17214_v9 = vadd.f32 %v2663_v30, %v2156_v12  ;;  %v13476_v26 = vpop.f32.mrb[125].mxu1  ;;  %13889 = vmatmul.mubr.msk.bf16.gmra.mrb[56].mxu0 %vm213_vm1, %v15358_v46 }
 0x3d5   :  { %v2159_v7 = vpop.f32.mrb[126].mxu1  ;;  %13892 = vmatprep.mubr.msk.bf16.mxu0 %vm15735_vm0, %v15734_v0 }
 0x3d6   :  { %19352 = vst [vmem:[#allocation3_spill] sm:$0xff] %v17214_v9  ;;  %v17217_v47 = vadd.f32 %v2666_v53, %v2159_v7  ;;  %v13477_v19 = vpop.f32.mrb[127].mxu1  ;;  %v2671_v14 = vpop.f32.mrb[236].mxu0 }
 0x3d7   :  { %v13646_v49 = vpop.f32.mrb[237].mxu0 }
 0x3d8   :  { %19353 = vst [vmem:[#allocation4_spill] sm:$0xff] %v17217_v47  ;;  %v2674_v63 = vpop.f32.mrb[238].mxu0 }
 0x3d9   :  { %13723 = vmatmul.mubr.msk.bf16.gmra.mrb[204].mxu1 %vm213_vm1, %v15359_v44  ;;  %v13647_v41 = vpop.f32.mrb[239].mxu0  ;;  %v15361_v44 = vld [vmem:[#allocation2 + $0x68] sm:$0xff]  }
 0x3da   :  { %13726 = vmatprep.mubr.msk.bf16.mxu1 %vm15735_vm0, %v15734_v0 }
 0x3db   :  { %v2164_v30 = vpop.f32.mrb[128].mxu1 }
 0x3dc   :  { %v17224_v12 = vadd.f32 %v2671_v14, %v2164_v30  ;;  %v13480_v53 = vpop.f32.mrb[129].mxu1  ;;  %13893 = vmatmul.mubr.msk.bf16.gmra.mrb[60].mxu0 %vm213_vm1, %v15360_v59  ;;  %v15362_v30 = vld [vmem:[#allocation2 + $0x8c] sm:$0xff]  }
 0x3dd   :  { %v2167_v46 = vpop.f32.mrb[130].mxu1  ;;  %13896 = vmatprep.mubr.msk.bf16.mxu0 %vm15735_vm0, %v15734_v0 }
 0x3de   :  { %19354 = vst [vmem:[#allocation5_spill] sm:$0xff] %v17224_v12  ;;  %v17227_v26 = vadd.f32 %v2674_v63, %v2167_v46  ;;  %v13481_v7 = vpop.f32.mrb[131].mxu1  ;;  %v2679_v19 = vpop.f32.mrb[240].mxu0 }
 0x3df   :  { %v13650_v49 = vpop.f32.mrb[241].mxu0 }
 0x3e0   :  { %19355 = vst [vmem:[#allocation6_spill] sm:$0xff] %v17227_v26  ;;  %v2682_v41 = vpop.f32.mrb[242].mxu0 }
 0x3e1   :  { %13727 = vmatmul.mubr.msk.bf16.gmra.mrb[208].mxu1 %vm213_vm1, %v15361_v44  ;;  %v13651_v47 = vpop.f32.mrb[243].mxu0  ;;  %v15363_v44 = vld [vmem:[#allocation2 + $0x70] sm:$0xff]  }
 0x3e2   :  { %13730 = vmatprep.mubr.msk.bf16.mxu1 %vm15735_vm0, %v15734_v0 }
 0x3e3   :  { %v2172_v14 = vpop.f32.mrb[132].mxu1 }
 0x3e4   :  { %v17234_v53 = vadd.f32 %v2679_v19, %v2172_v14  ;;  %v13484_v63 = vpop.f32.mrb[133].mxu1  ;;  %13897 = vmatmul.mubr.msk.bf16.gmra.mrb[64].mxu0 %vm213_vm1, %v15362_v30  ;;  %v15364_v14 = vld [vmem:[#allocation2 + $0x94] sm:$0xff]  }
 0x3e5   :  { %v2175_v59 = vpop.f32.mrb[134].mxu1  ;;  %13900 = vmatprep.mubr.msk.bf16.mxu0 %vm15735_vm0, %v15734_v0 }
 0x3e6   :  { %19356 = vst [vmem:[#allocation7_spill] sm:$0xff] %v17234_v53  ;;  %v17237_v46 = vadd.f32 %v2682_v41, %v2175_v59  ;;  %v13485_v7 = vpop.f32.mrb[135].mxu1  ;;  %v2687_v49 = vpop.f32.mrb[244].mxu0 }
 0x3e7   :  { %v13654_v47 = vpop.f32.mrb[245].mxu0 }
 0x3e8   :  { %19357 = vst [vmem:[#allocation8_spill] sm:$0xff] %v17237_v46  ;;  %v2690_v26 = vpop.f32.mrb[246].mxu0  ;;  %v15365_v47 = vld [vmem:[#allocation2 + $0x78] sm:$0xff]  }
 0x3e9   :  { %13731 = vmatmul.mubr.msk.bf16.gmra.mrb[212].mxu1 %vm213_vm1, %v15363_v44  ;;  %v13655_v12 = vpop.f32.mrb[247].mxu0 }
 0x3ea   :  { %13734 = vmatprep.mubr.msk.bf16.mxu1 %vm15735_vm0, %v15734_v0 }
 0x3eb   :  { %v2180_v19 = vpop.f32.mrb[136].mxu1 }
 0x3ec   :  { %v17244_v63 = vadd.f32 %v2687_v49, %v2180_v19  ;;  %v13488_v41 = vpop.f32.mrb[137].mxu1  ;;  %13901 = vmatmul.mubr.msk.bf16.gmra.mrb[68].mxu0 %vm213_vm1, %v15364_v14  ;;  %v15366_v19 = vld [vmem:[#allocation2 + $0x9c] sm:$0xff]   ;;  %v15368_v14 = vld [vmem:[#allocation2 + $0xa4] sm:$0xff]  }
 0x3ed   :  { %v2183_v30 = vpop.f32.mrb[138].mxu1  ;;  %13904 = vmatprep.mubr.msk.bf16.mxu0 %vm15735_vm0, %v15734_v0  ;;  %v15370_v41 = vld [vmem:[#allocation2 + $0xac] sm:$0xff]  }
 0x3ee   :  { %19358 = vst [vmem:[#allocation9_spill] sm:$0xff] %v17244_v63  ;;  %v17247_v59 = vadd.f32 %v2690_v26, %v2183_v30  ;;  %v13489_v7 = vpop.f32.mrb[139].mxu1  ;;  %v2695_v44 = vpop.f32.mrb[248].mxu0  ;;  %v15367_v26 = vld [vmem:[#allocation2 + $0x80] sm:$0xff]   ;;  %v15371_v30 = vld [vmem:[#allocation2 + $0x90] sm:$0xff]  }
 0x3ef   :  { %v13658_v12 = vpop.f32.mrb[249].mxu0  ;;  %v15372_v7 = vld [vmem:[#allocation2 + $0xb4] sm:$0xff]  }
 0x3f0   :  { %19359 = vst [vmem:[#allocation10_spill] sm:$0xff] %v17247_v59  ;;  %v2697_v46 = vpop.f32.mrb[250].mxu0  ;;  %v15373_v44 = vld [vmem:[#allocation2 + $0x98] sm:$0xff]  }
 0x3f1   :  { %13735 = vmatmul.mubr.msk.bf16.gmra.mrb[216].mxu1 %vm213_vm1, %v15365_v47  ;;  %v13659_v49 = vpop.f32.mrb[251].mxu0  ;;  %v15369_v46 = vld [vmem:[#allocation2 + $0x88] sm:$0xff]   ;;  %v15374_v12 = vld [vmem:[#allocation2 + $0xbc] sm:$0xff]  }
 0x3f2   :  { %13738 = vmatprep.mubr.msk.bf16.mxu1 %vm15735_vm0, %v15734_v0  ;;  %v15404_v47 = vld [vmem:[%s19344_s3 + $0x28] sm:$0xff]   ;;  %v15375_v49 = vld [vmem:[#allocation2 + $0xa0] sm:$0xff]  }
 0x3f3   :  { %14175 = vmatpush3.bf16.msra.mxu0 %v15404_v47 }
 0x3f4   :  { %13905 = vmatmul.mubr.msk.bf16.gmra.mrb[72].mxu0 %vm213_vm1, %v15366_v19  ;;  %14506 = vmatprep.subr.bf16.mxu0 %v15734_v0  ;;  %v15376_v19 = vld [vmem:[#allocation2 + $0xc4] sm:$0xff]  }
 0x3f5   :  { %13908 = vmatprep.mubr.msk.bf16.mxu0 %vm15735_vm0, %v15734_v0 }
 0x3f9   :  { %13739 = vmatmul.mubr.msk.bf16.gmra.mrb[220].mxu1 %vm213_vm1, %v15367_v26  ;;  %v15377_v26 = vld [vmem:[#allocation2 + $0xa8] sm:$0xff]  }
 0x3fa   :  { %13742 = vmatprep.mubr.msk.bf16.mxu1 %vm15735_vm0, %v15734_v0 }
 0x3fc   :  { %13909 = vmatmul.mubr.msk.bf16.gmra.mrb[76].mxu0 %vm213_vm1, %v15368_v14  ;;  %v15378_v14 = vld [vmem:[#allocation2 + $0xcc] sm:$0xff]  }
 0x3fd   :  { %13912 = vmatprep.mubr.msk.bf16.mxu0 %vm15735_vm0, %v15734_v0 }
 0x401   :  { %13743 = vmatmul.mubr.msk.bf16.gmra.mrb[224].mxu1 %vm213_vm1, %v15369_v46 }
 0x402   :  { %13746 = vmatprep.mubr.msk.bf16.mxu1 %vm15735_vm0, %v15734_v0 }
 0x404   :  { %13913 = vmatmul.mubr.msk.bf16.gmra.mrb[80].mxu0 %vm213_vm1, %v15370_v41 }
 0x405   :  { %13916 = vmatprep.mubr.msk.bf16.mxu0 %vm15735_vm0, %v15734_v0 }
 0x409   :  { %13747 = vmatmul.mubr.msk.bf16.gmra.mrb[228].mxu1 %vm213_vm1, %v15371_v30  ;;  %v15379_v30 = vld [vmem:[#allocation2 + $0xb0] sm:$0xff]  }
 0x40a   :  { %13750 = vmatprep.mubr.msk.bf16.mxu1 %vm15735_vm0, %v15734_v0 }
 0x40c   :  { %13917 = vmatmul.mubr.msk.bf16.gmra.mrb[84].mxu0 %vm213_vm1, %v15372_v7 }
 0x40d   :  { %13920 = vmatprep.mubr.msk.bf16.mxu0 %vm15735_vm0, %v15734_v0 }
 0x411   :  { %13751 = vmatmul.mubr.msk.bf16.gmra.mrb[232].mxu1 %vm213_vm1, %v15373_v44  ;;  %v15380_v44 = vld [vmem:[#allocation2 + $0xd4] sm:$0xff]  }
 0x412   :  { %13754 = vmatprep.mubr.msk.bf16.mxu1 %vm15735_vm0, %v15734_v0 }
 0x414   :  { %13921 = vmatmul.mubr.msk.bf16.gmra.mrb[88].mxu0 %vm213_vm1, %v15374_v12 }
 0x415   :  { %13924 = vmatprep.mubr.msk.bf16.mxu0 %vm15735_vm0, %v15734_v0 }
 0x419   :  { %13755 = vmatmul.mubr.msk.bf16.gmra.mrb[236].mxu1 %vm213_vm1, %v15375_v49  ;;  %v15381_v49 = vld [vmem:[#allocation2 + $0xb8] sm:$0xff]  }
 0x41a   :  { %13758 = vmatprep.mubr.msk.bf16.mxu1 %vm15735_vm0, %v15734_v0 }
 0x41c   :  { %13925 = vmatmul.mubr.msk.bf16.gmra.mrb[92].mxu0 %vm213_vm1, %v15376_v19 }
 0x41d   :  { %13928 = vmatprep.mubr.msk.bf16.mxu0 %vm15735_vm0, %v15734_v0 }
 0x421   :  { %13759 = vmatmul.mubr.msk.bf16.gmra.mrb[240].mxu1 %vm213_vm1, %v15377_v26 }
 0x422   :  { %13762 = vmatprep.mubr.msk.bf16.mxu1 %vm15735_vm0, %v15734_v0 }
 0x424   :  { %13929 = vmatmul.mubr.msk.bf16.gmra.mrb[96].mxu0 %vm213_vm1, %v15378_v14 }
 0x425   :  { %13932 = vmatprep.mubr.msk.bf16.mxu0 %vm15735_vm0, %v15734_v0 }
 0x426   :  { %v2188_v46 = vpop.f32.mrb[140].mxu1 }
 0x427   :  { %v13492_v41 = vpop.f32.mrb[141].mxu1  ;;  %v15382_v46 = vld [vmem:[#allocation2 + $0xdc] sm:$0xff]  }
 0x428   :  { %v2190_v7 = vpop.f32.mrb[142].mxu1 }
 0x429   :  { %13763 = vmatmul.mubr.msk.bf16.gmra.mrb[244].mxu1 %vm213_vm1, %v15379_v30  ;;  %v13493_v47 = vpop.f32.mrb[143].mxu1 }
 0x42a   :  { %13766 = vmatprep.mubr.msk.bf16.mxu1 %vm15735_vm0, %v15734_v0 }
 0x42c   :  { %13933 = vmatmul.mubr.msk.bf16.gmra.mrb[100].mxu0 %vm213_vm1, %v15380_v44  ;;  %v15383_v44 = vld [vmem:[#allocation2 + $0xc0] sm:$0xff]  }
 0x42d   :  { %13936 = vmatprep.mubr.msk.bf16.mxu0 %vm15735_vm0, %v15734_v0 }
 0x42f   :  { %v2701_v12 = vpop.f32.mrb[252].mxu0 }
 0x430   :  { %v13662_v19 = vpop.f32.mrb[253].mxu0 }
 0x431   :  { %13767 = vmatmul.mubr.msk.bf16.gmra.mrb[248].mxu1 %vm213_vm1, %v15381_v49  ;;  %v2703_v26 = vpop.f32.mrb[254].mxu0 }
 0x432   :  { %v13663_v14 = vpop.f32.mrb[255].mxu0  ;;  %13770 = vmatprep.mubr.msk.bf16.mxu1 %vm15735_vm0, %v15734_v0 }
 0x433   :  { %v15384_v14 = vld [vmem:[#allocation2 + $0xe4] sm:$0xff]  }
 0x434   :  { %v2194_v41 = vpop.f32.mrb[144].mxu1  ;;  %13937 = vmatmul.mubr.msk.bf16.gmra.mrb[104].mxu0 %vm213_vm1, %v15382_v46 }
 0x435   :  { %v13496_v30 = vpop.f32.mrb[145].mxu1  ;;  %13940 = vmatprep.mubr.msk.bf16.mxu0 %vm15735_vm0, %v15734_v0 }
 0x436   :  { %v2196_v7 = vpop.f32.mrb[146].mxu1 }
 0x437   :  { %v13497_v47 = vpop.f32.mrb[147].mxu1  ;;  %v2707_v12 = vpop.f32.mrb[0].mxu0 }
 0x438   :  { %v13666_v19 = vpop.f32.mrb[1].mxu0  ;;  %v15385_v47 = vld [vmem:[#allocation2 + $0xc8] sm:$0xff]  }
 0x439   :  { %13771 = vmatmul.mubr.msk.bf16.gmra.mrb[252].mxu1 %vm213_vm1, %v15383_v44  ;;  %v2709_v49 = vpop.f32.mrb[2].mxu0 }
 0x43a   :  { %13774 = vmatprep.mubr.msk.bf16.mxu1 %vm15735_vm0, %v15734_v0  ;;  %v13667_v26 = vpop.f32.mrb[3].mxu0 }
 0x43b   :  { %v15386_v26 = vld [vmem:[#allocation2 + $0xec] sm:$0xff]  }
 0x43c   :  { %v2200_v41 = vpop.f32.mrb[148].mxu1  ;;  %13941 = vmatmul.mubr.msk.bf16.gmra.mrb[108].mxu0 %vm213_vm1, %v15384_v14 }
 0x43d   :  { %v13500_v30 = vpop.f32.mrb[149].mxu1  ;;  %13944 = vmatprep.mubr.msk.bf16.mxu0 %vm15735_vm0, %v15734_v0 }
 0x43e   :  { %v2202_v46 = vpop.f32.mrb[150].mxu1 }
 0x43f   :  { %v13501_v7 = vpop.f32.mrb[151].mxu1  ;;  %v2713_v12 = vpop.f32.mrb[4].mxu0 }
 0x440   :  { %v13670_v19 = vpop.f32.mrb[5].mxu0  ;;  %v15387_v7 = vld [vmem:[#allocation2 + $0xd0] sm:$0xff]  }
 0x441   :  { %13775 = vmatmul.mubr.msk.bf16.gmra.mrb[0].mxu1 %vm213_vm1, %v15385_v47  ;;  %v2715_v44 = vpop.f32.mrb[6].mxu0 }
 0x442   :  { %13778 = vmatprep.mubr.msk.bf16.mxu1 %vm15735_vm0, %v15734_v0  ;;  %v13671_v49 = vpop.f32.mrb[7].mxu0 }
 0x443   :  { %v15388_v49 = vld [vmem:[#allocation2 + $0xf4] sm:$0xff]  }
 0x444   :  { %v2206_v41 = vpop.f32.mrb[152].mxu1  ;;  %13945 = vmatmul.mubr.msk.bf16.gmra.mrb[112].mxu0 %vm213_vm1, %v15386_v26  ;;  %v15389_v26 = vld [vmem:[#allocation2 + $0xd8] sm:$0xff]  }
 0x445   :  { %v13504_v30 = vpop.f32.mrb[153].mxu1  ;;  %13948 = vmatprep.mubr.msk.bf16.mxu0 %vm15735_vm0, %v15734_v0 }
 0x446   :  { %v2208_v14 = vpop.f32.mrb[154].mxu1 }
 0x447   :  { %v13505_v46 = vpop.f32.mrb[155].mxu1  ;;  %v2719_v12 = vpop.f32.mrb[8].mxu0 }
 0x448   :  { %v13674_v19 = vpop.f32.mrb[9].mxu0 }
 0x449   :  { %13779 = vmatmul.mubr.msk.bf16.gmra.mrb[4].mxu1 %vm213_vm1, %v15387_v7  ;;  %v2721_v47 = vpop.f32.mrb[10].mxu0  ;;  %v15390_v7 = vld [vmem:[#allocation2 + $0xfc] sm:$0xff]  }
 0x44a   :  { %13782 = vmatprep.mubr.msk.bf16.mxu1 %vm15735_vm0, %v15734_v0  ;;  %v13675_v44 = vpop.f32.mrb[11].mxu0 }
 0x44c   :  { %v2212_v41 = vpop.f32.mrb[156].mxu1  ;;  %13949 = vmatmul.mubr.msk.bf16.gmra.mrb[116].mxu0 %vm213_vm1, %v15388_v49 }
 0x44d   :  { %v13508_v30 = vpop.f32.mrb[157].mxu1  ;;  %13952 = vmatprep.mubr.msk.bf16.mxu0 %vm15735_vm0, %v15734_v0 }
 0x44e   :  { %v2214_v14 = vpop.f32.mrb[158].mxu1 }
 0x44f   :  { %v13509_v46 = vpop.f32.mrb[159].mxu1  ;;  %v3979_v12 = vpop.f32.mrb[12].mxu0 }
 0x450   :  { %v13846_v19 = vpop.f32.mrb[13].mxu0  ;;  %v15391_v46 = vld [vmem:[#allocation2 + $0xe0] sm:$0xff]  }
 0x451   :  { %13783 = vmatmul.mubr.msk.bf16.gmra.mrb[8].mxu1 %vm213_vm1, %v15389_v26  ;;  %v3981_v47 = vpop.f32.mrb[14].mxu0 }
 0x452   :  { %13786 = vmatprep.mubr.msk.bf16.mxu1 %vm15735_vm0, %v15734_v0  ;;  %v13847_v44 = vpop.f32.mrb[15].mxu0  ;;  %v15392_v47 = vld [vmem:[#allocation2 + $0x104] sm:$0xff]  }
 0x454   :  { %v3173_v41 = vpop.f32.mrb[160].mxu1  ;;  %13953 = vmatmul.mubr.msk.bf16.gmra.mrb[120].mxu0 %vm213_vm1, %v15390_v7 }
 0x455   :  { %v13680_v30 = vpop.f32.mrb[161].mxu1  ;;  %13956 = vmatprep.mubr.msk.bf16.mxu0 %vm15735_vm0, %v15734_v0 }
 0x456   :  { %v3175_v49 = vpop.f32.mrb[162].mxu1 }
 0x457   :  { %v13681_v14 = vpop.f32.mrb[163].mxu1  ;;  %v3985_v12 = vpop.f32.mrb[16].mxu0 }
 0x458   :  { %v13850_v26 = vpop.f32.mrb[17].mxu0  ;;  %v15393_v14 = vld [vmem:[#allocation2 + $0xe8] sm:$0xff]  }
 0x459   :  { %13787 = vmatmul.mubr.msk.bf16.gmra.mrb[12].mxu1 %vm213_vm1, %v15391_v46  ;;  %v3987_v19 = vpop.f32.mrb[18].mxu0 }
 0x45a   :  { %13790 = vmatprep.mubr.msk.bf16.mxu1 %vm15735_vm0, %v15734_v0  ;;  %v13851_v44 = vpop.f32.mrb[19].mxu0  ;;  %v15394_v19 = vld [vmem:[#allocation2 + $0x10c] sm:$0xff]  }
 0x45c   :  { %v3179_v41 = vpop.f32.mrb[164].mxu1  ;;  %13957 = vmatmul.mubr.msk.bf16.gmra.mrb[124].mxu0 %vm213_vm1, %v15392_v47 }
 0x45d   :  { %v13684_v30 = vpop.f32.mrb[165].mxu1  ;;  %13960 = vmatprep.mubr.msk.bf16.mxu0 %vm15735_vm0, %v15734_v0 }
 0x45e   :  { %v3181_v7 = vpop.f32.mrb[166].mxu1 }
 0x45f   :  { %v13685_v49 = vpop.f32.mrb[167].mxu1  ;;  %v3991_v12 = vpop.f32.mrb[20].mxu0 }
 0x460   :  { %v13854_v46 = vpop.f32.mrb[21].mxu0  ;;  %v15395_v49 = vld [vmem:[#allocation2 + $0xf0] sm:$0xff]  }
 0x461   :  { %13791 = vmatmul.mubr.msk.bf16.gmra.mrb[16].mxu1 %vm213_vm1, %v15393_v14  ;;  %v3993_v26 = vpop.f32.mrb[22].mxu0 }
 0x462   :  { %13794 = vmatprep.mubr.msk.bf16.mxu1 %vm15735_vm0, %v15734_v0  ;;  %v13855_v44 = vpop.f32.mrb[23].mxu0  ;;  %v15396_v26 = vld [vmem:[#allocation2 + $0x114] sm:$0xff]  }
 0x464   :  { %v3185_v41 = vpop.f32.mrb[168].mxu1  ;;  %13961 = vmatmul.mubr.msk.bf16.gmra.mrb[128].mxu0 %vm213_vm1, %v15394_v19 }
 0x465   :  { %v13688_v30 = vpop.f32.mrb[169].mxu1  ;;  %13964 = vmatprep.mubr.msk.bf16.mxu0 %vm15735_vm0, %v15734_v0 }
 0x466   :  { %v3187_v47 = vpop.f32.mrb[170].mxu1 }
 0x467   :  { %v13689_v7 = vpop.f32.mrb[171].mxu1  ;;  %v3997_v12 = vpop.f32.mrb[24].mxu0 }
 0x468   :  { %v13858_v14 = vpop.f32.mrb[25].mxu0  ;;  %v15397_v7 = vld [vmem:[#allocation2 + $0xf8] sm:$0xff]  }
 0x469   :  { %13795 = vmatmul.mubr.msk.bf16.gmra.mrb[20].mxu1 %vm213_vm1, %v15395_v49  ;;  %v3999_v46 = vpop.f32.mrb[26].mxu0 }
 0x46a   :  { %13798 = vmatprep.mubr.msk.bf16.mxu1 %vm15735_vm0, %v15734_v0  ;;  %v13859_v44 = vpop.f32.mrb[27].mxu0  ;;  %v15398_v46 = vld [vmem:[#allocation2 + $0x11c] sm:$0xff]  }
 0x46c   :  { %v3191_v41 = vpop.f32.mrb[172].mxu1  ;;  %13965 = vmatmul.mubr.msk.bf16.gmra.mrb[132].mxu0 %vm213_vm1, %v15396_v26 }
 0x46d   :  { %v13692_v30 = vpop.f32.mrb[173].mxu1  ;;  %13968 = vmatprep.mubr.msk.bf16.mxu0 %vm15735_vm0, %v15734_v0 }
 0x46e   :  { %v3193_v19 = vpop.f32.mrb[174].mxu1 }
 0x46f   :  { %v13693_v47 = vpop.f32.mrb[175].mxu1  ;;  %v4003_v12 = vpop.f32.mrb[28].mxu0 }
 0x470   :  { %v13862_v49 = vpop.f32.mrb[29].mxu0  ;;  %v15399_v47 = vld [vmem:[#allocation2 + $0x100] sm:$0xff]  }
 0x471   :  { %13799 = vmatmul.mubr.msk.bf16.gmra.mrb[24].mxu1 %vm213_vm1, %v15397_v7  ;;  %v4005_v14 = vpop.f32.mrb[30].mxu0 }
 0x472   :  { %13802 = vmatprep.mubr.msk.bf16.mxu1 %vm15735_vm0, %v15734_v0  ;;  %v13863_v44 = vpop.f32.mrb[31].mxu0 }
 0x473   :  { %v15400_v44 = vld [vmem:[#allocation2 + $0x124] sm:$0xff]  }
 0x474   :  { %v3197_v41 = vpop.f32.mrb[176].mxu1  ;;  %13969 = vmatmul.mubr.msk.bf16.gmra.mrb[136].mxu0 %vm213_vm1, %v15398_v46 }
 0x475   :  { %v13696_v30 = vpop.f32.mrb[177].mxu1  ;;  %13972 = vmatprep.mubr.msk.bf16.mxu0 %vm15735_vm0, %v15734_v0 }
 0x476   :  { %v3199_v26 = vpop.f32.mrb[178].mxu1 }
 0x477   :  { %v13697_v19 = vpop.f32.mrb[179].mxu1  ;;  %v4009_v12 = vpop.f32.mrb[32].mxu0 }
 0x478   :  { %v13866_v7 = vpop.f32.mrb[33].mxu0 }
 0x479   :  { %13803 = vmatmul.mubr.msk.bf16.gmra.mrb[28].mxu1 %vm213_vm1, %v15399_v47  ;;  %v4012_v49 = vpop.f32.mrb[34].mxu0  ;;  %v15401_v7 = vld [vmem:[#allocation2 + $0x108] sm:$0xff]  }
 0x47a   :  { %13806 = vmatprep.mubr.msk.bf16.mxu1 %vm15735_vm0, %v15734_v0  ;;  %v13867_v14 = vpop.f32.mrb[35].mxu0 }
 0x47c   :  { %v3203_v41 = vpop.f32.mrb[180].mxu1  ;;  %13973 = vmatmul.mubr.msk.bf16.gmra.mrb[140].mxu0 %vm213_vm1, %v15400_v44 }
 0x47d   :  { %v3474_v30 = vadd.f32 %v3203_v41, %v16651_v1  ;;  %v13700_v46 = vpop.f32.mrb[181].mxu1  ;;  %13976 = vmatprep.mubr.msk.bf16.mxu0 %vm15735_vm0, %v15734_v0  ;;  %v15402_v41 = vld [vmem:[#allocation2 + $0x12c] sm:$0xff]  }
 0x47e   :  { %v3206_v26 = vpop.f32.mrb[182].mxu1 }
 0x47f   :  { %v3475_v19 = vadd.f32 %v3206_v26, %v16654_v57  ;;  %v13701_v47 = vpop.f32.mrb[183].mxu1  ;;  %v17365_v59 = vadd.f32 %v4009_v12, %v3474_v30  ;;  %v4017_v63 = vpop.f32.mrb[36].mxu0  ;;  %v15403_v26 = vld [vmem:[#allocation2 + $0x110] sm:$0xff]  }
 0x480   :  { %v13870_v14 = vpop.f32.mrb[37].mxu0 }
 0x481   :  { %13807 = vmatmul.mubr.msk.bf16.gmra.mrb[32].mxu1 %vm213_vm1, %v15401_v7  ;;  %v17368_v53 = vadd.f32 %v4012_v49, %v3475_v19  ;;  %v4020_v1 = vpop.f32.mrb[38].mxu0 }
 0x482   :  { %13810 = vmatprep.mubr.msk.bf16.mxu1 %vm15735_vm0, %v15734_v0  ;;  %v13871_v44 = vpop.f32.mrb[39].mxu0 }
 0x484   :  { %v3211_v46 = vpop.f32.mrb[184].mxu1  ;;  %13977 = vmatmul.mubr.msk.bf16.gmra.mrb[144].mxu0 %vm213_vm1, %v15402_v41  ;;  %v15405_v41 = vld [vmem:[#allocation2 + $0x134] sm:$0xff]  }
 0x485   :  { %v3476_v9 = vadd.f32 %v3211_v46, %v16658_v36  ;;  %v13704_v57 = vpop.f32.mrb[185].mxu1  ;;  %13980 = vmatprep.mubr.msk.bf16.mxu0 %vm15735_vm0, %v15734_v0 }
 0x486   :  { %v3214_v12 = vpop.f32.mrb[186].mxu1 }
 0x487   :  { %v3477_v30 = vadd.f32 %v3214_v12, %v16660_v15  ;;  %v13705_v49 = vpop.f32.mrb[187].mxu1  ;;  %v17377_v19 = vadd.f32 %v4017_v63, %v3476_v9  ;;  %v4025_v47 = vpop.f32.mrb[40].mxu0  ;;  %v15406_v12 = vld [vmem:[#allocation2 + $0x118] sm:$0xff]  }
 0x488   :  { %v13874_v7 = vpop.f32.mrb[41].mxu0 }
 0x489   :  { %13811 = vmatmul.mubr.msk.bf16.gmra.mrb[36].mxu1 %vm213_vm1, %v15403_v26  ;;  %v17380_v14 = vadd.f32 %v4020_v1, %v3477_v30  ;;  %v4028_v36 = vpop.f32.mrb[42].mxu0 }
 0x48a   :  { %13814 = vmatprep.mubr.msk.bf16.mxu1 %vm15735_vm0, %v15734_v0  ;;  %v13875_v44 = vpop.f32.mrb[43].mxu0 }
 0x48c   :  { %v3219_v46 = vpop.f32.mrb[188].mxu1  ;;  %13981 = vmatmul.mubr.msk.bf16.gmra.mrb[148].mxu0 %vm213_vm1, %v15405_v41  ;;  %v15407_v41 = vld [vmem:[#allocation2 + $0x13c] sm:$0xff]  }
 0x48d   :  { %v3478_v57 = vadd.f32 %v3219_v46, %v16662_v54  ;;  %v13708_v15 = vpop.f32.mrb[189].mxu1  ;;  %13984 = vmatprep.mubr.msk.bf16.mxu0 %vm15735_vm0, %v15734_v0 }
 0x48e   :  { %v3222_v9 = vpop.f32.mrb[190].mxu1 }
 0x48f   :  { %v3479_v63 = vadd.f32 %v3222_v9, %v16664_v45  ;;  %v13709_v1 = vpop.f32.mrb[191].mxu1  ;;  %v17389_v30 = vadd.f32 %v4025_v47, %v3478_v57  ;;  %v4033_v49 = vpop.f32.mrb[44].mxu0  ;;  %v15408_v47 = vld [vmem:[#allocation2 + $0x120] sm:$0xff]  }
 0x490   :  { %v13878_v26 = vpop.f32.mrb[45].mxu0 }
 0x491   :  { %13815 = vmatmul.mubr.msk.bf16.gmra.mrb[40].mxu1 %vm213_vm1, %v15406_v12  ;;  %v17392_v7 = vadd.f32 %v4028_v36, %v3479_v63  ;;  %v4036_v54 = vpop.f32.mrb[46].mxu0  ;;  %v15409_v26 = vld [vmem:[#allocation2 + $0x144] sm:$0xff]  }
 0x492   :  { %13818 = vmatprep.mubr.msk.bf16.mxu1 %vm15735_vm0, %v15734_v0  ;;  %v13879_v44 = vpop.f32.mrb[47].mxu0 }
 0x493   :  { %19360 = vst [vmem:[#allocation11_spill] sm:$0xff] %v17392_v7 }
 0x494   :  { %v3227_v46 = vpop.f32.mrb[192].mxu1  ;;  %13985 = vmatmul.mubr.msk.bf16.gmra.mrb[152].mxu0 %vm213_vm1, %v15407_v41 }
 0x495   :  { %v3480_v15 = vadd.f32 %v3227_v46, %v16666_v5  ;;  %v13712_v45 = vpop.f32.mrb[193].mxu1  ;;  %13988 = vmatprep.mubr.msk.bf16.mxu0 %vm15735_vm0, %v15734_v0 }
 0x496   :  { %v3230_v57 = vpop.f32.mrb[194].mxu1 }
 0x497   :  { %v3481_v36 = vadd.f32 %v3230_v57, %v16668_v22  ;;  %v13713_v9 = vpop.f32.mrb[195].mxu1  ;;  %v17401_v63 = vadd.f32 %v4033_v49, %v3480_v15  ;;  %v4041_v1 = vpop.f32.mrb[48].mxu0 }
 0x498   :  { %v13882_v12 = vpop.f32.mrb[49].mxu0 }
 0x499   :  { %13819 = vmatmul.mubr.msk.bf16.gmra.mrb[44].mxu1 %vm213_vm1, %v15408_v47  ;;  %v17404_v44 = vadd.f32 %v4036_v54, %v3481_v36  ;;  %v4044_v5 = vpop.f32.mrb[50].mxu0  ;;  %v15410_v47 = vld [vmem:[#allocation2 + $0x128] sm:$0xff]  }
 0x49a   :  { %13822 = vmatprep.mubr.msk.bf16.mxu1 %vm15735_vm0, %v15734_v0  ;;  %v13883_v41 = vpop.f32.mrb[51].mxu0 }
 0x49c   :  { %v3235_v46 = vpop.f32.mrb[196].mxu1  ;;  %13989 = vmatmul.mubr.msk.bf16.gmra.mrb[156].mxu0 %vm213_vm1, %v15409_v26 }
 0x49d   :  { %v3482_v45 = vadd.f32 %v3235_v46, %v16864_v55  ;;  %v13716_v7 = vpop.f32.mrb[197].mxu1  ;;  %13992 = vmatprep.mubr.msk.bf16.mxu0 %vm15735_vm0, %v15734_v0  ;;  %v15411_v55 = vld [vmem:[#allocation2 + $0x14c] sm:$0xff]  }
 0x49e   :  { %v3238_v22 = vpop.f32.mrb[198].mxu1 }
 0x49f   :  { %v17412_v49 = vadd.f32 %v4041_v1, %v3482_v45  ;;  %v3483_v54 = vadd.f32 %v3238_v22, %v16867_v11  ;;  %v13717_v15 = vpop.f32.mrb[199].mxu1  ;;  %v4049_v57 = vpop.f32.mrb[52].mxu0  ;;  %v15412_v45 = vld [vmem:[#allocation2 + $0x130] sm:$0xff]  }
 0x4a0   :  { %v13886_v9 = vpop.f32.mrb[53].mxu0 }
 0x4a1   :  { %v17415_v36 = vadd.f32 %v4044_v5, %v3483_v54  ;;  %13823 = vmatmul.mubr.msk.bf16.gmra.mrb[48].mxu1 %vm213_vm1, %v15410_v47  ;;  %v4052_v7 = vpop.f32.mrb[54].mxu0  ;;  %v15413_v47 = vld [vmem:[#allocation2 + $0x154] sm:$0xff]  }
 0x4a2   :  { %13826 = vmatprep.mubr.msk.bf16.mxu1 %vm15735_vm0, %v15734_v0  ;;  %v13887_v12 = vpop.f32.mrb[55].mxu0 }
 0x4a4   :  { %v3243_v26 = vpop.f32.mrb[200].mxu1  ;;  %13993 = vmatmul.mubr.msk.bf16.gmra.mrb[160].mxu0 %vm213_vm1, %v15411_v55 }
 0x4a5   :  { %v3484_v1 = vadd.f32 %v3243_v26, %v16869_v17  ;;  %v13720_v41 = vpop.f32.mrb[201].mxu1  ;;  %13996 = vmatprep.mubr.msk.bf16.mxu0 %vm15735_vm0, %v15734_v0 }
 0x4a6   :  { %v3246_v11 = vpop.f32.mrb[202].mxu1 }
 0x4a7   :  { %v3485_v5 = vadd.f32 %v3246_v11, %v16871_v21  ;;  %v13721_v46 = vpop.f32.mrb[203].mxu1  ;;  %v17425_v22 = vadd.f32 %v4049_v57, %v3484_v1  ;;  %v4057_v54 = vpop.f32.mrb[56].mxu0 }
 0x4a8   :  { %v13890_v15 = vpop.f32.mrb[57].mxu0 }
 0x4a9   :  { %13827 = vmatmul.mubr.msk.bf16.gmra.mrb[52].mxu1 %vm213_vm1, %v15412_v45  ;;  %v17428_v9 = vadd.f32 %v4052_v7, %v3485_v5  ;;  %v4060_v17 = vpop.f32.mrb[58].mxu0  ;;  %v15414_v7 = vld [vmem:[#allocation2 + $0x138] sm:$0xff]  }
 0x4aa   :  { %13830 = vmatprep.mubr.msk.bf16.mxu1 %vm15735_vm0, %v15734_v0  ;;  %v13891_v55 = vpop.f32.mrb[59].mxu0  ;;  %v15415_v45 = vld [vmem:[#allocation2 + $0x15c] sm:$0xff]  }
 0x4ac   :  { %v3251_v12 = vpop.f32.mrb[204].mxu1  ;;  %13997 = vmatmul.mubr.msk.bf16.gmra.mrb[164].mxu0 %vm213_vm1, %v15413_v47 }
 0x4ad   :  { %v3486_v26 = vadd.f32 %v3251_v12, %v16873_v60  ;;  %v13724_v21 = vpop.f32.mrb[205].mxu1  ;;  %14000 = vmatprep.mubr.msk.bf16.mxu0 %vm15735_vm0, %v15734_v0 }
 0x4ae   :  { %v3254_v57 = vpop.f32.mrb[206].mxu1 }
 0x4af   :  { %v3487_v1 = vadd.f32 %v3254_v57, %v16875_v2  ;;  %v13725_v41 = vpop.f32.mrb[207].mxu1  ;;  %v17437_v11 = vadd.f32 %v4057_v54, %v3486_v26  ;;  %v4065_v5 = vpop.f32.mrb[60].mxu0 }
 0x4b0   :  { %v13894_v46 = vpop.f32.mrb[61].mxu0 }
 0x4b1   :  { %13831 = vmatmul.mubr.msk.bf16.gmra.mrb[56].mxu1 %vm213_vm1, %v15414_v7  ;;  %v17440_v15 = vadd.f32 %v4060_v17, %v3487_v1  ;;  %v4068_v60 = vpop.f32.mrb[62].mxu0  ;;  %v15416_v17 = vld [vmem:[#allocation2 + $0x140] sm:$0xff]  }
 0x4b2   :  { %13834 = vmatprep.mubr.msk.bf16.mxu1 %vm15735_vm0, %v15734_v0  ;;  %v13895_v47 = vpop.f32.mrb[63].mxu0  ;;  %v15417_v7 = vld [vmem:[#allocation2 + $0x164] ss:$0 sps:$4 sm:$0xff]  }
 0x4b4   :  { %v3259_v55 = vpop.f32.mrb[208].mxu1  ;;  %14001 = vmatmul.mubr.msk.bf16.gmra.mrb[168].mxu0 %vm213_vm1, %v15415_v45 }
 0x4b5   :  { %v3488_v12 = vadd.f32 %v3259_v55, %v16881_v58  ;;  %v13728_v2 = vpop.f32.mrb[209].mxu1  ;;  %14004 = vmatprep.mubr.msk.bf16.mxu0 %vm15735_vm0, %v15734_v0 }
 0x4b6   :  { %v3262_v54 = vpop.f32.mrb[210].mxu1 }
 0x4b7   :  { %v3489_v26 = vadd.f32 %v3262_v54, %v16885_v16  ;;  %v13729_v21 = vpop.f32.mrb[211].mxu1  ;;  %v17449_v57 = vadd.f32 %v4065_v5, %v3488_v12  ;;  %v4073_v1 = vpop.f32.mrb[64].mxu0  ;;  %v15418_v16 = vld [vmem:[#allocation2 + $0x148] ss:$0 sps:$4 sm:$0xff]   ;;  %v15419_v54 = vld [vmem:[#allocation2 + $0x2c] sm:$0xff]  }
 0x4b8   :  { %v13898_v41 = vpop.f32.mrb[65].mxu0 }
 0x4b9   :  { %13835 = vmatmul.mubr.msk.bf16.gmra.mrb[60].mxu1 %vm213_vm1, %v15416_v17  ;;  %v17452_v46 = vadd.f32 %v4068_v60, %v3489_v26  ;;  %v4075_v58 = vpop.f32.mrb[66].mxu0 }
 0x4ba   :  { %13838 = vmatprep.mubr.msk.bf16.mxu1 %vm15735_vm0, %v15734_v0  ;;  %v13899_v45 = vpop.f32.mrb[67].mxu0 }
 0x4bb   :  { %v15421_v45 = vld [vmem:[%s19344_s3 + $0x30] sm:$0xff]  }
 0x4bc   :  { %v3267_v47 = vpop.f32.mrb[212].mxu1  ;;  %14005 = vmatmul.mubr.msk.bf16.gmra.mrb[172].mxu0 %vm213_vm1, %v15417_v7  ;;  %v15420_v7 = vld [vmem:[#allocation2 + $0x28] sm:$0xff]  }
 0x4bd   :  { %v13732_v55 = vpop.f32.mrb[213].mxu1  ;;  %14176 = vmatprep.mubr.msk.bf16.mxu0 %vm15735_vm0, %v15734_v0 }
 0x4be   :  { %v3269_v2 = vpop.f32.mrb[214].mxu1 }
 0x4bf   :  { %v13733_v5 = vpop.f32.mrb[215].mxu1  ;;  %v4079_v12 = vpop.f32.mrb[68].mxu0 }
 0x4c0   :  { %v13902_v60 = vpop.f32.mrb[69].mxu0 }
 0x4c1   :  { %13839 = vmatmul.mubr.msk.bf16.gmra.mrb[64].mxu1 %vm213_vm1, %v15418_v16  ;;  %v4082_v26 = vpop.f32.mrb[70].mxu0 }
 0x4c2   :  { %14010 = vmatprep.mubr.msk.bf16.mxu1 %vm15735_vm0, %v15734_v0  ;;  %v13903_v21 = vpop.f32.mrb[71].mxu0 }
 0x4c4   :  { %v3273_v17 = vpop.f32.mrb[216].mxu1  ;;  %14177 = vmatmul.mubr.msk.bf16.vlgmr.msra.gmra.mrb[176].mxu0 %vm213_vm1, %v15419_v54 }
 0x4c5   :  { %v3490_v1 = vadd.f32 %v3273_v17, %v16899_v33  ;;  %v13736_v41 = vpop.f32.mrb[217].mxu1  ;;  %14180 = vmatprep.mubr.msk.bf16.mxu0 %vm15735_vm0, %v15734_v0  ;;  %v15422_v33 = vld [vmem:[#allocation2 + $0x34] sm:$0xff]  }
 0x4c6   :  { %v3276_v58 = vpop.f32.mrb[218].mxu1 }
 0x4c7   :  { %v3491_v47 = vadd.f32 %v3276_v58, %v16904_v10  ;;  %v13737_v55 = vpop.f32.mrb[219].mxu1  ;;  %v17470_v16 = vadd.f32 %v4079_v12, %v3490_v1  ;;  %v4087_v2 = vpop.f32.mrb[72].mxu0  ;;  %v15423_v1 = vld [vmem:[#allocation2 + $0x30] sm:$0xff]  }
 0x4c8   :  { %v13906_v5 = vpop.f32.mrb[73].mxu0  ;;  %v15424_v55 = vld [vmem:[#allocation2 + $0x3c] sm:$0xff]  }
 0x4c9   :  { %14011 = vmatmul.mubr.msk.bf16.vlgmr.msra.gmra.mrb[68].mxu1 %vm213_vm1, %v15420_v7  ;;  %v17473_v60 = vadd.f32 %v4082_v26, %v3491_v47  ;;  %v4090_v54 = vpop.f32.mrb[74].mxu0 }
 0x4ca   :  { %14341 = vmatpush3.bf16.msra.mxu1 %v15421_v45  ;;  %14014 = vmatprep.mubr.msk.bf16.mxu1 %vm15735_vm0, %v15734_v0  ;;  %v13907_v21 = vpop.f32.mrb[75].mxu0 }
 0x4cb   :  { %14672 = vmatprep.subr.bf16.mxu1 %v15734_v0 }
 0x4cc   :  { %v3281_v17 = vpop.f32.mrb[220].mxu1  ;;  %14181 = vmatmul.mubr.msk.bf16.gmra.mrb[180].mxu0 %vm213_vm1, %v15422_v33 }
 0x4cd   :  { %v3492_v10 = vadd.f32 %v3281_v17, %v16917_v43  ;;  %v13740_v12 = vpop.f32.mrb[221].mxu1  ;;  %14184 = vmatprep.mubr.msk.bf16.mxu0 %vm15735_vm0, %v15734_v0 }
 0x4ce   :  { %v3284_v41 = vpop.f32.mrb[222].mxu1 }
 0x4cf   :  { %v3493_v26 = vadd.f32 %v3284_v41, %v16927_v18  ;;  %v13741_v7 = vpop.f32.mrb[223].mxu1  ;;  %v17483_v58 = vadd.f32 %v4087_v2, %v3492_v10  ;;  %v4095_v45 = vpop.f32.mrb[76].mxu0  ;;  %v15425_v18 = vld [vmem:[#allocation2 + $0x38] sm:$0xff]  }
 0x4d0   :  { %v13910_v47 = vpop.f32.mrb[77].mxu0  ;;  %v15426_v7 = vld [vmem:[#allocation2 + $0x44] sm:$0xff]  }
 0x4d1   :  { %14015 = vmatmul.mubr.msk.bf16.gmra.mrb[72].mxu1 %vm213_vm1, %v15423_v1  ;;  %v17486_v5 = vadd.f32 %v4090_v54, %v3493_v26  ;;  %v4098_v43 = vpop.f32.mrb[78].mxu0 }
 0x4d2   :  { %14018 = vmatprep.mubr.msk.bf16.mxu1 %vm15735_vm0, %v15734_v0  ;;  %v13911_v33 = vpop.f32.mrb[79].mxu0 }
 0x4d4   :  { %v3289_v21 = vpop.f32.mrb[224].mxu1  ;;  %14185 = vmatmul.mubr.msk.bf16.gmra.mrb[184].mxu0 %vm213_vm1, %v15424_v55 }
 0x4d5   :  { %v3494_v17 = vadd.f32 %v3289_v21, %v16942_v50  ;;  %v13744_v12 = vpop.f32.mrb[225].mxu1  ;;  %14188 = vmatprep.mubr.msk.bf16.mxu0 %vm15735_vm0, %v15734_v0 }
 0x4d6   :  { %v3292_v2 = vpop.f32.mrb[226].mxu1 }
 0x4d7   :  { %v3495_v10 = vadd.f32 %v3292_v2, %v16952_v38  ;;  %v13745_v54 = vpop.f32.mrb[227].mxu1  ;;  %v17495_v1 = vadd.f32 %v4095_v45, %v3494_v17  ;;  %v4103_v41 = vpop.f32.mrb[80].mxu0  ;;  %v15427_v38 = vld [vmem:[#allocation2 + $0x40] sm:$0xff]  }
 0x4d8   :  { %v13914_v26 = vpop.f32.mrb[81].mxu0 }
 0x4d9   :  { %14019 = vmatmul.mubr.msk.bf16.gmra.mrb[76].mxu1 %vm213_vm1, %v15425_v18  ;;  %v17498_v47 = vadd.f32 %v4098_v43, %v3495_v10  ;;  %v4106_v50 = vpop.f32.mrb[82].mxu0  ;;  %v15428_v26 = vld [vmem:[#allocation2 + $0x4c] sm:$0xff]  }
 0x4da   :  { %14022 = vmatprep.mubr.msk.bf16.mxu1 %vm15735_vm0, %v15734_v0  ;;  %v13915_v55 = vpop.f32.mrb[83].mxu0 }
 0x4dc   :  { %v3297_v33 = vpop.f32.mrb[228].mxu1  ;;  %14189 = vmatmul.mubr.msk.bf16.gmra.mrb[188].mxu0 %vm213_vm1, %v15426_v7 }
 0x4dd   :  { %v3496_v21 = vadd.f32 %v3297_v33, %v16971_v32  ;;  %v13748_v12 = vpop.f32.mrb[229].mxu1  ;;  %14192 = vmatprep.mubr.msk.bf16.mxu0 %vm15735_vm0, %v15734_v0 }
 0x4de   :  { %v3300_v45 = vpop.f32.mrb[230].mxu1 }
 0x4df   :  { %v3497_v17 = vadd.f32 %v3300_v45, %v16977_v34  ;;  %v13749_v43 = vpop.f32.mrb[231].mxu1  ;;  %v17507_v18 = vadd.f32 %v4103_v41, %v3496_v21  ;;  %v4111_v2 = vpop.f32.mrb[84].mxu0  ;;  %v15429_v34 = vld [vmem:[#allocation2 + $0x48] sm:$0xff]  }
 0x4e0   :  { %v13918_v10 = vpop.f32.mrb[85].mxu0 }
 0x4e1   :  { %14023 = vmatmul.mubr.msk.bf16.gmra.mrb[80].mxu1 %vm213_vm1, %v15427_v38  ;;  %v17510_v54 = vadd.f32 %v4106_v50, %v3497_v17  ;;  %v4114_v32 = vpop.f32.mrb[86].mxu0 }
 0x4e2   :  { %14026 = vmatprep.mubr.msk.bf16.mxu1 %vm15735_vm0, %v15734_v0  ;;  %v13919_v7 = vpop.f32.mrb[87].mxu0 }
 0x4e4   :  { %v3305_v55 = vpop.f32.mrb[232].mxu1  ;;  %14193 = vmatmul.mubr.msk.bf16.gmra.mrb[192].mxu0 %vm213_vm1, %v15428_v26  ;;  %v15430_v26 = vld [vmem:[#allocation2 + $0x54] sm:$0xff]  }
 0x4e5   :  { %v3498_v33 = vadd.f32 %v3305_v55, %v17041_v39  ;;  %v13752_v12 = vpop.f32.mrb[233].mxu1  ;;  %14196 = vmatprep.mubr.msk.bf16.mxu0 %vm15735_vm0, %v15734_v0 }
 0x4e6   :  { %v3308_v41 = vpop.f32.mrb[234].mxu1  ;;  %v15431_v12 = vld [vmem:[#allocation2 + $0x50] sm:$0xff]  }
 0x4e7   :  { %v17518_v21 = vadd.f32 %v4111_v2, %v3498_v33  ;;  %v3499_v50 = vadd.f32 %v3308_v41, %v17044_v13  ;;  %v13753_v38 = vpop.f32.mrb[235].mxu1  ;;  %v4119_v45 = vpop.f32.mrb[88].mxu0 }
 0x4e8   :  { %v13922_v43 = vpop.f32.mrb[89].mxu0 }
 0x4e9   :  { %v17521_v17 = vadd.f32 %v4114_v32, %v3499_v50  ;;  %14027 = vmatmul.mubr.msk.bf16.gmra.mrb[84].mxu1 %vm213_vm1, %v15429_v34  ;;  %v4122_v39 = vpop.f32.mrb[90].mxu0 }
 0x4ea   :  { %14030 = vmatprep.mubr.msk.bf16.mxu1 %vm15735_vm0, %v15734_v0  ;;  %v13923_v10 = vpop.f32.mrb[91].mxu0 }
 0x4eb   :  { %v15432_v10 = vld [vmem:[#allocation2 + $0x5c] sm:$0xff]  }
 0x4ec   :  { %v3313_v7 = vpop.f32.mrb[236].mxu1  ;;  %14197 = vmatmul.mubr.msk.bf16.gmra.mrb[196].mxu0 %vm213_vm1, %v15430_v26 }
 0x4ed   :  { %v3500_v55 = vadd.f32 %v3313_v7, %v17046_v4  ;;  %v13756_v2 = vpop.f32.mrb[237].mxu1  ;;  %14200 = vmatprep.mubr.msk.bf16.mxu0 %vm15735_vm0, %v15734_v0 }
 0x4ee   :  { %v3316_v13 = vpop.f32.mrb[238].mxu1  ;;  %v15433_v2 = vld [vmem:[#allocation2 + $0x58] sm:$0xff]  }
 0x4ef   :  { %v3501_v32 = vadd.f32 %v3316_v13, %v17048_v35  ;;  %v13757_v33 = vpop.f32.mrb[239].mxu1  ;;  %v17531_v34 = vadd.f32 %v4119_v45, %v3500_v55  ;;  %v4127_v41 = vpop.f32.mrb[92].mxu0 }
 0x4f0   :  { %v13926_v50 = vpop.f32.mrb[93].mxu0 }
 0x4f1   :  { %14031 = vmatmul.mubr.msk.bf16.gmra.mrb[88].mxu1 %vm213_vm1, %v15431_v12  ;;  %v17534_v38 = vadd.f32 %v4122_v39, %v3501_v32  ;;  %v4130_v4 = vpop.f32.mrb[94].mxu0 }
 0x4f2   :  { %14034 = vmatprep.mubr.msk.bf16.mxu1 %vm15735_vm0, %v15734_v0  ;;  %v13927_v43 = vpop.f32.mrb[95].mxu0 }
 0x4f3   :  { %v15434_v43 = vld [vmem:[#allocation2 + $0x64] sm:$0xff]  }
 0x4f4   :  { %v3321_v26 = vpop.f32.mrb[240].mxu1  ;;  %14201 = vmatmul.mubr.msk.bf16.gmra.mrb[200].mxu0 %vm213_vm1, %v15432_v10 }
 0x4f5   :  { %v3502_v7 = vadd.f32 %v3321_v26, %v17050_v48  ;;  %v13760_v35 = vpop.f32.mrb[241].mxu1  ;;  %14204 = vmatprep.mubr.msk.bf16.mxu0 %vm15735_vm0, %v15734_v0 }
 0x4f6   :  { %v3324_v45 = vpop.f32.mrb[242].mxu1  ;;  %v15435_v35 = vld [vmem:[#allocation2 + $0x60] sm:$0xff]  }
 0x4f7   :  { %v3503_v55 = vadd.f32 %v3324_v45, %v17052_v29  ;;  %v13761_v39 = vpop.f32.mrb[243].mxu1  ;;  %v17543_v13 = vadd.f32 %v4127_v41, %v3502_v7  ;;  %v4135_v32 = vpop.f32.mrb[96].mxu0 }
 0x4f8   :  { %v13930_v33 = vpop.f32.mrb[97].mxu0 }
 0x4f9   :  { %14035 = vmatmul.mubr.msk.bf16.gmra.mrb[92].mxu1 %vm213_vm1, %v15433_v2  ;;  %v17546_v12 = vadd.f32 %v4130_v4, %v3503_v55  ;;  %v4138_v48 = vpop.f32.mrb[98].mxu0  ;;  %v15436_v2 = vld [vmem:[#allocation2 + $0x6c] sm:$0xff]  }
 0x4fa   :  { %14038 = vmatprep.mubr.msk.bf16.mxu1 %vm15735_vm0, %v15734_v0  ;;  %v13931_v50 = vpop.f32.mrb[99].mxu0 }
 0x4fc   :  { %v3329_v10 = vpop.f32.mrb[244].mxu1  ;;  %14205 = vmatmul.mubr.msk.bf16.gmra.mrb[204].mxu0 %vm213_vm1, %v15434_v43 }
 0x4fd   :  { %v3504_v26 = vadd.f32 %v3329_v10, %v17055_v25  ;;  %v13764_v29 = vpop.f32.mrb[245].mxu1  ;;  %14208 = vmatprep.mubr.msk.bf16.mxu0 %vm15735_vm0, %v15734_v0 }
 0x4fe   :  { %v3332_v41 = vpop.f32.mrb[246].mxu1 }
 0x4ff   :  { %v3505_v7 = vadd.f32 %v3332_v41, %v17063_v20  ;;  %v13765_v4 = vpop.f32.mrb[247].mxu1  ;;  %v17555_v45 = vadd.f32 %v4135_v32, %v3504_v26  ;;  %v4143_v55 = vpop.f32.mrb[100].mxu0  ;;  %v15437_v26 = vld [vmem:[#allocation2 + $0x68] sm:$0xff]  }
 0x500   :  { %v13934_v39 = vpop.f32.mrb[101].mxu0  ;;  %v15438_v4 = vld [vmem:[#allocation2 + $0x74] sm:$0xff]  }
 0x501   :  { %14039 = vmatmul.mubr.msk.bf16.gmra.mrb[96].mxu1 %vm213_vm1, %v15435_v35  ;;  %v17558_v33 = vadd.f32 %v4138_v48, %v3505_v7  ;;  %v4145_v25 = vpop.f32.mrb[102].mxu0 }
 0x502   :  { %14042 = vmatprep.mubr.msk.bf16.mxu1 %vm15735_vm0, %v15734_v0  ;;  %v13935_v50 = vpop.f32.mrb[103].mxu0 }
 0x504   :  { %v3337_v43 = vpop.f32.mrb[248].mxu1  ;;  %14209 = vmatmul.mubr.msk.bf16.gmra.mrb[208].mxu0 %vm213_vm1, %v15436_v2 }
 0x505   :  { %v13768_v10 = vpop.f32.mrb[249].mxu1  ;;  %14212 = vmatprep.mubr.msk.bf16.mxu0 %vm15735_vm0, %v15734_v0  ;;  %v15439_v43 = vld [vmem:[#allocation2 + $0x70] sm:$0xff]  }
 0x506   :  { %v3339_v20 = vpop.f32.mrb[250].mxu1 }
 0x507   :  { %v13769_v32 = vpop.f32.mrb[251].mxu1  ;;  %v4149_v29 = vpop.f32.mrb[104].mxu0 }
 0x508   :  { %v13938_v41 = vpop.f32.mrb[105].mxu0 }
 0x509   :  { %14043 = vmatmul.mubr.msk.bf16.gmra.mrb[100].mxu1 %vm213_vm1, %v15437_v26  ;;  %v4152_v48 = vpop.f32.mrb[106].mxu0 }
 0x50a   :  { %14046 = vmatprep.mubr.msk.bf16.mxu1 %vm15735_vm0, %v15734_v0  ;;  %v13939_v7 = vpop.f32.mrb[107].mxu0 }
 0x50b   :  { %v15440_v7 = vld [vmem:[#allocation2 + $0x7c] sm:$0xff]  }
 0x50c   :  { %v3343_v35 = vpop.f32.mrb[252].mxu1  ;;  %14213 = vmatmul.mubr.msk.bf16.gmra.mrb[212].mxu0 %vm213_vm1, %v15438_v4 }
 0x50d   :  { %v3506_v55 = vadd.f32 %v3343_v35, %v17072_v40  ;;  %v13772_v39 = vpop.f32.mrb[253].mxu1  ;;  %14216 = vmatprep.mubr.msk.bf16.mxu0 %vm15735_vm0, %v15734_v0 }
 0x50e   :  { %v3346_v2 = vpop.f32.mrb[254].mxu1  ;;  %v15441_v39 = vld [vmem:[#allocation2 + $0x78] sm:$0xff]  }
 0x50f   :  { %v3507_v25 = vadd.f32 %v3346_v2, %v17076_v24  ;;  %v13773_v50 = vpop.f32.mrb[255].mxu1  ;;  %v17573_v10 = vadd.f32 %v4149_v29, %v3506_v55  ;;  %v4157_v20 = vpop.f32.mrb[108].mxu0 }
 0x510   :  { %v13942_v32 = vpop.f32.mrb[109].mxu0 }
 0x511   :  { %14047 = vmatmul.mubr.msk.bf16.gmra.mrb[104].mxu1 %vm213_vm1, %v15439_v43  ;;  %v17576_v26 = vadd.f32 %v4152_v48, %v3507_v25  ;;  %v4160_v40 = vpop.f32.mrb[110].mxu0 }
 0x512   :  { %14050 = vmatprep.mubr.msk.bf16.mxu1 %vm15735_vm0, %v15734_v0  ;;  %v13943_v41 = vpop.f32.mrb[111].mxu0 }
 0x513   :  { %v15442_v41 = vld [vmem:[#allocation2 + $0x84] sm:$0xff]  }
 0x514   :  { %v3351_v4 = vpop.f32.mrb[0].mxu1  ;;  %14217 = vmatmul.mubr.msk.bf16.gmra.mrb[216].mxu0 %vm213_vm1, %v15440_v7 }
 0x515   :  { %v3508_v35 = vadd.f32 %v3351_v4, %v17086_v61  ;;  %v13776_v24 = vpop.f32.mrb[1].mxu1  ;;  %14220 = vmatprep.mubr.msk.bf16.mxu0 %vm15735_vm0, %v15734_v0 }
 0x516   :  { %v3354_v29 = vpop.f32.mrb[2].mxu1  ;;  %v15443_v24 = vld [vmem:[#allocation2 + $0x80] sm:$0xff]  }
 0x517   :  { %v3509_v55 = vadd.f32 %v3354_v29, %v17090_v42  ;;  %v13777_v48 = vpop.f32.mrb[3].mxu1  ;;  %v17585_v2 = vadd.f32 %v4157_v20, %v3508_v35  ;;  %v4165_v25 = vpop.f32.mrb[112].mxu0 }
 0x518   :  { %v13946_v50 = vpop.f32.mrb[113].mxu0 }
 0x519   :  { %14051 = vmatmul.mubr.msk.bf16.gmra.mrb[108].mxu1 %vm213_vm1, %v15441_v39  ;;  %v17588_v43 = vadd.f32 %v4160_v40, %v3509_v55  ;;  %v4168_v61 = vpop.f32.mrb[114].mxu0 }
 0x51a   :  { %14054 = vmatprep.mubr.msk.bf16.mxu1 %vm15735_vm0, %v15734_v0  ;;  %v13947_v32 = vpop.f32.mrb[115].mxu0 }
 0x51b   :  { %v15444_v32 = vld [vmem:[#allocation2 + $0x8c] sm:$0xff]  }
 0x51c   :  { %v3359_v7 = vpop.f32.mrb[4].mxu1  ;;  %14221 = vmatmul.mubr.msk.bf16.gmra.mrb[220].mxu0 %vm213_vm1, %v15442_v41 }
 0x51d   :  { %v3510_v4 = vadd.f32 %v3359_v7, %v17099_v27  ;;  %v13780_v42 = vpop.f32.mrb[5].mxu1  ;;  %14224 = vmatprep.mubr.msk.bf16.mxu0 %vm15735_vm0, %v15734_v0 }
 0x51e   :  { %v3362_v20 = vpop.f32.mrb[6].mxu1  ;;  %v15445_v42 = vld [vmem:[#allocation2 + $0x88] sm:$0xff]  }
 0x51f   :  { %v3511_v35 = vadd.f32 %v3362_v20, %v17104_v56  ;;  %v13781_v40 = vpop.f32.mrb[7].mxu1  ;;  %v17597_v29 = vadd.f32 %v4165_v25, %v3510_v4  ;;  %v4173_v55 = vpop.f32.mrb[116].mxu0 }
 0x520   :  { %v13950_v48 = vpop.f32.mrb[117].mxu0 }
 0x521   :  { %14055 = vmatmul.mubr.msk.bf16.gmra.mrb[112].mxu1 %vm213_vm1, %v15443_v24  ;;  %v17600_v39 = vadd.f32 %v4168_v61, %v3511_v35  ;;  %v4176_v27 = vpop.f32.mrb[118].mxu0  ;;  %v15446_v48 = vld [vmem:[#allocation2 + $0x94] sm:$0xff]  }
 0x522   :  { %14058 = vmatprep.mubr.msk.bf16.mxu1 %vm15735_vm0, %v15734_v0  ;;  %v13951_v50 = vpop.f32.mrb[119].mxu0 }
 0x524   :  { %v3367_v41 = vpop.f32.mrb[8].mxu1  ;;  %14225 = vmatmul.mubr.msk.bf16.gmra.mrb[224].mxu0 %vm213_vm1, %v15444_v32 }
 0x525   :  { %v3512_v7 = vadd.f32 %v3367_v41, %v17110_v3  ;;  %v13784_v56 = vpop.f32.mrb[9].mxu1  ;;  %14228 = vmatprep.mubr.msk.bf16.mxu0 %vm15735_vm0, %v15734_v0 }
 0x526   :  { %v3370_v25 = vpop.f32.mrb[10].mxu1 }
 0x527   :  { %v3513_v4 = vadd.f32 %v3370_v25, %v17114_v37  ;;  %v13785_v61 = vpop.f32.mrb[11].mxu1  ;;  %v17609_v20 = vadd.f32 %v4173_v55, %v3512_v7  ;;  %v4181_v35 = vpop.f32.mrb[120].mxu0  ;;  %v15447_v55 = vld [vmem:[#allocation2 + $0x90] sm:$0xff]  }
 0x528   :  { %v13954_v40 = vpop.f32.mrb[121].mxu0 }
 0x529   :  { %14059 = vmatmul.mubr.msk.bf16.gmra.mrb[116].mxu1 %vm213_vm1, %v15445_v42  ;;  %v17612_v24 = vadd.f32 %v4176_v27, %v3513_v4  ;;  %v4184_v3 = vpop.f32.mrb[122].mxu0 }
 0x52a   :  { %14062 = vmatprep.mubr.msk.bf16.mxu1 %vm15735_vm0, %v15734_v0  ;;  %v13955_v50 = vpop.f32.mrb[123].mxu0 }
 0x52c   :  { %v3375_v32 = vpop.f32.mrb[12].mxu1  ;;  %14229 = vmatmul.mubr.msk.bf16.gmra.mrb[228].mxu0 %vm213_vm1, %v15446_v48  ;;  %v15448_v48 = vld [vmem:[#allocation2 + $0x9c] sm:$0xff]  }
 0x52d   :  { %v3514_v41 = vadd.f32 %v3375_v32, %v17163_v8  ;;  %v13788_v37 = vpop.f32.mrb[13].mxu1  ;;  %14232 = vmatprep.mubr.msk.bf16.mxu0 %vm15735_vm0, %v15734_v0 }
 0x52e   :  { %v3378_v7 = vpop.f32.mrb[14].mxu1  ;;  %v15449_v37 = vld [vmem:[#allocation2 + $0x98] sm:$0xff]  }
 0x52f   :  { %v17620_v56 = vadd.f32 %v4181_v35, %v3514_v41  ;;  %v3515_v27 = vadd.f32 %v3378_v7, %v17167_v62  ;;  %v13789_v25 = vpop.f32.mrb[15].mxu1  ;;  %v4189_v4 = vpop.f32.mrb[124].mxu0 }
 0x530   :  { %v13958_v42 = vpop.f32.mrb[125].mxu0 }
 0x531   :  { %v17623_v61 = vadd.f32 %v4184_v3, %v3515_v27  ;;  %14063 = vmatmul.mubr.msk.bf16.gmra.mrb[120].mxu1 %vm213_vm1, %v15447_v55  ;;  %v4192_v8 = vpop.f32.mrb[126].mxu0 }
 0x532   :  { %14066 = vmatprep.mubr.msk.bf16.mxu1 %vm15735_vm0, %v15734_v0  ;;  %v13959_v40 = vpop.f32.mrb[127].mxu0 }
 0x533   :  { %v15450_v40 = vld [vmem:[#allocation2 + $0xa4] sm:$0xff]  }
 0x534   :  { %v3383_v50 = vpop.f32.mrb[16].mxu1  ;;  %14233 = vmatmul.mubr.msk.bf16.gmra.mrb[232].mxu0 %vm213_vm1, %v15448_v48 }
 0x535   :  { %v3516_v32 = vadd.f32 %v3383_v50, %v17178_v51  ;;  %v13792_v35 = vpop.f32.mrb[17].mxu1  ;;  %14236 = vmatprep.mubr.msk.bf16.mxu0 %vm15735_vm0, %v15734_v0 }
 0x536   :  { %v3386_v62 = vpop.f32.mrb[18].mxu1  ;;  %v15451_v35 = vld [vmem:[#allocation2 + $0xa0] sm:$0xff]  }
 0x537   :  { %v3517_v3 = vadd.f32 %v3386_v62, %v17180_v6  ;;  %v13793_v41 = vpop.f32.mrb[19].mxu1  ;;  %v17633_v55 = vadd.f32 %v4189_v4, %v3516_v32  ;;  %v4197_v7 = vpop.f32.mrb[128].mxu0 }
 0x538   :  { %v13962_v27 = vpop.f32.mrb[129].mxu0 }
 0x539   :  { %14067 = vmatmul.mubr.msk.bf16.gmra.mrb[124].mxu1 %vm213_vm1, %v15449_v37  ;;  %v17636_v25 = vadd.f32 %v4192_v8, %v3517_v3  ;;  %v4200_v51 = vpop.f32.mrb[130].mxu0 }
 0x53a   :  { %14070 = vmatprep.mubr.msk.bf16.mxu1 %vm15735_vm0, %v15734_v0  ;;  %v13963_v42 = vpop.f32.mrb[131].mxu0 }
 0x53b   :  { %v15452_v42 = vld [vmem:[#allocation2 + $0xac] sm:$0xff]  }
 0x53c   :  { %v3391_v48 = vpop.f32.mrb[20].mxu1  ;;  %14237 = vmatmul.mubr.msk.bf16.gmra.mrb[236].mxu0 %vm213_vm1, %v15450_v40 }
 0x53d   :  { %v3518_v50 = vadd.f32 %v3391_v48, %v17188_v28  ;;  %v13796_v6 = vpop.f32.mrb[21].mxu1  ;;  %14240 = vmatprep.mubr.msk.bf16.mxu0 %vm15735_vm0, %v15734_v0 }
 0x53e   :  { %v3394_v4 = vpop.f32.mrb[22].mxu1  ;;  %v15453_v6 = vld [vmem:[#allocation2 + $0xa8] sm:$0xff]  }
 0x53f   :  { %v3519_v32 = vadd.f32 %v3394_v4, %v17190_v23  ;;  %v13797_v8 = vpop.f32.mrb[23].mxu1  ;;  %v17645_v62 = vadd.f32 %v4197_v7, %v3518_v50  ;;  %v4205_v3 = vpop.f32.mrb[132].mxu0 }
 0x540   :  { %v13966_v41 = vpop.f32.mrb[133].mxu0 }
 0x541   :  { %14071 = vmatmul.mubr.msk.bf16.gmra.mrb[128].mxu1 %vm213_vm1, %v15451_v35  ;;  %v17648_v37 = vadd.f32 %v4200_v51, %v3519_v32  ;;  %v4208_v28 = vpop.f32.mrb[134].mxu0  ;;  %v15454_v35 = vld [vmem:[#allocation2 + $0xb4] sm:$0xff]  }
 0x542   :  { %14074 = vmatprep.mubr.msk.bf16.mxu1 %vm15735_vm0, %v15734_v0  ;;  %v13967_v27 = vpop.f32.mrb[135].mxu0 }
 0x544   :  { %v3399_v40 = vpop.f32.mrb[24].mxu1  ;;  %14241 = vmatmul.mubr.msk.bf16.gmra.mrb[240].mxu0 %vm213_vm1, %v15452_v42 }
 0x545   :  { %v3520_v48 = vadd.f32 %v3399_v40, %v17198_v31  ;;  %v13800_v23 = vpop.f32.mrb[25].mxu1  ;;  %14244 = vmatprep.mubr.msk.bf16.mxu0 %vm15735_vm0, %v15734_v0 }
 0x546   :  { %v3402_v7 = vpop.f32.mrb[26].mxu1 }
 0x547   :  { %v3521_v50 = vadd.f32 %v3402_v7, %v17201_v52  ;;  %v13801_v51 = vpop.f32.mrb[27].mxu1  ;;  %v17657_v4 = vadd.f32 %v4205_v3, %v3520_v48  ;;  %v4213_v32 = vpop.f32.mrb[136].mxu0  ;;  %v15455_v48 = vld [vmem:[#allocation2 + $0xb0] sm:$0xff]  }
 0x548   :  { %v13970_v8 = vpop.f32.mrb[137].mxu0 }
 0x549   :  { %19361 = vst [vmem:[#allocation12_spill] sm:$0xff] %v17657_v4  ;;  %14075 = vmatmul.mubr.msk.bf16.gmra.mrb[132].mxu1 %vm213_vm1, %v15453_v6  ;;  %v17660_v41 = vadd.f32 %v4208_v28, %v3521_v50  ;;  %v4215_v31 = vpop.f32.mrb[138].mxu0  ;;  %v15488_v28 = vld [vmem:[%s19344_s3 + $0x38] sm:$0xff]  }
 0x54a   :  { %14078 = vmatprep.mubr.msk.bf16.mxu1 %vm15735_vm0, %v15734_v0  ;;  %v13971_v27 = vpop.f32.mrb[139].mxu0  ;;  %v15456_v6 = vld [vmem:[#allocation2 + $0xbc] sm:$0xff]   ;;  %14507 = vmatpush3.bf16.msra.mxu0 %v15488_v28  ;;  %v19363_v8 = vld [vmem:[#allocation3_spill] sm:$0xff] }
 0x54b   :  { %19362 = vst [vmem:[#allocation13_spill] sm:$0xff] %v17660_v41  ;;  %14838 = vmatprep.subr.bf16.mxu0 %v15734_v0  ;;  %v19367_v41 = vld [vmem:[#allocation5_spill] sm:$0xff] }
 0x54c   :  { %v3407_v42 = vpop.f32.mrb[28].mxu1  ;;  %14245 = vmatmul.mubr.msk.bf16.gmra.mrb[244].mxu0 %vm213_vm1, %v15454_v35 }
 0x54d   :  { %v13804_v40 = vpop.f32.mrb[29].mxu1  ;;  %14248 = vmatprep.mubr.msk.bf16.mxu0 %vm15735_vm0, %v15734_v0  ;;  %v19364_v42 = vld [vmem:[#allocation4_spill] sm:$0xff] }
 0x54e   :  { %v3409_v52 = vpop.f32.mrb[30].mxu1 }
 0x54f   :  { %v13805_v3 = vpop.f32.mrb[31].mxu1  ;;  %v4219_v23 = vpop.f32.mrb[140].mxu0 }
 0x550   :  { %v13974_v7 = vpop.f32.mrb[141].mxu0  ;;  %v15457_v3 = vld [vmem:[#allocation2 + $0xb8] sm:$0xff]  }
 0x551   :  { %14079 = vmatmul.mubr.msk.bf16.gmra.mrb[136].mxu1 %vm213_vm1, %v15455_v48  ;;  %v4222_v50 = vpop.f32.mrb[142].mxu0 }
 0x552   :  { %14082 = vmatprep.mubr.msk.bf16.mxu1 %vm15735_vm0, %v15734_v0  ;;  %v13975_v51 = vpop.f32.mrb[143].mxu0 }
 0x554   :  { %v3413_v32 = vpop.f32.mrb[32].mxu1  ;;  %14249 = vmatmul.mubr.msk.bf16.gmra.mrb[248].mxu0 %vm213_vm1, %v15456_v6 }
 0x555   :  { %v3522_v35 = vadd.f32 %v3413_v32, %v19363_v8  ;;  %v13808_v31 = vpop.f32.mrb[33].mxu1  ;;  %14252 = vmatprep.mubr.msk.bf16.mxu0 %vm15735_vm0, %v15734_v0  ;;  %v15458_v8 = vld [vmem:[#allocation2 + $0xc4] sm:$0xff]  }
 0x556   :  { %v3416_v27 = vpop.f32.mrb[34].mxu1 }
 0x557   :  { %v3523_v40 = vadd.f32 %v3416_v27, %v19364_v42  ;;  %v13809_v52 = vpop.f32.mrb[35].mxu1  ;;  %v17679_v48 = vadd.f32 %v4219_v23, %v3522_v35  ;;  %v4227_v7 = vpop.f32.mrb[144].mxu0  ;;  %v19368_v35 = vld [vmem:[#allocation6_spill] sm:$0xff] }
 0x558   :  { %v13978_v28 = vpop.f32.mrb[145].mxu0 }
 0x559   :  { %19365 = vst [vmem:[#allocation3_spill] sm:$0xff] %v17679_v48  ;;  %14083 = vmatmul.mubr.msk.bf16.gmra.mrb[140].mxu1 %vm213_vm1, %v15457_v3  ;;  %v17682_v51 = vadd.f32 %v4222_v50, %v3523_v40  ;;  %v4230_v32 = vpop.f32.mrb[146].mxu0  ;;  %v15459_v40 = vld [vmem:[#allocation2 + $0xc0] sm:$0xff]  }
 0x55a   :  { %14086 = vmatprep.mubr.msk.bf16.mxu1 %vm15735_vm0, %v15734_v0  ;;  %v13979_v6 = vpop.f32.mrb[147].mxu0 }
 0x55b   :  { %19366 = vst [vmem:[#allocation4_spill] sm:$0xff] %v17682_v51  ;;  %v19371_v51 = vld [vmem:[#allocation7_spill] sm:$0xff] }
 0x55c   :  { %v3421_v31 = vpop.f32.mrb[36].mxu1  ;;  %14253 = vmatmul.mubr.msk.bf16.gmra.mrb[252].mxu0 %vm213_vm1, %v15458_v8 }
 0x55d   :  { %v3524_v4 = vadd.f32 %v3421_v31, %v19367_v41  ;;  %v13812_v27 = vpop.f32.mrb[37].mxu1  ;;  %14256 = vmatprep.mubr.msk.bf16.mxu0 %vm15735_vm0, %v15734_v0  ;;  %v15460_v31 = vld [vmem:[#allocation2 + $0xcc] sm:$0xff]  }
 0x55e   :  { %v3424_v23 = vpop.f32.mrb[38].mxu1 }
 0x55f   :  { %v3525_v42 = vadd.f32 %v3424_v23, %v19368_v35  ;;  %v13813_v50 = vpop.f32.mrb[39].mxu1  ;;  %v17691_v52 = vadd.f32 %v4227_v7, %v3524_v4  ;;  %v4235_v3 = vpop.f32.mrb[148].mxu0  ;;  %v19372_v7 = vld [vmem:[#allocation8_spill] sm:$0xff] }
 0x560   :  { %v13982_v28 = vpop.f32.mrb[149].mxu0 }
 0x561   :  { %19369 = vst [vmem:[#allocation5_spill] sm:$0xff] %v17691_v52  ;;  %14087 = vmatmul.mubr.msk.bf16.gmra.mrb[144].mxu1 %vm213_vm1, %v15459_v40  ;;  %v17694_v6 = vadd.f32 %v4230_v32, %v3525_v42  ;;  %v4238_v41 = vpop.f32.mrb[150].mxu0  ;;  %v15461_v42 = vld [vmem:[#allocation2 + $0xc8] sm:$0xff]  }
 0x562   :  { %14090 = vmatprep.mubr.msk.bf16.mxu1 %vm15735_vm0, %v15734_v0  ;;  %v13983_v8 = vpop.f32.mrb[151].mxu0 }
 0x563   :  { %19370 = vst [vmem:[#allocation6_spill] sm:$0xff] %v17694_v6  ;;  %v19374_v6 = vld [vmem:[#allocation9_spill] sm:$0xff] }
 0x564   :  { %v3429_v27 = vpop.f32.mrb[40].mxu1  ;;  %14257 = vmatmul.mubr.msk.bf16.gmra.mrb[0].mxu0 %vm213_vm1, %v15460_v31 }
 0x565   :  { %v3526_v48 = vadd.f32 %v3429_v27, %v19371_v51  ;;  %v13816_v23 = vpop.f32.mrb[41].mxu1  ;;  %14260 = vmatprep.mubr.msk.bf16.mxu0 %vm15735_vm0, %v15734_v0  ;;  %v15462_v27 = vld [vmem:[#allocation2 + $0xd4] sm:$0xff]  }
 0x566   :  { %v3432_v4 = vpop.f32.mrb[42].mxu1 }
 0x567   :  { %v3527_v35 = vadd.f32 %v3432_v4, %v19372_v7  ;;  %v13817_v32 = vpop.f32.mrb[43].mxu1  ;;  %v17703_v50 = vadd.f32 %v4235_v3, %v3526_v48  ;;  %v4243_v40 = vpop.f32.mrb[152].mxu0  ;;  %v19375_v3 = vld [vmem:[#allocation10_spill] sm:$0xff] }
 0x568   :  { %v13986_v28 = vpop.f32.mrb[153].mxu0 }
 0x569   :  { %14091 = vmatmul.mubr.msk.bf16.gmra.mrb[148].mxu1 %vm213_vm1, %v15461_v42  ;;  %v17706_v8 = vadd.f32 %v4238_v41, %v3527_v35  ;;  %v4246_v51 = vpop.f32.mrb[154].mxu0  ;;  %v15463_v35 = vld [vmem:[#allocation2 + $0xd0] sm:$0xff]  }
 0x56a   :  { %14094 = vmatprep.mubr.msk.bf16.mxu1 %vm15735_vm0, %v15734_v0  ;;  %v13987_v31 = vpop.f32.mrb[155].mxu0 }
 0x56b   :  { %19373 = vst [vmem:[#allocation7_spill] sm:$0xff] %v17706_v8 }
 0x56c   :  { %v3437_v23 = vpop.f32.mrb[44].mxu1  ;;  %14261 = vmatmul.mubr.msk.bf16.gmra.mrb[4].mxu0 %vm213_vm1, %v15462_v27  ;;  %v15464_v27 = vld [vmem:[#allocation2 + $0xdc] sm:$0xff]  }
 0x56d   :  { %v3528_v52 = vadd.f32 %v3437_v23, %v19374_v6  ;;  %v13820_v4 = vpop.f32.mrb[45].mxu1  ;;  %14264 = vmatprep.mubr.msk.bf16.mxu0 %vm15735_vm0, %v15734_v0 }
 0x56e   :  { %v3440_v48 = vpop.f32.mrb[46].mxu1 }
 0x56f   :  { %v3529_v7 = vadd.f32 %v3440_v48, %v19375_v3  ;;  %v13821_v41 = vpop.f32.mrb[47].mxu1  ;;  %v17715_v32 = vadd.f32 %v4243_v40, %v3528_v52  ;;  %v4251_v42 = vpop.f32.mrb[156].mxu0  ;;  %v15465_v48 = vld [vmem:[#allocation2 + $0xd8] sm:$0xff]  }
 0x570   :  { %v13990_v28 = vpop.f32.mrb[157].mxu0  ;;  %v15466_v41 = vld [vmem:[#allocation2 + $0xe4] sm:$0xff]  }
 0x571   :  { %14095 = vmatmul.mubr.msk.bf16.gmra.mrb[152].mxu1 %vm213_vm1, %v15463_v35  ;;  %v17718_v31 = vadd.f32 %v4246_v51, %v3529_v7  ;;  %v4253_v6 = vpop.f32.mrb[158].mxu0 }
 0x572   :  { %14098 = vmatprep.mubr.msk.bf16.mxu1 %vm15735_vm0, %v15734_v0  ;;  %v13991_v23 = vpop.f32.mrb[159].mxu0 }
 0x574   :  { %v3445_v4 = vpop.f32.mrb[48].mxu1  ;;  %14265 = vmatmul.mubr.msk.bf16.gmra.mrb[8].mxu0 %vm213_vm1, %v15464_v27  ;;  %v15467_v27 = vld [vmem:[#allocation2 + $0xe0] sm:$0xff]  }
 0x575   :  { %v13824_v8 = vpop.f32.mrb[49].mxu1  ;;  %14268 = vmatprep.mubr.msk.bf16.mxu0 %vm15735_vm0, %v15734_v0 }
 0x576   :  { %v3447_v3 = vpop.f32.mrb[50].mxu1 }
 0x577   :  { %v13825_v52 = vpop.f32.mrb[51].mxu1  ;;  %v4257_v40 = vpop.f32.mrb[160].mxu0  ;;  %v15468_v3 = vld [vmem:[#allocation2 + $0xec] sm:$0xff]  }
 0x578   :  { %v13994_v51 = vpop.f32.mrb[161].mxu0 }
 0x579   :  { %14099 = vmatmul.mubr.msk.bf16.gmra.mrb[156].mxu1 %vm213_vm1, %v15465_v48  ;;  %v4259_v7 = vpop.f32.mrb[162].mxu0 }
 0x57a   :  { %14102 = vmatprep.mubr.msk.bf16.mxu1 %vm15735_vm0, %v15734_v0  ;;  %v13995_v35 = vpop.f32.mrb[163].mxu0 }
 0x57b   :  { %v15469_v35 = vld [vmem:[#allocation2 + $0xe8] sm:$0xff]  }
 0x57c   :  { %v3451_v42 = vpop.f32.mrb[52].mxu1  ;;  %14269 = vmatmul.mubr.msk.bf16.gmra.mrb[12].mxu0 %vm213_vm1, %v15466_v41 }
 0x57d   :  { %v13828_v8 = vpop.f32.mrb[53].mxu1  ;;  %14272 = vmatprep.mubr.msk.bf16.mxu0 %vm15735_vm0, %v15734_v0 }
 0x57e   :  { %v3453_v28 = vpop.f32.mrb[54].mxu1 }
 0x57f   :  { %v13829_v6 = vpop.f32.mrb[55].mxu1  ;;  %v4263_v23 = vpop.f32.mrb[164].mxu0 }
 0x580   :  { %v13998_v4 = vpop.f32.mrb[165].mxu0  ;;  %v15470_v6 = vld [vmem:[#allocation2 + $0xf4] sm:$0xff]  }
 0x581   :  { %14103 = vmatmul.mubr.msk.bf16.gmra.mrb[160].mxu1 %vm213_vm1, %v15467_v27  ;;  %v4265_v48 = vpop.f32.mrb[166].mxu0 }
 0x582   :  { %14106 = vmatprep.mubr.msk.bf16.mxu1 %vm15735_vm0, %v15734_v0  ;;  %v13999_v52 = vpop.f32.mrb[167].mxu0 }
 0x583   :  { %v15471_v52 = vld [vmem:[#allocation2 + $0xf0] sm:$0xff]  }
 0x584   :  { %v3457_v40 = vpop.f32.mrb[56].mxu1  ;;  %14273 = vmatmul.mubr.msk.bf16.gmra.mrb[16].mxu0 %vm213_vm1, %v15468_v3 }
 0x585   :  { %v13832_v51 = vpop.f32.mrb[57].mxu1  ;;  %14276 = vmatprep.mubr.msk.bf16.mxu0 %vm15735_vm0, %v15734_v0 }
 0x586   :  { %v3459_v7 = vpop.f32.mrb[58].mxu1  ;;  %v15472_v51 = vld [vmem:[#allocation2 + $0xfc] sm:$0xff]  }
 0x587   :  { %v13833_v41 = vpop.f32.mrb[59].mxu1  ;;  %v4269_v42 = vpop.f32.mrb[168].mxu0 }
 0x588   :  { %v14002_v8 = vpop.f32.mrb[169].mxu0 }
 0x589   :  { %14107 = vmatmul.mubr.msk.bf16.gmra.mrb[164].mxu1 %vm213_vm1, %v15469_v35  ;;  %v4271_v28 = vpop.f32.mrb[170].mxu0 }
 0x58a   :  { %14110 = vmatprep.mubr.msk.bf16.mxu1 %vm15735_vm0, %v15734_v0  ;;  %v14003_v27 = vpop.f32.mrb[171].mxu0 }
 0x58b   :  { %v15473_v27 = vld [vmem:[#allocation2 + $0xf8] sm:$0xff]  }
 0x58c   :  { %v3463_v23 = vpop.f32.mrb[60].mxu1  ;;  %14277 = vmatmul.mubr.msk.bf16.gmra.mrb[20].mxu0 %vm213_vm1, %v15470_v6 }
 0x58d   :  { %v13836_v4 = vpop.f32.mrb[61].mxu1  ;;  %14280 = vmatprep.mubr.msk.bf16.mxu0 %vm15735_vm0, %v15734_v0 }
 0x58e   :  { %v3465_v48 = vpop.f32.mrb[62].mxu1 }
 0x58f   :  { %v13837_v3 = vpop.f32.mrb[63].mxu1  ;;  %v4275_v40 = vpop.f32.mrb[172].mxu0 }
 0x590   :  { %v14006_v7 = vpop.f32.mrb[173].mxu0  ;;  %v15474_v3 = vld [vmem:[#allocation2 + $0x104] sm:$0xff]  }
 0x591   :  { %14111 = vmatmul.mubr.msk.bf16.gmra.mrb[168].mxu1 %vm213_vm1, %v15471_v52  ;;  %v4277_v41 = vpop.f32.mrb[174].mxu0 }
 0x592   :  { %14114 = vmatprep.mubr.msk.bf16.mxu1 %vm15735_vm0, %v15734_v0  ;;  %v14007_v35 = vpop.f32.mrb[175].mxu0 }
 0x593   :  { %v15475_v35 = vld [vmem:[#allocation2 + $0x100] sm:$0xff]  }
 0x594   :  { %v3469_v42 = vpop.f32.mrb[64].mxu1  ;;  %14281 = vmatmul.mubr.msk.bf16.gmra.mrb[24].mxu0 %vm213_vm1, %v15472_v51 }
 0x595   :  { %v13840_v8 = vpop.f32.mrb[65].mxu1  ;;  %14284 = vmatprep.mubr.msk.bf16.mxu0 %vm15735_vm0, %v15734_v0 }
 0x596   :  { %v3471_v28 = vpop.f32.mrb[66].mxu1 }
 0x597   :  { %v13841_v6 = vpop.f32.mrb[67].mxu1  ;;  %v5591_v23 = vpop.f32.mrb[176].mxu0 }
 0x598   :  { %v14178_v4 = vpop.f32.mrb[177].mxu0  ;;  %v15476_v6 = vld [vmem:[#allocation2 + $0x10c] sm:$0xff]  }
 0x599   :  { %14115 = vmatmul.mubr.msk.bf16.gmra.mrb[172].mxu1 %vm213_vm1, %v15473_v27  ;;  %v5593_v48 = vpop.f32.mrb[178].mxu0 }
 0x59a   :  { %14118 = vmatprep.mubr.msk.bf16.mxu1 %vm15735_vm0, %v15734_v0  ;;  %v14179_v52 = vpop.f32.mrb[179].mxu0 }
 0x59b   :  { %v15477_v52 = vld [vmem:[#allocation2 + $0x108] sm:$0xff]  }
 0x59c   :  { %v4785_v40 = vpop.f32.mrb[68].mxu1  ;;  %14285 = vmatmul.mubr.msk.bf16.gmra.mrb[28].mxu0 %vm213_vm1, %v15474_v3 }
 0x59d   :  { %v14012_v7 = vpop.f32.mrb[69].mxu1  ;;  %14288 = vmatprep.mubr.msk.bf16.mxu0 %vm15735_vm0, %v15734_v0 }
 0x59e   :  { %v4787_v51 = vpop.f32.mrb[70].mxu1 }
 0x59f   :  { %v14013_v41 = vpop.f32.mrb[71].mxu1  ;;  %v5597_v42 = vpop.f32.mrb[180].mxu0 }
 0x5a0   :  { %v14182_v8 = vpop.f32.mrb[181].mxu0  ;;  %v15478_v41 = vld [vmem:[#allocation2 + $0x114] sm:$0xff]  }
 0x5a1   :  { %14119 = vmatmul.mubr.msk.bf16.gmra.mrb[176].mxu1 %vm213_vm1, %v15475_v35  ;;  %v5599_v28 = vpop.f32.mrb[182].mxu0 }
 0x5a2   :  { %14122 = vmatprep.mubr.msk.bf16.mxu1 %vm15735_vm0, %v15734_v0  ;;  %v14183_v27 = vpop.f32.mrb[183].mxu0 }
 0x5a3   :  { %v15479_v27 = vld [vmem:[#allocation2 + $0x110] sm:$0xff]  }
 0x5a4   :  { %v4791_v23 = vpop.f32.mrb[72].mxu1  ;;  %14289 = vmatmul.mubr.msk.bf16.gmra.mrb[32].mxu0 %vm213_vm1, %v15476_v6 }
 0x5a5   :  { %v14016_v4 = vpop.f32.mrb[73].mxu1  ;;  %14292 = vmatprep.mubr.msk.bf16.mxu0 %vm15735_vm0, %v15734_v0 }
 0x5a6   :  { %v4793_v48 = vpop.f32.mrb[74].mxu1 }
 0x5a7   :  { %v14017_v3 = vpop.f32.mrb[75].mxu1  ;;  %v5603_v40 = vpop.f32.mrb[184].mxu0 }
 0x5a8   :  { %v14186_v7 = vpop.f32.mrb[185].mxu0  ;;  %v15480_v3 = vld [vmem:[#allocation2 + $0x11c] sm:$0xff]  }
 0x5a9   :  { %14123 = vmatmul.mubr.msk.bf16.gmra.mrb[180].mxu1 %vm213_vm1, %v15477_v52  ;;  %v5605_v51 = vpop.f32.mrb[186].mxu0 }
 0x5aa   :  { %14126 = vmatprep.mubr.msk.bf16.mxu1 %vm15735_vm0, %v15734_v0  ;;  %v14187_v35 = vpop.f32.mrb[187].mxu0 }
 0x5ab   :  { %v15481_v35 = vld [vmem:[#allocation2 + $0x118] sm:$0xff]  }
 0x5ac   :  { %v4797_v42 = vpop.f32.mrb[76].mxu1  ;;  %14293 = vmatmul.mubr.msk.bf16.gmra.mrb[36].mxu0 %vm213_vm1, %v15478_v41 }
 0x5ad   :  { %v14020_v8 = vpop.f32.mrb[77].mxu1  ;;  %14296 = vmatprep.mubr.msk.bf16.mxu0 %vm15735_vm0, %v15734_v0 }
 0x5ae   :  { %v4799_v28 = vpop.f32.mrb[78].mxu1 }
 0x5af   :  { %v14021_v6 = vpop.f32.mrb[79].mxu1  ;;  %v5609_v23 = vpop.f32.mrb[188].mxu0 }
 0x5b0   :  { %v14190_v4 = vpop.f32.mrb[189].mxu0 }
 0x5b1   :  { %14127 = vmatmul.mubr.msk.bf16.gmra.mrb[184].mxu1 %vm213_vm1, %v15479_v27  ;;  %v5611_v48 = vpop.f32.mrb[190].mxu0  ;;  %v15482_v27 = vld [vmem:[#allocation2 + $0x124] sm:$0xff]  }
 0x5b2   :  { %14130 = vmatprep.mubr.msk.bf16.mxu1 %vm15735_vm0, %v15734_v0  ;;  %v14191_v52 = vpop.f32.mrb[191].mxu0  ;;  %v15483_v48 = vld [vmem:[#allocation2 + $0x120] sm:$0xff]  }
 0x5b4   :  { %v4803_v40 = vpop.f32.mrb[80].mxu1  ;;  %14297 = vmatmul.mubr.msk.bf16.gmra.mrb[40].mxu0 %vm213_vm1, %v15480_v3 }
 0x5b5   :  { %v14024_v7 = vpop.f32.mrb[81].mxu1  ;;  %14300 = vmatprep.mubr.msk.bf16.mxu0 %vm15735_vm0, %v15734_v0 }
 0x5b6   :  { %v4805_v51 = vpop.f32.mrb[82].mxu1 }
 0x5b7   :  { %v14025_v41 = vpop.f32.mrb[83].mxu1  ;;  %v5615_v42 = vpop.f32.mrb[192].mxu0 }
 0x5b8   :  { %v14194_v8 = vpop.f32.mrb[193].mxu0 }
 0x5b9   :  { %14131 = vmatmul.mubr.msk.bf16.gmra.mrb[188].mxu1 %vm213_vm1, %v15481_v35  ;;  %v5617_v28 = vpop.f32.mrb[194].mxu0  ;;  %v15484_v35 = vld [vmem:[#allocation2 + $0x12c] sm:$0xff]  }
 0x5ba   :  { %14134 = vmatprep.mubr.msk.bf16.mxu1 %vm15735_vm0, %v15734_v0  ;;  %v14195_v6 = vpop.f32.mrb[195].mxu0 }
 0x5bc   :  { %v4809_v23 = vpop.f32.mrb[84].mxu1  ;;  %14301 = vmatmul.mubr.msk.bf16.gmra.mrb[44].mxu0 %vm213_vm1, %v15482_v27 }
 0x5bd   :  { %v14028_v4 = vpop.f32.mrb[85].mxu1  ;;  %14304 = vmatprep.mubr.msk.bf16.mxu0 %vm15735_vm0, %v15734_v0 }
 0x5be   :  { %v4811_v3 = vpop.f32.mrb[86].mxu1  ;;  %v15485_v4 = vld [vmem:[#allocation2 + $0x128] sm:$0xff]  }
 0x5bf   :  { %v14029_v52 = vpop.f32.mrb[87].mxu1  ;;  %v5621_v40 = vpop.f32.mrb[196].mxu0 }
 0x5c0   :  { %v14198_v7 = vpop.f32.mrb[197].mxu0 }
 0x5c1   :  { %14135 = vmatmul.mubr.msk.bf16.gmra.mrb[192].mxu1 %vm213_vm1, %v15483_v48  ;;  %v5624_v51 = vpop.f32.mrb[198].mxu0 }
 0x5c2   :  { %14138 = vmatprep.mubr.msk.bf16.mxu1 %vm15735_vm0, %v15734_v0  ;;  %v14199_v41 = vpop.f32.mrb[199].mxu0 }
 0x5c4   :  { %v4815_v42 = vpop.f32.mrb[88].mxu1  ;;  %14305 = vmatmul.mubr.msk.bf16.gmra.mrb[48].mxu0 %vm213_vm1, %v15484_v35  ;;  %v15486_v35 = vld [vmem:[#allocation2 + $0x134] sm:$0xff]  }
 0x5c5   :  { %v5086_v8 = vadd.f32 %v4815_v42, %v17365_v59  ;;  %v14032_v28 = vpop.f32.mrb[89].mxu1  ;;  %14308 = vmatprep.mubr.msk.bf16.mxu0 %vm15735_vm0, %v15734_v0 }
 0x5c6   :  { %v4818_v6 = vpop.f32.mrb[90].mxu1 }
 0x5c7   :  { %v5087_v27 = vadd.f32 %v4818_v6, %v17368_v53  ;;  %v14033_v23 = vpop.f32.mrb[91].mxu1  ;;  %v17787_v48 = vadd.f32 %v5621_v40, %v5086_v8  ;;  %v5629_v3 = vpop.f32.mrb[200].mxu0  ;;  %v15487_v6 = vld [vmem:[#allocation2 + $0x130] sm:$0xff]  }
 0x5c8   :  { %v14202_v52 = vpop.f32.mrb[201].mxu0 }
 0x5c9   :  { %14139 = vmatmul.mubr.msk.bf16.gmra.mrb[196].mxu1 %vm213_vm1, %v15485_v4  ;;  %v17790_v7 = vadd.f32 %v5624_v51, %v5087_v27  ;;  %v5632_v59 = vpop.f32.mrb[202].mxu0 }
 0x5ca   :  { %14142 = vmatprep.mubr.msk.bf16.mxu1 %vm15735_vm0, %v15734_v0  ;;  %v14203_v41 = vpop.f32.mrb[203].mxu0 }
 0x5cc   :  { %v4823_v42 = vpop.f32.mrb[92].mxu1  ;;  %14309 = vmatmul.mubr.msk.bf16.gmra.mrb[52].mxu0 %vm213_vm1, %v15486_v35  ;;  %v15489_v35 = vld [vmem:[#allocation2 + $0x13c] sm:$0xff]  }
 0x5cd   :  { %v5088_v28 = vadd.f32 %v4823_v42, %v17377_v19  ;;  %v14036_v53 = vpop.f32.mrb[93].mxu1  ;;  %14312 = vmatprep.mubr.msk.bf16.mxu0 %vm15735_vm0, %v15734_v0 }
 0x5ce   :  { %v4826_v40 = vpop.f32.mrb[94].mxu1 }
 0x5cf   :  { %v5089_v8 = vadd.f32 %v4826_v40, %v17380_v14  ;;  %v14037_v51 = vpop.f32.mrb[95].mxu1  ;;  %v17799_v27 = vadd.f32 %v5629_v3, %v5088_v28  ;;  %v5637_v23 = vpop.f32.mrb[204].mxu0  ;;  %v19377_v28 = vld [vmem:[#allocation11_spill] sm:$0xff] }
 0x5d0   :  { %v14206_v4 = vpop.f32.mrb[205].mxu0 }
 0x5d1   :  { %14143 = vmatmul.mubr.msk.bf16.gmra.mrb[200].mxu1 %vm213_vm1, %v15487_v6  ;;  %v17802_v52 = vadd.f32 %v5632_v59, %v5089_v8  ;;  %v5640_v19 = vpop.f32.mrb[206].mxu0  ;;  %v15490_v8 = vld [vmem:[#allocation2 + $0x138] sm:$0xff]  }
 0x5d2   :  { %14146 = vmatprep.mubr.msk.bf16.mxu1 %vm15735_vm0, %v15734_v0  ;;  %v14207_v41 = vpop.f32.mrb[207].mxu0 }
 0x5d3   :  { %19376 = vst [vmem:[#allocation8_spill] sm:$0xff] %v17802_v52  ;;  %v15491_v41 = vld [vmem:[#allocation2 + $0x144] sm:$0xff]  }
 0x5d4   :  { %v4831_v42 = vpop.f32.mrb[96].mxu1  ;;  %14313 = vmatmul.mubr.msk.bf16.gmra.mrb[56].mxu0 %vm213_vm1, %v15489_v35 }
 0x5d5   :  { %v5090_v53 = vadd.f32 %v4831_v42, %v17389_v30  ;;  %v14040_v14 = vpop.f32.mrb[97].mxu1  ;;  %14316 = vmatprep.mubr.msk.bf16.mxu0 %vm15735_vm0, %v15734_v0 }
 0x5d6   :  { %v4834_v3 = vpop.f32.mrb[98].mxu1 }
 0x5d7   :  { %v5091_v40 = vadd.f32 %v4834_v3, %v19377_v28  ;;  %v14041_v59 = vpop.f32.mrb[99].mxu1  ;;  %v17811_v51 = vadd.f32 %v5637_v23, %v5090_v53  ;;  %v5645_v6 = vpop.f32.mrb[208].mxu0 }
 0x5d8   :  { %v14210_v4 = vpop.f32.mrb[209].mxu0 }
 0x5d9   :  { %14147 = vmatmul.mubr.msk.bf16.gmra.mrb[204].mxu1 %vm213_vm1, %v15490_v8  ;;  %v17814_v52 = vadd.f32 %v5640_v19, %v5091_v40  ;;  %v5648_v30 = vpop.f32.mrb[210].mxu0  ;;  %v15492_v40 = vld [vmem:[#allocation2 + $0x140] sm:$0xff]  }
 0x5da   :  { %14150 = vmatprep.mubr.msk.bf16.mxu1 %vm15735_vm0, %v15734_v0  ;;  %v14211_v35 = vpop.f32.mrb[211].mxu0 }
 0x5dc   :  { %v4839_v42 = vpop.f32.mrb[100].mxu1  ;;  %14317 = vmatmul.mubr.msk.bf16.gmra.mrb[60].mxu0 %vm213_vm1, %v15491_v41 }
 0x5dd   :  { %v5092_v14 = vadd.f32 %v4839_v42, %v17401_v63  ;;  %v14044_v3 = vpop.f32.mrb[101].mxu1  ;;  %14320 = vmatprep.mubr.msk.bf16.mxu0 %vm15735_vm0, %v15734_v0  ;;  %v15493_v63 = vld [vmem:[#allocation2 + $0x14c] sm:$0xff]  }
 0x5de   :  { %v4842_v23 = vpop.f32.mrb[102].mxu1 }
 0x5df   :  { %v17822_v53 = vadd.f32 %v5645_v6, %v5092_v14  ;;  %v5093_v19 = vadd.f32 %v4842_v23, %v17404_v44  ;;  %v14045_v28 = vpop.f32.mrb[103].mxu1  ;;  %v5653_v59 = vpop.f32.mrb[212].mxu0  ;;  %v15494_v44 = vld [vmem:[#allocation2 + $0x148] sm:$0xff]  }
 0x5e0   :  { %v14214_v4 = vpop.f32.mrb[213].mxu0 }
 0x5e1   :  { %v17825_v8 = vadd.f32 %v5648_v30, %v5093_v19  ;;  %14151 = vmatmul.mubr.msk.bf16.gmra.mrb[208].mxu1 %vm213_vm1, %v15492_v40  ;;  %v5656_v35 = vpop.f32.mrb[214].mxu0  ;;  %v15495_v4 = vld [vmem:[#allocation2 + $0x154] sm:$0xff]  }
 0x5e2   :  { %14154 = vmatprep.mubr.msk.bf16.mxu1 %vm15735_vm0, %v15734_v0  ;;  %v14215_v41 = vpop.f32.mrb[215].mxu0 }
 0x5e3   :  { %19378 = vst [vmem:[#allocation9_spill] sm:$0xff] %v17825_v8 }
 0x5e4   :  { %v4847_v42 = vpop.f32.mrb[104].mxu1  ;;  %14321 = vmatmul.mubr.msk.bf16.gmra.mrb[64].mxu0 %vm213_vm1, %v15493_v63 }
 0x5e5   :  { %v5094_v6 = vadd.f32 %v4847_v42, %v17412_v49  ;;  %v14048_v14 = vpop.f32.mrb[105].mxu1  ;;  %14324 = vmatprep.mubr.msk.bf16.mxu0 %vm15735_vm0, %v15734_v0 }
 0x5e6   :  { %v4850_v3 = vpop.f32.mrb[106].mxu1 }
 0x5e7   :  { %v5095_v30 = vadd.f32 %v4850_v3, %v17415_v36  ;;  %v14049_v23 = vpop.f32.mrb[107].mxu1  ;;  %v17835_v19 = vadd.f32 %v5653_v59, %v5094_v6  ;;  %v5661_v28 = vpop.f32.mrb[216].mxu0  ;;  %v15496_v36 = vld [vmem:[#allocation2 + $0x150] sm:$0xff]  }
 0x5e8   :  { %v14218_v40 = vpop.f32.mrb[217].mxu0  ;;  %v15497_v23 = vld [vmem:[#allocation2 + $0x15c] sm:$0xff]  }
 0x5e9   :  { %14155 = vmatmul.mubr.msk.bf16.gmra.mrb[212].mxu1 %vm213_vm1, %v15494_v44  ;;  %v17838_v41 = vadd.f32 %v5656_v35, %v5095_v30  ;;  %v5664_v49 = vpop.f32.mrb[218].mxu0 }
 0x5ea   :  { %14158 = vmatprep.mubr.msk.bf16.mxu1 %vm15735_vm0, %v15734_v0  ;;  %v14219_v63 = vpop.f32.mrb[219].mxu0 }
 0x5ec   :  { %v4855_v42 = vpop.f32.mrb[108].mxu1  ;;  %14325 = vmatmul.mubr.msk.bf16.gmra.mrb[68].mxu0 %vm213_vm1, %v15495_v4 }
 0x5ed   :  { %v5096_v14 = vadd.f32 %v4855_v42, %v17425_v22  ;;  %v14052_v8 = vpop.f32.mrb[109].mxu1  ;;  %14328 = vmatprep.mubr.msk.bf16.mxu0 %vm15735_vm0, %v15734_v0 }
 0x5ee   :  { %v4858_v59 = vpop.f32.mrb[110].mxu1 }
 0x5ef   :  { %v5097_v6 = vadd.f32 %v4858_v59, %v17428_v9  ;;  %v14053_v35 = vpop.f32.mrb[111].mxu1  ;;  %v17847_v44 = vadd.f32 %v5661_v28, %v5096_v14  ;;  %v5669_v3 = vpop.f32.mrb[220].mxu0  ;;  %v15498_v9 = vld [vmem:[#allocation2 + $0x158] sm:$0xff]  }
 0x5f0   :  { %v14222_v30 = vpop.f32.mrb[221].mxu0  ;;  %v15499_v35 = vld [vmem:[#allocation2 + $0x164] sm:$0xff]  }
 0x5f1   :  { %14159 = vmatmul.mubr.msk.bf16.gmra.mrb[216].mxu1 %vm213_vm1, %v15496_v36  ;;  %v17850_v40 = vadd.f32 %v5664_v49, %v5097_v6  ;;  %v5672_v22 = vpop.f32.mrb[222].mxu0 }
 0x5f2   :  { %14162 = vmatprep.mubr.msk.bf16.mxu1 %vm15735_vm0, %v15734_v0  ;;  %v14223_v8 = vpop.f32.mrb[223].mxu0 }
 0x5f4   :  { %v4863_v4 = vpop.f32.mrb[112].mxu1  ;;  %14329 = vmatmul.mubr.msk.bf16.gmra.mrb[72].mxu0 %vm213_vm1, %v15497_v23 }
 0x5f5   :  { %v5098_v63 = vadd.f32 %v4863_v4, %v17437_v11  ;;  %v14056_v42 = vpop.f32.mrb[113].mxu1  ;;  %14332 = vmatprep.mubr.msk.bf16.mxu0 %vm15735_vm0, %v15734_v0 }
 0x5f6   :  { %v4866_v28 = vpop.f32.mrb[114].mxu1 }
 0x5f7   :  { %v5099_v14 = vadd.f32 %v4866_v28, %v17440_v15  ;;  %v14057_v49 = vpop.f32.mrb[115].mxu1  ;;  %v17859_v36 = vadd.f32 %v5669_v3, %v5098_v63  ;;  %v5677_v59 = vpop.f32.mrb[224].mxu0  ;;  %v15500_v15 = vld [vmem:[#allocation2 + $0x160] sm:$0xff]  }
 0x5f8   :  { %v14226_v6 = vpop.f32.mrb[225].mxu0  ;;  %v15501_v49 = vld [vmem:[#allocation2 + $0x16c] ss:$0 sps:$4 sm:$0xff]  }
 0x5f9   :  { %14163 = vmatmul.mubr.msk.bf16.gmra.mrb[220].mxu1 %vm213_vm1, %v15498_v9  ;;  %v17862_v30 = vadd.f32 %v5672_v22, %v5099_v14  ;;  %v5680_v11 = vpop.f32.mrb[226].mxu0 }
 0x5fa   :  { %14166 = vmatprep.mubr.msk.bf16.mxu1 %vm15735_vm0, %v15734_v0  ;;  %v14227_v23 = vpop.f32.mrb[227].mxu0 }
 0x5fc   :  { %v4871_v8 = vpop.f32.mrb[116].mxu1  ;;  %14333 = vmatmul.mubr.msk.bf16.gmra.mrb[76].mxu0 %vm213_vm1, %v15499_v35 }
 0x5fd   :  { %v5100_v4 = vadd.f32 %v4871_v8, %v17449_v57  ;;  %v14060_v42 = vpop.f32.mrb[117].mxu1  ;;  %14336 = vmatprep.mubr.msk.bf16.mxu0 %vm15735_vm0, %v15734_v0 }
 0x5fe   :  { %v4874_v3 = vpop.f32.mrb[118].mxu1 }
 0x5ff   :  { %v5101_v63 = vadd.f32 %v4874_v3, %v17452_v46  ;;  %v14061_v22 = vpop.f32.mrb[119].mxu1  ;;  %v17871_v9 = vadd.f32 %v5677_v59, %v5100_v4  ;;  %v5685_v28 = vpop.f32.mrb[228].mxu0  ;;  %v15502_v46 = vld [vmem:[#allocation2 + $0x168] ss:$0 sps:$4 sm:$0xff]   ;;  %v6755_v4 = vld [vmem:[#allocation2 + $0x50] sm:$0xf] }
 0x600   :  { %v14230_v14 = vpop.f32.mrb[229].mxu0  ;;  %v6754_v3 = vld [vmem:[#allocation2 + $0x4c] sm:$0xf] }
 0x601   :  { %14167 = vmatmul.mubr.msk.bf16.gmra.mrb[224].mxu1 %vm213_vm1, %v15500_v15  ;;  %v17874_v6 = vadd.f32 %v5680_v11, %v5101_v63  ;;  %v5687_v57 = vpop.f32.mrb[230].mxu0  ;;  %v12309_v28 = vcombine.low %v6754_v3, %v6755_v4 }
 0x602   :  { %14170 = vmatprep.mubr.msk.bf16.mxu1 %vm15735_vm0, %v15734_v0  ;;  %v14231_v35 = vpop.f32.mrb[231].mxu0 }
 0x603   :  { %v15503_v35 = vld [vmem:[#allocation2 + $0x48] sm:$0xff]  }
 0x604   :  { %v4879_v23 = vpop.f32.mrb[120].mxu1  ;;  %14337 = vmatmul.mubr.msk.bf16.gmra.mrb[80].mxu0 %vm213_vm1, %v15501_v49 }
 0x605   :  { %v14064_v8 = vpop.f32.mrb[121].mxu1  ;;  %14508 = vmatprep.mubr.msk.bf16.mxu0 %vm15735_vm0, %v15734_v0 }
 0x606   :  { %v4881_v42 = vpop.f32.mrb[122].mxu1  ;;  %v15504_v8 = vld [vmem:[%s19344_s3 + $0x40] sm:$0xff]  }
 0x607   :  { %v14065_v59 = vpop.f32.mrb[123].mxu1  ;;  %v5691_v15 = vpop.f32.mrb[232].mxu0 }
 0x608   :  { %v14234_v11 = vpop.f32.mrb[233].mxu0 }
 0x609   :  { %14171 = vmatmul.mubr.msk.bf16.gmra.mrb[228].mxu1 %vm213_vm1, %v15502_v46  ;;  %v5694_v63 = vpop.f32.mrb[234].mxu0 }
 0x60a   :  { %14342 = vmatprep.mubr.msk.bf16.mxu1 %vm15735_vm0, %v15734_v0  ;;  %v14235_v22 = vpop.f32.mrb[235].mxu0 }
 0x60c   :  { %v4885_v14 = vpop.f32.mrb[124].mxu1  ;;  %14509 = vmatmul.mubr.msk.bf16.vlgmr.msra.gmra.mrb[84].mxu0 %vm213_vm1, %v12309_v28  ;;  %v15505_v28 = vld [vmem:[#allocation2 + $0x54] sm:$0xff]  }
 0x60d   :  { %v5102_v49 = vadd.f32 %v4885_v14, %v17470_v16  ;;  %v14068_v57 = vpop.f32.mrb[125].mxu1  ;;  %14512 = vmatprep.mubr.msk.bf16.mxu0 %vm15735_vm0, %v15734_v0 }
 0x60e   :  { %v4888_v23 = vpop.f32.mrb[126].mxu1 }
 0x60f   :  { %v5103_v46 = vadd.f32 %v4888_v23, %v17473_v60  ;;  %v14069_v42 = vpop.f32.mrb[127].mxu1  ;;  %v17892_v59 = vadd.f32 %v5691_v15, %v5102_v49  ;;  %v5699_v4 = vpop.f32.mrb[236].mxu0 }
 0x610   :  { %v14238_v3 = vpop.f32.mrb[237].mxu0 }
 0x611   :  { %14343 = vmatmul.mubr.msk.bf16.vlgmr.msra.gmra.mrb[232].mxu1 %vm213_vm1, %v15503_v35  ;;  %v17895_v16 = vadd.f32 %v5694_v63, %v5103_v46  ;;  %v5702_v11 = vpop.f32.mrb[238].mxu0  ;;  %v15506_v35 = vld [vmem:[#allocation2 + $0x50] sm:$0xff]  }
 0x612   :  { %14673 = vmatpush3.bf16.msra.mxu1 %v15504_v8  ;;  %14346 = vmatprep.mubr.msk.bf16.mxu1 %vm15735_vm0, %v15734_v0  ;;  %v14239_v22 = vpop.f32.mrb[239].mxu0 }
 0x613   :  { %14974 = vmatprep.subr.bf16.mxu1 %v15734_v0  ;;  %v15507_v22 = vld [vmem:[#allocation2 + $0x5c] sm:$0xff]  }
 0x614   :  { %v4893_v14 = vpop.f32.mrb[128].mxu1  ;;  %14513 = vmatmul.mubr.msk.bf16.gmra.mrb[88].mxu0 %vm213_vm1, %v15505_v28 }
 0x615   :  { %v5104_v60 = vadd.f32 %v4893_v14, %v17483_v58  ;;  %v14072_v15 = vpop.f32.mrb[129].mxu1  ;;  %14516 = vmatprep.mubr.msk.bf16.mxu0 %vm15735_vm0, %v15734_v0 }
 0x616   :  { %v4896_v49 = vpop.f32.mrb[130].mxu1  ;;  %v15508_v15 = vld [vmem:[#allocation2 + $0x58] sm:$0xff]  }
 0x617   :  { %v5105_v63 = vadd.f32 %v4896_v49, %v17486_v5  ;;  %v14073_v57 = vpop.f32.mrb[131].mxu1  ;;  %v17905_v23 = vadd.f32 %v5699_v4, %v5104_v60  ;;  %v5707_v8 = vpop.f32.mrb[240].mxu0 }
 0x618   :  { %v14242_v46 = vpop.f32.mrb[241].mxu0 }
 0x619   :  { %14347 = vmatmul.mubr.msk.bf16.gmra.mrb[236].mxu1 %vm213_vm1, %v15506_v35  ;;  %v17908_v42 = vadd.f32 %v5702_v11, %v5105_v63  ;;  %v5710_v58 = vpop.f32.mrb[242].mxu0  ;;  %v15509_v46 = vld [vmem:[#allocation2 + $0x64] sm:$0xff]  }
 0x61a   :  { %14350 = vmatprep.mubr.msk.bf16.mxu1 %vm15735_vm0, %v15734_v0  ;;  %v14243_v3 = vpop.f32.mrb[243].mxu0 }
 0x61c   :  { %v4901_v28 = vpop.f32.mrb[132].mxu1  ;;  %14517 = vmatmul.mubr.msk.bf16.gmra.mrb[92].mxu0 %vm213_vm1, %v15507_v22 }
 0x61d   :  { %v5106_v14 = vadd.f32 %v4901_v28, %v17495_v1  ;;  %v14076_v5 = vpop.f32.mrb[133].mxu1  ;;  %14520 = vmatprep.mubr.msk.bf16.mxu0 %vm15735_vm0, %v15734_v0 }
 0x61e   :  { %v4904_v4 = vpop.f32.mrb[134].mxu1 }
 0x61f   :  { %v5107_v60 = vadd.f32 %v4904_v4, %v17498_v47  ;;  %v14077_v11 = vpop.f32.mrb[135].mxu1  ;;  %v17917_v49 = vadd.f32 %v5707_v8, %v5106_v14  ;;  %v5715_v63 = vpop.f32.mrb[244].mxu0  ;;  %v15510_v4 = vld [vmem:[#allocation2 + $0x60] sm:$0xff]  }
 0x620   :  { %v14246_v57 = vpop.f32.mrb[245].mxu0 }
 0x621   :  { %14351 = vmatmul.mubr.msk.bf16.gmra.mrb[240].mxu1 %vm213_vm1, %v15508_v15  ;;  %v17920_v35 = vadd.f32 %v5710_v58, %v5107_v60  ;;  %v5718_v1 = vpop.f32.mrb[246].mxu0 }
 0x622   :  { %14354 = vmatprep.mubr.msk.bf16.mxu1 %vm15735_vm0, %v15734_v0  ;;  %v14247_v3 = vpop.f32.mrb[247].mxu0 }
 0x624   :  { %v4909_v22 = vpop.f32.mrb[136].mxu1  ;;  %14521 = vmatmul.mubr.msk.bf16.gmra.mrb[96].mxu0 %vm213_vm1, %v15509_v46 }
 0x625   :  { %v5108_v28 = vadd.f32 %v4909_v22, %v17507_v18  ;;  %v14080_v47 = vpop.f32.mrb[137].mxu1  ;;  %14524 = vmatprep.mubr.msk.bf16.mxu0 %vm15735_vm0, %v15734_v0  ;;  %v15511_v18 = vld [vmem:[#allocation2 + $0x6c] sm:$0xff]  }
 0x626   :  { %v4912_v8 = vpop.f32.mrb[138].mxu1  ;;  %v15512_v47 = vld [vmem:[#allocation2 + $0x68] sm:$0xff]  }
 0x627   :  { %v17928_v14 = vadd.f32 %v5715_v63, %v5108_v28  ;;  %v5109_v58 = vadd.f32 %v4912_v8, %v17510_v54  ;;  %v14081_v5 = vpop.f32.mrb[139].mxu1  ;;  %v5723_v60 = vpop.f32.mrb[248].mxu0 }
 0x628   :  { %v14250_v15 = vpop.f32.mrb[249].mxu0 }
 0x629   :  { %v17931_v11 = vadd.f32 %v5718_v1, %v5109_v58  ;;  %14355 = vmatmul.mubr.msk.bf16.gmra.mrb[244].mxu1 %vm213_vm1, %v15510_v4  ;;  %v5726_v57 = vpop.f32.mrb[250].mxu0 }
 0x62a   :  { %14358 = vmatprep.mubr.msk.bf16.mxu1 %vm15735_vm0, %v15734_v0  ;;  %v14251_v46 = vpop.f32.mrb[251].mxu0 }
 0x62c   :  { %v4917_v3 = vpop.f32.mrb[140].mxu1  ;;  %14525 = vmatmul.mubr.msk.bf16.gmra.mrb[100].mxu0 %vm213_vm1, %v15511_v18  ;;  %v15513_v18 = vld [vmem:[#allocation2 + $0x74] sm:$0xff]  }
 0x62d   :  { %v5110_v63 = vadd.f32 %v4917_v3, %v17518_v21  ;;  %v14084_v22 = vpop.f32.mrb[141].mxu1  ;;  %14528 = vmatprep.mubr.msk.bf16.mxu0 %vm15735_vm0, %v15734_v0 }
 0x62e   :  { %v4920_v54 = vpop.f32.mrb[142].mxu1  ;;  %v15514_v22 = vld [vmem:[#allocation2 + $0x70] sm:$0xff]  }
 0x62f   :  { %v5111_v1 = vadd.f32 %v4920_v54, %v17521_v17  ;;  %v14085_v28 = vpop.f32.mrb[143].mxu1  ;;  %v17941_v8 = vadd.f32 %v5723_v60, %v5110_v63  ;;  %v5731_v58 = vpop.f32.mrb[252].mxu0 }
 0x630   :  { %v14254_v5 = vpop.f32.mrb[253].mxu0 }
 0x631   :  { %14359 = vmatmul.mubr.msk.bf16.gmra.mrb[248].mxu1 %vm213_vm1, %v15512_v47  ;;  %v17944_v4 = vadd.f32 %v5726_v57, %v5111_v1  ;;  %v5734_v21 = vpop.f32.mrb[254].mxu0 }
 0x632   :  { %14362 = vmatprep.mubr.msk.bf16.mxu1 %vm15735_vm0, %v15734_v0  ;;  %v14255_v15 = vpop.f32.mrb[255].mxu0 }
 0x633   :  { %v15515_v15 = vld [vmem:[#allocation2 + $0x7c] sm:$0xff]  }
 0x634   :  { %v4925_v46 = vpop.f32.mrb[144].mxu1  ;;  %14529 = vmatmul.mubr.msk.bf16.gmra.mrb[104].mxu0 %vm213_vm1, %v15513_v18 }
 0x635   :  { %v5112_v3 = vadd.f32 %v4925_v46, %v17531_v34  ;;  %v14088_v17 = vpop.f32.mrb[145].mxu1  ;;  %14532 = vmatprep.mubr.msk.bf16.mxu0 %vm15735_vm0, %v15734_v0 }
 0x636   :  { %v4928_v60 = vpop.f32.mrb[146].mxu1  ;;  %v15516_v17 = vld [vmem:[#allocation2 + $0x78] sm:$0xff]  }
 0x637   :  { %v5113_v63 = vadd.f32 %v4928_v60, %v17534_v38  ;;  %v14089_v57 = vpop.f32.mrb[147].mxu1  ;;  %v17953_v54 = vadd.f32 %v5731_v58, %v5112_v3  ;;  %v5739_v1 = vpop.f32.mrb[0].mxu0 }
 0x638   :  { %v14258_v28 = vpop.f32.mrb[1].mxu0 }
 0x639   :  { %14363 = vmatmul.mubr.msk.bf16.gmra.mrb[252].mxu1 %vm213_vm1, %v15514_v22  ;;  %v17956_v47 = vadd.f32 %v5734_v21, %v5113_v63  ;;  %v5742_v34 = vpop.f32.mrb[2].mxu0 }
 0x63a   :  { %14366 = vmatprep.mubr.msk.bf16.mxu1 %vm15735_vm0, %v15734_v0  ;;  %v14259_v5 = vpop.f32.mrb[3].mxu0 }
 0x63b   :  { %v15517_v5 = vld [vmem:[#allocation2 + $0x84] sm:$0xff]  }
 0x63c   :  { %v4933_v18 = vpop.f32.mrb[148].mxu1  ;;  %14533 = vmatmul.mubr.msk.bf16.gmra.mrb[108].mxu0 %vm213_vm1, %v15515_v15 }
 0x63d   :  { %v5114_v46 = vadd.f32 %v4933_v18, %v17543_v13  ;;  %v14092_v38 = vpop.f32.mrb[149].mxu1  ;;  %14536 = vmatprep.mubr.msk.bf16.mxu0 %vm15735_vm0, %v15734_v0 }
 0x63e   :  { %v4936_v58 = vpop.f32.mrb[150].mxu1  ;;  %v15518_v38 = vld [vmem:[#allocation2 + $0x80] sm:$0xff]  }
 0x63f   :  { %v5115_v3 = vadd.f32 %v4936_v58, %v17546_v12  ;;  %v14093_v21 = vpop.f32.mrb[151].mxu1  ;;  %v17965_v60 = vadd.f32 %v5739_v1, %v5114_v46  ;;  %v5747_v63 = vpop.f32.mrb[4].mxu0 }
 0x640   :  { %v14262_v57 = vpop.f32.mrb[5].mxu0 }
 0x641   :  { %14367 = vmatmul.mubr.msk.bf16.gmra.mrb[0].mxu1 %vm213_vm1, %v15516_v17  ;;  %v17968_v22 = vadd.f32 %v5742_v34, %v5115_v3  ;;  %v5750_v13 = vpop.f32.mrb[6].mxu0 }
 0x642   :  { %14370 = vmatprep.mubr.msk.bf16.mxu1 %vm15735_vm0, %v15734_v0  ;;  %v14263_v28 = vpop.f32.mrb[7].mxu0 }
 0x643   :  { %v15519_v28 = vld [vmem:[#allocation2 + $0x8c] sm:$0xff]  }
 0x644   :  { %v4941_v15 = vpop.f32.mrb[152].mxu1  ;;  %14537 = vmatmul.mubr.msk.bf16.gmra.mrb[112].mxu0 %vm213_vm1, %v15517_v5 }
 0x645   :  { %v5116_v18 = vadd.f32 %v4941_v15, %v17555_v45  ;;  %v14096_v12 = vpop.f32.mrb[153].mxu1  ;;  %14540 = vmatprep.mubr.msk.bf16.mxu0 %vm15735_vm0, %v15734_v0 }
 0x646   :  { %v4944_v1 = vpop.f32.mrb[154].mxu1 }
 0x647   :  { %v5117_v46 = vadd.f32 %v4944_v1, %v17558_v33  ;;  %v14097_v34 = vpop.f32.mrb[155].mxu1  ;;  %v17977_v58 = vadd.f32 %v5747_v63, %v5116_v18  ;;  %v5755_v3 = vpop.f32.mrb[8].mxu0  ;;  %v15520_v18 = vld [vmem:[#allocation2 + $0x88] sm:$0xff]  }
 0x648   :  { %v14266_v21 = vpop.f32.mrb[9].mxu0  ;;  %v15521_v34 = vld [vmem:[#allocation2 + $0x94] sm:$0xff]  }
 0x649   :  { %14371 = vmatmul.mubr.msk.bf16.gmra.mrb[4].mxu1 %vm213_vm1, %v15518_v38  ;;  %v17980_v17 = vadd.f32 %v5750_v13, %v5117_v46  ;;  %v5757_v45 = vpop.f32.mrb[10].mxu0 }
 0x64a   :  { %14374 = vmatprep.mubr.msk.bf16.mxu1 %vm15735_vm0, %v15734_v0  ;;  %v14267_v57 = vpop.f32.mrb[11].mxu0  ;;  %v15522_v45 = vld [vmem:[#allocation2 + $0x90] sm:$0xff]  }
 0x64c   :  { %v4949_v5 = vpop.f32.mrb[156].mxu1  ;;  %14541 = vmatmul.mubr.msk.bf16.gmra.mrb[116].mxu0 %vm213_vm1, %v15519_v28 }
 0x64d   :  { %v14100_v15 = vpop.f32.mrb[157].mxu1  ;;  %14544 = vmatprep.mubr.msk.bf16.mxu0 %vm15735_vm0, %v15734_v0 }
 0x64e   :  { %v4951_v33 = vpop.f32.mrb[158].mxu1 }
 0x64f   :  { %v14101_v63 = vpop.f32.mrb[159].mxu1  ;;  %v5761_v12 = vpop.f32.mrb[12].mxu0 }
 0x650   :  { %v14270_v1 = vpop.f32.mrb[13].mxu0 }
 0x651   :  { %14375 = vmatmul.mubr.msk.bf16.gmra.mrb[8].mxu1 %vm213_vm1, %v15520_v18  ;;  %v5764_v13 = vpop.f32.mrb[14].mxu0 }
 0x652   :  { %14378 = vmatprep.mubr.msk.bf16.mxu1 %vm15735_vm0, %v15734_v0  ;;  %v14271_v46 = vpop.f32.mrb[15].mxu0 }
 0x653   :  { %v15523_v46 = vld [vmem:[#allocation2 + $0x9c] sm:$0xff]  }
 0x654   :  { %v4955_v38 = vpop.f32.mrb[160].mxu1  ;;  %14545 = vmatmul.mubr.msk.bf16.gmra.mrb[120].mxu0 %vm213_vm1, %v15521_v34 }
 0x655   :  { %v5118_v3 = vadd.f32 %v4955_v38, %v17573_v10  ;;  %v14104_v21 = vpop.f32.mrb[161].mxu1  ;;  %14548 = vmatprep.mubr.msk.bf16.mxu0 %vm15735_vm0, %v15734_v0 }
 0x656   :  { %v4958_v57 = vpop.f32.mrb[162].mxu1 }
 0x657   :  { %v5119_v28 = vadd.f32 %v4958_v57, %v17576_v26  ;;  %v14105_v5 = vpop.f32.mrb[163].mxu1  ;;  %v17995_v15 = vadd.f32 %v5761_v12, %v5118_v3  ;;  %v5769_v33 = vpop.f32.mrb[16].mxu0  ;;  %v15524_v3 = vld [vmem:[#allocation2 + $0x98] sm:$0xff]  }
 0x658   :  { %v14274_v63 = vpop.f32.mrb[17].mxu0 }
 0x659   :  { %14379 = vmatmul.mubr.msk.bf16.gmra.mrb[12].mxu1 %vm213_vm1, %v15522_v45  ;;  %v17998_v18 = vadd.f32 %v5764_v13, %v5119_v28  ;;  %v5772_v10 = vpop.f32.mrb[18].mxu0 }
 0x65a   :  { %14382 = vmatprep.mubr.msk.bf16.mxu1 %vm15735_vm0, %v15734_v0  ;;  %v14275_v1 = vpop.f32.mrb[19].mxu0 }
 0x65b   :  { %v15525_v1 = vld [vmem:[#allocation2 + $0xa4] sm:$0xff]  }
 0x65c   :  { %v4963_v34 = vpop.f32.mrb[164].mxu1  ;;  %14549 = vmatmul.mubr.msk.bf16.gmra.mrb[124].mxu0 %vm213_vm1, %v15523_v46 }
 0x65d   :  { %v5120_v38 = vadd.f32 %v4963_v34, %v17585_v2  ;;  %v14108_v21 = vpop.f32.mrb[165].mxu1  ;;  %14552 = vmatprep.mubr.msk.bf16.mxu0 %vm15735_vm0, %v15734_v0 }
 0x65e   :  { %v4966_v26 = vpop.f32.mrb[166].mxu1  ;;  %v15526_v21 = vld [vmem:[#allocation2 + $0xa0] sm:$0xff]  }
 0x65f   :  { %v5121_v12 = vadd.f32 %v4966_v26, %v17588_v43  ;;  %v14109_v13 = vpop.f32.mrb[167].mxu1  ;;  %v18007_v45 = vadd.f32 %v5769_v33, %v5120_v38  ;;  %v5777_v57 = vpop.f32.mrb[20].mxu0 }
 0x660   :  { %v14278_v28 = vpop.f32.mrb[21].mxu0 }
 0x661   :  { %14383 = vmatmul.mubr.msk.bf16.gmra.mrb[16].mxu1 %vm213_vm1, %v15524_v3  ;;  %v18010_v5 = vadd.f32 %v5772_v10, %v5121_v12  ;;  %v5780_v2 = vpop.f32.mrb[22].mxu0  ;;  %v15527_v28 = vld [vmem:[#allocation2 + $0xac] sm:$0xff]  }
 0x662   :  { %14386 = vmatprep.mubr.msk.bf16.mxu1 %vm15735_vm0, %v15734_v0  ;;  %v14279_v63 = vpop.f32.mrb[23].mxu0 }
 0x664   :  { %v4971_v46 = vpop.f32.mrb[168].mxu1  ;;  %14553 = vmatmul.mubr.msk.bf16.gmra.mrb[128].mxu0 %vm213_vm1, %v15525_v1 }
 0x665   :  { %v5122_v34 = vadd.f32 %v4971_v46, %v17597_v29  ;;  %v14112_v43 = vpop.f32.mrb[169].mxu1  ;;  %14556 = vmatprep.mubr.msk.bf16.mxu0 %vm15735_vm0, %v15734_v0 }
 0x666   :  { %v4974_v33 = vpop.f32.mrb[170].mxu1 }
 0x667   :  { %v5123_v38 = vadd.f32 %v4974_v33, %v17600_v39  ;;  %v14113_v10 = vpop.f32.mrb[171].mxu1  ;;  %v18019_v26 = vadd.f32 %v5777_v57, %v5122_v34  ;;  %v5785_v12 = vpop.f32.mrb[24].mxu0  ;;  %v15528_v33 = vld [vmem:[#allocation2 + $0xa8] sm:$0xff]  }
 0x668   :  { %v14282_v13 = vpop.f32.mrb[25].mxu0 }
 0x669   :  { %14387 = vmatmul.mubr.msk.bf16.gmra.mrb[20].mxu1 %vm213_vm1, %v15526_v21  ;;  %v18022_v3 = vadd.f32 %v5780_v2, %v5123_v38  ;;  %v5788_v29 = vpop.f32.mrb[26].mxu0 }
 0x66a   :  { %14390 = vmatprep.mubr.msk.bf16.mxu1 %vm15735_vm0, %v15734_v0  ;;  %v14283_v63 = vpop.f32.mrb[27].mxu0 }
 0x66c   :  { %v4979_v1 = vpop.f32.mrb[172].mxu1  ;;  %14557 = vmatmul.mubr.msk.bf16.gmra.mrb[132].mxu0 %vm213_vm1, %v15527_v28 }
 0x66d   :  { %v5124_v46 = vadd.f32 %v4979_v1, %v17609_v20  ;;  %v14116_v39 = vpop.f32.mrb[173].mxu1  ;;  %14560 = vmatprep.mubr.msk.bf16.mxu0 %vm15735_vm0, %v15734_v0  ;;  %v15529_v20 = vld [vmem:[#allocation2 + $0xb4] sm:$0xff]  }
 0x66e   :  { %v4982_v57 = vpop.f32.mrb[174].mxu1  ;;  %v15530_v39 = vld [vmem:[#allocation2 + $0xb0] sm:$0xff]  }
 0x66f   :  { %v18030_v34 = vadd.f32 %v5785_v12, %v5124_v46  ;;  %v5125_v2 = vadd.f32 %v4982_v57, %v17612_v24  ;;  %v14117_v43 = vpop.f32.mrb[175].mxu1  ;;  %v5793_v38 = vpop.f32.mrb[28].mxu0 }
 0x670   :  { %v14286_v21 = vpop.f32.mrb[29].mxu0 }
 0x671   :  { %v18033_v10 = vadd.f32 %v5788_v29, %v5125_v2  ;;  %14391 = vmatmul.mubr.msk.bf16.gmra.mrb[24].mxu1 %vm213_vm1, %v15528_v33  ;;  %v5796_v13 = vpop.f32.mrb[30].mxu0 }
 0x672   :  { %14394 = vmatprep.mubr.msk.bf16.mxu1 %vm15735_vm0, %v15734_v0  ;;  %v14287_v28 = vpop.f32.mrb[31].mxu0 }
 0x674   :  { %v4987_v63 = vpop.f32.mrb[176].mxu1  ;;  %14561 = vmatmul.mubr.msk.bf16.gmra.mrb[136].mxu0 %vm213_vm1, %v15529_v20  ;;  %v15531_v20 = vld [vmem:[#allocation2 + $0xbc] sm:$0xff]  }
 0x675   :  { %v5126_v12 = vadd.f32 %v4987_v63, %v17620_v56  ;;  %v14120_v1 = vpop.f32.mrb[177].mxu1  ;;  %14564 = vmatprep.mubr.msk.bf16.mxu0 %vm15735_vm0, %v15734_v0 }
 0x676   :  { %v4990_v24 = vpop.f32.mrb[178].mxu1  ;;  %v15532_v1 = vld [vmem:[#allocation2 + $0xb8] sm:$0xff]  }
 0x677   :  { %v5127_v29 = vadd.f32 %v4990_v24, %v17623_v61  ;;  %v14121_v46 = vpop.f32.mrb[179].mxu1  ;;  %v18043_v57 = vadd.f32 %v5793_v38, %v5126_v12  ;;  %v5801_v2 = vpop.f32.mrb[32].mxu0 }
 0x678   :  { %v14290_v43 = vpop.f32.mrb[33].mxu0 }
 0x679   :  { %14395 = vmatmul.mubr.msk.bf16.gmra.mrb[28].mxu1 %vm213_vm1, %v15530_v39  ;;  %v18046_v33 = vadd.f32 %v5796_v13, %v5127_v29  ;;  %v5804_v56 = vpop.f32.mrb[34].mxu0 }
 0x67a   :  { %14398 = vmatprep.mubr.msk.bf16.mxu1 %vm15735_vm0, %v15734_v0  ;;  %v14291_v21 = vpop.f32.mrb[35].mxu0 }
 0x67b   :  { %v15533_v21 = vld [vmem:[#allocation2 + $0xc4] sm:$0xff]  }
 0x67c   :  { %v4995_v28 = vpop.f32.mrb[180].mxu1  ;;  %14565 = vmatmul.mubr.msk.bf16.gmra.mrb[140].mxu0 %vm213_vm1, %v15531_v20 }
 0x67d   :  { %v5128_v63 = vadd.f32 %v4995_v28, %v17633_v55  ;;  %v14124_v61 = vpop.f32.mrb[181].mxu1  ;;  %14568 = vmatprep.mubr.msk.bf16.mxu0 %vm15735_vm0, %v15734_v0 }
 0x67e   :  { %v4998_v38 = vpop.f32.mrb[182].mxu1  ;;  %v15534_v61 = vld [vmem:[#allocation2 + $0xc0] sm:$0xff]  }
 0x67f   :  { %v5129_v12 = vadd.f32 %v4998_v38, %v17636_v25  ;;  %v14125_v13 = vpop.f32.mrb[183].mxu1  ;;  %v18055_v24 = vadd.f32 %v5801_v2, %v5128_v63  ;;  %v5809_v29 = vpop.f32.mrb[36].mxu0 }
 0x680   :  { %v14294_v46 = vpop.f32.mrb[37].mxu0 }
 0x681   :  { %14399 = vmatmul.mubr.msk.bf16.gmra.mrb[32].mxu1 %vm213_vm1, %v15532_v1  ;;  %v18058_v39 = vadd.f32 %v5804_v56, %v5129_v12  ;;  %v5812_v55 = vpop.f32.mrb[38].mxu0 }
 0x682   :  { %14402 = vmatprep.mubr.msk.bf16.mxu1 %vm15735_vm0, %v15734_v0  ;;  %v14295_v43 = vpop.f32.mrb[39].mxu0 }
 0x683   :  { %19379 = vst [vmem:[#allocation10_spill] sm:$0xff] %v18058_v39  ;;  %v15535_v43 = vld [vmem:[#allocation2 + $0xcc] sm:$0xff]  }
 0x684   :  { %v5003_v20 = vpop.f32.mrb[184].mxu1  ;;  %14569 = vmatmul.mubr.msk.bf16.gmra.mrb[144].mxu0 %vm213_vm1, %v15533_v21 }
 0x685   :  { %v5130_v28 = vadd.f32 %v5003_v20, %v17645_v62  ;;  %v14128_v25 = vpop.f32.mrb[185].mxu1  ;;  %14572 = vmatprep.mubr.msk.bf16.mxu0 %vm15735_vm0, %v15734_v0  ;;  %v19382_v20 = vld [vmem:[#allocation12_spill] sm:$0xff] }
 0x686   :  { %v5006_v2 = vpop.f32.mrb[186].mxu1 }
 0x687   :  { %v5131_v63 = vadd.f32 %v5006_v2, %v17648_v37  ;;  %v14129_v56 = vpop.f32.mrb[187].mxu1  ;;  %v18067_v38 = vadd.f32 %v5809_v29, %v5130_v28  ;;  %v5817_v12 = vpop.f32.mrb[40].mxu0  ;;  %v19383_v28 = vld [vmem:[#allocation13_spill] sm:$0xff] }
 0x688   :  { %v14298_v13 = vpop.f32.mrb[41].mxu0 }
 0x689   :  { %19380 = vst [vmem:[#allocation11_spill] sm:$0xff] %v18067_v38  ;;  %14403 = vmatmul.mubr.msk.bf16.gmra.mrb[36].mxu1 %vm213_vm1, %v15534_v61  ;;  %v18070_v1 = vadd.f32 %v5812_v55, %v5131_v63  ;;  %v5820_v62 = vpop.f32.mrb[42].mxu0  ;;  %v15536_v63 = vld [vmem:[#allocation2 + $0xc8] sm:$0xff]  }
 0x68a   :  { %14406 = vmatprep.mubr.msk.bf16.mxu1 %vm15735_vm0, %v15734_v0  ;;  %v14299_v46 = vpop.f32.mrb[43].mxu0 }
 0x68b   :  { %19381 = vst [vmem:[#allocation14_spill] sm:$0xff] %v18070_v1 }
 0x68c   :  { %v5011_v21 = vpop.f32.mrb[188].mxu1  ;;  %14573 = vmatmul.mubr.msk.bf16.gmra.mrb[148].mxu0 %vm213_vm1, %v15535_v43 }
 0x68d   :  { %v5132_v25 = vadd.f32 %v5011_v21, %v19382_v20  ;;  %v14132_v37 = vpop.f32.mrb[189].mxu1  ;;  %14576 = vmatprep.mubr.msk.bf16.mxu0 %vm15735_vm0, %v15734_v0  ;;  %v15537_v20 = vld [vmem:[#allocation2 + $0xd4] sm:$0xff]  }
 0x68e   :  { %v5014_v29 = vpop.f32.mrb[190].mxu1 }
 0x68f   :  { %v5133_v2 = vadd.f32 %v5014_v29, %v19383_v28  ;;  %v14133_v55 = vpop.f32.mrb[191].mxu1  ;;  %v18079_v56 = vadd.f32 %v5817_v12, %v5132_v25  ;;  %v5825_v61 = vpop.f32.mrb[44].mxu0  ;;  %v15538_v25 = vld [vmem:[#allocation2 + $0xd0] sm:$0xff]  }
 0x690   :  { %v14302_v13 = vpop.f32.mrb[45].mxu0 }
 0x691   :  { %19384 = vst [vmem:[#allocation12_spill] sm:$0xff] %v18079_v56  ;;  %14407 = vmatmul.mubr.msk.bf16.gmra.mrb[40].mxu1 %vm213_vm1, %v15536_v63  ;;  %v18082_v46 = vadd.f32 %v5820_v62, %v5133_v2  ;;  %v5827_v21 = vpop.f32.mrb[46].mxu0  ;;  %v15539_v63 = vld [vmem:[#allocation2 + $0xdc] sm:$0xff]   ;;  %v19386_v13 = vld [vmem:[#allocation3_spill] sm:$0xff]  ;;  %v19388_v56 = vld [vmem:[#allocation5_spill] sm:$0xff] }
 0x692   :  { %14410 = vmatprep.mubr.msk.bf16.mxu1 %vm15735_vm0, %v15734_v0  ;;  %v14303_v43 = vpop.f32.mrb[47].mxu0 }
 0x693   :  { %19385 = vst [vmem:[#allocation13_spill] sm:$0xff] %v18082_v46 }
 0x694   :  { %v5019_v37 = vpop.f32.mrb[192].mxu1  ;;  %14577 = vmatmul.mubr.msk.bf16.gmra.mrb[152].mxu0 %vm213_vm1, %v15537_v20  ;;  %v15540_v20 = vld [vmem:[#allocation2 + $0xd8] sm:$0xff]  }
 0x695   :  { %v14136_v1 = vpop.f32.mrb[193].mxu1  ;;  %14580 = vmatprep.mubr.msk.bf16.mxu0 %vm15735_vm0, %v15734_v0 }
 0x696   :  { %v5021_v29 = vpop.f32.mrb[194].mxu1  ;;  %v15570_v1 = vld [vmem:[%s19346_s5 + $0x10] sm:$0xff]  }
 0x697   :  { %v14137_v12 = vpop.f32.mrb[195].mxu1  ;;  %v5831_v28 = vpop.f32.mrb[48].mxu0  ;;  %14839 = vmatpush3.bf16.msra.mxu0 %v15570_v1  ;;  %v19387_v29 = vld [vmem:[#allocation4_spill] sm:$0xff] }
 0x698   :  { %v14306_v55 = vpop.f32.mrb[49].mxu0  ;;  %14840 = vmatprep.subr.bf16.mxu0 %v15734_v0 }
 0x699   :  { %14411 = vmatmul.mubr.msk.bf16.gmra.mrb[44].mxu1 %vm213_vm1, %v15538_v25  ;;  %v5834_v62 = vpop.f32.mrb[50].mxu0 }
 0x69a   :  { %14414 = vmatprep.mubr.msk.bf16.mxu1 %vm15735_vm0, %v15734_v0  ;;  %v14307_v2 = vpop.f32.mrb[51].mxu0 }
 0x69c   :  { %v5025_v61 = vpop.f32.mrb[196].mxu1  ;;  %14581 = vmatmul.mubr.msk.bf16.gmra.mrb[156].mxu0 %vm213_vm1, %v15539_v63 }
 0x69d   :  { %v5134_v21 = vadd.f32 %v5025_v61, %v19386_v13  ;;  %v14140_v43 = vpop.f32.mrb[197].mxu1  ;;  %14584 = vmatprep.mubr.msk.bf16.mxu0 %vm15735_vm0, %v15734_v0  ;;  %v15541_v13 = vld [vmem:[#allocation2 + $0xe4] sm:$0xff]  }
 0x69e   :  { %v5028_v37 = vpop.f32.mrb[198].mxu1 }
 0x69f   :  { %v5135_v12 = vadd.f32 %v5028_v37, %v19387_v29  ;;  %v14141_v25 = vpop.f32.mrb[199].mxu1  ;;  %v18101_v55 = vadd.f32 %v5831_v28, %v5134_v21  ;;  %v5839_v2 = vpop.f32.mrb[52].mxu0 }
 0x6a0   :  { %v14310_v46 = vpop.f32.mrb[53].mxu0 }
 0x6a1   :  { %14415 = vmatmul.mubr.msk.bf16.gmra.mrb[48].mxu1 %vm213_vm1, %v15540_v20  ;;  %v18104_v1 = vadd.f32 %v5834_v62, %v5135_v12  ;;  %v5842_v61 = vpop.f32.mrb[54].mxu0  ;;  %v19389_v46 = vld [vmem:[#allocation6_spill] sm:$0xff]  ;;  %v15542_v20 = vld [vmem:[#allocation2 + $0xe0] sm:$0xff]  }
 0x6a2   :  { %14418 = vmatprep.mubr.msk.bf16.mxu1 %vm15735_vm0, %v15734_v0  ;;  %v14311_v63 = vpop.f32.mrb[55].mxu0 }
 0x6a3   :  { %v15543_v63 = vld [vmem:[#allocation2 + $0xec] sm:$0xff]  }
 0x6a4   :  { %v5033_v43 = vpop.f32.mrb[200].mxu1  ;;  %14585 = vmatmul.mubr.msk.bf16.gmra.mrb[160].mxu0 %vm213_vm1, %v15541_v13 }
 0x6a5   :  { %v5136_v38 = vadd.f32 %v5033_v43, %v19388_v56  ;;  %v14144_v39 = vpop.f32.mrb[201].mxu1  ;;  %14588 = vmatprep.mubr.msk.bf16.mxu0 %vm15735_vm0, %v15734_v0 }
 0x6a6   :  { %v5036_v28 = vpop.f32.mrb[202].mxu1 }
 0x6a7   :  { %v5137_v21 = vadd.f32 %v5036_v28, %v19389_v46  ;;  %v14145_v62 = vpop.f32.mrb[203].mxu1  ;;  %v18113_v37 = vadd.f32 %v5839_v2, %v5136_v38  ;;  %v5847_v29 = vpop.f32.mrb[56].mxu0  ;;  %v19391_v2 = vld [vmem:[#allocation7_spill] sm:$0xff] }
 0x6a8   :  { %v14314_v12 = vpop.f32.mrb[57].mxu0 }
 0x6a9   :  { %14419 = vmatmul.mubr.msk.bf16.gmra.mrb[52].mxu1 %vm213_vm1, %v15542_v20  ;;  %v18116_v25 = vadd.f32 %v5842_v61, %v5137_v21  ;;  %v5850_v56 = vpop.f32.mrb[58].mxu0  ;;  %v15544_v21 = vld [vmem:[#allocation2 + $0xe8] sm:$0xff]  }
 0x6aa   :  { %14422 = vmatprep.mubr.msk.bf16.mxu1 %vm15735_vm0, %v15734_v0  ;;  %v14315_v39 = vpop.f32.mrb[59].mxu0 }
 0x6ab   :  { %19390 = vst [vmem:[#allocation3_spill] sm:$0xff] %v18116_v25 }
 0x6ac   :  { %v5041_v13 = vpop.f32.mrb[204].mxu1  ;;  %14589 = vmatmul.mubr.msk.bf16.gmra.mrb[164].mxu0 %vm213_vm1, %v15543_v63  ;;  %v15545_v63 = vld [vmem:[#allocation2 + $0xf4] sm:$0xff]  }
 0x6ad   :  { %v5138_v43 = vadd.f32 %v5041_v13, %v17703_v50  ;;  %v14148_v28 = vpop.f32.mrb[205].mxu1  ;;  %14592 = vmatprep.mubr.msk.bf16.mxu0 %vm15735_vm0, %v15734_v0 }
 0x6ae   :  { %v5044_v38 = vpop.f32.mrb[206].mxu1 }
 0x6af   :  { %v5139_v46 = vadd.f32 %v5044_v38, %v19391_v2  ;;  %v14149_v61 = vpop.f32.mrb[207].mxu1  ;;  %v18125_v62 = vadd.f32 %v5847_v29, %v5138_v43  ;;  %v5855_v20 = vpop.f32.mrb[60].mxu0  ;;  %v15546_v2 = vld [vmem:[#allocation2 + $0xf0] sm:$0xff]  }
 0x6b0   :  { %v14318_v12 = vpop.f32.mrb[61].mxu0 }
 0x6b1   :  { %14423 = vmatmul.mubr.msk.bf16.gmra.mrb[56].mxu1 %vm213_vm1, %v15544_v21  ;;  %v18128_v39 = vadd.f32 %v5850_v56, %v5139_v46  ;;  %v5858_v50 = vpop.f32.mrb[62].mxu0  ;;  %v15547_v21 = vld [vmem:[#allocation2 + $0xfc] sm:$0xff]  }
 0x6b2   :  { %14426 = vmatprep.mubr.msk.bf16.mxu1 %vm15735_vm0, %v15734_v0  ;;  %v14319_v13 = vpop.f32.mrb[63].mxu0 }
 0x6b4   :  { %v5049_v28 = vpop.f32.mrb[208].mxu1  ;;  %14593 = vmatmul.mubr.msk.bf16.gmra.mrb[168].mxu0 %vm213_vm1, %v15545_v63 }
 0x6b5   :  { %v5140_v25 = vadd.f32 %v5049_v28, %v17715_v32  ;;  %v14152_v38 = vpop.f32.mrb[209].mxu1  ;;  %14596 = vmatprep.mubr.msk.bf16.mxu0 %vm15735_vm0, %v15734_v0 }
 0x6b6   :  { %v5052_v29 = vpop.f32.mrb[210].mxu1 }
 0x6b7   :  { %v5141_v43 = vadd.f32 %v5052_v29, %v17718_v31  ;;  %v14153_v56 = vpop.f32.mrb[211].mxu1  ;;  %v18137_v46 = vadd.f32 %v5855_v20, %v5140_v25  ;;  %v5863_v61 = vpop.f32.mrb[64].mxu0  ;;  %v15548_v20 = vld [vmem:[#allocation2 + $0xf8] sm:$0xff]  }
 0x6b8   :  { %v14322_v12 = vpop.f32.mrb[65].mxu0  ;;  %v15549_v56 = vld [vmem:[#allocation2 + $0x104] sm:$0xff]  }
 0x6b9   :  { %14427 = vmatmul.mubr.msk.bf16.gmra.mrb[60].mxu1 %vm213_vm1, %v15546_v2  ;;  %v18140_v13 = vadd.f32 %v5858_v50, %v5141_v43  ;;  %v5865_v32 = vpop.f32.mrb[66].mxu0 }
 0x6ba   :  { %14430 = vmatprep.mubr.msk.bf16.mxu1 %vm15735_vm0, %v15734_v0  ;;  %v14323_v63 = vpop.f32.mrb[67].mxu0 }
 0x6bb   :  { %19392 = vst [vmem:[#allocation4_spill] sm:$0xff] %v18140_v13  ;;  %v15550_v63 = vld [vmem:[#allocation2 + $0x100] sm:$0xff]  }
 0x6bc   :  { %v5057_v28 = vpop.f32.mrb[212].mxu1  ;;  %14597 = vmatmul.mubr.msk.bf16.gmra.mrb[172].mxu0 %vm213_vm1, %v15547_v21 }
 0x6bd   :  { %v14156_v38 = vpop.f32.mrb[213].mxu1  ;;  %14600 = vmatprep.mubr.msk.bf16.mxu0 %vm15735_vm0, %v15734_v0 }
 0x6be   :  { %v5059_v31 = vpop.f32.mrb[214].mxu1 }
 0x6bf   :  { %v14157_v25 = vpop.f32.mrb[215].mxu1  ;;  %v5869_v29 = vpop.f32.mrb[68].mxu0 }
 0x6c0   :  { %v14326_v50 = vpop.f32.mrb[69].mxu0  ;;  %v15551_v25 = vld [vmem:[#allocation2 + $0x10c] sm:$0xff]  }
 0x6c1   :  { %14431 = vmatmul.mubr.msk.bf16.gmra.mrb[64].mxu1 %vm213_vm1, %v15548_v20  ;;  %v5871_v43 = vpop.f32.mrb[70].mxu0 }
 0x6c2   :  { %14434 = vmatprep.mubr.msk.bf16.mxu1 %vm15735_vm0, %v15734_v0  ;;  %v14327_v2 = vpop.f32.mrb[71].mxu0 }
 0x6c3   :  { %v15552_v2 = vld [vmem:[#allocation2 + $0x108] sm:$0xff]  }
 0x6c4   :  { %v5063_v61 = vpop.f32.mrb[216].mxu1  ;;  %14601 = vmatmul.mubr.msk.bf16.gmra.mrb[176].mxu0 %vm213_vm1, %v15549_v56 }
 0x6c5   :  { %v14160_v12 = vpop.f32.mrb[217].mxu1  ;;  %14604 = vmatprep.mubr.msk.bf16.mxu0 %vm15735_vm0, %v15734_v0 }
 0x6c6   :  { %v5065_v21 = vpop.f32.mrb[218].mxu1 }
 0x6c7   :  { %v14161_v32 = vpop.f32.mrb[219].mxu1  ;;  %v5875_v28 = vpop.f32.mrb[72].mxu0 }
 0x6c8   :  { %v14330_v38 = vpop.f32.mrb[73].mxu0  ;;  %v15553_v32 = vld [vmem:[#allocation2 + $0x114] sm:$0xff]  }
 0x6c9   :  { %14435 = vmatmul.mubr.msk.bf16.gmra.mrb[68].mxu1 %vm213_vm1, %v15550_v63  ;;  %v5877_v31 = vpop.f32.mrb[74].mxu0 }
 0x6ca   :  { %14438 = vmatprep.mubr.msk.bf16.mxu1 %vm15735_vm0, %v15734_v0  ;;  %v14331_v20 = vpop.f32.mrb[75].mxu0 }
 0x6cb   :  { %v15554_v20 = vld [vmem:[#allocation2 + $0x110] sm:$0xff]  }
 0x6cc   :  { %v5069_v29 = vpop.f32.mrb[220].mxu1  ;;  %14605 = vmatmul.mubr.msk.bf16.gmra.mrb[180].mxu0 %vm213_vm1, %v15551_v25 }
 0x6cd   :  { %v14164_v50 = vpop.f32.mrb[221].mxu1  ;;  %14608 = vmatprep.mubr.msk.bf16.mxu0 %vm15735_vm0, %v15734_v0 }
 0x6ce   :  { %v5071_v43 = vpop.f32.mrb[222].mxu1 }
 0x6cf   :  { %v14165_v56 = vpop.f32.mrb[223].mxu1  ;;  %v5881_v61 = vpop.f32.mrb[76].mxu0 }
 0x6d0   :  { %v14334_v12 = vpop.f32.mrb[77].mxu0  ;;  %v15555_v56 = vld [vmem:[#allocation2 + $0x11c] sm:$0xff]  }
 0x6d1   :  { %14439 = vmatmul.mubr.msk.bf16.gmra.mrb[72].mxu1 %vm213_vm1, %v15552_v2  ;;  %v5883_v21 = vpop.f32.mrb[78].mxu0 }
 0x6d2   :  { %14442 = vmatprep.mubr.msk.bf16.mxu1 %vm15735_vm0, %v15734_v0  ;;  %v14335_v63 = vpop.f32.mrb[79].mxu0 }
 0x6d3   :  { %v15556_v63 = vld [vmem:[#allocation2 + $0x118] sm:$0xff]  }
 0x6d4   :  { %v5075_v28 = vpop.f32.mrb[224].mxu1  ;;  %14609 = vmatmul.mubr.msk.bf16.gmra.mrb[184].mxu0 %vm213_vm1, %v15553_v32 }
 0x6d5   :  { %v14168_v38 = vpop.f32.mrb[225].mxu1  ;;  %14612 = vmatprep.mubr.msk.bf16.mxu0 %vm15735_vm0, %v15734_v0 }
 0x6d6   :  { %v5077_v31 = vpop.f32.mrb[226].mxu1 }
 0x6d7   :  { %v14169_v25 = vpop.f32.mrb[227].mxu1  ;;  %v5887_v29 = vpop.f32.mrb[80].mxu0 }
 0x6d8   :  { %v14338_v50 = vpop.f32.mrb[81].mxu0 }
 0x6d9   :  { %14443 = vmatmul.mubr.msk.bf16.gmra.mrb[76].mxu1 %vm213_vm1, %v15554_v20  ;;  %v5889_v43 = vpop.f32.mrb[82].mxu0  ;;  %v15557_v20 = vld [vmem:[#allocation2 + $0x124] sm:$0xff]  }
 0x6da   :  { %14446 = vmatprep.mubr.msk.bf16.mxu1 %vm15735_vm0, %v15734_v0  ;;  %v14339_v2 = vpop.f32.mrb[83].mxu0  ;;  %v15558_v43 = vld [vmem:[#allocation2 + $0x120] sm:$0xff]  }
 0x6dc   :  { %v5081_v61 = vpop.f32.mrb[228].mxu1  ;;  %14613 = vmatmul.mubr.msk.bf16.gmra.mrb[188].mxu0 %vm213_vm1, %v15555_v56 }
 0x6dd   :  { %v14172_v12 = vpop.f32.mrb[229].mxu1  ;;  %14616 = vmatprep.mubr.msk.bf16.mxu0 %vm15735_vm0, %v15734_v0 }
 0x6de   :  { %v5083_v21 = vpop.f32.mrb[230].mxu1 }
 0x6df   :  { %v14173_v32 = vpop.f32.mrb[231].mxu1  ;;  %v7203_v28 = vpop.f32.mrb[84].mxu0 }
 0x6e0   :  { %v14510_v38 = vpop.f32.mrb[85].mxu0 }
 0x6e1   :  { %14447 = vmatmul.mubr.msk.bf16.gmra.mrb[80].mxu1 %vm213_vm1, %v15556_v63  ;;  %v7205_v31 = vpop.f32.mrb[86].mxu0  ;;  %v15559_v63 = vld [vmem:[#allocation2 + $0x12c] sm:$0xff]  }
 0x6e2   :  { %14450 = vmatprep.mubr.msk.bf16.mxu1 %vm15735_vm0, %v15734_v0  ;;  %v14511_v25 = vpop.f32.mrb[87].mxu0 }
 0x6e4   :  { %v6397_v29 = vpop.f32.mrb[232].mxu1  ;;  %14617 = vmatmul.mubr.msk.bf16.gmra.mrb[192].mxu0 %vm213_vm1, %v15557_v20  ;;  %v15560_v20 = vld [vmem:[#allocation2 + $0x128] sm:$0xff]  }
 0x6e5   :  { %v14344_v50 = vpop.f32.mrb[233].mxu1  ;;  %14620 = vmatprep.mubr.msk.bf16.mxu0 %vm15735_vm0, %v15734_v0 }
 0x6e6   :  { %v6399_v56 = vpop.f32.mrb[234].mxu1 }
 0x6e7   :  { %v14345_v2 = vpop.f32.mrb[235].mxu1  ;;  %v7209_v61 = vpop.f32.mrb[88].mxu0 }
 0x6e8   :  { %v14514_v12 = vpop.f32.mrb[89].mxu0  ;;  %v15561_v2 = vld [vmem:[#allocation2 + $0x134] sm:$0xff]  }
 0x6e9   :  { %14451 = vmatmul.mubr.msk.bf16.gmra.mrb[84].mxu1 %vm213_vm1, %v15558_v43  ;;  %v7211_v21 = vpop.f32.mrb[90].mxu0 }
 0x6ea   :  { %14454 = vmatprep.mubr.msk.bf16.mxu1 %vm15735_vm0, %v15734_v0  ;;  %v14515_v32 = vpop.f32.mrb[91].mxu0 }
 0x6ec   :  { %v6403_v28 = vpop.f32.mrb[236].mxu1  ;;  %14621 = vmatmul.mubr.msk.bf16.gmra.mrb[196].mxu0 %vm213_vm1, %v15559_v63  ;;  %v15562_v63 = vld [vmem:[#allocation2 + $0x130] sm:$0xff]  }
 0x6ed   :  { %v14348_v38 = vpop.f32.mrb[237].mxu1  ;;  %14624 = vmatprep.mubr.msk.bf16.mxu0 %vm15735_vm0, %v15734_v0 }
 0x6ee   :  { %v6405_v31 = vpop.f32.mrb[238].mxu1 }
 0x6ef   :  { %v14349_v25 = vpop.f32.mrb[239].mxu1  ;;  %v7215_v29 = vpop.f32.mrb[92].mxu0 }
 0x6f0   :  { %v14518_v50 = vpop.f32.mrb[93].mxu0 }
 0x6f1   :  { %14455 = vmatmul.mubr.msk.bf16.gmra.mrb[88].mxu1 %vm213_vm1, %v15560_v20  ;;  %v7217_v43 = vpop.f32.mrb[94].mxu0  ;;  %v15563_v20 = vld [vmem:[#allocation2 + $0x13c] sm:$0xff]  }
 0x6f2   :  { %14458 = vmatprep.mubr.msk.bf16.mxu1 %vm15735_vm0, %v15734_v0  ;;  %v14519_v56 = vpop.f32.mrb[95].mxu0 }
 0x6f4   :  { %v6409_v61 = vpop.f32.mrb[240].mxu1  ;;  %14625 = vmatmul.mubr.msk.bf16.gmra.mrb[200].mxu0 %vm213_vm1, %v15561_v2  ;;  %v15564_v2 = vld [vmem:[#allocation2 + $0x138] sm:$0xff]  }
 0x6f5   :  { %v14352_v12 = vpop.f32.mrb[241].mxu1  ;;  %14628 = vmatprep.mubr.msk.bf16.mxu0 %vm15735_vm0, %v15734_v0 }
 0x6f6   :  { %v6411_v21 = vpop.f32.mrb[242].mxu1 }
 0x6f7   :  { %v14353_v32 = vpop.f32.mrb[243].mxu1  ;;  %v7221_v28 = vpop.f32.mrb[96].mxu0  ;;  %v15566_v21 = vld [vmem:[#allocation2 + $0x144] sm:$0xff]  }
 0x6f8   :  { %v14522_v38 = vpop.f32.mrb[97].mxu0 }
 0x6f9   :  { %14459 = vmatmul.mubr.msk.bf16.gmra.mrb[92].mxu1 %vm213_vm1, %v15562_v63  ;;  %v7223_v31 = vpop.f32.mrb[98].mxu0 }
 0x6fa   :  { %14462 = vmatprep.mubr.msk.bf16.mxu1 %vm15735_vm0, %v15734_v0  ;;  %v14523_v25 = vpop.f32.mrb[99].mxu0 }
 0x6fc   :  { %v6415_v29 = vpop.f32.mrb[244].mxu1  ;;  %14629 = vmatmul.mubr.msk.bf16.gmra.mrb[204].mxu0 %vm213_vm1, %v15563_v20  ;;  %v15565_v20 = vld [vmem:[#allocation2 + $0x140] sm:$0xff]  }
 0x6fd   :  { %v14356_v50 = vpop.f32.mrb[245].mxu1  ;;  %14632 = vmatprep.mubr.msk.bf16.mxu0 %vm15735_vm0, %v15734_v0 }
 0x6fe   :  { %v6417_v43 = vpop.f32.mrb[246].mxu1 }
 0x6ff   :  { %v14357_v56 = vpop.f32.mrb[247].mxu1  ;;  %v7227_v61 = vpop.f32.mrb[100].mxu0  ;;  %v15568_v43 = vld [vmem:[#allocation2 + $0x14c] sm:$0xff]  }
 0x700   :  { %v14526_v12 = vpop.f32.mrb[101].mxu0 }
 0x701   :  { %14463 = vmatmul.mubr.msk.bf16.gmra.mrb[96].mxu1 %vm213_vm1, %v15564_v2  ;;  %v7229_v32 = vpop.f32.mrb[102].mxu0 }
 0x702   :  { %14466 = vmatprep.mubr.msk.bf16.mxu1 %vm15735_vm0, %v15734_v0  ;;  %v14527_v63 = vpop.f32.mrb[103].mxu0  ;;  %v15567_v32 = vld [vmem:[#allocation2 + $0x148] sm:$0xff]  }
 0x704   :  { %v6421_v28 = vpop.f32.mrb[248].mxu1  ;;  %14633 = vmatmul.mubr.msk.bf16.gmra.mrb[208].mxu0 %vm213_vm1, %v15566_v21 }
 0x705   :  { %v14360_v38 = vpop.f32.mrb[249].mxu1  ;;  %14636 = vmatprep.mubr.msk.bf16.mxu0 %vm15735_vm0, %v15734_v0 }
 0x706   :  { %v6423_v31 = vpop.f32.mrb[250].mxu1 }
 0x707   :  { %v14361_v25 = vpop.f32.mrb[251].mxu1  ;;  %v7233_v29 = vpop.f32.mrb[104].mxu0 }
 0x708   :  { %v14530_v50 = vpop.f32.mrb[105].mxu0 }
 0x709   :  { %14467 = vmatmul.mubr.msk.bf16.gmra.mrb[100].mxu1 %vm213_vm1, %v15565_v20  ;;  %v7236_v56 = vpop.f32.mrb[106].mxu0  ;;  %v15571_v50 = vld [vmem:[#allocation2 + $0x154] sm:$0xff]  }
 0x70a   :  { %14470 = vmatprep.mubr.msk.bf16.mxu1 %vm15735_vm0, %v15734_v0  ;;  %v14531_v2 = vpop.f32.mrb[107].mxu0 }
 0x70c   :  { %v6427_v61 = vpop.f32.mrb[252].mxu1  ;;  %14637 = vmatmul.mubr.msk.bf16.gmra.mrb[212].mxu0 %vm213_vm1, %v15568_v43 }
 0x70d   :  { %v6698_v12 = vadd.f32 %v6427_v61, %v17787_v48  ;;  %v14364_v21 = vpop.f32.mrb[253].mxu1  ;;  %14640 = vmatprep.mubr.msk.bf16.mxu0 %vm15735_vm0, %v15734_v0 }
 0x70e   :  { %v6430_v63 = vpop.f32.mrb[254].mxu1 }
 0x70f   :  { %v6699_v28 = vadd.f32 %v6430_v63, %v17790_v7  ;;  %v14365_v38 = vpop.f32.mrb[255].mxu1  ;;  %v18209_v31 = vadd.f32 %v7233_v29, %v6698_v12  ;;  %v7241_v25 = vpop.f32.mrb[108].mxu0  ;;  %v15569_v7 = vld [vmem:[#allocation2 + $0x150] sm:$0xff]   ;;  %v19394_v12 = vld [vmem:[#allocation8_spill] sm:$0xff] }
 0x710   :  { %v14534_v20 = vpop.f32.mrb[109].mxu0 }
 0x711   :  { %14471 = vmatmul.mubr.msk.bf16.gmra.mrb[104].mxu1 %vm213_vm1, %v15567_v32  ;;  %v18212_v2 = vadd.f32 %v7236_v56, %v6699_v28  ;;  %v7244_v48 = vpop.f32.mrb[110].mxu0  ;;  %v15573_v20 = vld [vmem:[#allocation2 + $0x15c] sm:$0xff]  }
 0x712   :  { %14474 = vmatprep.mubr.msk.bf16.mxu1 %vm15735_vm0, %v15734_v0  ;;  %v14535_v43 = vpop.f32.mrb[111].mxu0 }
 0x713   :  { %19393 = vst [vmem:[#allocation5_spill] sm:$0xff] %v18212_v2 }
 0x714   :  { %v6435_v61 = vpop.f32.mrb[0].mxu1  ;;  %14641 = vmatmul.mubr.msk.bf16.gmra.mrb[216].mxu0 %vm213_vm1, %v15571_v50 }
 0x715   :  { %v6700_v21 = vadd.f32 %v6435_v61, %v17799_v27  ;;  %v14368_v13 = vpop.f32.mrb[1].mxu1  ;;  %14644 = vmatprep.mubr.msk.bf16.mxu0 %vm15735_vm0, %v15734_v0 }
 0x716   :  { %v6438_v29 = vpop.f32.mrb[2].mxu1 }
 0x717   :  { %v6701_v32 = vadd.f32 %v6438_v29, %v19394_v12  ;;  %v14369_v56 = vpop.f32.mrb[3].mxu1  ;;  %v18221_v63 = vadd.f32 %v7241_v25, %v6700_v21  ;;  %v7249_v28 = vpop.f32.mrb[112].mxu0  ;;  %v15572_v29 = vld [vmem:[#allocation2 + $0x158] sm:$0xff]  }
 0x718   :  { %v14538_v38 = vpop.f32.mrb[113].mxu0  ;;  %v15575_v56 = vld [vmem:[#allocation2 + $0x164] sm:$0xff]  }
 0x719   :  { %14475 = vmatmul.mubr.msk.bf16.gmra.mrb[108].mxu1 %vm213_vm1, %v15569_v7  ;;  %v18224_v43 = vadd.f32 %v7244_v48, %v6701_v32  ;;  %v7252_v27 = vpop.f32.mrb[114].mxu0 }
 0x71a   :  { %14478 = vmatprep.mubr.msk.bf16.mxu1 %vm15735_vm0, %v15734_v0  ;;  %v14539_v13 = vpop.f32.mrb[115].mxu0 }
 0x71c   :  { %v6443_v50 = vpop.f32.mrb[4].mxu1  ;;  %14645 = vmatmul.mubr.msk.bf16.gmra.mrb[220].mxu0 %vm213_vm1, %v15573_v20 }
 0x71d   :  { %v6702_v61 = vadd.f32 %v6443_v50, %v17811_v51  ;;  %v14372_v2 = vpop.f32.mrb[5].mxu1  ;;  %14648 = vmatprep.mubr.msk.bf16.mxu0 %vm15735_vm0, %v15734_v0 }
 0x71e   :  { %v6446_v25 = vpop.f32.mrb[6].mxu1 }
 0x71f   :  { %v6703_v21 = vadd.f32 %v6446_v25, %v17814_v52  ;;  %v14373_v48 = vpop.f32.mrb[7].mxu1  ;;  %v18233_v7 = vadd.f32 %v7249_v28, %v6702_v61  ;;  %v7257_v12 = vpop.f32.mrb[116].mxu0  ;;  %v15574_v52 = vld [vmem:[#allocation2 + $0x160] sm:$0xff]  }
 0x720   :  { %v14542_v32 = vpop.f32.mrb[117].mxu0  ;;  %v19396_v61 = vld [vmem:[#allocation9_spill] sm:$0xff] }
 0x721   :  { %14479 = vmatmul.mubr.msk.bf16.gmra.mrb[112].mxu1 %vm213_vm1, %v15572_v29  ;;  %v18236_v38 = vadd.f32 %v7252_v27, %v6703_v21  ;;  %v7260_v51 = vpop.f32.mrb[118].mxu0 }
 0x722   :  { %14482 = vmatprep.mubr.msk.bf16.mxu1 %vm15735_vm0, %v15734_v0  ;;  %v14543_v2 = vpop.f32.mrb[119].mxu0 }
 0x723   :  { %19395 = vst [vmem:[#allocation6_spill] sm:$0xff] %v18236_v38  ;;  %v15576_v38 = vld [vmem:[#allocation2 + $0x168] sm:$0xff]  }
 0x724   :  { %v6451_v20 = vpop.f32.mrb[8].mxu1  ;;  %14649 = vmatmul.mubr.msk.bf16.gmra.mrb[224].mxu0 %vm213_vm1, %v15575_v56 }
 0x725   :  { %v6704_v13 = vadd.f32 %v6451_v20, %v17822_v53  ;;  %v14376_v50 = vpop.f32.mrb[9].mxu1  ;;  %14652 = vmatprep.mubr.msk.bf16.mxu0 %vm15735_vm0, %v15734_v0 }
 0x726   :  { %v6454_v28 = vpop.f32.mrb[10].mxu1 }
 0x727   :  { %v6705_v29 = vadd.f32 %v6454_v28, %v19396_v61  ;;  %v14377_v27 = vpop.f32.mrb[11].mxu1  ;;  %v18245_v25 = vadd.f32 %v7257_v12, %v6704_v13  ;;  %v7265_v21 = vpop.f32.mrb[120].mxu0 }
 0x728   :  { %v14546_v48 = vpop.f32.mrb[121].mxu0 }
 0x729   :  { %14483 = vmatmul.mubr.msk.bf16.gmra.mrb[116].mxu1 %vm213_vm1, %v15574_v52  ;;  %v18248_v32 = vadd.f32 %v7260_v51, %v6705_v29  ;;  %v7268_v53 = vpop.f32.mrb[122].mxu0 }
 0x72a   :  { %14486 = vmatprep.mubr.msk.bf16.mxu1 %vm15735_vm0, %v15734_v0  ;;  %v14547_v56 = vpop.f32.mrb[123].mxu0 }
 0x72c   :  { %v6459_v2 = vpop.f32.mrb[12].mxu1 }
 0x72d   :  { %v6706_v20 = vadd.f32 %v6459_v2, %v17835_v19  ;;  %v14380_v50 = vpop.f32.mrb[13].mxu1 }
 0x72e   :  { %v6462_v28 = vpop.f32.mrb[14].mxu1  ;;  %v15577_v50 = vld [vmem:[#allocation2 + $0x170] sm:$0xff]  }
 0x72f   :  { %v6707_v12 = vadd.f32 %v6462_v28, %v17838_v41  ;;  %v14381_v13 = vpop.f32.mrb[15].mxu1  ;;  %v18254_v61 = vadd.f32 %v7265_v21, %v6706_v20  ;;  %v7273_v52 = vpop.f32.mrb[124].mxu0 }
 0x730   :  { %v14550_v51 = vpop.f32.mrb[125].mxu0 }
 0x731   :  { %14487 = vmatmul.mubr.msk.bf16.gmra.mrb[120].mxu1 %vm213_vm1, %v15576_v38  ;;  %v18257_v29 = vadd.f32 %v7268_v53, %v6707_v12  ;;  %v7276_v27 = vpop.f32.mrb[126].mxu0 }
 0x732   :  { %14490 = vmatprep.mubr.msk.bf16.mxu1 %vm15735_vm0, %v15734_v0  ;;  %v14551_v48 = vpop.f32.mrb[127].mxu0 }
 0x734   :  { %v6467_v19 = vpop.f32.mrb[16].mxu1 }
 0x735   :  { %v6708_v56 = vadd.f32 %v6467_v19, %v17847_v44  ;;  %v14384_v2 = vpop.f32.mrb[17].mxu1 }
 0x736   :  { %v6470_v41 = vpop.f32.mrb[18].mxu1  ;;  %v15578_v2 = vld [vmem:[#allocation2 + $0x178] sm:$0xff]  }
 0x737   :  { %v6709_v21 = vadd.f32 %v6470_v41, %v17850_v40  ;;  %v14385_v20 = vpop.f32.mrb[19].mxu1  ;;  %v18263_v28 = vadd.f32 %v7273_v52, %v6708_v56  ;;  %v7281_v38 = vpop.f32.mrb[128].mxu0  ;;  %v15594_v40 = vld [vmem:[%s19346_s5 + $0x18] sm:$0xff]  }
 0x738   :  { %v14554_v53 = vpop.f32.mrb[129].mxu0  ;;  %14841 = vmatpush3.bf16.msra.mxu0 %v15594_v40 }
 0x739   :  { %14491 = vmatmul.mubr.msk.bf16.gmra.mrb[124].mxu1 %vm213_vm1, %v15577_v50  ;;  %v18266_v12 = vadd.f32 %v7276_v27, %v6709_v21  ;;  %v7284_v13 = vpop.f32.mrb[130].mxu0  ;;  %14846 = vmatprep.subr.bf16.mxu0 %v15734_v0 }
 0x73a   :  { %14494 = vmatprep.mubr.msk.bf16.mxu1 %vm15735_vm0, %v15734_v0  ;;  %v14555_v51 = vpop.f32.mrb[131].mxu0 }
 0x73c   :  { %v6475_v44 = vpop.f32.mrb[20].mxu1 }
 0x73d   :  { %v6710_v48 = vadd.f32 %v6475_v44, %v17859_v36  ;;  %v14388_v19 = vpop.f32.mrb[21].mxu1 }
 0x73e   :  { %v6478_v52 = vpop.f32.mrb[22].mxu1  ;;  %v15579_v19 = vld [vmem:[#allocation2 + $0x180] sm:$0xff]  }
 0x73f   :  { %v6711_v56 = vadd.f32 %v6478_v52, %v17862_v30  ;;  %v14389_v50 = vpop.f32.mrb[23].mxu1  ;;  %v18275_v27 = vadd.f32 %v7281_v38, %v6710_v48  ;;  %v7289_v41 = vpop.f32.mrb[132].mxu0 }
 0x740   :  { %v14558_v21 = vpop.f32.mrb[133].mxu0 }
 0x741   :  { %14495 = vmatmul.mubr.msk.bf16.gmra.mrb[128].mxu1 %vm213_vm1, %v15578_v2  ;;  %v18279_v36 = vadd.f32 %v7284_v13, %v6711_v56  ;;  %v7292_v20 = vpop.f32.mrb[134].mxu0 }
 0x742   :  { %14498 = vmatprep.mubr.msk.bf16.mxu1 %vm15735_vm0, %v15734_v0  ;;  %v14559_v53 = vpop.f32.mrb[135].mxu0 }
 0x743   :  { %19397 = vst [vmem:[#allocation7_spill] sm:$0xff] %v18279_v36 }
 0x744   :  { %v6483_v51 = vpop.f32.mrb[24].mxu1 }
 0x745   :  { %v6712_v30 = vadd.f32 %v6483_v51, %v17871_v9  ;;  %v14392_v44 = vpop.f32.mrb[25].mxu1  ;;  %v15580_v51 = vld [vmem:[#allocation2 + $0x188] ss:$0 sps:$4 sm:$0xff]  }
 0x746   :  { %v6486_v38 = vpop.f32.mrb[26].mxu1 }
 0x747   :  { %v6713_v48 = vadd.f32 %v6486_v38, %v17874_v6  ;;  %v14393_v40 = vpop.f32.mrb[27].mxu1  ;;  %v18285_v52 = vadd.f32 %v7289_v41, %v6712_v30  ;;  %v7297_v2 = vpop.f32.mrb[136].mxu0 }
 0x748   :  { %v14562_v13 = vpop.f32.mrb[137].mxu0  ;;  %v7560_v2 = vld [vmem:[#allocation2 + $0x50] sm:$0xf] }
 0x749   :  { %14499 = vmatmul.mubr.msk.bf16.gmra.mrb[132].mxu1 %vm213_vm1, %v15579_v19  ;;  %v18288_v56 = vadd.f32 %v7292_v20, %v6713_v48  ;;  %v7299_v50 = vpop.f32.mrb[138].mxu0  ;;  %v7561_v19 = vld [vmem:[#allocation2 + $0x54] sm:$0xf] }
 0x74a   :  { %14502 = vmatprep.mubr.msk.bf16.mxu1 %vm15735_vm0, %v15734_v0  ;;  %v14563_v21 = vpop.f32.mrb[139].mxu0  ;;  %v12392_v50 = vcombine.low %v7560_v2, %v7561_v19  ;;  %v15581_v2 = vld [vmem:[#allocation2 + $0x58] sm:$0xff]  }
 0x74c   :  { %v6491_v9 = vpop.f32.mrb[28].mxu1 }
 0x74d   :  { %v14396_v53 = vpop.f32.mrb[29].mxu1 }
 0x74e   :  { %v6493_v44 = vpop.f32.mrb[30].mxu1 }
 0x74f   :  { %v14397_v36 = vpop.f32.mrb[31].mxu1  ;;  %v7303_v6 = vpop.f32.mrb[140].mxu0 }
 0x750   :  { %v14566_v41 = vpop.f32.mrb[141].mxu0  ;;  %v15589_v36 = vld [vmem:[%s19346_s5 + $0x110] sm:$0xff]  }
 0x751   :  { %14503 = vmatmul.mubr.msk.bf16.gmra.mrb[136].mxu1 %vm213_vm1, %v15580_v51  ;;  %v7306_v30 = vpop.f32.mrb[142].mxu0 }
 0x752   :  { %14674 = vmatprep.mubr.msk.bf16.mxu1 %vm15735_vm0, %v15734_v0  ;;  %v14567_v20 = vpop.f32.mrb[143].mxu0 }
 0x754   :  { %v6497_v38 = vpop.f32.mrb[32].mxu1 }
 0x755   :  { %v6714_v48 = vadd.f32 %v6497_v38, %v17892_v59  ;;  %v14400_v40 = vpop.f32.mrb[33].mxu1 }
 0x756   :  { %v6500_v13 = vpop.f32.mrb[34].mxu1 }
 0x757   :  { %v6715_v21 = vadd.f32 %v6500_v13, %v17895_v16  ;;  %v14401_v9 = vpop.f32.mrb[35].mxu1  ;;  %v18300_v53 = vadd.f32 %v7303_v6, %v6714_v48  ;;  %v7311_v51 = vpop.f32.mrb[144].mxu0 }
 0x758   :  { %v14570_v44 = vpop.f32.mrb[145].mxu0 }
 0x759   :  { %14675 = vmatmul.mubr.msk.bf16.vlgmr.msra.gmra.mrb[140].mxu1 %vm213_vm1, %v12392_v50  ;;  %v18303_v41 = vadd.f32 %v7306_v30, %v6715_v21  ;;  %v7314_v59 = vpop.f32.mrb[146].mxu0 }
 0x75a   :  { %14678 = vmatprep.mubr.msk.bf16.mxu1 %vm15735_vm0, %v15734_v0  ;;  %14975 = vmatpush3.bf16.msra.mxu1 %v15589_v36  ;;  %v14571_v20 = vpop.f32.mrb[147].mxu0 }
 0x75b   :  { %14976 = vmatprep.subr.bf16.mxu1 %v15734_v0 }
 0x75c   :  { %v6505_v19 = vpop.f32.mrb[36].mxu1 }
 0x75d   :  { %v6716_v16 = vadd.f32 %v6505_v19, %v17905_v23  ;;  %v14404_v38 = vpop.f32.mrb[37].mxu1 }
 0x75e   :  { %v6508_v6 = vpop.f32.mrb[38].mxu1 }
 0x75f   :  { %v6717_v48 = vadd.f32 %v6508_v6, %v17908_v42  ;;  %v14405_v40 = vpop.f32.mrb[39].mxu1  ;;  %v18310_v13 = vadd.f32 %v7311_v51, %v6716_v16  ;;  %v7319_v30 = vpop.f32.mrb[148].mxu0  ;;  %v15582_v16 = vld [vmem:[#allocation2 + $0x60] sm:$0xff]  }
 0x760   :  { %v14574_v50 = vpop.f32.mrb[149].mxu0 }
 0x761   :  { %14679 = vmatmul.mubr.msk.bf16.gmra.mrb[144].mxu1 %vm213_vm1, %v15581_v2  ;;  %v18313_v21 = vadd.f32 %v7314_v59, %v6717_v48  ;;  %v7322_v36 = vpop.f32.mrb[150].mxu0 }
 0x762   :  { %14682 = vmatprep.mubr.msk.bf16.mxu1 %vm15735_vm0, %v15734_v0  ;;  %v14575_v9 = vpop.f32.mrb[151].mxu0 }
 0x764   :  { %v6513_v23 = vpop.f32.mrb[40].mxu1 }
 0x765   :  { %v6718_v44 = vadd.f32 %v6513_v23, %v17917_v49  ;;  %v14408_v20 = vpop.f32.mrb[41].mxu1 }
 0x766   :  { %v6516_v42 = vpop.f32.mrb[42].mxu1 }
 0x767   :  { %v6719_v19 = vadd.f32 %v6516_v42, %v17920_v35  ;;  %v14409_v51 = vpop.f32.mrb[43].mxu1  ;;  %v18319_v38 = vadd.f32 %v7319_v30, %v6718_v44  ;;  %v7327_v6 = vpop.f32.mrb[152].mxu0  ;;  %v15583_v44 = vld [vmem:[#allocation2 + $0x68] sm:$0xff]  }
 0x768   :  { %v14578_v40 = vpop.f32.mrb[153].mxu0 }
 0x769   :  { %14683 = vmatmul.mubr.msk.bf16.gmra.mrb[148].mxu1 %vm213_vm1, %v15582_v16  ;;  %v18322_v59 = vadd.f32 %v7322_v36, %v6719_v19  ;;  %v7330_v48 = vpop.f32.mrb[154].mxu0 }
 0x76a   :  { %14686 = vmatprep.mubr.msk.bf16.mxu1 %vm15735_vm0, %v15734_v0  ;;  %v14579_v2 = vpop.f32.mrb[155].mxu0 }
 0x76c   :  { %v6521_v49 = vpop.f32.mrb[44].mxu1 }
 0x76d   :  { %v6720_v50 = vadd.f32 %v6521_v49, %v17928_v14  ;;  %v14412_v9 = vpop.f32.mrb[45].mxu1 }
 0x76e   :  { %v6524_v35 = vpop.f32.mrb[46].mxu1 }
 0x76f   :  { %v6721_v23 = vadd.f32 %v6524_v35, %v17931_v11  ;;  %v14413_v30 = vpop.f32.mrb[47].mxu1  ;;  %v18328_v20 = vadd.f32 %v7327_v6, %v6720_v50  ;;  %v7335_v42 = vpop.f32.mrb[156].mxu0  ;;  %v15584_v50 = vld [vmem:[#allocation2 + $0x70] sm:$0xff]  }
 0x770   :  { %v14582_v51 = vpop.f32.mrb[157].mxu0 }
 0x771   :  { %14687 = vmatmul.mubr.msk.bf16.gmra.mrb[152].mxu1 %vm213_vm1, %v15583_v44  ;;  %v18331_v36 = vadd.f32 %v7330_v48, %v6721_v23  ;;  %v7338_v19 = vpop.f32.mrb[158].mxu0 }
 0x772   :  { %14690 = vmatprep.mubr.msk.bf16.mxu1 %vm15735_vm0, %v15734_v0  ;;  %v14583_v16 = vpop.f32.mrb[159].mxu0 }
 0x774   :  { %v6529_v14 = vpop.f32.mrb[48].mxu1 }
 0x775   :  { %v6722_v40 = vadd.f32 %v6529_v14, %v17941_v8  ;;  %v14416_v2 = vpop.f32.mrb[49].mxu1 }
 0x776   :  { %v6532_v11 = vpop.f32.mrb[50].mxu1 }
 0x777   :  { %v6723_v49 = vadd.f32 %v6532_v11, %v17944_v4  ;;  %v14417_v6 = vpop.f32.mrb[51].mxu1  ;;  %v18337_v9 = vadd.f32 %v7335_v42, %v6722_v40  ;;  %v7343_v35 = vpop.f32.mrb[160].mxu0  ;;  %v15585_v40 = vld [vmem:[#allocation2 + $0x78] sm:$0xff]  }
 0x778   :  { %v14586_v30 = vpop.f32.mrb[161].mxu0 }
 0x779   :  { %14691 = vmatmul.mubr.msk.bf16.gmra.mrb[156].mxu1 %vm213_vm1, %v15584_v50  ;;  %v18340_v48 = vadd.f32 %v7338_v19, %v6723_v49  ;;  %v7346_v23 = vpop.f32.mrb[162].mxu0 }
 0x77a   :  { %14694 = vmatprep.mubr.msk.bf16.mxu1 %vm15735_vm0, %v15734_v0  ;;  %v14587_v44 = vpop.f32.mrb[163].mxu0 }
 0x77c   :  { %v6537_v8 = vpop.f32.mrb[52].mxu1 }
 0x77d   :  { %v6724_v51 = vadd.f32 %v6537_v8, %v17953_v54  ;;  %v14420_v16 = vpop.f32.mrb[53].mxu1 }
 0x77e   :  { %v6540_v4 = vpop.f32.mrb[54].mxu1 }
 0x77f   :  { %v6725_v14 = vadd.f32 %v6540_v4, %v17956_v47  ;;  %v14421_v42 = vpop.f32.mrb[55].mxu1  ;;  %v18346_v2 = vadd.f32 %v7343_v35, %v6724_v51  ;;  %v7351_v11 = vpop.f32.mrb[164].mxu0  ;;  %v15586_v51 = vld [vmem:[#allocation2 + $0x80] sm:$0xff]  }
 0x780   :  { %v14590_v6 = vpop.f32.mrb[165].mxu0 }
 0x781   :  { %14695 = vmatmul.mubr.msk.bf16.gmra.mrb[160].mxu1 %vm213_vm1, %v15585_v40  ;;  %v18349_v19 = vadd.f32 %v7346_v23, %v6725_v14  ;;  %v7354_v49 = vpop.f32.mrb[166].mxu0 }
 0x782   :  { %14698 = vmatprep.mubr.msk.bf16.mxu1 %vm15735_vm0, %v15734_v0  ;;  %v14591_v50 = vpop.f32.mrb[167].mxu0 }
 0x784   :  { %v6545_v54 = vpop.f32.mrb[56].mxu1 }
 0x785   :  { %v6726_v30 = vadd.f32 %v6545_v54, %v17965_v60  ;;  %v14424_v44 = vpop.f32.mrb[57].mxu1 }
 0x786   :  { %v6548_v47 = vpop.f32.mrb[58].mxu1 }
 0x787   :  { %v6727_v8 = vadd.f32 %v6548_v47, %v17968_v22  ;;  %v14425_v35 = vpop.f32.mrb[59].mxu1  ;;  %v18355_v16 = vadd.f32 %v7351_v11, %v6726_v30  ;;  %v7359_v4 = vpop.f32.mrb[168].mxu0  ;;  %v15587_v30 = vld [vmem:[#allocation2 + $0x88] sm:$0xff]  }
 0x788   :  { %v14594_v42 = vpop.f32.mrb[169].mxu0 }
 0x789   :  { %14699 = vmatmul.mubr.msk.bf16.gmra.mrb[164].mxu1 %vm213_vm1, %v15586_v51  ;;  %v18358_v23 = vadd.f32 %v7354_v49, %v6727_v8  ;;  %v7362_v14 = vpop.f32.mrb[170].mxu0 }
 0x78a   :  { %14702 = vmatprep.mubr.msk.bf16.mxu1 %vm15735_vm0, %v15734_v0  ;;  %v14595_v40 = vpop.f32.mrb[171].mxu0 }
 0x78b   :  { %v15588_v40 = vld [vmem:[#allocation2 + $0x90] sm:$0xff]  }
 0x78c   :  { %v6553_v60 = vpop.f32.mrb[60].mxu1 }
 0x78d   :  { %v6728_v6 = vadd.f32 %v6553_v60, %v17977_v58  ;;  %v14428_v50 = vpop.f32.mrb[61].mxu1 }
 0x78e   :  { %v6556_v22 = vpop.f32.mrb[62].mxu1 }
 0x78f   :  { %v6729_v54 = vadd.f32 %v6556_v22, %v17980_v17  ;;  %v14429_v11 = vpop.f32.mrb[63].mxu1  ;;  %v18364_v44 = vadd.f32 %v7359_v4, %v6728_v6  ;;  %v7367_v47 = vpop.f32.mrb[172].mxu0 }
 0x790   :  { %v14598_v49 = vpop.f32.mrb[173].mxu0 }
 0x791   :  { %14703 = vmatmul.mubr.msk.bf16.gmra.mrb[168].mxu1 %vm213_vm1, %v15587_v30  ;;  %v18367_v8 = vadd.f32 %v7362_v14, %v6729_v54  ;;  %v7369_v35 = vpop.f32.mrb[174].mxu0 }
 0x792   :  { %14706 = vmatprep.mubr.msk.bf16.mxu1 %vm15735_vm0, %v15734_v0  ;;  %v14599_v51 = vpop.f32.mrb[175].mxu0  ;;  %v15590_v35 = vld [vmem:[#allocation2 + $0x98] sm:$0xff]  }
 0x794   :  { %v6561_v58 = vpop.f32.mrb[64].mxu1 }
 0x795   :  { %v14432_v42 = vpop.f32.mrb[65].mxu1 }
 0x796   :  { %v6563_v60 = vpop.f32.mrb[66].mxu1 }
 0x797   :  { %v14433_v17 = vpop.f32.mrb[67].mxu1  ;;  %v7373_v50 = vpop.f32.mrb[176].mxu0 }
 0x798   :  { %v14602_v22 = vpop.f32.mrb[177].mxu0 }
 0x799   :  { %14707 = vmatmul.mubr.msk.bf16.gmra.mrb[172].mxu1 %vm213_vm1, %v15588_v40  ;;  %v7376_v4 = vpop.f32.mrb[178].mxu0 }
 0x79a   :  { %14710 = vmatprep.mubr.msk.bf16.mxu1 %vm15735_vm0, %v15734_v0  ;;  %v14603_v14 = vpop.f32.mrb[179].mxu0 }
 0x79c   :  { %v6567_v6 = vpop.f32.mrb[68].mxu1 }
 0x79d   :  { %v6730_v54 = vadd.f32 %v6567_v6, %v17995_v15  ;;  %v14436_v11 = vpop.f32.mrb[69].mxu1 }
 0x79e   :  { %v6570_v30 = vpop.f32.mrb[70].mxu1 }
 0x79f   :  { %v6731_v47 = vadd.f32 %v6570_v30, %v17998_v18  ;;  %v14437_v49 = vpop.f32.mrb[71].mxu1  ;;  %v18376_v51 = vadd.f32 %v7373_v50, %v6730_v54  ;;  %v7381_v58 = vpop.f32.mrb[180].mxu0  ;;  %v15591_v54 = vld [vmem:[#allocation2 + $0xa0] sm:$0xff]  }
 0x7a0   :  { %v14606_v42 = vpop.f32.mrb[181].mxu0 }
 0x7a1   :  { %14711 = vmatmul.mubr.msk.bf16.gmra.mrb[176].mxu1 %vm213_vm1, %v15590_v35  ;;  %v18379_v40 = vadd.f32 %v7376_v4, %v6731_v47  ;;  %v7384_v60 = vpop.f32.mrb[182].mxu0 }
 0x7a2   :  { %14714 = vmatprep.mubr.msk.bf16.mxu1 %vm15735_vm0, %v15734_v0  ;;  %v14607_v17 = vpop.f32.mrb[183].mxu0 }
 0x7a4   :  { %v6575_v15 = vpop.f32.mrb[72].mxu1 }
 0x7a5   :  { %v6732_v22 = vadd.f32 %v6575_v15, %v18007_v45  ;;  %v14440_v14 = vpop.f32.mrb[73].mxu1 }
 0x7a6   :  { %v6578_v18 = vpop.f32.mrb[74].mxu1 }
 0x7a7   :  { %v6733_v6 = vadd.f32 %v6578_v18, %v18010_v5  ;;  %v14441_v50 = vpop.f32.mrb[75].mxu1  ;;  %v18385_v11 = vadd.f32 %v7381_v58, %v6732_v22  ;;  %v7389_v30 = vpop.f32.mrb[184].mxu0  ;;  %v15592_v22 = vld [vmem:[#allocation2 + $0xa8] sm:$0xff]  }
 0x7a8   :  { %v14610_v49 = vpop.f32.mrb[185].mxu0 }
 0x7a9   :  { %14715 = vmatmul.mubr.msk.bf16.gmra.mrb[180].mxu1 %vm213_vm1, %v15591_v54  ;;  %v18388_v4 = vadd.f32 %v7384_v60, %v6733_v6  ;;  %v7392_v47 = vpop.f32.mrb[186].mxu0 }
 0x7aa   :  { %14718 = vmatprep.mubr.msk.bf16.mxu1 %vm15735_vm0, %v15734_v0  ;;  %v14611_v35 = vpop.f32.mrb[187].mxu0 }
 0x7ac   :  { %v6583_v45 = vpop.f32.mrb[76].mxu1 }
 0x7ad   :  { %v6734_v42 = vadd.f32 %v6583_v45, %v18019_v26  ;;  %v14444_v17 = vpop.f32.mrb[77].mxu1 }
 0x7ae   :  { %v6586_v5 = vpop.f32.mrb[78].mxu1  ;;  %v15593_v17 = vld [vmem:[#allocation2 + $0xb0] sm:$0xff]  }
 0x7af   :  { %v6735_v15 = vadd.f32 %v6586_v5, %v18022_v3  ;;  %v14445_v58 = vpop.f32.mrb[79].mxu1  ;;  %v18394_v14 = vadd.f32 %v7389_v30, %v6734_v42  ;;  %v7397_v18 = vpop.f32.mrb[188].mxu0  ;;  %v15610_v3 = vld [vmem:[#allocation2 + $0x16c] sm:$0xff]  }
 0x7b0   :  { %v14614_v50 = vpop.f32.mrb[189].mxu0  ;;  %14653 = vmatmul.mubr.msk.bf16.gmra.mrb[228].mxu0 %vm213_vm1, %v15610_v3  ;;  %v15595_v3 = vld [vmem:[#allocation2 + $0xb8] sm:$0xff]  }
 0x7b1   :  { %14719 = vmatmul.mubr.msk.bf16.gmra.mrb[184].mxu1 %vm213_vm1, %v15592_v22  ;;  %v18397_v60 = vadd.f32 %v7392_v47, %v6735_v15  ;;  %v7400_v6 = vpop.f32.mrb[190].mxu0  ;;  %14656 = vmatprep.mubr.msk.bf16.mxu0 %vm15735_vm0, %v15734_v0 }
 0x7b2   :  { %14722 = vmatprep.mubr.msk.bf16.mxu1 %vm15735_vm0, %v15734_v0  ;;  %v14615_v54 = vpop.f32.mrb[191].mxu0 }
 0x7b4   :  { %v6591_v26 = vpop.f32.mrb[80].mxu1 }
 0x7b5   :  { %v6736_v49 = vadd.f32 %v6591_v26, %v18030_v34  ;;  %v14448_v35 = vpop.f32.mrb[81].mxu1 }
 0x7b6   :  { %v6594_v45 = vpop.f32.mrb[82].mxu1 }
 0x7b7   :  { %v6737_v30 = vadd.f32 %v6594_v45, %v18033_v10  ;;  %v14449_v42 = vpop.f32.mrb[83].mxu1  ;;  %v18404_v5 = vadd.f32 %v7397_v18, %v6736_v49  ;;  %v7405_v47 = vpop.f32.mrb[192].mxu0  ;;  %v15612_v18 = vld [vmem:[#allocation2 + $0x174] sm:$0xff]  }
 0x7b8   :  { %v14618_v15 = vpop.f32.mrb[193].mxu0  ;;  %14657 = vmatmul.mubr.msk.bf16.gmra.mrb[232].mxu0 %vm213_vm1, %v15612_v18 }
 0x7b9   :  { %14723 = vmatmul.mubr.msk.bf16.gmra.mrb[188].mxu1 %vm213_vm1, %v15593_v17  ;;  %v18409_v58 = vadd.f32 %v7400_v6, %v6737_v30  ;;  %v7408_v34 = vpop.f32.mrb[194].mxu0  ;;  %14660 = vmatprep.mubr.msk.bf16.mxu0 %vm15735_vm0, %v15734_v0 }
 0x7ba   :  { %14726 = vmatprep.mubr.msk.bf16.mxu1 %vm15735_vm0, %v15734_v0  ;;  %v14619_v10 = vpop.f32.mrb[195].mxu0 }
 0x7bc   :  { %v6599_v22 = vpop.f32.mrb[84].mxu1 }
 0x7bd   :  { %v6738_v50 = vadd.f32 %v6599_v22, %v18043_v57  ;;  %v14452_v54 = vpop.f32.mrb[85].mxu1  ;;  %v15614_v57 = vld [vmem:[%s19346_s5 + $0x118] sm:$0xff]  }
 0x7be   :  { %v6602_v26 = vpop.f32.mrb[86].mxu1  ;;  %14977 = vmatpush3.bf16.msra.mxu1 %v15614_v57  ;;  %v15615_v22 = vld [vmem:[#allocation2 + $0x17c] sm:$0xff]   ;;  %v19398_v54 = vld [vmem:[#allocation10_spill] sm:$0xff] }
 0x7bf   :  { %v6739_v49 = vadd.f32 %v6602_v26, %v18046_v33  ;;  %v14453_v35 = vpop.f32.mrb[87].mxu1  ;;  %v18416_v45 = vadd.f32 %v7405_v47, %v6738_v50  ;;  %v7413_v6 = vpop.f32.mrb[196].mxu0  ;;  %14990 = vmatprep.subr.bf16.mxu1 %v15734_v0 }
 0x7c0   :  { %v14622_v30 = vpop.f32.mrb[197].mxu0  ;;  %v15596_v35 = vld [vmem:[#allocation2 + $0xc0] sm:$0xff]   ;;  %14661 = vmatmul.mubr.msk.bf16.gmra.mrb[236].mxu0 %vm213_vm1, %v15615_v22 }
 0x7c1   :  { %14727 = vmatmul.mubr.msk.bf16.gmra.mrb[192].mxu1 %vm213_vm1, %v15595_v3  ;;  %v18424_v42 = vadd.f32 %v7408_v34, %v6739_v49  ;;  %v7416_v33 = vpop.f32.mrb[198].mxu0  ;;  %14664 = vmatprep.mubr.msk.bf16.mxu0 %vm15735_vm0, %v15734_v0 }
 0x7c2   :  { %14730 = vmatprep.mubr.msk.bf16.mxu1 %vm15735_vm0, %v15734_v0  ;;  %v14623_v17 = vpop.f32.mrb[199].mxu0 }
 0x7c4   :  { %v6607_v47 = vpop.f32.mrb[88].mxu1 }
 0x7c5   :  { %v6740_v15 = vadd.f32 %v6607_v47, %v18055_v24  ;;  %v14456_v10 = vpop.f32.mrb[89].mxu1  ;;  %v19401_v47 = vld [vmem:[#allocation11_spill] sm:$0xff] }
 0x7c6   :  { %v6610_v50 = vpop.f32.mrb[90].mxu1 }
 0x7c7   :  { %v6741_v18 = vadd.f32 %v6610_v50, %v19398_v54  ;;  %v14457_v26 = vpop.f32.mrb[91].mxu1  ;;  %v18432_v34 = vadd.f32 %v7413_v6, %v6740_v15  ;;  %v7421_v49 = vpop.f32.mrb[200].mxu0  ;;  %v15617_v6 = vld [vmem:[#allocation2 + $0x184] sm:$0xff]   ;;  %v19402_v50 = vld [vmem:[#allocation14_spill] sm:$0xff] }
 0x7c8   :  { %v14626_v3 = vpop.f32.mrb[201].mxu0  ;;  %14665 = vmatmul.mubr.msk.bf16.gmra.mrb[240].mxu0 %vm213_vm1, %v15617_v6 }
 0x7c9   :  { %19399 = vst [vmem:[#allocation8_spill] sm:$0xff] %v18432_v34  ;;  %14731 = vmatmul.mubr.msk.bf16.gmra.mrb[196].mxu1 %vm213_vm1, %v15596_v35  ;;  %v18437_v30 = vadd.f32 %v7416_v33, %v6741_v18  ;;  %v7424_v24 = vpop.f32.mrb[202].mxu0  ;;  %v15597_v34 = vld [vmem:[#allocation2 + $0xc8] sm:$0xff]   ;;  %14668 = vmatprep.mubr.msk.bf16.mxu0 %vm15735_vm0, %v15734_v0 }
 0x7ca   :  { %14734 = vmatprep.mubr.msk.bf16.mxu1 %vm15735_vm0, %v15734_v0  ;;  %v14627_v57 = vpop.f32.mrb[203].mxu0 }
 0x7cb   :  { %19400 = vst [vmem:[#allocation9_spill] sm:$0xff] %v18437_v30 }
 0x7cc   :  { %v6615_v17 = vpop.f32.mrb[92].mxu1 }
 0x7cd   :  { %v6742_v10 = vadd.f32 %v6615_v17, %v19401_v47  ;;  %v14460_v22 = vpop.f32.mrb[93].mxu1 }
 0x7ce   :  { %v6618_v15 = vpop.f32.mrb[94].mxu1  ;;  %v19404_v22 = vld [vmem:[#allocation12_spill] sm:$0xff] }
 0x7cf   :  { %v6743_v54 = vadd.f32 %v6618_v15, %v19402_v50  ;;  %v14461_v26 = vpop.f32.mrb[95].mxu1  ;;  %v18444_v35 = vadd.f32 %v7421_v49, %v6742_v10  ;;  %v7429_v33 = vpop.f32.mrb[204].mxu0  ;;  %v19405_v10 = vld [vmem:[#allocation13_spill] sm:$0xff] }
 0x7d0   :  { %v14630_v18 = vpop.f32.mrb[205].mxu0 }
 0x7d1   :  { %19403 = vst [vmem:[#allocation10_spill] sm:$0xff] %v18444_v35  ;;  %14735 = vmatmul.mubr.msk.bf16.gmra.mrb[200].mxu1 %vm213_vm1, %v15597_v34  ;;  %v18449_v3 = vadd.f32 %v7424_v24, %v6743_v54  ;;  %v7432_v57 = vpop.f32.mrb[206].mxu0  ;;  %v15598_v35 = vld [vmem:[#allocation2 + $0xd0] sm:$0xff]   ;;  %v15619_v24 = vld [vmem:[#allocation2 + $0x18c] ss:$0 sps:$4 sm:$0xff]  }
 0x7d2   :  { %14738 = vmatprep.mubr.msk.bf16.mxu1 %vm15735_vm0, %v15734_v0  ;;  %v14631_v17 = vpop.f32.mrb[207].mxu0  ;;  %14669 = vmatmul.mubr.msk.bf16.gmra.mrb[244].mxu0 %vm213_vm1, %v15619_v24 }
 0x7d3   :  { %14842 = vmatprep.mubr.msk.bf16.mxu0 %vm15735_vm0, %v15734_v0 }
 0x7d4   :  { %v6623_v47 = vpop.f32.mrb[96].mxu1 }
 0x7d5   :  { %v6744_v15 = vadd.f32 %v6623_v47, %v19404_v22  ;;  %v14464_v6 = vpop.f32.mrb[97].mxu1 }
 0x7d6   :  { %v6626_v49 = vpop.f32.mrb[98].mxu1 }
 0x7d7   :  { %v6745_v50 = vadd.f32 %v6626_v49, %v19405_v10  ;;  %v14465_v26 = vpop.f32.mrb[99].mxu1  ;;  %v18455_v30 = vadd.f32 %v7429_v33, %v6744_v15  ;;  %v7437_v18 = vpop.f32.mrb[208].mxu0  ;;  %v15599_v15 = vld [vmem:[#allocation2 + $0xd8] sm:$0xff]  }
 0x7d8   :  { %v14634_v34 = vpop.f32.mrb[209].mxu0 }
 0x7d9   :  { %14739 = vmatmul.mubr.msk.bf16.gmra.mrb[204].mxu1 %vm213_vm1, %v15598_v35  ;;  %v18458_v54 = vadd.f32 %v7432_v57, %v6745_v50  ;;  %v7439_v17 = vpop.f32.mrb[210].mxu0 }
 0x7da   :  { %14742 = vmatprep.mubr.msk.bf16.mxu1 %vm15735_vm0, %v15734_v0  ;;  %v14635_v47 = vpop.f32.mrb[211].mxu0 }
 0x7dc   :  { %v6631_v22 = vpop.f32.mrb[100].mxu1 }
 0x7dd   :  { %v14468_v33 = vpop.f32.mrb[101].mxu1 }
 0x7de   :  { %v6633_v6 = vpop.f32.mrb[102].mxu1  ;;  %v15600_v33 = vld [vmem:[#allocation2 + $0xe0] sm:$0xff]  }
 0x7df   :  { %v14469_v49 = vpop.f32.mrb[103].mxu1  ;;  %v7443_v35 = vpop.f32.mrb[212].mxu0 }
 0x7e0   :  { %v14638_v57 = vpop.f32.mrb[213].mxu0 }
 0x7e1   :  { %14743 = vmatmul.mubr.msk.bf16.gmra.mrb[208].mxu1 %vm213_vm1, %v15599_v15  ;;  %v7446_v10 = vpop.f32.mrb[214].mxu0 }
 0x7e2   :  { %14746 = vmatprep.mubr.msk.bf16.mxu1 %vm15735_vm0, %v15734_v0  ;;  %v14639_v50 = vpop.f32.mrb[215].mxu0 }
 0x7e4   :  { %v6637_v26 = vpop.f32.mrb[104].mxu1 }
 0x7e5   :  { %v14472_v18 = vpop.f32.mrb[105].mxu1  ;;  %v6746_v34 = vadd.f32 %v6637_v26, %v18101_v55 }
 0x7e6   :  { %v6640_v24 = vpop.f32.mrb[106].mxu1 }
 0x7e7   :  { %v18469_v17 = vadd.f32 %v7443_v35, %v6746_v34  ;;  %v14473_v47 = vpop.f32.mrb[107].mxu1  ;;  %v6747_v22 = vadd.f32 %v6640_v24, %v18104_v1  ;;  %v7451_v6 = vpop.f32.mrb[216].mxu0  ;;  %v19407_v24 = vld [vmem:[#allocation3_spill] sm:$0xff] }
 0x7e8   :  { %v14642_v15 = vpop.f32.mrb[217].mxu0 }
 0x7e9   :  { %v18472_v49 = vadd.f32 %v7446_v10, %v6747_v22  ;;  %14747 = vmatmul.mubr.msk.bf16.gmra.mrb[212].mxu1 %vm213_vm1, %v15600_v33  ;;  %v7454_v57 = vpop.f32.mrb[218].mxu0  ;;  %v15601_v10 = vld [vmem:[#allocation2 + $0xe8] sm:$0xff]  }
 0x7ea   :  { %14750 = vmatprep.mubr.msk.bf16.mxu1 %vm15735_vm0, %v15734_v0  ;;  %v14643_v50 = vpop.f32.mrb[219].mxu0 }
 0x7eb   :  { %19406 = vst [vmem:[#allocation11_spill] sm:$0xff] %v18472_v49 }
 0x7ec   :  { %v6645_v18 = vpop.f32.mrb[108].mxu1 }
 0x7ed   :  { %v14476_v55 = vpop.f32.mrb[109].mxu1  ;;  %v6748_v35 = vadd.f32 %v6645_v18, %v18113_v37 }
 0x7ee   :  { %v6648_v26 = vpop.f32.mrb[110].mxu1 }
 0x7ef   :  { %v18478_v34 = vadd.f32 %v7451_v6, %v6748_v35  ;;  %v14477_v1 = vpop.f32.mrb[111].mxu1  ;;  %v6749_v47 = vadd.f32 %v6648_v26, %v19407_v24  ;;  %v7459_v22 = vpop.f32.mrb[220].mxu0 }
 0x7f0   :  { %v14646_v33 = vpop.f32.mrb[221].mxu0 }
 0x7f1   :  { %v18481_v49 = vadd.f32 %v7454_v57, %v6749_v47  ;;  %14751 = vmatmul.mubr.msk.bf16.gmra.mrb[216].mxu1 %vm213_vm1, %v15601_v10  ;;  %v7462_v15 = vpop.f32.mrb[222].mxu0  ;;  %v15602_v57 = vld [vmem:[#allocation2 + $0xf0] sm:$0xff]  }
 0x7f2   :  { %14754 = vmatprep.mubr.msk.bf16.mxu1 %vm15735_vm0, %v15734_v0  ;;  %v14647_v50 = vpop.f32.mrb[223].mxu0 }
 0x7f4   :  { %v6653_v55 = vpop.f32.mrb[112].mxu1 }
 0x7f5   :  { %v14480_v37 = vpop.f32.mrb[113].mxu1  ;;  %v6750_v6 = vadd.f32 %v6653_v55, %v18125_v62 }
 0x7f6   :  { %v6656_v18 = vpop.f32.mrb[114].mxu1 }
 0x7f7   :  { %v18487_v35 = vadd.f32 %v7459_v22, %v6750_v6  ;;  %v14481_v26 = vpop.f32.mrb[115].mxu1  ;;  %v6751_v1 = vadd.f32 %v6656_v18, %v18128_v39  ;;  %v7467_v24 = vpop.f32.mrb[224].mxu0  ;;  %v19409_v6 = vld [vmem:[#allocation4_spill] sm:$0xff] }
 0x7f8   :  { %v14650_v10 = vpop.f32.mrb[225].mxu0 }
 0x7f9   :  { %v18490_v47 = vadd.f32 %v7462_v15, %v6751_v1  ;;  %14755 = vmatmul.mubr.msk.bf16.gmra.mrb[220].mxu1 %vm213_vm1, %v15602_v57  ;;  %v7470_v33 = vpop.f32.mrb[226].mxu0  ;;  %v15603_v15 = vld [vmem:[#allocation2 + $0xf8] sm:$0xff]  }
 0x7fa   :  { %14758 = vmatprep.mubr.msk.bf16.mxu1 %vm15735_vm0, %v15734_v0  ;;  %v14651_v50 = vpop.f32.mrb[227].mxu0 }
 0x7fb   :  { %19408 = vst [vmem:[#allocation14_spill] sm:$0xff] %v18490_v47 }
 0x7fc   :  { %v6661_v37 = vpop.f32.mrb[116].mxu1 }
 0x7fd   :  { %v6752_v62 = vadd.f32 %v6661_v37, %v18137_v46  ;;  %v14484_v22 = vpop.f32.mrb[117].mxu1  ;;  %v15604_v46 = vld [vmem:[#allocation2 + $0x100] sm:$0xff]  }
 0x7fe   :  { %v6664_v55 = vpop.f32.mrb[118].mxu1  ;;  %v15605_v22 = vld [vmem:[#allocation2 + $0x108] sm:$0xff]  }
 0x7ff   :  { %v6753_v26 = vadd.f32 %v6664_v55, %v19409_v6  ;;  %v18497_v39 = vadd.f32 %v7467_v24, %v6752_v62  ;;  %v14485_v18 = vpop.f32.mrb[119].mxu1 }
 0x800   :  { %v15606_v18 = vld [vmem:[#allocation2 + $0x110] sm:$0xff]  }
 0x801   :  { %v18499_v1 = vadd.f32 %v7470_v33, %v6753_v26  ;;  %14759 = vmatmul.mubr.msk.bf16.gmra.mrb[224].mxu1 %vm213_vm1, %v15603_v15 }
 0x802   :  { %14762 = vmatprep.mubr.msk.bf16.mxu1 %vm15735_vm0, %v15734_v0 }
 0x803   :  { %19410 = vst [vmem:[#allocation12_spill] sm:$0xff] %v18499_v1 }
 0x804   :  { %v6669_v57 = vpop.f32.mrb[120].mxu1 }
 0x805   :  { %v14488_v10 = vpop.f32.mrb[121].mxu1 }
 0x806   :  { %v6671_v50 = vpop.f32.mrb[122].mxu1 }
 0x807   :  { %v14489_v47 = vpop.f32.mrb[123].mxu1 }
 0x809   :  { %14763 = vmatmul.mubr.msk.bf16.gmra.mrb[228].mxu1 %vm213_vm1, %v15604_v46  ;;  %v15607_v46 = vld [vmem:[#allocation2 + $0x118] sm:$0xff]  }
 0x80a   :  { %14766 = vmatprep.mubr.msk.bf16.mxu1 %vm15735_vm0, %v15734_v0 }
 0x80c   :  { %v6675_v24 = vpop.f32.mrb[124].mxu1 }
 0x80d   :  { %v14492_v37 = vpop.f32.mrb[125].mxu1 }
 0x80e   :  { %v6677_v62 = vpop.f32.mrb[126].mxu1 }
 0x80f   :  { %v14493_v33 = vpop.f32.mrb[127].mxu1  ;;  %v15608_v62 = vld [vmem:[#allocation2 + $0x120] sm:$0xff]  }
 0x811   :  { %14767 = vmatmul.mubr.msk.bf16.gmra.mrb[232].mxu1 %vm213_vm1, %v15605_v22 }
 0x812   :  { %14770 = vmatprep.mubr.msk.bf16.mxu1 %vm15735_vm0, %v15734_v0 }
 0x814   :  { %v6681_v55 = vpop.f32.mrb[128].mxu1 }
 0x815   :  { %v14496_v6 = vpop.f32.mrb[129].mxu1 }
 0x816   :  { %v6683_v26 = vpop.f32.mrb[130].mxu1 }
 0x817   :  { %v14497_v47 = vpop.f32.mrb[131].mxu1 }
 0x819   :  { %14771 = vmatmul.mubr.msk.bf16.gmra.mrb[236].mxu1 %vm213_vm1, %v15606_v18  ;;  %v15609_v18 = vld [vmem:[#allocation2 + $0x128] sm:$0xff]  }
 0x81a   :  { %14774 = vmatprep.mubr.msk.bf16.mxu1 %vm15735_vm0, %v15734_v0 }
 0x81c   :  { %v6687_v15 = vpop.f32.mrb[132].mxu1 }
 0x81d   :  { %v14500_v57 = vpop.f32.mrb[133].mxu1 }
 0x81e   :  { %v6689_v10 = vpop.f32.mrb[134].mxu1 }
 0x81f   :  { %v14501_v50 = vpop.f32.mrb[135].mxu1 }
 0x821   :  { %14775 = vmatmul.mubr.msk.bf16.gmra.mrb[240].mxu1 %vm213_vm1, %v15607_v46  ;;  %v15611_v46 = vld [vmem:[#allocation2 + $0x130] sm:$0xff]  }
 0x822   :  { %14778 = vmatprep.mubr.msk.bf16.mxu1 %vm15735_vm0, %v15734_v0 }
 0x824   :  { %v6693_v24 = vpop.f32.mrb[136].mxu1 }
 0x825   :  { %v14504_v37 = vpop.f32.mrb[137].mxu1 }
 0x826   :  { %v6695_v33 = vpop.f32.mrb[138].mxu1 }
 0x827   :  { %v14505_v22 = vpop.f32.mrb[139].mxu1 }
 0x828   :  { %v15613_v22 = vld [vmem:[#allocation2 + $0x138] sm:$0xff]  }
 0x829   :  { %14779 = vmatmul.mubr.msk.bf16.gmra.mrb[244].mxu1 %vm213_vm1, %v15608_v62 }
 0x82a   :  { %14782 = vmatprep.mubr.msk.bf16.mxu1 %vm15735_vm0, %v15734_v0 }
 0x82c   :  { %v8009_v55 = vpop.f32.mrb[140].mxu1 }
 0x82d   :  { %v14676_v6 = vpop.f32.mrb[141].mxu1 }
 0x82e   :  { %v8011_v26 = vpop.f32.mrb[142].mxu1 }
 0x82f   :  { %v14677_v47 = vpop.f32.mrb[143].mxu1 }
 0x831   :  { %14783 = vmatmul.mubr.msk.bf16.gmra.mrb[248].mxu1 %vm213_vm1, %v15609_v18  ;;  %v15616_v18 = vld [vmem:[#allocation2 + $0x140] sm:$0xff]  }
 0x832   :  { %14786 = vmatprep.mubr.msk.bf16.mxu1 %vm15735_vm0, %v15734_v0 }
 0x834   :  { %v8015_v15 = vpop.f32.mrb[144].mxu1 }
 0x835   :  { %v14680_v57 = vpop.f32.mrb[145].mxu1 }
 0x836   :  { %v8017_v10 = vpop.f32.mrb[146].mxu1 }
 0x837   :  { %v14681_v50 = vpop.f32.mrb[147].mxu1  ;;  %v15618_v10 = vld [vmem:[#allocation2 + $0x148] sm:$0xff]  }
 0x839   :  { %14787 = vmatmul.mubr.msk.bf16.gmra.mrb[252].mxu1 %vm213_vm1, %v15611_v46 }
 0x83a   :  { %14790 = vmatprep.mubr.msk.bf16.mxu1 %vm15735_vm0, %v15734_v0 }
 0x83c   :  { %v8021_v24 = vpop.f32.mrb[148].mxu1 }
 0x83d   :  { %v14684_v37 = vpop.f32.mrb[149].mxu1 }
 0x83e   :  { %v8023_v62 = vpop.f32.mrb[150].mxu1  ;;  %v18537_v37 = vld [vmem:[%s19347_s4] ss:$0 sm:$0xff] }
 0x83f   :  { %v14685_v33 = vpop.f32.mrb[151].mxu1 }
 0x841   :  { %14791 = vmatmul.mubr.msk.bf16.gmra.mrb[0].mxu1 %vm213_vm1, %v15613_v22  ;;  %v15620_v22 = vld [vmem:[#allocation2 + $0x150] sm:$0xff]  }
 0x842   :  { %14794 = vmatprep.mubr.msk.bf16.mxu1 %vm15735_vm0, %v15734_v0 }
 0x844   :  { %v8027_v55 = vpop.f32.mrb[152].mxu1 }
 0x845   :  { %v14688_v6 = vpop.f32.mrb[153].mxu1 }
 0x846   :  { %v8029_v26 = vpop.f32.mrb[154].mxu1 }
 0x847   :  { %v14689_v47 = vpop.f32.mrb[155].mxu1  ;;  %v19411_v26 = vld [vmem:[#allocation5_spill] sm:$0xff] }
 0x849   :  { %14795 = vmatmul.mubr.msk.bf16.gmra.mrb[4].mxu1 %vm213_vm1, %v15616_v18 }
 0x84a   :  { %14798 = vmatprep.mubr.msk.bf16.mxu1 %vm15735_vm0, %v15734_v0 }
 0x84c   :  { %v8033_v15 = vpop.f32.mrb[156].mxu1 }
 0x84d   :  { %v14692_v57 = vpop.f32.mrb[157].mxu1 }
 0x84e   :  { %v8035_v50 = vpop.f32.mrb[158].mxu1 }
 0x84f   :  { %v14693_v46 = vpop.f32.mrb[159].mxu1 }
 0x851   :  { %14799 = vmatmul.mubr.msk.bf16.gmra.mrb[8].mxu1 %vm213_vm1, %v15618_v10 }
 0x852   :  { %14802 = vmatprep.mubr.msk.bf16.mxu1 %vm15735_vm0, %v15734_v0 }
 0x854   :  { %v8039_v24 = vpop.f32.mrb[160].mxu1 }
 0x855   :  { %v8310_v62 = vadd.f32 %v8039_v24, %v18209_v31  ;;  %v14696_v33 = vpop.f32.mrb[161].mxu1 }
 0x856   :  { %v8042_v55 = vpop.f32.mrb[162].mxu1  ;;  %v15621_v33 = vld [vmem:[#allocation2 + $0x158] sm:$0xff]  }
 0x857   :  { %v8373_v6 = vadd.f32 %v18537_v37, %v8310_v62  ;;  %v8311_v47 = vadd.f32 %v8042_v55, %v19411_v26  ;;  %v14697_v18 = vpop.f32.mrb[163].mxu1  ;;  %v15622_v62 = vld [vmem:[%s19346_s5] sm:$0xff]  }
 0x859   :  { %v8374_v15 = vadd.f32 %v18537_v37, %v8311_v47  ;;  %14803 = vmatmul.mubr.msk.bf16.gmra.mrb[12].mxu1 %vm213_vm1, %v15620_v22  ;;  %v8429_v57 = vmax.f32 %v8373_v6, 0.0 }
 0x85a   :  { %14806 = vmatprep.mubr.msk.bf16.mxu1 %vm15735_vm0, %v15734_v0 }
 0x85b   :  { %v8430_v10 = vmax.f32 %v8374_v15, 0.0 }
 0x85c   :  { %v8047_v50 = vpop.f32.mrb[164].mxu1 }
 0x85d   :  { %v8485_v46 = vpack.c.bf16 %v8430_v10, %v8429_v57  ;;  %v8312_v31 = vadd.f32 %v8047_v50, %v18221_v63  ;;  %v14700_v24 = vpop.f32.mrb[165].mxu1  ;;  %v15623_v63 = vld [vmem:[%s19346_s5 + $0x8] sm:$0xff]   ;;  %v15624_v50 = vld [vmem:[#allocation2 + $0x160] sm:$0xff]  }
 0x85e   :  { %v8050_v1 = vpop.f32.mrb[166].mxu1  ;;  %v15625_v24 = vld [vmem:[%s19346_s5 + $0x20] sm:$0xff]  }
 0x85f   :  { %v8522_v55 = vrot.slane %v8485_v46, 4  ;;  %v8375_v22 = vadd.f32 %v18537_v37, %v8312_v31  ;;  %v8313_v26 = vadd.f32 %v8050_v1, %v18224_v43  ;;  %v14701_v47 = vpop.f32.mrb[167].mxu1 }
 0x861   :  { %v8376_v6 = vadd.f32 %v18537_v37, %v8313_v26  ;;  %14807 = vmatmul.mubr.msk.bf16.gmra.mrb[16].mxu1 %vm213_vm1, %v15621_v33  ;;  %14843 = vmatmul.mubr.msk.bf16.vlgmr.msra.gmra.mrb[248].mxu0 %vm8535_vm3, %v8522_v55  ;;  %v8431_v18 = vmax.f32 %v8375_v22, 0.0 }
 0x862   :  { %14847 = vmatpush3.bf16.msra.mxu0 %v15622_v62  ;;  %14810 = vmatprep.mubr.msk.bf16.mxu1 %vm15735_vm0, %v15734_v0  ;;  %v19412_v62 = vld [vmem:[#allocation6_spill] sm:$0xff] }
 0x863   :  { %v8432_v15 = vmax.f32 %v8376_v6, 0.0  ;;  %14848 = vmatprep.subr.bf16.mxu0 %v15734_v0  ;;  %14850 = vmatprep.mubr.msk.bf16.mxu0 %vm15735_vm0, %v15734_v0 }
 0x864   :  { %v8055_v43 = vpop.f32.mrb[168].mxu1 }
 0x865   :  { %v8486_v1 = vpack.c.bf16 %v8432_v15, %v8431_v18  ;;  %v8314_v57 = vadd.f32 %v8055_v43, %v18233_v7  ;;  %v14704_v10 = vpop.f32.mrb[169].mxu1  ;;  %v15626_v7 = vld [vmem:[%s19346_s5 + $0x28] sm:$0xff]  }
 0x866   :  { %14849 = vmatpush3.bf16.msra.mxu0 %v15623_v63  ;;  %v8058_v31 = vpop.f32.mrb[170].mxu1  ;;  %v15627_v43 = vld [vmem:[#allocation2 + $0x168] sm:$0xff]   ;;  %v15628_v10 = vld [vmem:[%s19346_s5 + $0x30] sm:$0xff]  }
 0x867   :  { %v8377_v33 = vadd.f32 %v18537_v37, %v8314_v57  ;;  %v8315_v55 = vadd.f32 %v8058_v31, %v19412_v62  ;;  %v14705_v22 = vpop.f32.mrb[171].mxu1  ;;  %14854 = vmatprep.subr.bf16.mxu0 %v15734_v0 }
 0x869   :  { %v8378_v26 = vadd.f32 %v18537_v37, %v8315_v55  ;;  %14811 = vmatmul.mubr.msk.bf16.gmra.mrb[20].mxu1 %vm213_vm1, %v15624_v50  ;;  %14851 = vmatmul.mubr.msk.bf16.vlgmr.msra.gmra.mrb[252].mxu0 %vm8535_vm3, %v8485_v46  ;;  %v8433_v47 = vmax.f32 %v8377_v33, 0.0 }
 0x86a   :  { %14855 = vmatpush3.bf16.msra.mxu0 %v15625_v24  ;;  %14814 = vmatprep.mubr.msk.bf16.mxu1 %vm15735_vm0, %v15734_v0 }
 0x86b   :  { %v8434_v6 = vmax.f32 %v8378_v26, 0.0  ;;  %14856 = vmatprep.subr.bf16.mxu0 %v15734_v0  ;;  %14858 = vmatprep.mubr.msk.bf16.mxu0 %vm15735_vm0, %v15734_v0 }
 0x86c   :  { %v8063_v63 = vpop.f32.mrb[172].mxu1 }
 0x86d   :  { %v18581_v18 = vpack.c.bf16 %v8434_v6, %v8433_v47  ;;  %v8316_v46 = vadd.f32 %v8063_v63, %v18245_v25  ;;  %v14708_v15 = vpop.f32.mrb[173].mxu1  ;;  %v15629_v25 = vld [vmem:[%s19346_s5 + $0x38] sm:$0xff]   ;;  %v15634_v47 = vld [vmem:[#allocation2 + $0x170] sm:$0xff]   ;;  %v15630_v63 = vld [vmem:[%s19346_s5 + $0x40] sm:$0xff]  }
 0x86e   :  { %14857 = vmatpush3.bf16.msra.mxu0 %v15626_v7  ;;  %v8066_v57 = vpop.f32.mrb[174].mxu1 }
 0x86f   :  { %v8379_v50 = vadd.f32 %v18537_v37, %v8316_v46  ;;  %v8317_v31 = vadd.f32 %v8066_v57, %v18248_v32  ;;  %14862 = vmatprep.subr.bf16.mxu0 %v15734_v0  ;;  %v14709_v24 = vpop.f32.mrb[175].mxu1  ;;  %v8699_v46 = vrot.slane %v8486_v1, 4 }
 0x871   :  { %v8380_v33 = vadd.f32 %v18537_v37, %v8317_v31  ;;  %14815 = vmatmul.mubr.msk.bf16.gmra.mrb[24].mxu1 %vm213_vm1, %v15627_v43  ;;  %14859 = vmatmul.mubr.msk.bf16.vlgmr.msra.gmra.mrb[0].mxu0 %vm8535_vm3, %v8486_v1  ;;  %v8435_v62 = vmax.f32 %v8379_v50, 0.0 }
 0x872   :  { %14863 = vmatpush3.bf16.msra.mxu0 %v15628_v10  ;;  %14866 = vmatprep.mubr.msk.bf16.mxu0 %vm15735_vm0, %v15734_v0 }
 0x873   :  { %v8436_v55 = vmax.f32 %v8380_v33, 0.0  ;;  %14864 = vmatprep.subr.bf16.mxu0 %v15734_v0  ;;  %14818 = vmatprep.mubr.msk.bf16.mxu1 %vm15735_vm0, %v15734_v0 }
 0x874   :  { %v8071_v32 = vpop.f32.mrb[176].mxu1 }
 0x875   :  { %v18601_v22 = vpack.c.bf16 %v8436_v55, %v8435_v62  ;;  %v8318_v26 = vadd.f32 %v8071_v32, %v18254_v61  ;;  %v14712_v7 = vpop.f32.mrb[177].mxu1  ;;  %v15631_v61 = vld [vmem:[%s19346_s5 + $0x48] sm:$0xff]   ;;  %v15632_v55 = vld [vmem:[%s19346_s5 + $0x50] sm:$0xff]  }
 0x876   :  { %14865 = vmatpush3.bf16.msra.mxu0 %v15629_v25  ;;  %v8074_v6 = vpop.f32.mrb[178].mxu1  ;;  %v15637_v25 = vld [vmem:[#allocation2 + $0x178] sm:$0xff]  }
 0x877   :  { %v8381_v15 = vadd.f32 %v18537_v37, %v8318_v26  ;;  %v8319_v43 = vadd.f32 %v8074_v6, %v18257_v29  ;;  %v14713_v57 = vpop.f32.mrb[179].mxu1  ;;  %14870 = vmatprep.subr.bf16.mxu0 %v15734_v0 }
 0x878   :  { %v15640_v57 = vld [vmem:[#allocation2 + $0x180] sm:$0xff]  }
 0x879   :  { %v8382_v10 = vadd.f32 %v18537_v37, %v8319_v43  ;;  %14867 = vmatmul.mubr.msk.bf16.vlgmr.msra.gmra.mrb[4].mxu0 %vm8535_vm3, %v8699_v46  ;;  %14819 = vmatmul.mubr.msk.bf16.gmra.mrb[28].mxu1 %vm213_vm1, %v15634_v47  ;;  %v8437_v1 = vmax.f32 %v8381_v15, 0.0 }
 0x87a   :  { %14871 = vmatpush3.bf16.msra.mxu0 %v15630_v63  ;;  %14874 = vmatprep.mubr.msk.bf16.mxu0 %vm15735_vm0, %v15734_v0 }
 0x87b   :  { %v8438_v50 = vmax.f32 %v8382_v10, 0.0  ;;  %14872 = vmatprep.subr.bf16.mxu0 %v15734_v0  ;;  %14822 = vmatprep.mubr.msk.bf16.mxu1 %vm15735_vm0, %v15734_v0 }
 0x87c   :  { %v8079_v29 = vpop.f32.mrb[180].mxu1 }
 0x87d   :  { %v18621_v31 = vpack.c.bf16 %v8438_v50, %v8437_v1  ;;  %v8320_v24 = vadd.f32 %v8079_v29, %v18263_v28  ;;  %v14716_v33 = vpop.f32.mrb[181].mxu1  ;;  %v15633_v28 = vld [vmem:[%s19346_s5 + $0x58] sm:$0xff]   ;;  %v8821_v1 = vrot.slane %v18581_v18, 4 }
 0x87e   :  { %14873 = vmatpush3.bf16.msra.mxu0 %v15631_v61  ;;  %v8082_v62 = vpop.f32.mrb[182].mxu1  ;;  %v15635_v61 = vld [vmem:[%s19346_s5 + $0x60] sm:$0xff]   ;;  %v19413_v29 = vld [vmem:[#allocation7_spill] sm:$0xff] }
 0x87f   :  { %v8383_v32 = vadd.f32 %v18537_v37, %v8320_v24  ;;  %v8321_v26 = vadd.f32 %v8082_v62, %v18266_v12  ;;  %v14717_v7 = vpop.f32.mrb[183].mxu1  ;;  %14878 = vmatprep.subr.bf16.mxu0 %v15734_v0 }
 0x881   :  { %v8384_v47 = vadd.f32 %v18537_v37, %v8321_v26  ;;  %14875 = vmatmul.mubr.msk.bf16.vlgmr.msra.gmra.mrb[8].mxu0 %vm8535_vm3, %v18581_v18  ;;  %14823 = vmatmul.mubr.msk.bf16.gmra.mrb[32].mxu1 %vm213_vm1, %v15637_v25  ;;  %v8439_v6 = vmax.f32 %v8383_v32, 0.0 }
 0x882   :  { %14879 = vmatpush3.bf16.msra.mxu0 %v15632_v55  ;;  %14882 = vmatprep.mubr.msk.bf16.mxu0 %vm15735_vm0, %v15734_v0 }
 0x883   :  { %v8440_v12 = vmax.f32 %v8384_v47, 0.0  ;;  %14880 = vmatprep.subr.bf16.mxu0 %v15734_v0  ;;  %14826 = vmatprep.mubr.msk.bf16.mxu1 %vm15735_vm0, %v15734_v0  ;;  %v7475_v18 = vpop.f32.mrb[228].mxu0 }
 0x884   :  { %v8087_v63 = vpop.f32.mrb[184].mxu1  ;;  %v14654_v32 = vpop.f32.mrb[229].mxu0  ;;  %v15646_v18 = vld [vmem:[#allocation2 + $0x190] ss:$0 sps:$4 sm:$0xff]  }
 0x885   :  { %v18642_v46 = vpack.c.bf16 %v8440_v12, %v8439_v6  ;;  %v8322_v15 = vadd.f32 %v8087_v63, %v18275_v27  ;;  %v14720_v43 = vpop.f32.mrb[185].mxu1  ;;  %v15636_v27 = vld [vmem:[%s19346_s5 + $0x68] sm:$0xff]   ;;  %v7477_v7 = vpop.f32.mrb[230].mxu0  ;;  %v15641_v32 = vld [vmem:[%s19346_s5 + $0x80] sm:$0xff]  }
 0x886   :  { %14881 = vmatpush3.bf16.msra.mxu0 %v15633_v28  ;;  %v8090_v10 = vpop.f32.mrb[186].mxu1  ;;  %v15643_v12 = vld [vmem:[#allocation2 + $0x188] sm:$0xff]   ;;  %v14655_v63 = vpop.f32.mrb[231].mxu0  ;;  %v15638_v43 = vld [vmem:[%s19346_s5 + $0x70] sm:$0xff]  }
 0x887   :  { %v8385_v50 = vadd.f32 %v18537_v37, %v8322_v15  ;;  %v8323_v24 = vadd.f32 %v8090_v10, %v19413_v29  ;;  %v14721_v33 = vpop.f32.mrb[187].mxu1  ;;  %14886 = vmatprep.subr.bf16.mxu0 %v15734_v0 }
 0x889   :  { %v8386_v25 = vadd.f32 %v18537_v37, %v8323_v24  ;;  %14883 = vmatmul.mubr.msk.bf16.vlgmr.msra.gmra.mrb[12].mxu0 %vm8535_vm3, %v8821_v1  ;;  %14827 = vmatmul.mubr.msk.bf16.gmra.mrb[36].mxu1 %vm213_vm1, %v15640_v57  ;;  %v8441_v62 = vmax.f32 %v8385_v50, 0.0 }
 0x88a   :  { %14887 = vmatpush3.bf16.msra.mxu0 %v15635_v61  ;;  %14890 = vmatprep.mubr.msk.bf16.mxu0 %vm15735_vm0, %v15734_v0 }
 0x88b   :  { %v8442_v55 = vmax.f32 %v8386_v25, 0.0  ;;  %14888 = vmatprep.subr.bf16.mxu0 %v15734_v0  ;;  %14830 = vmatprep.mubr.msk.bf16.mxu1 %vm15735_vm0, %v15734_v0  ;;  %v7481_v50 = vpop.f32.mrb[232].mxu0 }
 0x88c   :  { %v8095_v26 = vpop.f32.mrb[188].mxu1  ;;  %v14658_v24 = vpop.f32.mrb[233].mxu0 }
 0x88d   :  { %v18663_v47 = vpack.c.bf16 %v8442_v55, %v8441_v62  ;;  %v8324_v28 = vadd.f32 %v8095_v26, %v18285_v52  ;;  %v14724_v6 = vpop.f32.mrb[189].mxu1  ;;  %v15639_v52 = vld [vmem:[%s19346_s5 + $0x78] sm:$0xff]   ;;  %v7483_v33 = vpop.f32.mrb[234].mxu0  ;;  %v8943_v26 = vrot.slane %v18621_v31, 4 }
 0x88e   :  { %14889 = vmatpush3.bf16.msra.mxu0 %v15636_v27  ;;  %v8098_v15 = vpop.f32.mrb[190].mxu1  ;;  %v14659_v62 = vpop.f32.mrb[235].mxu0 }
 0x88f   :  { %v8387_v57 = vadd.f32 %v18537_v37, %v8324_v28  ;;  %v8325_v10 = vadd.f32 %v8098_v15, %v18288_v56  ;;  %v14725_v61 = vpop.f32.mrb[191].mxu1  ;;  %14894 = vmatprep.subr.bf16.mxu0 %v15734_v0  ;;  %v15642_v28 = vld [vmem:[%s19346_s5 + $0x88] sm:$0xff]  }
 0x890   :  { %v15644_v61 = vld [vmem:[%s19346_s5 + $0x90] sm:$0xff]  }
 0x891   :  { %v8388_v1 = vadd.f32 %v18537_v37, %v8325_v10  ;;  %14891 = vmatmul.mubr.msk.bf16.vlgmr.msra.gmra.mrb[16].mxu0 %vm8535_vm3, %v18601_v22  ;;  %14831 = vmatmul.mubr.msk.bf16.gmra.mrb[40].mxu1 %vm213_vm1, %v15643_v12  ;;  %v8443_v56 = vmax.f32 %v8387_v57, 0.0 }
 0x892   :  { %14895 = vmatpush3.bf16.msra.mxu0 %v15638_v43  ;;  %14898 = vmatprep.mubr.msk.bf16.mxu0 %vm15735_vm0, %v15734_v0 }
 0x893   :  { %v8444_v29 = vmax.f32 %v8388_v1, 0.0  ;;  %14896 = vmatprep.subr.bf16.mxu0 %v15734_v0  ;;  %14834 = vmatprep.mubr.msk.bf16.mxu1 %vm15735_vm0, %v15734_v0  ;;  %v7487_v6 = vpop.f32.mrb[236].mxu0 }
 0x894   :  { %v8103_v22 = vpop.f32.mrb[192].mxu1  ;;  %v14662_v31 = vpop.f32.mrb[237].mxu0 }
 0x895   :  { %v18684_v25 = vpack.c.bf16 %v8444_v29, %v8443_v56  ;;  %v14728_v27 = vpop.f32.mrb[193].mxu1  ;;  %v7489_v63 = vpop.f32.mrb[238].mxu0 }
 0x896   :  { %14897 = vmatpush3.bf16.msra.mxu0 %v15639_v52  ;;  %v8105_v55 = vpop.f32.mrb[194].mxu1  ;;  %v14663_v57 = vpop.f32.mrb[239].mxu0 }
 0x897   :  { %v14729_v7 = vpop.f32.mrb[195].mxu1  ;;  %14902 = vmatprep.subr.bf16.mxu0 %v15734_v0 }
 0x898   :  { %v15647_v7 = vld [vmem:[%s19346_s5 + $0xa0] sm:$0xff]  }
 0x899   :  { %14899 = vmatmul.mubr.msk.bf16.vlgmr.msra.gmra.mrb[20].mxu0 %vm8535_vm3, %v8943_v26  ;;  %14835 = vmatmul.mubr.msk.bf16.gmra.mrb[44].mxu1 %vm213_vm1, %v15646_v18 }
 0x89a   :  { %14903 = vmatpush3.bf16.msra.mxu0 %v15641_v32  ;;  %14906 = vmatprep.mubr.msk.bf16.mxu0 %vm15735_vm0, %v15734_v0 }
 0x89b   :  { %14904 = vmatprep.subr.bf16.mxu0 %v15734_v0  ;;  %14978 = vmatprep.mubr.msk.bf16.mxu1 %vm15735_vm0, %v15734_v0  ;;  %v7493_v29 = vpop.f32.mrb[240].mxu0 }
 0x89c   :  { %v8109_v12 = vpop.f32.mrb[196].mxu1 }
 0x89d   :  { %v8326_v15 = vadd.f32 %v8109_v12, %v18300_v53  ;;  %v14732_v43 = vpop.f32.mrb[197].mxu1  ;;  %v15645_v53 = vld [vmem:[%s19346_s5 + $0x98] sm:$0xff]  }
 0x89e   :  { %14905 = vmatpush3.bf16.msra.mxu0 %v15642_v28  ;;  %v8112_v10 = vpop.f32.mrb[198].mxu1  ;;  %v9065_v28 = vrot.slane %v18642_v46, 4 }
 0x89f   :  { %v8389_v1 = vadd.f32 %v18537_v37, %v8326_v15  ;;  %v8327_v52 = vadd.f32 %v8112_v10, %v18303_v41  ;;  %v14733_v50 = vpop.f32.mrb[199].mxu1  ;;  %14910 = vmatprep.subr.bf16.mxu0 %v15734_v0  ;;  %v14666_v41 = vpop.f32.mrb[241].mxu0 }
 0x8a0   :  { %v7495_v27 = vpop.f32.mrb[242].mxu0 }
 0x8a1   :  { %v8390_v56 = vadd.f32 %v18537_v37, %v8327_v52  ;;  %14907 = vmatmul.mubr.msk.bf16.vlgmr.msra.gmra.mrb[24].mxu0 %vm8535_vm3, %v18642_v46  ;;  %v8445_v24 = vmax.f32 %v8389_v1, 0.0  ;;  %v14667_v32 = vpop.f32.mrb[243].mxu0  ;;  %v15649_v1 = vld [vmem:[%s19346_s5 + $0xb0] sm:$0xff]   ;;  %v15651_v27 = vld [vmem:[%s19346_s5 + $0xb8] sm:$0xff]  }
 0x8a2   :  { %14911 = vmatpush3.bf16.msra.mxu0 %v15644_v61  ;;  %14914 = vmatprep.mubr.msk.bf16.mxu0 %vm15735_vm0, %v15734_v0  ;;  %v15650_v52 = vld [vmem:[%s19346_s5 + $0x130] sm:$0xff]  }
 0x8a3   :  { %v8446_v22 = vmax.f32 %v8390_v56, 0.0  ;;  %14912 = vmatprep.subr.bf16.mxu0 %v15734_v0 }
 0x8a4   :  { %v8117_v33 = vpop.f32.mrb[200].mxu1 }
 0x8a5   :  { %v18717_v18 = vpack.c.bf16 %v8446_v22, %v8445_v24  ;;  %v8328_v62 = vadd.f32 %v8117_v33, %v18310_v13  ;;  %v14736_v55 = vpop.f32.mrb[201].mxu1  ;;  %v15648_v13 = vld [vmem:[%s19346_s5 + $0xa8] sm:$0xff]   ;;  %v7499_v50 = vpop.f32.mrb[244].mxu0 }
 0x8a6   :  { %14913 = vmatpush3.bf16.msra.mxu0 %v15645_v53  ;;  %v8120_v26 = vpop.f32.mrb[202].mxu1 }
 0x8a7   :  { %v8391_v6 = vadd.f32 %v18537_v37, %v8328_v62  ;;  %v8329_v31 = vadd.f32 %v8120_v26, %v18313_v21  ;;  %v14737_v12 = vpop.f32.mrb[203].mxu1  ;;  %14918 = vmatprep.subr.bf16.mxu0 %v15734_v0 }
 0x8a8   :  { %v9187_v12 = vrot.slane %v18663_v47, 4 }
 0x8a9   :  { %v8392_v63 = vadd.f32 %v18537_v37, %v8329_v31  ;;  %14915 = vmatmul.mubr.msk.bf16.vlgmr.msra.gmra.mrb[28].mxu0 %vm8535_vm3, %v9065_v28  ;;  %v8447_v46 = vmax.f32 %v8391_v6, 0.0  ;;  %v15653_v31 = vld [vmem:[%s19346_s5 + $0xc0] sm:$0xff]  }
 0x8aa   :  { %14919 = vmatpush3.bf16.msra.mxu0 %v15647_v7  ;;  %14922 = vmatprep.mubr.msk.bf16.mxu0 %vm15735_vm0, %v15734_v0 }
 0x8ab   :  { %v8448_v15 = vmax.f32 %v8392_v63, 0.0  ;;  %14920 = vmatprep.subr.bf16.mxu0 %v15734_v0 }
 0x8ac   :  { %v8125_v21 = vpop.f32.mrb[204].mxu1 }
 0x8ad   :  { %v18735_v43 = vpack.c.bf16 %v8448_v15, %v8447_v46  ;;  %v8330_v57 = vadd.f32 %v8125_v21, %v18319_v38  ;;  %v14740_v10 = vpop.f32.mrb[205].mxu1  ;;  %v14670_v38 = vpop.f32.mrb[245].mxu0 }
 0x8ae   :  { %14921 = vmatpush3.bf16.msra.mxu0 %v15648_v13  ;;  %v8128_v61 = vpop.f32.mrb[206].mxu1  ;;  %v7501_v22 = vpop.f32.mrb[246].mxu0  ;;  %v15658_v10 = vld [vmem:[%s19346_s5 + $0x158] sm:$0xff]  }
 0x8af   :  { %v9553_v56 = vrot.slane %v18735_v43, 4  ;;  %v8393_v53 = vadd.f32 %v18537_v37, %v8330_v57  ;;  %v8331_v29 = vadd.f32 %v8128_v61, %v18322_v59  ;;  %v14741_v24 = vpop.f32.mrb[207].mxu1  ;;  %14926 = vmatprep.subr.bf16.mxu0 %v15734_v0  ;;  %v14671_v33 = vpop.f32.mrb[247].mxu0  ;;  %v15652_v59 = vld [vmem:[%s19346_s5 + $0x138] sm:$0xff]  }
 0x8b1   :  { %v8394_v41 = vadd.f32 %v18537_v37, %v8331_v29  ;;  %14923 = vmatmul.mubr.msk.bf16.vlgmr.msra.gmra.mrb[32].mxu0 %vm8535_vm3, %v18663_v47  ;;  %14979 = vmatmul.mubr.msk.bf16.vlgmr.msra.gmra.mrb[48].mxu1 %vm8535_vm3, %v9553_v56  ;;  %v8449_v62 = vmax.f32 %v8393_v53, 0.0  ;;  %v15655_v53 = vld [vmem:[%s19346_s5 + $0xd0] sm:$0xff]  }
 0x8b2   :  { %14927 = vmatpush3.bf16.msra.mxu0 %v15649_v1  ;;  %14991 = vmatpush3.bf16.msra.mxu1 %v15650_v52 }
 0x8b3   :  { %v8450_v55 = vmax.f32 %v8394_v41, 0.0  ;;  %14928 = vmatprep.subr.bf16.mxu0 %v15734_v0  ;;  %14992 = vmatprep.subr.bf16.mxu1 %v15734_v0 }
 0x8b4   :  { %v8133_v32 = vpop.f32.mrb[208].mxu1  ;;  %14930 = vmatprep.mubr.msk.bf16.mxu0 %vm15735_vm0, %v15734_v0  ;;  %14994 = vmatprep.mubr.msk.bf16.mxu1 %vm15735_vm0, %v15734_v0 }
 0x8b5   :  { %v18764_v26 = vpack.c.bf16 %v8450_v55, %v8449_v62  ;;  %v8332_v7 = vadd.f32 %v8133_v32, %v18328_v20  ;;  %v14744_v28 = vpop.f32.mrb[209].mxu1  ;;  %v15656_v20 = vld [vmem:[%s19346_s5 + $0x150] sm:$0xff]   ;;  %v15659_v32 = vld [vmem:[%s19346_s5 + $0xe0] sm:$0xff]  }
 0x8b6   :  { %14929 = vmatpush3.bf16.msra.mxu0 %v15651_v27  ;;  %v8136_v6 = vpop.f32.mrb[210].mxu1  ;;  %14993 = vmatpush3.bf16.msra.mxu1 %v15652_v59  ;;  %v9309_v28 = vrot.slane %v18684_v25, 4 }
 0x8b7   :  { %v9675_v63 = vrot.slane %v18764_v26, 4  ;;  %v8395_v13 = vadd.f32 %v18537_v37, %v8332_v7  ;;  %v8333_v46 = vadd.f32 %v8136_v6, %v18331_v36  ;;  %14934 = vmatprep.subr.bf16.mxu0 %v15734_v0  ;;  %v14745_v15 = vpop.f32.mrb[211].mxu1  ;;  %15006 = vmatprep.subr.bf16.mxu1 %v15734_v0  ;;  %v15654_v36 = vld [vmem:[%s19346_s5 + $0xc8] sm:$0xff]   ;;  %v15660_v7 = vld [vmem:[%s19346_s5 + $0x170] sm:$0xff]  }
 0x8b9   :  { %v8396_v21 = vadd.f32 %v18537_v37, %v8333_v46  ;;  %14931 = vmatmul.mubr.msk.bf16.vlgmr.msra.gmra.mrb[36].mxu0 %vm8535_vm3, %v9187_v12  ;;  %14995 = vmatmul.mubr.msk.bf16.vlgmr.msra.gmra.mrb[52].mxu1 %vm8535_vm3, %v9675_v63  ;;  %v8451_v47 = vmax.f32 %v8395_v13, 0.0  ;;  %v15662_v13 = vld [vmem:[%s19346_s5 + $0x178] sm:$0xff]  }
 0x8ba   :  { %14935 = vmatpush3.bf16.msra.mxu0 %v15653_v31  ;;  %14938 = vmatprep.mubr.msk.bf16.mxu0 %vm15735_vm0, %v15734_v0 }
 0x8bb   :  { %v8452_v57 = vmax.f32 %v8396_v21, 0.0  ;;  %14936 = vmatprep.subr.bf16.mxu0 %v15734_v0  ;;  %15007 = vmatpush3.bf16.msra.mxu1 %v15656_v20 }
 0x8bc   :  { %v8141_v61 = vpop.f32.mrb[212].mxu1  ;;  %15008 = vmatprep.subr.bf16.mxu1 %v15734_v0  ;;  %15010 = vmatprep.mubr.msk.bf16.mxu1 %vm15735_vm0, %v15734_v0 }
 0x8bd   :  { %v18794_v1 = vpack.c.bf16 %v8452_v57, %v8451_v47  ;;  %v8334_v52 = vadd.f32 %v8141_v61, %v18337_v9  ;;  %v14748_v50 = vpop.f32.mrb[213].mxu1  ;;  %v15657_v9 = vld [vmem:[%s19346_s5 + $0xd8] sm:$0xff]   ;;  %v15663_v57 = vld [vmem:[%s19346_s5 + $0xf0] sm:$0xff]  }
 0x8be   :  { %14937 = vmatpush3.bf16.msra.mxu0 %v15654_v36  ;;  %v8144_v56 = vpop.f32.mrb[214].mxu1 }
 0x8bf   :  { %v8397_v29 = vadd.f32 %v18537_v37, %v8334_v52  ;;  %v8335_v24 = vadd.f32 %v8144_v56, %v18340_v48  ;;  %v14749_v38 = vpop.f32.mrb[215].mxu1  ;;  %14942 = vmatprep.subr.bf16.mxu0 %v15734_v0  ;;  %15009 = vmatpush3.bf16.msra.mxu1 %v15658_v10  ;;  %v15664_v10 = vld [vmem:[%s19346_s5 + $0x190] sm:$0xff]  }
 0x8c0   :  { %15022 = vmatprep.subr.bf16.mxu1 %v15734_v0 }
 0x8c1   :  { %v8398_v22 = vadd.f32 %v18537_v37, %v8335_v24  ;;  %14939 = vmatmul.mubr.msk.bf16.vlgmr.msra.gmra.mrb[40].mxu0 %vm8535_vm3, %v18684_v25  ;;  %v8453_v48 = vmax.f32 %v8397_v29, 0.0  ;;  %v15661_v25 = vld [vmem:[%s19346_s5 + $0xe8] sm:$0xff]  }
 0x8c2   :  { %14943 = vmatpush3.bf16.msra.mxu0 %v15655_v53  ;;  %14946 = vmatprep.mubr.msk.bf16.mxu0 %vm15735_vm0, %v15734_v0  ;;  %v15665_v53 = vld [vmem:[%s19346_s5 + $0xf8] sm:$0xff]  }
 0x8c3   :  { %v8454_v41 = vmax.f32 %v8398_v22, 0.0  ;;  %14944 = vmatprep.subr.bf16.mxu0 %v15734_v0 }
 0x8c4   :  { %v8149_v33 = vpop.f32.mrb[216].mxu1 }
 0x8c5   :  { %v8497_v27 = vpack.c.bf16 %v8454_v41, %v8453_v48  ;;  %v8336_v59 = vadd.f32 %v8149_v33, %v18346_v2  ;;  %v14752_v62 = vpop.f32.mrb[217].mxu1  ;;  %v15667_v33 = vld [vmem:[%s19346_s5 + $0x100] sm:$0xff]  }
 0x8c6   :  { %14945 = vmatpush3.bf16.msra.mxu0 %v15657_v9  ;;  %v8152_v55 = vpop.f32.mrb[218].mxu1 }
 0x8c7   :  { %v9797_v6 = vrot.slane %v8497_v27, 4  ;;  %v8399_v31 = vadd.f32 %v18537_v37, %v8336_v59  ;;  %v8337_v12 = vadd.f32 %v8152_v55, %v18349_v19  ;;  %v14753_v63 = vpop.f32.mrb[219].mxu1  ;;  %14950 = vmatprep.subr.bf16.mxu0 %v15734_v0  ;;  %v15668_v27 = vld [vmem:[%s19346_s5 + $0x1b0] sm:$0xff]   ;;  %v9431_v59 = vrot.slane %v18717_v18, 4 }
 0x8c9   :  { %v8400_v2 = vadd.f32 %v18537_v37, %v8337_v12  ;;  %14947 = vmatmul.mubr.msk.bf16.vlgmr.msra.gmra.mrb[44].mxu0 %vm8535_vm3, %v9309_v28  ;;  %15011 = vmatmul.mubr.msk.bf16.vlgmr.msra.gmra.mrb[56].mxu1 %vm8535_vm3, %v9797_v6  ;;  %v8455_v19 = vmax.f32 %v8399_v31, 0.0 }
 0x8ca   :  { %14951 = vmatpush3.bf16.msra.mxu0 %v15659_v32  ;;  %15023 = vmatpush3.bf16.msra.mxu1 %v15660_v7 }
 0x8cb   :  { %v8456_v46 = vmax.f32 %v8400_v2, 0.0  ;;  %14952 = vmatprep.subr.bf16.mxu0 %v15734_v0  ;;  %15024 = vmatprep.subr.bf16.mxu1 %v15734_v0 }
 0x8cc   :  { %v8157_v15 = vpop.f32.mrb[220].mxu1  ;;  %14954 = vmatprep.mubr.msk.bf16.mxu0 %vm15735_vm0, %v15734_v0  ;;  %15026 = vmatprep.mubr.msk.bf16.mxu1 %vm15735_vm0, %v15734_v0 }
 0x8cd   :  { %v18839_v20 = vpack.c.bf16 %v8456_v46, %v8455_v19  ;;  %v8338_v21 = vadd.f32 %v8157_v15, %v18355_v16  ;;  %v14756_v36 = vpop.f32.mrb[221].mxu1  ;;  %v15674_v46 = vld [vmem:[%s19346_s5 + $0x1d0] sm:$0xff]   ;;  %v15672_v15 = vld [vmem:[%s19346_s5 + $0x128] sm:$0xff]  }
 0x8ce   :  { %14953 = vmatpush3.bf16.msra.mxu0 %v15661_v25  ;;  %v8160_v47 = vpop.f32.mrb[222].mxu1  ;;  %15025 = vmatpush3.bf16.msra.mxu1 %v15662_v13  ;;  %v15671_v25 = vld [vmem:[%s19346_s5 + $0x120] sm:$0xff]  }
 0x8cf   :  { %v9919_v61 = vrot.slane %v18839_v20, 4  ;;  %v8401_v52 = vadd.f32 %v18537_v37, %v8338_v21  ;;  %v8339_v50 = vadd.f32 %v8160_v47, %v18358_v23  ;;  %v14757_v56 = vpop.f32.mrb[223].mxu1  ;;  %14958 = vmatprep.subr.bf16.mxu0 %v15734_v0  ;;  %15038 = vmatprep.subr.bf16.mxu1 %v15734_v0  ;;  %v15666_v23 = vld [vmem:[%s19346_s5 + $0x198] sm:$0xff]  }
 0x8d0   :  { %v15676_v21 = vld [vmem:[%s19346_s5 + $0x1d8] sm:$0xff]  }
 0x8d1   :  { %v8402_v16 = vadd.f32 %v18537_v37, %v8339_v50  ;;  %14955 = vmatmul.mubr.msk.bf16.vlgmr.msra.gmra.mrb[48].mxu0 %vm8535_vm3, %v18717_v18  ;;  %15027 = vmatmul.mubr.msk.bf16.vlgmr.msra.gmra.mrb[60].mxu1 %vm8535_vm3, %v9919_v61  ;;  %v8457_v29 = vmax.f32 %v8401_v52, 0.0  ;;  %v15669_v18 = vld [vmem:[%s19346_s5 + $0x108] sm:$0xff]  }
 0x8d2   :  { %14959 = vmatpush3.bf16.msra.mxu0 %v15663_v57  ;;  %15039 = vmatpush3.bf16.msra.mxu1 %v15664_v10  ;;  %v15673_v10 = vld [vmem:[%s19346_s5 + $0x140] sm:$0xff]  }
 0x8d3   :  { %v8458_v24 = vmax.f32 %v8402_v16, 0.0  ;;  %14960 = vmatprep.subr.bf16.mxu0 %v15734_v0  ;;  %15040 = vmatprep.subr.bf16.mxu1 %v15734_v0 }
 0x8d4   :  { %v8165_v38 = vpop.f32.mrb[224].mxu1  ;;  %14962 = vmatprep.mubr.msk.bf16.mxu0 %vm15735_vm0, %v15734_v0  ;;  %15042 = vmatprep.mubr.msk.bf16.mxu1 %vm15735_vm0, %v15734_v0 }
 0x8d5   :  { %v18869_v22 = vpack.c.bf16 %v8458_v24, %v8457_v29  ;;  %v8340_v9 = vadd.f32 %v8165_v38, %v18364_v44  ;;  %v14760_v48 = vpop.f32.mrb[225].mxu1  ;;  %v15677_v38 = vld [vmem:[%s19346_s5 + $0x160] sm:$0xff]  }
 0x8d6   :  { %14961 = vmatpush3.bf16.msra.mxu0 %v15665_v53  ;;  %v8168_v41 = vpop.f32.mrb[226].mxu1  ;;  %15041 = vmatpush3.bf16.msra.mxu1 %v15666_v23 }
 0x8d7   :  { %v10041_v62 = vrot.slane %v18869_v22, 4  ;;  %v8403_v55 = vadd.f32 %v18537_v37, %v8340_v9  ;;  %v8341_v44 = vadd.f32 %v8168_v41, %v18367_v8  ;;  %v14761_v32 = vpop.f32.mrb[227].mxu1  ;;  %14966 = vmatprep.subr.bf16.mxu0 %v15734_v0  ;;  %15054 = vmatprep.subr.bf16.mxu1 %v15734_v0  ;;  %v15670_v8 = vld [vmem:[%s19346_s5 + $0x1b8] sm:$0xff]   ;;  %v15678_v9 = vld [vmem:[%s19346_s5 + $0x1f0] sm:$0xff]  }
 0x8d9   :  { %v8404_v7 = vadd.f32 %v18537_v37, %v8341_v44  ;;  %14963 = vmatmul.mubr.msk.bf16.vlgmr.msra.gmra.mrb[52].mxu0 %vm8535_vm3, %v9431_v59  ;;  %15043 = vmatmul.mubr.msk.bf16.vlgmr.msra.gmra.mrb[64].mxu1 %vm8535_vm3, %v10041_v62  ;;  %v8459_v28 = vmax.f32 %v8403_v55, 0.0  ;;  %v15679_v59 = vld [vmem:[%s19346_s5 + $0x168] sm:$0xff]  }
 0x8da   :  { %14967 = vmatpush3.bf16.msra.mxu0 %v15667_v33  ;;  %15055 = vmatpush3.bf16.msra.mxu1 %v15668_v27 }
 0x8db   :  { %v8460_v6 = vmax.f32 %v8404_v7, 0.0  ;;  %14968 = vmatprep.subr.bf16.mxu0 %v15734_v0  ;;  %15056 = vmatprep.subr.bf16.mxu1 %v15734_v0 }
 0x8dc   :  { %v8173_v31 = vpop.f32.mrb[228].mxu1  ;;  %14970 = vmatprep.mubr.msk.bf16.mxu0 %vm15735_vm0, %v15734_v0  ;;  %15058 = vmatprep.mubr.msk.bf16.mxu1 %vm15735_vm0, %v15734_v0 }
 0x8dd   :  { %v18899_v12 = vpack.c.bf16 %v8460_v6, %v8459_v28  ;;  %v14764_v63 = vpop.f32.mrb[229].mxu1  ;;  %v15682_v28 = vld [vmem:[%s19346_s5 + $0x210] sm:$0xff]  }
 0x8de   :  { %14969 = vmatpush3.bf16.msra.mxu0 %v15669_v18  ;;  %v8175_v2 = vpop.f32.mrb[230].mxu1  ;;  %15057 = vmatpush3.bf16.msra.mxu1 %v15670_v8  ;;  %v15681_v8 = vld [vmem:[%s19346_s5 + $0x180] sm:$0xff]  }
 0x8df   :  { %v10163_v13 = vrot.slane %v18899_v12, 4  ;;  %v14765_v19 = vpop.f32.mrb[231].mxu1  ;;  %14982 = vmatprep.subr.bf16.mxu0 %v15734_v0  ;;  %15070 = vmatprep.subr.bf16.mxu1 %v15734_v0 }
 0x8e1   :  { %14971 = vmatmul.mubr.msk.bf16.vlgmr.msra.gmra.mrb[56].mxu0 %vm8535_vm3, %v18735_v43  ;;  %15059 = vmatmul.mubr.msk.bf16.vlgmr.msra.gmra.mrb[68].mxu1 %vm8535_vm3, %v10163_v13 }
 0x8e2   :  { %14983 = vmatpush3.bf16.msra.mxu0 %v15671_v25  ;;  %14986 = vmatprep.mubr.msk.bf16.mxu0 %vm15735_vm0, %v15734_v0  ;;  %v15683_v25 = vld [vmem:[%s19346_s5 + $0x188] sm:$0xff]  }
 0x8e3   :  { %14984 = vmatprep.subr.bf16.mxu0 %v15734_v0  ;;  %15071 = vmatpush3.bf16.msra.mxu1 %v15674_v46 }
 0x8e4   :  { %v8179_v36 = vpop.f32.mrb[232].mxu1  ;;  %15072 = vmatprep.subr.bf16.mxu1 %v15734_v0  ;;  %15074 = vmatprep.mubr.msk.bf16.mxu1 %vm15735_vm0, %v15734_v0 }
 0x8e5   :  { %v8342_v43 = vadd.f32 %v8179_v36, %v18376_v51  ;;  %v14768_v47 = vpop.f32.mrb[233].mxu1  ;;  %v15675_v51 = vld [vmem:[%s19346_s5 + $0x148] sm:$0xff]  }
 0x8e6   :  { %14985 = vmatpush3.bf16.msra.mxu0 %v15672_v15  ;;  %v8182_v57 = vpop.f32.mrb[234].mxu1 }
 0x8e7   :  { %v8405_v61 = vadd.f32 %v18537_v37, %v8342_v43  ;;  %v8343_v52 = vadd.f32 %v8182_v57, %v18379_v40  ;;  %v14769_v50 = vpop.f32.mrb[235].mxu1  ;;  %14998 = vmatprep.subr.bf16.mxu0 %v15734_v0  ;;  %15073 = vmatpush3.bf16.msra.mxu1 %v15676_v21  ;;  %v15685_v43 = vld [vmem:[%s19346_s5 + $0x1a0] sm:$0xff]  }
 0x8e8   :  { %15086 = vmatprep.subr.bf16.mxu1 %v15734_v0 }
 0x8e9   :  { %v8406_v56 = vadd.f32 %v18537_v37, %v8343_v52  ;;  %14987 = vmatmul.mubr.msk.bf16.vlgmr.msra.gmra.mrb[60].mxu0 %vm8535_vm3, %v18764_v26  ;;  %v8461_v40 = vmax.f32 %v8405_v61, 0.0  ;;  %v19018_v52 = vld [vmem:[%s19347_s4] ss:$0 sm:$0xff] }
 0x8ea   :  { %14999 = vmatpush3.bf16.msra.mxu0 %v15673_v10  ;;  %15002 = vmatprep.mubr.msk.bf16.mxu0 %vm15735_vm0, %v15734_v0 }
 0x8eb   :  { %v8462_v16 = vmax.f32 %v8406_v56, 0.0  ;;  %15000 = vmatprep.subr.bf16.mxu0 %v15734_v0 }
 0x8ec   :  { %v8187_v53 = vpop.f32.mrb[236].mxu1 }
 0x8ed   :  { %v18942_v23 = vpack.c.bf16 %v8462_v16, %v8461_v40  ;;  %v8344_v29 = vadd.f32 %v8187_v53, %v18385_v11  ;;  %v14772_v24 = vpop.f32.mrb[237].mxu1 }
 0x8ee   :  { %15001 = vmatpush3.bf16.msra.mxu0 %v15675_v51  ;;  %v8190_v26 = vpop.f32.mrb[238].mxu1  ;;  %v15690_v51 = vld [vmem:[%s19346_s5 + $0x238] sm:$0xff]   ;;  %v15687_v24 = vld [vmem:[%s19346_s5 + $0x1c0] sm:$0xff]  }
 0x8ef   :  { %v10285_v48 = vrot.slane %v18942_v23, 4  ;;  %v8407_v41 = vadd.f32 %v18537_v37, %v8344_v29  ;;  %v8345_v33 = vadd.f32 %v8190_v26, %v18388_v4  ;;  %v14773_v27 = vpop.f32.mrb[239].mxu1  ;;  %15014 = vmatprep.subr.bf16.mxu0 %v15734_v0  ;;  %v15680_v4 = vld [vmem:[%s19346_s5 + $0x1f8] sm:$0xff]  }
 0x8f1   :  { %v8408_v11 = vadd.f32 %v18537_v37, %v8345_v33  ;;  %15003 = vmatmul.mubr.msk.bf16.vlgmr.msra.gmra.mrb[64].mxu0 %vm8535_vm3, %v18794_v1  ;;  %15075 = vmatmul.mubr.msk.bf16.vlgmr.msra.gmra.mrb[72].mxu1 %vm8535_vm3, %v10285_v48  ;;  %v8463_v62 = vmax.f32 %v8407_v41, 0.0 }
 0x8f2   :  { %15015 = vmatpush3.bf16.msra.mxu0 %v15677_v38  ;;  %15087 = vmatpush3.bf16.msra.mxu1 %v15678_v9 }
 0x8f3   :  { %v8464_v55 = vmax.f32 %v8408_v11, 0.0  ;;  %15016 = vmatprep.subr.bf16.mxu0 %v15734_v0  ;;  %15088 = vmatprep.subr.bf16.mxu1 %v15734_v0  ;;  %v19414_v11 = vld [vmem:[#allocation8_spill] sm:$0xff] }
 0x8f4   :  { %v8195_v44 = vpop.f32.mrb[240].mxu1  ;;  %15018 = vmatprep.mubr.msk.bf16.mxu0 %vm15735_vm0, %v15734_v0  ;;  %15090 = vmatprep.mubr.msk.bf16.mxu1 %vm15735_vm0, %v15734_v0 }
 0x8f5   :  { %v18971_v1 = vpack.c.bf16 %v8464_v55, %v8463_v62  ;;  %v8346_v32 = vadd.f32 %v8195_v44, %v18394_v14  ;;  %v14776_v7 = vpop.f32.mrb[241].mxu1  ;;  %v15692_v55 = vld [vmem:[%s19346_s5 + $0x250] sm:$0xff]  }
 0x8f6   :  { %15017 = vmatpush3.bf16.msra.mxu0 %v15679_v59  ;;  %v8198_v18 = vpop.f32.mrb[242].mxu1  ;;  %15089 = vmatpush3.bf16.msra.mxu1 %v15680_v4  ;;  %v19415_v7 = vld [vmem:[#allocation9_spill] sm:$0xff] }
 0x8f7   :  { %v10407_v6 = vrot.slane %v18971_v1, 4  ;;  %v8409_v31 = vadd.f32 %v18537_v37, %v8346_v32  ;;  %v8347_v63 = vadd.f32 %v8198_v18, %v18397_v60  ;;  %v14777_v2 = vpop.f32.mrb[243].mxu1  ;;  %15030 = vmatprep.subr.bf16.mxu0 %v15734_v0  ;;  %15102 = vmatprep.subr.bf16.mxu1 %v15734_v0  ;;  %v15684_v60 = vld [vmem:[%s19346_s5 + $0x218] sm:$0xff]  }
 0x8f9   :  { %v8410_v14 = vadd.f32 %v18537_v37, %v8347_v63  ;;  %15019 = vmatmul.mubr.msk.bf16.vlgmr.msra.gmra.mrb[68].mxu0 %vm8535_vm3, %v18839_v20  ;;  %15091 = vmatmul.mubr.msk.bf16.vlgmr.msra.gmra.mrb[76].mxu1 %vm8535_vm3, %v10407_v6  ;;  %v8465_v13 = vmax.f32 %v8409_v31, 0.0  ;;  %v15693_v6 = vld [vmem:[%s19346_s5 + $0x1e8] sm:$0xff]   ;;  %v15694_v31 = vld [vmem:[%s19346_s5 + $0x258] sm:$0xff]  }
 0x8fa   :  { %15031 = vmatpush3.bf16.msra.mxu0 %v15681_v8  ;;  %15103 = vmatpush3.bf16.msra.mxu1 %v15682_v28 }
 0x8fb   :  { %v8466_v19 = vmax.f32 %v8410_v14, 0.0  ;;  %15032 = vmatprep.subr.bf16.mxu0 %v15734_v0  ;;  %15104 = vmatprep.subr.bf16.mxu1 %v15734_v0 }
 0x8fc   :  { %v8203_v46 = vpop.f32.mrb[244].mxu1  ;;  %15034 = vmatprep.mubr.msk.bf16.mxu0 %vm15735_vm0, %v15734_v0  ;;  %15106 = vmatprep.mubr.msk.bf16.mxu1 %vm15735_vm0, %v15734_v0 }
 0x8fd   :  { %v19001_v20 = vpack.c.bf16 %v8466_v19, %v8465_v13  ;;  %v8348_v15 = vadd.f32 %v8203_v46, %v18404_v5  ;;  %v14780_v21 = vpop.f32.mrb[245].mxu1  ;;  %v15688_v5 = vld [vmem:[%s19346_s5 + $0x230] sm:$0xff]   ;;  %v15695_v46 = vld [vmem:[%s19346_s5 + $0x200] sm:$0xff]  }
 0x8fe   :  { %15033 = vmatpush3.bf16.msra.mxu0 %v15683_v25  ;;  %v8206_v36 = vpop.f32.mrb[246].mxu1  ;;  %15105 = vmatpush3.bf16.msra.mxu1 %v15684_v60  ;;  %v19416_v25 = vld [vmem:[#allocation10_spill] sm:$0xff] }
 0x8ff   :  { %v10529_v47 = vrot.slane %v19001_v20, 4  ;;  %v8411_v57 = vadd.f32 %v18537_v37, %v8348_v15  ;;  %v8349_v10 = vadd.f32 %v8206_v36, %v18409_v58  ;;  %15046 = vmatprep.subr.bf16.mxu0 %v15734_v0  ;;  %v14781_v61 = vpop.f32.mrb[247].mxu1  ;;  %15118 = vmatprep.subr.bf16.mxu1 %v15734_v0  ;;  %v15686_v58 = vld [vmem:[%s19346_s5 + $0x1a8] sm:$0xff]   ;;  %v15696_v15 = vld [vmem:[%s19346_s5 + $0x270] sm:$0xff]  }
 0x901   :  { %v8412_v50 = vadd.f32 %v19018_v52, %v8349_v10  ;;  %15035 = vmatmul.mubr.msk.bf16.vlgmr.msra.gmra.mrb[72].mxu0 %vm8535_vm3, %v18869_v22  ;;  %15107 = vmatmul.mubr.msk.bf16.vlgmr.msra.gmra.mrb[80].mxu1 %vm8535_vm3, %v10529_v47  ;;  %v8467_v37 = vmax.f32 %v8411_v57, 0.0  ;;  %v15697_v10 = vld [vmem:[%s19346_s5 + $0x208] sm:$0xff]  }
 0x902   :  { %15047 = vmatpush3.bf16.msra.mxu0 %v15685_v43  ;;  %15050 = vmatprep.mubr.msk.bf16.mxu0 %vm15735_vm0, %v15734_v0 }
 0x903   :  { %v8468_v56 = vmax.f32 %v8412_v50, 0.0  ;;  %15048 = vmatprep.subr.bf16.mxu0 %v15734_v0  ;;  %15119 = vmatpush3.bf16.msra.mxu1 %v15688_v5 }
 0x904   :  { %v8211_v22 = vpop.f32.mrb[248].mxu1  ;;  %15120 = vmatprep.subr.bf16.mxu1 %v15734_v0  ;;  %15122 = vmatprep.mubr.msk.bf16.mxu1 %vm15735_vm0, %v15734_v0 }
 0x905   :  { %v19036_v40 = vpack.c.bf16 %v8468_v56, %v8467_v37  ;;  %v8350_v16 = vadd.f32 %v8211_v22, %v18416_v45  ;;  %v14784_v53 = vpop.f32.mrb[249].mxu1  ;;  %v15689_v45 = vld [vmem:[%s19346_s5 + $0x1c8] sm:$0xff]   ;;  %v15700_v22 = vld [vmem:[%s19346_s5 + $0x290] sm:$0xff]  }
 0x906   :  { %15049 = vmatpush3.bf16.msra.mxu0 %v15686_v58  ;;  %v8214_v29 = vpop.f32.mrb[250].mxu1 }
 0x907   :  { %v8413_v26 = vadd.f32 %v19018_v52, %v8350_v16  ;;  %v8351_v38 = vadd.f32 %v8214_v29, %v18424_v42  ;;  %v14785_v9 = vpop.f32.mrb[251].mxu1  ;;  %15062 = vmatprep.subr.bf16.mxu0 %v15734_v0  ;;  %15121 = vmatpush3.bf16.msra.mxu1 %v15690_v51  ;;  %v15699_v51 = vld [vmem:[%s19346_s5 + $0x220] sm:$0xff]  }
 0x908   :  { %15134 = vmatprep.subr.bf16.mxu1 %v15734_v0 }
 0x909   :  { %v8414_v48 = vadd.f32 %v19018_v52, %v8351_v38  ;;  %15051 = vmatmul.mubr.msk.bf16.vlgmr.msra.gmra.mrb[76].mxu0 %vm8535_vm3, %v18899_v12  ;;  %v8469_v42 = vmax.f32 %v8413_v26, 0.0  ;;  %v15691_v12 = vld [vmem:[%s19346_s5 + $0x1e0] sm:$0xff]   ;;  %v15701_v26 = vld [vmem:[%s19346_s5 + $0x228] sm:$0xff]  }
 0x90a   :  { %15063 = vmatpush3.bf16.msra.mxu0 %v15687_v24  ;;  %15066 = vmatprep.mubr.msk.bf16.mxu0 %vm15735_vm0, %v15734_v0 }
 0x90b   :  { %v8470_v41 = vmax.f32 %v8414_v48, 0.0  ;;  %15064 = vmatprep.subr.bf16.mxu0 %v15734_v0 }
 0x90c   :  { %v8219_v33 = vpop.f32.mrb[252].mxu1 }
 0x90d   :  { %v8505_v27 = vpack.c.bf16 %v8470_v41, %v8469_v42  ;;  %v8352_v59 = vadd.f32 %v8219_v33, %v19414_v11  ;;  %v14788_v4 = vpop.f32.mrb[253].mxu1  ;;  %v15703_v42 = vld [vmem:[%s19346_s5 + $0x240] sm:$0xff]   ;;  %v15706_v11 = vld [vmem:[%s19346_s5 + $0x2b0] sm:$0xff]  }
 0x90e   :  { %15065 = vmatpush3.bf16.msra.mxu0 %v15689_v45  ;;  %v8222_v62 = vpop.f32.mrb[254].mxu1  ;;  %v15708_v4 = vld [vmem:[%s19346_s5 + $0x2b8] sm:$0xff]  }
 0x90f   :  { %v10651_v44 = vrot.slane %v8505_v27, 4  ;;  %v8415_v32 = vadd.f32 %v19018_v52, %v8352_v59  ;;  %v8353_v18 = vadd.f32 %v8222_v62, %v19415_v7  ;;  %v14789_v8 = vpop.f32.mrb[255].mxu1  ;;  %15078 = vmatprep.subr.bf16.mxu0 %v15734_v0  ;;  %v15704_v59 = vld [vmem:[%s19346_s5 + $0x248] sm:$0xff]   ;;  %v19417_v7 = vld [vmem:[#allocation11_spill] sm:$0xff] }
 0x911   :  { %v8416_v28 = vadd.f32 %v19018_v52, %v8353_v18  ;;  %15067 = vmatmul.mubr.msk.bf16.vlgmr.msra.gmra.mrb[80].mxu0 %vm8535_vm3, %v18942_v23  ;;  %15123 = vmatmul.mubr.msk.bf16.vlgmr.msra.gmra.mrb[84].mxu1 %vm8535_vm3, %v10651_v44  ;;  %v8471_v63 = vmax.f32 %v8415_v32, 0.0  ;;  %v15705_v44 = vld [vmem:[%s19346_s5 + $0x260] sm:$0xff]  }
 0x912   :  { %15079 = vmatpush3.bf16.msra.mxu0 %v15691_v12  ;;  %15135 = vmatpush3.bf16.msra.mxu1 %v15692_v55 }
 0x913   :  { %v8472_v2 = vmax.f32 %v8416_v28, 0.0  ;;  %15080 = vmatprep.subr.bf16.mxu0 %v15734_v0  ;;  %15136 = vmatprep.subr.bf16.mxu1 %v15734_v0 }
 0x914   :  { %v8227_v14 = vpop.f32.mrb[0].mxu1  ;;  %15082 = vmatprep.mubr.msk.bf16.mxu0 %vm15735_vm0, %v15734_v0  ;;  %15138 = vmatprep.mubr.msk.bf16.mxu1 %vm15735_vm0, %v15734_v0 }
 0x915   :  { %v19081_v23 = vpack.c.bf16 %v8472_v2, %v8471_v63  ;;  %v8354_v60 = vadd.f32 %v8227_v14, %v19416_v25  ;;  %v14792_v13 = vpop.f32.mrb[1].mxu1 }
 0x916   :  { %15081 = vmatpush3.bf16.msra.mxu0 %v15693_v6  ;;  %v8230_v19 = vpop.f32.mrb[2].mxu1  ;;  %15137 = vmatpush3.bf16.msra.mxu1 %v15694_v31 }
 0x917   :  { %v10773_v21 = vrot.slane %v19081_v23, 4  ;;  %v8417_v36 = vadd.f32 %v19018_v52, %v8354_v60  ;;  %v8355_v43 = vadd.f32 %v8230_v19, %v18449_v3  ;;  %v14793_v47 = vpop.f32.mrb[3].mxu1  ;;  %15094 = vmatprep.subr.bf16.mxu0 %v15734_v0  ;;  %15150 = vmatprep.subr.bf16.mxu1 %v15734_v0  ;;  %v15698_v3 = vld [vmem:[%s19346_s5 + $0x278] sm:$0xff]  }
 0x919   :  { %v8418_v57 = vadd.f32 %v19018_v52, %v8355_v43  ;;  %15083 = vmatmul.mubr.msk.bf16.vlgmr.msra.gmra.mrb[84].mxu0 %vm8535_vm3, %v18971_v1  ;;  %15139 = vmatmul.mubr.msk.bf16.vlgmr.msra.gmra.mrb[88].mxu1 %vm8535_vm3, %v10773_v21  ;;  %v8473_v61 = vmax.f32 %v8417_v36, 0.0 }
 0x91a   :  { %15095 = vmatpush3.bf16.msra.mxu0 %v15695_v46  ;;  %15151 = vmatpush3.bf16.msra.mxu1 %v15696_v15  ;;  %v15709_v46 = vld [vmem:[%s19346_s5 + $0x280] sm:$0xff]   ;;  %v15710_v15 = vld [vmem:[%s19346_s5 + $0x2d0] sm:$0xff]  }
 0x91b   :  { %v8474_v5 = vmax.f32 %v8418_v57, 0.0  ;;  %15096 = vmatprep.subr.bf16.mxu0 %v15734_v0  ;;  %15152 = vmatprep.subr.bf16.mxu1 %v15734_v0 }
 0x91c   :  { %v8235_v50 = vpop.f32.mrb[4].mxu1  ;;  %15098 = vmatprep.mubr.msk.bf16.mxu0 %vm15735_vm0, %v15734_v0  ;;  %15154 = vmatprep.mubr.msk.bf16.mxu1 %vm15735_vm0, %v15734_v0 }
 0x91d   :  { %v19111_v1 = vpack.c.bf16 %v8474_v5, %v8473_v61  ;;  %v8356_v58 = vadd.f32 %v8235_v50, %v18455_v30  ;;  %v14796_v37 = vpop.f32.mrb[5].mxu1 }
 0x91e   :  { %15097 = vmatpush3.bf16.msra.mxu0 %v15697_v10  ;;  %v8238_v56 = vpop.f32.mrb[6].mxu1  ;;  %15153 = vmatpush3.bf16.msra.mxu1 %v15698_v3  ;;  %v15711_v10 = vld [vmem:[%s19346_s5 + $0x288] sm:$0xff]  }
 0x91f   :  { %v10895_v16 = vrot.slane %v19111_v1, 4  ;;  %v8419_v53 = vadd.f32 %v19018_v52, %v8356_v58  ;;  %v8357_v29 = vadd.f32 %v8238_v56, %v18458_v54  ;;  %v14797_v24 = vpop.f32.mrb[7].mxu1  ;;  %15110 = vmatprep.subr.bf16.mxu0 %v15734_v0  ;;  %15166 = vmatprep.subr.bf16.mxu1 %v15734_v0  ;;  %v15702_v54 = vld [vmem:[%s19346_s5 + $0x298] sm:$0xff]  }
 0x921   :  { %v8420_v30 = vadd.f32 %v19018_v52, %v8357_v29  ;;  %15099 = vmatmul.mubr.msk.bf16.vlgmr.msra.gmra.mrb[88].mxu0 %vm8535_vm3, %v19001_v20  ;;  %15155 = vmatmul.mubr.msk.bf16.vlgmr.msra.gmra.mrb[92].mxu1 %vm8535_vm3, %v10895_v16  ;;  %v8475_v38 = vmax.f32 %v8419_v53, 0.0  ;;  %v15713_v53 = vld [vmem:[%s19346_s5 + $0x2a0] sm:$0xff]   ;;  %v15714_v29 = vld [vmem:[%s19346_s5 + $0x2f0] sm:$0xff]  }
 0x922   :  { %15111 = vmatpush3.bf16.msra.mxu0 %v15699_v51  ;;  %15167 = vmatpush3.bf16.msra.mxu1 %v15700_v22 }
 0x923   :  { %v8476_v9 = vmax.f32 %v8420_v30, 0.0  ;;  %15112 = vmatprep.subr.bf16.mxu0 %v15734_v0  ;;  %15168 = vmatprep.subr.bf16.mxu1 %v15734_v0 }
 0x924   :  { %v8243_v48 = vpop.f32.mrb[8].mxu1  ;;  %15114 = vmatprep.mubr.msk.bf16.mxu0 %vm15735_vm0, %v15734_v0  ;;  %15170 = vmatprep.mubr.msk.bf16.mxu1 %vm15735_vm0, %v15734_v0 }
 0x925   :  { %v19141_v20 = vpack.c.bf16 %v8476_v9, %v8475_v38  ;;  %v14800_v45 = vpop.f32.mrb[9].mxu1  ;;  %v15715_v48 = vld [vmem:[%s19346_s5 + $0x2a8] sm:$0xff]  }
 0x926   :  { %15113 = vmatpush3.bf16.msra.mxu0 %v15701_v26  ;;  %15169 = vmatpush3.bf16.msra.mxu1 %v15702_v54  ;;  %v8245_v41 = vpop.f32.mrb[10].mxu1  ;;  %v15716_v45 = vld [vmem:[%s19346_s5 + $0x2f8] sm:$0xff]  }
 0x927   :  { %v11017_v33 = vrot.slane %v19141_v20, 4  ;;  %15126 = vmatprep.subr.bf16.mxu0 %v15734_v0  ;;  %v14801_v27 = vpop.f32.mrb[11].mxu1  ;;  %15182 = vmatprep.subr.bf16.mxu1 %v15734_v0 }
 0x929   :  { %15115 = vmatmul.mubr.msk.bf16.vlgmr.msra.gmra.mrb[92].mxu0 %vm8535_vm3, %v19036_v40  ;;  %15171 = vmatmul.mubr.msk.bf16.vlgmr.msra.gmra.mrb[96].mxu1 %vm8535_vm3, %v11017_v33 }
 0x92a   :  { %15127 = vmatpush3.bf16.msra.mxu0 %v15703_v42  ;;  %15130 = vmatprep.mubr.msk.bf16.mxu0 %vm15735_vm0, %v15734_v0 }
 0x92b   :  { %15128 = vmatprep.subr.bf16.mxu0 %v15734_v0  ;;  %15183 = vmatpush3.bf16.msra.mxu1 %v15706_v11 }
 0x92c   :  { %v8249_v62 = vpop.f32.mrb[12].mxu1  ;;  %15184 = vmatprep.subr.bf16.mxu1 %v15734_v0  ;;  %15186 = vmatprep.mubr.msk.bf16.mxu1 %vm15735_vm0, %v15734_v0 }
 0x92d   :  { %v8358_v40 = vadd.f32 %v8249_v62, %v18469_v17  ;;  %v14804_v12 = vpop.f32.mrb[13].mxu1  ;;  %v15707_v17 = vld [vmem:[%s19346_s5 + $0x268] sm:$0xff]  }
 0x92e   :  { %15129 = vmatpush3.bf16.msra.mxu0 %v15704_v59  ;;  %v8252_v55 = vpop.f32.mrb[14].mxu1 }
 0x92f   :  { %v8421_v32 = vadd.f32 %v19018_v52, %v8358_v40  ;;  %v8359_v18 = vadd.f32 %v8252_v55, %v19417_v7  ;;  %15142 = vmatprep.subr.bf16.mxu0 %v15734_v0  ;;  %v14805_v8 = vpop.f32.mrb[15].mxu1  ;;  %15185 = vmatpush3.bf16.msra.mxu1 %v15708_v4  ;;  %v15717_v55 = vld [vmem:[%s19346_s5 + $0x2c0] sm:$0xff]  }
 0x930   :  { %15198 = vmatprep.subr.bf16.mxu1 %v15734_v0  ;;  %v19419_v7 = vld [vmem:[#allocation12_spill] sm:$0xff] }
 0x931   :  { %v8422_v28 = vadd.f32 %v19018_v52, %v8359_v18  ;;  %15131 = vmatmul.mubr.msk.bf16.vlgmr.msra.gmra.mrb[96].mxu0 %vm8535_vm3, %v19081_v23  ;;  %v8477_v6 = vmax.f32 %v8421_v32, 0.0 }
 0x932   :  { %15143 = vmatpush3.bf16.msra.mxu0 %v15705_v44  ;;  %15146 = vmatprep.mubr.msk.bf16.mxu0 %vm15735_vm0, %v15734_v0 }
 0x933   :  { %v8478_v31 = vmax.f32 %v8422_v28, 0.0  ;;  %15144 = vmatprep.subr.bf16.mxu0 %v15734_v0 }
 0x934   :  { %v8257_v63 = vpop.f32.mrb[16].mxu1  ;;  %v8573_v2 = vpop.f32.mrb[248].mxu0 }
 0x935   :  { %v19184_v14 = vpack.c.bf16 %v8478_v31, %v8477_v6  ;;  %v8360_v25 = vadd.f32 %v8257_v63, %v18478_v34  ;;  %v14808_v60 = vpop.f32.mrb[17].mxu1  ;;  %v14844_v23 = vpop.f32.mrb[249].mxu0 }
 0x936   :  { %15145 = vmatpush3.bf16.msra.mxu0 %v15707_v17  ;;  %v8260_v13 = vpop.f32.mrb[18].mxu1  ;;  %v8576_v19 = vpop.f32.mrb[250].mxu0  ;;  %v15718_v17 = vld [vmem:[%s19346_s5 + $0x2c8] sm:$0xff]  }
 0x937   :  { %v11139_v21 = vrot.slane %v19184_v14, 4  ;;  %v8423_v36 = vadd.f32 %v19018_v52, %v8360_v25  ;;  %v8361_v43 = vadd.f32 %v8260_v13, %v18481_v49  ;;  %v14845_v34 = vpop.f32.mrb[251].mxu0  ;;  %15158 = vmatprep.subr.bf16.mxu0 %v15734_v0  ;;  %v14809_v47 = vpop.f32.mrb[19].mxu1  ;;  %v15712_v49 = vld [vmem:[%s19346_s5 + $0x2d8] sm:$0xff]   ;;  %v15719_v13 = vld [vmem:[%s19346_s5 + $0x2e0] sm:$0xff]  }
 0x939   :  { %v8424_v57 = vadd.f32 %v19018_v52, %v8361_v43  ;;  %15147 = vmatmul.mubr.msk.bf16.vlgmr.msra.gmra.mrb[100].mxu0 %vm8535_vm3, %v19111_v1  ;;  %15187 = vmatmul.mubr.msk.bf16.vlgmr.msra.gmra.mrb[100].mxu1 %vm8535_vm3, %v11139_v21  ;;  %v8479_v3 = vmax.f32 %v8423_v36, 0.0  ;;  %v15720_v21 = vld [vmem:[%s19346_s5 + $0x2e8] sm:$0xff]  }
 0x93a   :  { %15159 = vmatpush3.bf16.msra.mxu0 %v15709_v46  ;;  %15199 = vmatpush3.bf16.msra.mxu1 %v15710_v15 }
 0x93b   :  { %v8480_v61 = vmax.f32 %v8424_v57, 0.0  ;;  %15160 = vmatprep.subr.bf16.mxu0 %v15734_v0  ;;  %15200 = vmatprep.subr.bf16.mxu1 %v15734_v0 }
 0x93c   :  { %v8265_v5 = vpop.f32.mrb[20].mxu1  ;;  %v8628_v50 = vpop.f32.mrb[252].mxu0  ;;  %15162 = vmatprep.mubr.msk.bf16.mxu0 %vm15735_vm0, %v15734_v0  ;;  %15202 = vmatprep.mubr.msk.bf16.mxu1 %vm15735_vm0, %v15734_v0 }
 0x93d   :  { %v19213_v1 = vpack.c.bf16 %v8480_v61, %v8479_v3  ;;  %v8362_v58 = vadd.f32 %v8265_v5, %v18487_v35  ;;  %v8629_v37 = vadd.f32 %v8628_v50, %v8573_v2  ;;  %v14812_v56 = vpop.f32.mrb[21].mxu1  ;;  %v14852_v51 = vpop.f32.mrb[253].mxu0  ;;  %v19418_v35 = vld [vmem:[#allocation14_spill] sm:$0xff] }
 0x93e   :  { %15161 = vmatpush3.bf16.msra.mxu0 %v15711_v10  ;;  %v8268_v22 = vpop.f32.mrb[22].mxu1  ;;  %v8631_v16 = vpop.f32.mrb[254].mxu0  ;;  %15201 = vmatpush3.bf16.msra.mxu1 %v15712_v49  ;;  %v15721_v49 = vld [vmem:[%s19346_s5 + $0x300] sm:$0xff]   ;;  %v15722_v50 = vld [vmem:[%s19346_s5 + $0x308] sm:$0xff]  }
 0x93f   :  { %v11261_v24 = vrot.slane %v19213_v1, 4  ;;  %v8425_v30 = vadd.f32 %v19018_v52, %v8362_v58  ;;  %v8363_v26 = vadd.f32 %v8268_v22, %v19418_v35  ;;  %v14853_v54 = vpop.f32.mrb[255].mxu0  ;;  %15174 = vmatprep.subr.bf16.mxu0 %v15734_v0  ;;  %15214 = vmatprep.subr.bf16.mxu1 %v15734_v0  ;;  %v14813_v38 = vpop.f32.mrb[23].mxu1 }
 0x941   :  { %v8426_v9 = vadd.f32 %v19018_v52, %v8363_v26  ;;  %15163 = vmatmul.mubr.msk.bf16.vlgmr.msra.gmra.mrb[104].mxu0 %vm8535_vm3, %v19141_v20  ;;  %15203 = vmatmul.mubr.msk.bf16.vlgmr.msra.gmra.mrb[104].mxu1 %vm8535_vm3, %v11261_v24  ;;  %v8481_v42 = vmax.f32 %v8425_v30, 0.0 }
 0x942   :  { %15175 = vmatpush3.bf16.msra.mxu0 %v15713_v53  ;;  %15215 = vmatpush3.bf16.msra.mxu1 %v15714_v29 }
 0x943   :  { %v8482_v41 = vmax.f32 %v8426_v9, 0.0  ;;  %15176 = vmatprep.subr.bf16.mxu0 %v15734_v0  ;;  %15216 = vmatprep.subr.bf16.mxu1 %v15734_v0 }
 0x944   :  { %v8273_v33 = vpop.f32.mrb[24].mxu1  ;;  %v8687_v20 = vpop.f32.mrb[0].mxu0  ;;  %15178 = vmatprep.mubr.msk.bf16.mxu0 %vm15735_vm0, %v15734_v0  ;;  %15218 = vmatprep.mubr.msk.bf16.mxu1 %vm15735_vm0, %v15734_v0 }
 0x945   :  { %v8511_v27 = vpack.c.bf16 %v8482_v41, %v8481_v42  ;;  %v8364_v11 = vadd.f32 %v8273_v33, %v18497_v39  ;;  %v8693_v59 = vadd.f32 %v8687_v20, %v8629_v37  ;;  %v14816_v4 = vpop.f32.mrb[25].mxu1  ;;  %v14860_v62 = vpop.f32.mrb[1].mxu0 }
 0x946   :  { %15177 = vmatpush3.bf16.msra.mxu0 %v15715_v48  ;;  %v8276_v40 = vpop.f32.mrb[26].mxu1  ;;  %v8690_v12 = vpop.f32.mrb[2].mxu0  ;;  %15217 = vmatpush3.bf16.msra.mxu1 %v15716_v45 }
 0x947   :  { %v11383_v44 = vrot.slane %v8511_v27, 4  ;;  %v8427_v32 = vadd.f32 %v19018_v52, %v8364_v11  ;;  %v8365_v18 = vadd.f32 %v8276_v40, %v19419_v7  ;;  %v14861_v8 = vpop.f32.mrb[3].mxu0  ;;  %15190 = vmatprep.subr.bf16.mxu0 %v15734_v0  ;;  %v14817_v39 = vpop.f32.mrb[27].mxu1  ;;  %15230 = vmatprep.subr.bf16.mxu1 %v15734_v0 }
 0x949   :  { %v8428_v28 = vadd.f32 %v19018_v52, %v8365_v18  ;;  %15179 = vmatmul.mubr.msk.bf16.vlgmr.msra.gmra.mrb[108].mxu0 %vm8535_vm3, %v19184_v14  ;;  %15219 = vmatmul.mubr.msk.bf16.vlgmr.msra.gmra.mrb[108].mxu1 %vm8535_vm3, %v11383_v44  ;;  %v8483_v6 = vmax.f32 %v8427_v32, 0.0 }
 0x94a   :  { %15191 = vmatpush3.bf16.msra.mxu0 %v15717_v55  ;;  %15194 = vmatprep.mubr.msk.bf16.mxu0 %vm15735_vm0, %v15734_v0 }
 0x94b   :  { %v8484_v31 = vmax.f32 %v8428_v28, 0.0  ;;  %15192 = vmatprep.subr.bf16.mxu0 %v15734_v0  ;;  %15246 = vmatprep.mubr.msk.bf16.mxu1 %vm15735_vm0, %v15734_v0 }
 0x94c   :  { %v8749_v52 = vpop.f32.mrb[4].mxu0  ;;  %v8281_v63 = vpop.f32.mrb[28].mxu1 }
 0x94d   :  { %v8512_v2 = vpack.c.bf16 %v8484_v31, %v8483_v6  ;;  %v8755_v14 = vadd.f32 %v8749_v52, %v8693_v59  ;;  %v14868_v25 = vpop.f32.mrb[5].mxu0  ;;  %v14820_v60 = vpop.f32.mrb[29].mxu1 }
 0x94e   :  { %15193 = vmatpush3.bf16.msra.mxu0 %v15718_v17  ;;  %v8752_v23 = vpop.f32.mrb[6].mxu0  ;;  %v8283_v19 = vpop.f32.mrb[30].mxu1 }
 0x94f   :  { %v14869_v46 = vpop.f32.mrb[7].mxu0  ;;  %15206 = vmatprep.subr.bf16.mxu0 %v15734_v0  ;;  %v14821_v15 = vpop.f32.mrb[31].mxu1 }
 0x951   :  { %15195 = vmatmul.mubr.msk.bf16.vlgmr.msra.gmra.mrb[112].mxu0 %vm8535_vm3, %v19213_v1 }
 0x952   :  { %15207 = vmatpush3.bf16.msra.mxu0 %v15719_v13  ;;  %15210 = vmatprep.mubr.msk.bf16.mxu0 %vm15735_vm0, %v15734_v0 }
 0x953   :  { %15208 = vmatprep.subr.bf16.mxu0 %v15734_v0 }
 0x954   :  { %v8809_v36 = vpop.f32.mrb[8].mxu0  ;;  %v8287_v43 = vpop.f32.mrb[32].mxu1 }
 0x955   :  { %v8815_v34 = vadd.f32 %v8809_v36, %v8755_v14  ;;  %v14876_v47 = vpop.f32.mrb[9].mxu0  ;;  %v14824_v57 = vpop.f32.mrb[33].mxu1 }
 0x956   :  { %15209 = vmatpush3.bf16.msra.mxu0 %v15720_v21  ;;  %v8812_v10 = vpop.f32.mrb[10].mxu0  ;;  %v8289_v3 = vpop.f32.mrb[34].mxu1 }
 0x957   :  { %v14877_v61 = vpop.f32.mrb[11].mxu0  ;;  %15222 = vmatprep.subr.bf16.mxu0 %v15734_v0  ;;  %v14825_v5 = vpop.f32.mrb[35].mxu1 }
 0x959   :  { %15211 = vmatmul.mubr.msk.bf16.vlgmr.msra.gmra.mrb[116].mxu0 %vm8535_vm3, %v8511_v27 }
 0x95a   :  { %15223 = vmatpush3.bf16.msra.mxu0 %v15721_v49  ;;  %15226 = vmatprep.mubr.msk.bf16.mxu0 %vm15735_vm0, %v15734_v0 }
 0x95b   :  { %15224 = vmatprep.subr.bf16.mxu0 %v15734_v0 }
 0x95c   :  { %v8871_v1 = vpop.f32.mrb[12].mxu0  ;;  %v8293_v58 = vpop.f32.mrb[36].mxu1 }
 0x95d   :  { %v8877_v37 = vadd.f32 %v8871_v1, %v8815_v34  ;;  %v14884_v56 = vpop.f32.mrb[13].mxu0  ;;  %v14828_v51 = vpop.f32.mrb[37].mxu1 }
 0x95e   :  { %15225 = vmatpush3.bf16.msra.mxu0 %v15722_v50  ;;  %v8874_v22 = vpop.f32.mrb[14].mxu0  ;;  %v8295_v16 = vpop.f32.mrb[38].mxu1 }
 0x95f   :  { %v14885_v53 = vpop.f32.mrb[15].mxu0  ;;  %v14829_v29 = vpop.f32.mrb[39].mxu1  ;;  %v15723_v16 = vld [vmem:[%s19348_s7] sm:$0xff]  }
 0x960   :  { %v15724_v53 = vld [vmem:[%s19348_s7 + $0x8] sm:$0xff]   ;;  %15231 = vmatpush3.bf16.msra.mxu1 %v15723_v16 }
 0x961   :  { %15227 = vmatmul.mubr.msk.bf16.vlgmr.msra.gmra.mrb[120].mxu0 %vm8535_vm3, %v8512_v2  ;;  %15232 = vmatprep.subr.bf16.mxu1 %v15734_v0 }
 0x964   :  { %v8931_v24 = vpop.f32.mrb[16].mxu0  ;;  %v8299_v30 = vpop.f32.mrb[40].mxu1  ;;  %15233 = vmatpush3.bf16.msra.mxu1 %v15724_v53 }
 0x965   :  { %v8937_v35 = vadd.f32 %v8931_v24, %v8877_v37  ;;  %v14892_v26 = vpop.f32.mrb[17].mxu0  ;;  %v14832_v54 = vpop.f32.mrb[41].mxu1  ;;  %15234 = vmatprep.subr.bf16.mxu1 %v15734_v0 }
 0x966   :  { %v8934_v38 = vpop.f32.mrb[18].mxu0  ;;  %v8301_v9 = vpop.f32.mrb[42].mxu1 }
 0x967   :  { %v14893_v48 = vpop.f32.mrb[19].mxu0  ;;  %v14833_v45 = vpop.f32.mrb[43].mxu1  ;;  %v15725_v9 = vld [vmem:[%s19348_s7 + $0x10] sm:$0xff]  }
 0x968   :  { %15235 = vmatpush3.bf16.msra.mxu1 %v15725_v9 }
 0x969   :  { %15236 = vmatprep.subr.bf16.mxu1 %v15734_v0 }
 0x96c   :  { %v8993_v42 = vpop.f32.mrb[20].mxu0  ;;  %v8305_v41 = vpop.f32.mrb[44].mxu1 }
 0x96d   :  { %v8999_v33 = vadd.f32 %v8993_v42, %v8937_v35  ;;  %v14900_v20 = vpop.f32.mrb[21].mxu0  ;;  %v14836_v27 = vpop.f32.mrb[45].mxu1  ;;  %v15726_v42 = vld [vmem:[%s19348_s7 + $0x18] sm:$0xff]  }
 0x96e   :  { %v8996_v11 = vpop.f32.mrb[22].mxu0  ;;  %v8307_v59 = vpop.f32.mrb[46].mxu1  ;;  %15237 = vmatpush3.bf16.msra.mxu1 %v15726_v42 }
 0x96f   :  { %v14901_v4 = vpop.f32.mrb[23].mxu0  ;;  %v14837_v62 = vpop.f32.mrb[47].mxu1  ;;  %15238 = vmatprep.subr.bf16.mxu1 %v15734_v0 }
 0x970   :  { %v15727_v62 = vld [vmem:[%s19348_s7 + $0x20] sm:$0xff]  }
 0x972   :  { %15239 = vmatpush3.bf16.msra.mxu1 %v15727_v62 }
 0x973   :  { %15240 = vmatprep.subr.bf16.mxu1 %v15734_v0 }
 0x974   :  { %v9053_v40 = vpop.f32.mrb[24].mxu0 }
 0x975   :  { %v9059_v12 = vadd.f32 %v9053_v40, %v8999_v33  ;;  %v14908_v55 = vpop.f32.mrb[25].mxu0 }
 0x976   :  { %v9056_v44 = vpop.f32.mrb[26].mxu0  ;;  %v15728_v55 = vld [vmem:[%s19348_s7 + $0x28] sm:$0xff]  }
 0x977   :  { %v14909_v32 = vpop.f32.mrb[27].mxu0  ;;  %15241 = vmatpush3.bf16.msra.mxu1 %v15728_v55 }
 0x978   :  { %15242 = vmatprep.subr.bf16.mxu1 %v15734_v0 }
 0x97c   :  { %v9115_v7 = vpop.f32.mrb[28].mxu0 }
 0x97d   :  { %v9121_v18 = vadd.f32 %v9115_v7, %v9059_v12  ;;  %v14916_v8 = vpop.f32.mrb[29].mxu0 }
 0x97e   :  { %v9118_v39 = vpop.f32.mrb[30].mxu0 }
 0x97f   :  { %v14917_v28 = vpop.f32.mrb[31].mxu0 }
 0x984   :  { %v9175_v17 = vpop.f32.mrb[32].mxu0  ;;  %v19287_v6 = vpop.f32.mrb[48].mxu1 }
 0x985   :  { %v9181_v31 = vadd.f32 %v9175_v17, %v9121_v18  ;;  %v14924_v52 = vpop.f32.mrb[33].mxu0  ;;  %v14980_v63 = vpop.f32.mrb[49].mxu1 }
 0x986   :  { %v9178_v2 = vpop.f32.mrb[34].mxu0  ;;  %v9606_v14 = vpop.f32.mrb[50].mxu1  ;;  %v15729_v63 = vld [vmem:[%s19348_s7 + $0x30] sm:$0xff]  }
 0x987   :  { %v14925_v25 = vpop.f32.mrb[35].mxu0  ;;  %v14981_v60 = vpop.f32.mrb[51].mxu1  ;;  %15243 = vmatpush3.bf16.msra.mxu1 %v15729_v63 }
 0x988   :  { %v15730_v60 = vld [vmem:[%s19348_s7 + $0x38] sm:$0xff]   ;;  %15244 = vmatprep.subr.bf16.mxu1 %v15734_v0 }
 0x98b   :  { %15245 = vmatpush3.bf16.msra.mxu1 %v15730_v60 }
 0x98c   :  { %v9237_v23 = vpop.f32.mrb[36].mxu0  ;;  %v19289_v13 = vpop.f32.mrb[52].mxu1 }
 0x98d   :  { %v9243_v19 = vadd.f32 %v9237_v23, %v9181_v31  ;;  %v14932_v46 = vpop.f32.mrb[37].mxu0  ;;  %v14996_v15 = vpop.f32.mrb[53].mxu1 }
 0x98e   :  { %v9240_v21 = vpop.f32.mrb[38].mxu0  ;;  %v9728_v36 = vpop.f32.mrb[54].mxu1 }
 0x98f   :  { %v14933_v43 = vpop.f32.mrb[39].mxu0  ;;  %v14997_v34 = vpop.f32.mrb[55].mxu1 }
 0x994   :  { %v9297_v47 = vpop.f32.mrb[40].mxu0 }
 0x995   :  { %v9303_v57 = vadd.f32 %v9297_v47, %v9243_v19  ;;  %v14940_v10 = vpop.f32.mrb[41].mxu0 }
 0x996   :  { %v9300_v49 = vpop.f32.mrb[42].mxu0 }
 0x997   :  { %v14941_v3 = vpop.f32.mrb[43].mxu0 }
 0x99c   :  { %v9359_v61 = vpop.f32.mrb[44].mxu0  ;;  %v19291_v5 = vpop.f32.mrb[56].mxu1 }
 0x99d   :  { %v9365_v50 = vadd.f32 %v9359_v61, %v9303_v57  ;;  %v14948_v1 = vpop.f32.mrb[45].mxu0  ;;  %v15012_v58 = vpop.f32.mrb[57].mxu1 }
 0x99e   :  { %v9362_v37 = vpop.f32.mrb[46].mxu0  ;;  %v9850_v56 = vpop.f32.mrb[58].mxu1 }
 0x99f   :  { %v14949_v51 = vpop.f32.mrb[47].mxu0  ;;  %v15013_v22 = vpop.f32.mrb[59].mxu1 }
 0x9a4   :  { %v9419_v29 = vpop.f32.mrb[48].mxu0  ;;  %v19300_v24 = vpop.f32.mrb[60].mxu1 }
 0x9a5   :  { %v9425_v30 = vadd.f32 %v9419_v29, %v9365_v50  ;;  %v14956_v35 = vpop.f32.mrb[49].mxu0  ;;  %v15028_v26 = vpop.f32.mrb[61].mxu1 }
 0x9a6   :  { %v9422_v54 = vpop.f32.mrb[50].mxu0  ;;  %v9972_v38 = vpop.f32.mrb[62].mxu1 }
 0x9a7   :  { %v14957_v48 = vpop.f32.mrb[51].mxu0  ;;  %v15029_v45 = vpop.f32.mrb[63].mxu1 }
 0x9ac   :  { %v9481_v41 = vpop.f32.mrb[52].mxu0  ;;  %v19310_v33 = vpop.f32.mrb[64].mxu1 }
 0x9ad   :  { %v9487_v20 = vadd.f32 %v9481_v41, %v9425_v30  ;;  %v14964_v27 = vpop.f32.mrb[53].mxu0  ;;  %v15044_v11 = vpop.f32.mrb[65].mxu1 }
 0x9ae   :  { %v9484_v59 = vpop.f32.mrb[54].mxu0  ;;  %v10094_v4 = vpop.f32.mrb[66].mxu1 }
 0x9af   :  { %v14965_v40 = vpop.f32.mrb[55].mxu0  ;;  %v15045_v12 = vpop.f32.mrb[67].mxu1 }
 0x9b4   :  { %v9541_v44 = vpop.f32.mrb[56].mxu0  ;;  %v10213_v32 = vpop.f32.mrb[68].mxu1 }
 0x9b5   :  { %v9547_v7 = vadd.f32 %v9541_v44, %v9487_v20  ;;  %v14972_v18 = vpop.f32.mrb[57].mxu0  ;;  %v15060_v8 = vpop.f32.mrb[69].mxu1 }
 0x9b6   :  { %v9544_v39 = vpop.f32.mrb[58].mxu0  ;;  %v10216_v28 = vpop.f32.mrb[70].mxu1 }
 0x9b7   :  { %v14973_v17 = vpop.f32.mrb[59].mxu0  ;;  %v15061_v31 = vpop.f32.mrb[71].mxu1  ;;  %v9609_v52 = vadd.f32 %v19287_v6, %v9547_v7 }
 0x9bc   :  { %v9663_v2 = vpop.f32.mrb[60].mxu0 }
 0x9bd   :  { %v9669_v14 = vadd.f32 %v9663_v2, %v9609_v52  ;;  %v14988_v25 = vpop.f32.mrb[61].mxu0 }
 0x9be   :  { %v9666_v23 = vpop.f32.mrb[62].mxu0 }
 0x9bf   :  { %v14989_v19 = vpop.f32.mrb[63].mxu0  ;;  %v9731_v6 = vadd.f32 %v19289_v13, %v9669_v14 }
 0x9c4   :  { %v9785_v46 = vpop.f32.mrb[64].mxu0  ;;  %v10335_v15 = vpop.f32.mrb[72].mxu1 }
 0x9c5   :  { %v9791_v21 = vadd.f32 %v9785_v46, %v9731_v6  ;;  %v15004_v36 = vpop.f32.mrb[65].mxu0  ;;  %v15076_v43 = vpop.f32.mrb[73].mxu1 }
 0x9c6   :  { %v9788_v34 = vpop.f32.mrb[66].mxu0  ;;  %v10338_v47 = vpop.f32.mrb[74].mxu1 }
 0x9c7   :  { %v15005_v57 = vpop.f32.mrb[67].mxu0  ;;  %v15077_v10 = vpop.f32.mrb[75].mxu1  ;;  %v9853_v49 = vadd.f32 %v19291_v5, %v9791_v21 }
 0x9cc   :  { %v9907_v3 = vpop.f32.mrb[68].mxu0  ;;  %v10457_v61 = vpop.f32.mrb[76].mxu1 }
 0x9cd   :  { %v9913_v50 = vadd.f32 %v9907_v3, %v9853_v49  ;;  %v15020_v1 = vpop.f32.mrb[69].mxu0  ;;  %v15092_v0 = vpop.f32.mrb[77].mxu1 }
 0x9ce   :  { %v9910_v58 = vpop.f32.mrb[70].mxu0  ;;  %v10460_v37 = vpop.f32.mrb[78].mxu1 }
 0x9cf   :  { %v15021_v13 = vpop.f32.mrb[71].mxu0  ;;  %v15093_v56 = vpop.f32.mrb[79].mxu1  ;;  %v9975_v51 = vadd.f32 %v19300_v24, %v9913_v50 }
 0x9d4   :  { %v10029_v22 = vpop.f32.mrb[72].mxu0  ;;  %v10579_v16 = vpop.f32.mrb[80].mxu1 }
 0x9d5   :  { %v10035_v53 = vadd.f32 %v10029_v22, %v9975_v51  ;;  %v15036_v29 = vpop.f32.mrb[73].mxu0  ;;  %v15108_v30 = vpop.f32.mrb[81].mxu1 }
 0x9d6   :  { %v10032_v35 = vpop.f32.mrb[74].mxu0  ;;  %v10582_v26 = vpop.f32.mrb[82].mxu1 }
 0x9d7   :  { %v15037_v54 = vpop.f32.mrb[75].mxu0  ;;  %v15109_v5 = vpop.f32.mrb[83].mxu1  ;;  %v10097_v38 = vadd.f32 %v19310_v33, %v10035_v53 }
 0x9dc   :  { %v10151_v9 = vpop.f32.mrb[76].mxu0 }
 0x9dd   :  { %v10157_v48 = vadd.f32 %v10151_v9, %v10097_v38  ;;  %v15052_v45 = vpop.f32.mrb[77].mxu0 }
 0x9de   :  { %v10154_v42 = vpop.f32.mrb[78].mxu0 }
 0x9df   :  { %v15053_v41 = vpop.f32.mrb[79].mxu0  ;;  %v10219_v20 = vadd.f32 %v10213_v32, %v10157_v48 }
 0x9e4   :  { %v10273_v27 = vpop.f32.mrb[80].mxu0  ;;  %v10701_v11 = vpop.f32.mrb[84].mxu1 }
 0x9e5   :  { %v10279_v24 = vadd.f32 %v10273_v27, %v10219_v20  ;;  %v15068_v59 = vpop.f32.mrb[81].mxu0  ;;  %v15124_v4 = vpop.f32.mrb[85].mxu1 }
 0x9e6   :  { %v10276_v62 = vpop.f32.mrb[82].mxu0  ;;  %v10704_v40 = vpop.f32.mrb[86].mxu1 }
 0x9e7   :  { %v15069_v12 = vpop.f32.mrb[83].mxu0  ;;  %v15125_v55 = vpop.f32.mrb[87].mxu1  ;;  %v10341_v44 = vadd.f32 %v10335_v15, %v10279_v24 }
 0x9ec   :  { %v10395_v7 = vpop.f32.mrb[84].mxu0  ;;  %v10823_v18 = vpop.f32.mrb[88].mxu1 }
 0x9ed   :  { %v10401_v8 = vadd.f32 %v10395_v7, %v10341_v44  ;;  %v15084_v33 = vpop.f32.mrb[85].mxu0  ;;  %v15140_v39 = vpop.f32.mrb[89].mxu1 }
 0x9ee   :  { %v10398_v28 = vpop.f32.mrb[86].mxu0  ;;  %v10826_v17 = vpop.f32.mrb[90].mxu1 }
 0x9ef   :  { %v15085_v31 = vpop.f32.mrb[87].mxu0  ;;  %v15141_v52 = vpop.f32.mrb[91].mxu1  ;;  %v10463_v32 = vadd.f32 %v10457_v61, %v10401_v8 }
 0x9f4   :  { %v10517_v63 = vpop.f32.mrb[88].mxu0  ;;  %v10945_v2 = vpop.f32.mrb[92].mxu1 }
 0x9f5   :  { %v10523_v14 = vadd.f32 %v10517_v63, %v10463_v32  ;;  %v15100_v25 = vpop.f32.mrb[89].mxu0  ;;  %v15156_v60 = vpop.f32.mrb[93].mxu1 }
 0x9f6   :  { %v10520_v23 = vpop.f32.mrb[90].mxu0  ;;  %v10948_v19 = vpop.f32.mrb[94].mxu1 }
 0x9f7   :  { %v15101_v6 = vpop.f32.mrb[91].mxu0  ;;  %v15157_v46 = vpop.f32.mrb[95].mxu1  ;;  %v10585_v15 = vadd.f32 %v10579_v16, %v10523_v14  ;;  %v12623_v23 = vld [vmem:[%s19349_s6] ss:$0 sm:$0xff] }
 0x9fc   :  { %v10639_v21 = vpop.f32.mrb[92].mxu0  ;;  %v11067_v36 = vpop.f32.mrb[96].mxu1 }
 0x9fd   :  { %v10645_v43 = vadd.f32 %v10639_v21, %v10585_v15  ;;  %v15116_v34 = vpop.f32.mrb[93].mxu0  ;;  %v15172_v47 = vpop.f32.mrb[97].mxu1 }
 0x9fe   :  { %v10642_v57 = vpop.f32.mrb[94].mxu0  ;;  %v11070_v10 = vpop.f32.mrb[98].mxu1  ;;  %v12624_v34 = vld [vmem:[%s19350_s8] ss:$0 sm:$0xff] }
 0x9ff   :  { %v15117_v49 = vpop.f32.mrb[95].mxu0  ;;  %v15173_v3 = vpop.f32.mrb[99].mxu1  ;;  %v10707_v61 = vadd.f32 %v10701_v11, %v10645_v43 }
 0xa04   :  { %v10761_v50 = vpop.f32.mrb[96].mxu0 }
 0xa05   :  { %v10767_v1 = vadd.f32 %v10761_v50, %v10707_v61  ;;  %v15132_v0 = vpop.f32.mrb[97].mxu0 }
 0xa06   :  { %v10764_v58 = vpop.f32.mrb[98].mxu0 }
 0xa07   :  { %v15133_v37 = vpop.f32.mrb[99].mxu0  ;;  %v10829_v13 = vadd.f32 %v10823_v18, %v10767_v1 }
 0xa0c   :  { %v10883_v56 = vpop.f32.mrb[100].mxu0  ;;  %v11189_v51 = vpop.f32.mrb[100].mxu1 }
 0xa0d   :  { %v10889_v22 = vadd.f32 %v10883_v56, %v10829_v13  ;;  %v15148_v16 = vpop.f32.mrb[101].mxu0  ;;  %v15188_v53 = vpop.f32.mrb[101].mxu1 }
 0xa0e   :  { %v10886_v29 = vpop.f32.mrb[102].mxu0  ;;  %v11192_v30 = vpop.f32.mrb[102].mxu1 }
 0xa0f   :  { %v15149_v35 = vpop.f32.mrb[103].mxu0  ;;  %v15189_v26 = vpop.f32.mrb[103].mxu1  ;;  %v10951_v54 = vadd.f32 %v10945_v2, %v10889_v22 }
 0xa14   :  { %v11005_v5 = vpop.f32.mrb[104].mxu0  ;;  %v11311_v38 = vpop.f32.mrb[104].mxu1 }
 0xa15   :  { %v11011_v9 = vadd.f32 %v11005_v5, %v10951_v54  ;;  %v15164_v48 = vpop.f32.mrb[105].mxu0  ;;  %v15204_v45 = vpop.f32.mrb[105].mxu1 }
 0xa16   :  { %v11008_v42 = vpop.f32.mrb[106].mxu0  ;;  %v11314_v41 = vpop.f32.mrb[106].mxu1 }
 0xa17   :  { %v15165_v20 = vpop.f32.mrb[107].mxu0  ;;  %v15205_v27 = vpop.f32.mrb[107].mxu1  ;;  %v11073_v11 = vadd.f32 %v11067_v36, %v11011_v9 }
 0xa1c   :  { %v11127_v24 = vpop.f32.mrb[108].mxu0  ;;  %v11433_v59 = vpop.f32.mrb[108].mxu1 }
 0xa1d   :  { %v11133_v4 = vadd.f32 %v11127_v24, %v11073_v11  ;;  %v15180_v62 = vpop.f32.mrb[109].mxu0  ;;  %v15220_v40 = vpop.f32.mrb[109].mxu1 }
 0xa1e   :  { %v11130_v12 = vpop.f32.mrb[110].mxu0  ;;  %v11436_v55 = vpop.f32.mrb[110].mxu1 }
 0xa1f   :  { %v15181_v44 = vpop.f32.mrb[111].mxu0  ;;  %v15221_v7 = vpop.f32.mrb[111].mxu1  ;;  %v11195_v18 = vadd.f32 %v11189_v51, %v11133_v4 }
 0xa24   :  { %v11249_v8 = vpop.f32.mrb[112].mxu0 }
 0xa25   :  { %v11255_v33 = vadd.f32 %v11249_v8, %v11195_v18  ;;  %v15196_v39 = vpop.f32.mrb[113].mxu0 }
 0xa26   :  { %v11252_v28 = vpop.f32.mrb[114].mxu0 }
 0xa27   :  { %v15197_v17 = vpop.f32.mrb[115].mxu0  ;;  %v11317_v31 = vadd.f32 %v11311_v38, %v11255_v33 }
 0xa2c   :  { %v11371_v52 = vpop.f32.mrb[116].mxu0 }
 0xa2d   :  { %v11377_v32 = vadd.f32 %v11371_v52, %v11317_v31  ;;  %v15212_v63 = vpop.f32.mrb[117].mxu0 }
 0xa2e   :  { %v11374_v2 = vpop.f32.mrb[118].mxu0 }
 0xa2f   :  { %v15213_v14 = vpop.f32.mrb[119].mxu0  ;;  %v11439_v25 = vadd.f32 %v11433_v59, %v11377_v32 }
 0xa34   :  { %v11493_v60 = vpop.f32.mrb[120].mxu0 }
 0xa35   :  { %v11499_v19 = vadd.f32 %v11493_v60, %v11439_v25  ;;  %v15228_v6 = vpop.f32.mrb[121].mxu0 }
 0xa36   :  { %v11496_v46 = vpop.f32.mrb[122].mxu0 }
 0xa37   :  { %v11507_v15 = vadd.f32 %v12623_v23, %v11499_v19  ;;  %v15229_v21 = vpop.f32.mrb[123].mxu0 }
 0xa39   :  { %v11508_v36 = vmax.f32 %v11507_v15, 0.0 }
 0xa3b   :  { %v11509_v43 = vpack.c.bf16 %v11508_v36, %v11508_v36 }
 0xa3d   :  { %15247 = vmatmul.mubr.bf16.vlgmr.msra.gmra.mrb[112].mxu1 %v11509_v43 }
 0xb10   :  { %v11615_v47 = vpop.f32.mrb[112].mxu1 }
 0xb11   :  { %v11616_v57 = vadd.f32 %v12624_v34, %v11615_v47  ;;  %v15248_v10 = vpop.f32.mrb[113].mxu1 }
 0xb12   :  { %v11618_v49 = vpop.f32.mrb[114].mxu1 }
 0xb13   :  { %11622 = vst.msk [vmem:[%s19351_s9] sm:$0xff] %vm11621_vm4, %v11616_v57  ;;  %v15249_v3 = vpop.f32.mrb[115].mxu1 }

</bundles_post_ra>
